<compile_context>
chip_gen: v5e
topology: v5e:2x2
jax: 0.10.0
libtpu: 0.0.40
codegen_flags: <defaults>
</compile_context>

<pallas_src>
import functools

import jax
import jax.numpy as jnp
from jax.experimental import pallas as pl
from jax.experimental.pallas import tpu as pltpu

EPS = 1e-5
_F32 = jnp.float32
_HIGHEST = jax.lax.Precision.HIGHEST
_DEFAULT = jax.lax.Precision.DEFAULT


def ff_kernel(x_ref, p_ref, w1_ref, b1_ref, w2_ref, b2_ref,
              g1_ref, be1_ref, g2_ref, be2_ref, o_ref, *, hidden_chunk):
    """One (batch, H-tile) block.

    x_ref : (1, C, hw_t)   lane-dense pixels (hw_t = h_tile * W)
    p_ref : (hw_t, hw_t)   f32 segment-mean matrix (1/W iff same d_model row)
    w1    : (2C, C) bf16/f32, w2: (C, 2C);  b1: (2C,1), b2: (C,1) f32
    g*/be*: (1, hw_t) f32  (LayerNorm affine, tiled to the block layout)
    """
    x = x_ref[0].astype(_F32)                 # (C, hw_t); LN math in f32
    P = p_ref[...]                            # (hw_t, hw_t)

    # ---- LayerNorm 1 over d_model, fully lane-dense (no relayout). ----------
    mu = jnp.dot(x, P, preferred_element_type=_F32, precision=_HIGHEST)
    d = x - mu
    var = jnp.dot(d * d, P, preferred_element_type=_F32, precision=_HIGHEST)
    xn = d * jax.lax.rsqrt(var + EPS) * g1_ref[...] + be1_ref[...]   # (C, hw_t)

    # ---- 1x1 convs as per-pixel matmuls, hidden dim chunked. ----------------
    cdt = w1_ref.dtype                        # bf16 by default (f32 in exact mode)
    conv_prec = _HIGHEST if cdt == jnp.float32 else _DEFAULT
    xn_m = xn.astype(cdt)
    two_c = w1_ref.shape[0]
    n_chunks = (two_c + hidden_chunk - 1) // hidden_chunk
    y = None
    for i in range(n_chunks):
        c0 = i * hidden_chunk
        c1 = min(c0 + hidden_chunk, two_c)
        h = jnp.dot(w1_ref[c0:c1, :], xn_m,
                    preferred_element_type=_F32, precision=conv_prec)
        h = jnp.maximum(h + b1_ref[c0:c1, :], 0.0)        # bias + relu, f32
        # TODO(synk): dropout(p=0.1) is identity in eval mode; training-mode
        # dropout (pltpu.prng_*) is not implemented.
        t = jnp.dot(w2_ref[:, c0:c1], h.astype(cdt),
                    preferred_element_type=_F32, precision=conv_prec)
        y = t if y is None else y + t
    y = y + b2_ref[...]                                    # (C, hw_t)

    # ---- residual (uses the *normed* x, as in the PyTorch forward) + LN 2. --
    z = xn + y
    mu2 = jnp.dot(z, P, preferred_element_type=_F32, precision=_HIGHEST)
    d2 = z - mu2
    var2 = jnp.dot(d2 * d2, P, preferred_element_type=_F32, precision=_HIGHEST)
    out = d2 * jax.lax.rsqrt(var2 + EPS) * g2_ref[...] + be2_ref[...]

    o_ref[0] = out.astype(o_ref.dtype)


def _vmem_limit_bytes():
    cap = 64 * 1024 * 1024                    # conservative fallback (v7x-sized)
    try:
        cap = int(getattr(pltpu.get_tpu_info(), "vmem_capacity_bytes", cap))
    except Exception:
        pass
    # Leave headroom for the compiler; 100 MiB max on 128 MiB parts, 48 MiB on v7x.
    return max(32 * 1024 * 1024, min(cap - 16 * 1024 * 1024, 100 * 1024 * 1024))


def _pick_h_tile(B, C, H, W, io_bytes, hidden_chunk, vmem_budget):
    """Largest H-tile whose VMEM footprint fits; prefer an even, >=2-step grid."""
    def footprint(h):
        hwt = h * W
        hid = min(2 * C, hidden_chunk)
        return (4 * C * hwt * io_bytes             # in + out blocks, double-buffered
                + 2 * hwt * hwt * 4                # segment-mean matrix
                + 8 * hwt * 4                      # tiled gamma/beta
                + (8 * C + 2 * hid) * hwt * 4)     # live f32 intermediates (rough)

    cands = [h for h in range(1, H + 1)
             if H % h == 0 and ((h * W) % 128 == 0 or h == H)]
    cands.sort(reverse=True)
    fitting = [h for h in cands if footprint(h) <= 0.6 * vmem_budget] or [cands[-1]]
    steps = lambda h: B * (H // h)
    for h in fitting:                              # both TensorCores busy & balanced
        if steps(h) >= 2 and steps(h) % 2 == 0:
            return h
    for h in fitting:
        if steps(h) >= 2:
            return h
    return fitting[0]


def feed_forward(x_nchw, params, *, h_tile=None, hidden_chunk=256,
                 matmul_dtype=jnp.bfloat16, vmem_limit_bytes=None):
    """x_nchw: (B, C, H, W) with W == d_model. Returns same shape and dtype."""
    B, C, H, W = x_nchw.shape
    w1, b1, w2, b2, g1, be1, g2, be2 = params

    if vmem_limit_bytes is None:
        vmem_limit_bytes = _vmem_limit_bytes()
    io_bytes = jnp.dtype(x_nchw.dtype).itemsize
    if h_tile is None:
        h_tile = _pick_h_tile(B, C, H, W, io_bytes, hidden_chunk, vmem_limit_bytes)
    assert H % h_tile == 0, "h_tile must divide H"
    assert h_tile == H or (h_tile * W) % 128 == 0, \
        "tiled last block dim must be a multiple of 128 lanes"
    n_ht = H // h_tile
    hw_t = h_tile * W

    # Free reshape (contiguous (H, W) -> H*W): pixels stay lane-dense, no transpose.
    x2 = x_nchw.reshape(B, C, H * W)

    # Matmul operands in matmul_dtype (bf16 => native MXU); biases / LN params f32.
    w1_k = w1.astype(matmul_dtype)
    w2_k = w2.astype(matmul_dtype)
    b1_2d = b1.astype(_F32).reshape(2 * C, 1)
    b2_2d = b2.astype(_F32).reshape(C, 1)

    # LayerNorm affine params tiled to the lane-dense block layout (period W).
    g1f = jnp.tile(g1.astype(_F32), h_tile).reshape(1, hw_t)
    be1f = jnp.tile(be1.astype(_F32), h_tile).reshape(1, hw_t)
    g2f = jnp.tile(g2.astype(_F32), h_tile).reshape(1, hw_t)
    be2f = jnp.tile(be2.astype(_F32), h_tile).reshape(1, hw_t)

    # Segment-mean matrix: P[p, q] = 1/W iff p and q lie in the same d_model row.
    seg = jnp.arange(hw_t, dtype=jnp.int32) // W
    P = jnp.where(seg[:, None] == seg[None, :], 1.0 / W, 0.0).astype(_F32)

    kern = functools.partial(ff_kernel, hidden_chunk=hidden_chunk)

    def build(single_buffer_params):
        pipe = dict(pipeline_mode=pl.Buffered(1)) if single_buffer_params else {}
        rep = lambda shp: pl.BlockSpec(shp, lambda b, t: (0, 0), **pipe)
        return pl.pallas_call(
            kern,
            out_shape=jax.ShapeDtypeStruct((B, C, H * W), x_nchw.dtype),
            grid_spec=pltpu.PrefetchScalarGridSpec(
                num_scalar_prefetch=0,
                grid=(B, n_ht),
                in_specs=[
                    pl.BlockSpec((1, C, hw_t), lambda b, t: (b, 0, t)),   # x
                    rep((hw_t, hw_t)),                                    # P
                    rep((2 * C, C)),                                      # w1
                    rep((2 * C, 1)),                                      # b1
                    rep((C, 2 * C)),                                      # w2
                    rep((C, 1)),                                          # b2
                    rep((1, hw_t)), rep((1, hw_t)),                       # gamma1/beta1
                    rep((1, hw_t)), rep((1, hw_t)),                       # gamma2/beta2
                ],
                out_specs=pl.BlockSpec((1, C, hw_t), lambda b, t: (b, 0, t)),
            ),
            compiler_params=pltpu.CompilerParams(
                dimension_semantics=("parallel", "parallel"),
                vmem_limit_bytes=vmem_limit_bytes,
            ),
        )

    args = (x2, P, w1_k, b1_2d, w2_k, b2_2d, g1f, be1f, g2f, be2f)
    try:
        out2 = build(True)(*args)      # replicated params single-buffered
    except Exception:
        out2 = build(False)(*args)     # fall back if Buffered(1) unsupported
    return out2.reshape(B, C, H, W)


def feed_forward_ref(x, params):
    """Pure-JAX reference (matches PyTorch eval-mode forward)."""
    w1, b1, w2, b2, g1, be1, g2, be2 = params

    def ln(v, g, b):
        mu = jnp.mean(v, axis=-1, keepdims=True)
        var = jnp.mean((v - mu) ** 2, axis=-1, keepdims=True)
        return (v - mu) * jax.lax.rsqrt(var + EPS) * g + b

    xn = ln(x, g1, be1)
    h = jnp.einsum('oc,bchw->bohw', w1, xn) + b1[None, :, None, None]
    h = jnp.maximum(h, 0.0)
    y = jnp.einsum('oc,bchw->bohw', w2, h) + b2[None, :, None, None]
    return ln(xn + y, g2, be2)


if __name__ == "__main__":
    # Exact f32 matmuls for the pure-JAX reference (kernel precisions are explicit).
    jax.config.update("jax_default_matmul_precision", "highest")

    B, C, H, d_model = 2, 4, 16, 16          # W == d_model for LayerNorm(d_model)

    key = jax.random.PRNGKey(0)
    ks = jax.random.split(key, 10)

    x = jax.random.normal(ks[0], (B, C, H, d_model), dtype=jnp.float32)
    w1 = jax.random.normal(ks[1], (2 * C, C), dtype=jnp.float32) * 0.1
    b1 = jax.random.normal(ks[2], (2 * C,), dtype=jnp.float32) * 0.1
    w2 = jax.random.normal(ks[3], (C, 2 * C), dtype=jnp.float32) * 0.1
    b2 = jax.random.normal(ks[4], (C,), dtype=jnp.float32) * 0.1
    g1 = 1.0 + 0.1 * jax.random.normal(ks[5], (d_model,), dtype=jnp.float32)
    be1 = 0.1 * jax.random.normal(ks[6], (d_model,), dtype=jnp.float32)
    g2 = 1.0 + 0.1 * jax.random.normal(ks[7], (d_model,), dtype=jnp.float32)
    be2 = 0.1 * jax.random.normal(ks[8], (d_model,), dtype=jnp.float32)
    params = (w1, b1, w2, b2, g1, be1, g2, be2)

    ref = feed_forward_ref(x, params)

    # Test 1: exact path (f32 matmul operands), auto tile/grid selection.
    out_f32 = jax.block_until_ready(feed_forward(x, params, matmul_dtype=jnp.float32))
    assert out_f32.shape == (B, C, H, d_model)
    assert jnp.allclose(out_f32, ref, atol=1e-3, rtol=1e-3), "f32 path mismatch"

    # Test 2: default bf16 matmul operands + explicit H-tiling (hw_t = 128 lanes).
    H2 = 32
    x_big = jax.random.normal(ks[9], (B, C, H2, d_model), dtype=jnp.float32)
    out_bf = jax.block_until_ready(feed_forward(x_big, params, h_tile=8))
    ref_big = feed_forward_ref(x_big, params)
    assert jnp.allclose(out_bf, ref_big, atol=2e-2, rtol=2e-2), "bf16-matmul mismatch"

    # Test 3: bf16 input/output (HBM-bandwidth-bound case); LN stats remain f32.
    x_bf16 = x.astype(jnp.bfloat16)
    out_io = jax.block_until_ready(feed_forward(x_bf16, params))
    assert out_io.dtype == jnp.bfloat16
    ref_io = feed_forward_ref(x_bf16.astype(jnp.float32), params)
    assert jnp.allclose(out_io.astype(jnp.float32), ref_io, atol=5e-2, rtol=5e-2), \
        "bf16 I/O path mismatch"

    print("KERNEL_OK")
</pallas_src>

<mosaic_0001>
module attributes {stable_mosaic.version = 11 : i64} {
  func.func @ff_kernel(%arg0: i32, %arg1: i32, %arg2: memref<1x4x256xf32, #tpu.memory_space<vmem>>, %arg3: memref<256x256xf32, #tpu.memory_space<vmem>>, %arg4: memref<8x4xf32, #tpu.memory_space<vmem>>, %arg5: memref<8x1xf32, #tpu.memory_space<vmem>>, %arg6: memref<4x8xf32, #tpu.memory_space<vmem>>, %arg7: memref<4x1xf32, #tpu.memory_space<vmem>>, %arg8: memref<1x256xf32, #tpu.memory_space<vmem>>, %arg9: memref<1x256xf32, #tpu.memory_space<vmem>>, %arg10: memref<1x256xf32, #tpu.memory_space<vmem>>, %arg11: memref<1x256xf32, #tpu.memory_space<vmem>>, %arg12: memref<1x4x256xf32, #tpu.memory_space<vmem>>) attributes {dimension_semantics = [#tpu.dimension_semantics<parallel>, #tpu.dimension_semantics<parallel>], iteration_bounds = array<i64: 2, 1>, scalar_prefetch = 0 : i64, scratch_operands = 0 : i64, tpu.core_type = #tpu.core_type<tc>, window_params = [{transform_indices = @transform_0, window_bounds = array<i64: 1, 4, 256>}, {pipeline_mode = #tpu.pipeline_mode<synchronous>, transform_indices = @transform_1, window_bounds = array<i64: 256, 256>}, {pipeline_mode = #tpu.pipeline_mode<synchronous>, transform_indices = @transform_2, window_bounds = array<i64: 8, 4>}, {pipeline_mode = #tpu.pipeline_mode<synchronous>, transform_indices = @transform_3, window_bounds = array<i64: 8, 1>}, {pipeline_mode = #tpu.pipeline_mode<synchronous>, transform_indices = @transform_4, window_bounds = array<i64: 4, 8>}, {pipeline_mode = #tpu.pipeline_mode<synchronous>, transform_indices = @transform_5, window_bounds = array<i64: 4, 1>}, {pipeline_mode = #tpu.pipeline_mode<synchronous>, transform_indices = @transform_6, window_bounds = array<i64: 1, 256>}, {pipeline_mode = #tpu.pipeline_mode<synchronous>, transform_indices = @transform_7, window_bounds = array<i64: 1, 256>}, {pipeline_mode = #tpu.pipeline_mode<synchronous>, transform_indices = @transform_8, window_bounds = array<i64: 1, 256>}, {pipeline_mode = #tpu.pipeline_mode<synchronous>, transform_indices = @transform_9, window_bounds = array<i64: 1, 256>}, {transform_indices = @transform_10, window_bounds = array<i64: 1, 4, 256>}]} {
    %c0 = arith.constant 0 : index
    %c0_0 = arith.constant 0 : index
    %c0_1 = arith.constant 0 : index
    %0 = vector.load %arg2[%c0, %c0_0, %c0_1] : memref<1x4x256xf32, #tpu.memory_space<vmem>>, vector<1x4x256xf32>
    %1 = vector.shape_cast %0 : vector<1x4x256xf32> to vector<4x256xf32>
    %c0_2 = arith.constant 0 : index
    %c0_3 = arith.constant 0 : index
    %2 = vector.load %arg3[%c0_2, %c0_3] : memref<256x256xf32, #tpu.memory_space<vmem>>, vector<256x256xf32>
    %cst = arith.constant dense<0.000000e+00> : vector<4x256xf32>
    %3 = tpu.matmul %1, %2, %cst {dimension_numbers = #tpu.dot_dimension_numbers<[1], [0], [0], [1], [0, 0, 1, 1], [], []>, precision = #tpu.contract_precision<fp32>} : vector<4x256xf32>, vector<256x256xf32>, vector<4x256xf32> -> vector<4x256xf32>
    %4 = arith.subf %1, %3 : vector<4x256xf32>
    %5 = arith.mulf %4, %4 : vector<4x256xf32>
    %cst_4 = arith.constant dense<0.000000e+00> : vector<4x256xf32>
    %6 = tpu.matmul %5, %2, %cst_4 {dimension_numbers = #tpu.dot_dimension_numbers<[1], [0], [0], [1], [0, 0, 1, 1], [], []>, precision = #tpu.contract_precision<fp32>} : vector<4x256xf32>, vector<256x256xf32>, vector<4x256xf32> -> vector<4x256xf32>
    %cst_5 = arith.constant 9.99999974E-6 : f32
    %7 = vector.broadcast %cst_5 : f32 to vector<4x256xf32>
    %8 = arith.addf %6, %7 : vector<4x256xf32>
    %9 = math.rsqrt %8 : vector<4x256xf32>
    %10 = arith.mulf %4, %9 : vector<4x256xf32>
    %c0_6 = arith.constant 0 : index
    %c0_7 = arith.constant 0 : index
    %11 = vector.load %arg8[%c0_6, %c0_7] : memref<1x256xf32, #tpu.memory_space<vmem>>, vector<1x256xf32>
    %12 = vector.broadcast %11 : vector<1x256xf32> to vector<4x256xf32>
    %13 = arith.mulf %10, %12 : vector<4x256xf32>
    %c0_8 = arith.constant 0 : index
    %c0_9 = arith.constant 0 : index
    %14 = vector.load %arg9[%c0_8, %c0_9] : memref<1x256xf32, #tpu.memory_space<vmem>>, vector<1x256xf32>
    %15 = vector.broadcast %14 : vector<1x256xf32> to vector<4x256xf32>
    %16 = arith.addf %13, %15 : vector<4x256xf32>
    %c0_10 = arith.constant 0 : index
    %c0_11 = arith.constant 0 : index
    %17 = vector.load %arg4[%c0_10, %c0_11] : memref<8x4xf32, #tpu.memory_space<vmem>>, vector<8x4xf32>
    %cst_12 = arith.constant dense<0.000000e+00> : vector<8x256xf32>
    %18 = tpu.matmul %17, %16, %cst_12 {dimension_numbers = #tpu.dot_dimension_numbers<[1], [0], [0], [1], [0, 0, 1, 1], [], []>, precision = #tpu.contract_precision<fp32>} : vector<8x4xf32>, vector<4x256xf32>, vector<8x256xf32> -> vector<8x256xf32>
    %c0_13 = arith.constant 0 : index
    %c0_14 = arith.constant 0 : index
    %19 = vector.load %arg5[%c0_13, %c0_14] : memref<8x1xf32, #tpu.memory_space<vmem>>, vector<8x1xf32>
    %20 = vector.broadcast %19 : vector<8x1xf32> to vector<8x256xf32>
    %21 = arith.addf %18, %20 : vector<8x256xf32>
    %cst_15 = arith.constant 0.000000e+00 : f32
    %22 = vector.broadcast %cst_15 : f32 to vector<8x256xf32>
    %23 = arith.maximumf %21, %22 : vector<8x256xf32>
    %c0_16 = arith.constant 0 : index
    %c0_17 = arith.constant 0 : index
    %24 = vector.load %arg6[%c0_16, %c0_17] : memref<4x8xf32, #tpu.memory_space<vmem>>, vector<4x8xf32>
    %cst_18 = arith.constant dense<0.000000e+00> : vector<4x256xf32>
    %25 = tpu.matmul %24, %23, %cst_18 {dimension_numbers = #tpu.dot_dimension_numbers<[1], [0], [0], [1], [0, 0, 1, 1], [], []>, precision = #tpu.contract_precision<fp32>} : vector<4x8xf32>, vector<8x256xf32>, vector<4x256xf32> -> vector<4x256xf32>
    %c0_19 = arith.constant 0 : index
    %c0_20 = arith.constant 0 : index
    %26 = vector.load %arg7[%c0_19, %c0_20] : memref<4x1xf32, #tpu.memory_space<vmem>>, vector<4x1xf32>
    %27 = vector.broadcast %26 : vector<4x1xf32> to vector<4x256xf32>
    %28 = arith.addf %25, %27 : vector<4x256xf32>
    %29 = arith.addf %16, %28 : vector<4x256xf32>
    %cst_21 = arith.constant dense<0.000000e+00> : vector<4x256xf32>
    %30 = tpu.matmul %29, %2, %cst_21 {dimension_numbers = #tpu.dot_dimension_numbers<[1], [0], [0], [1], [0, 0, 1, 1], [], []>, precision = #tpu.contract_precision<fp32>} : vector<4x256xf32>, vector<256x256xf32>, vector<4x256xf32> -> vector<4x256xf32>
    %31 = arith.subf %29, %30 : vector<4x256xf32>
    %32 = arith.mulf %31, %31 : vector<4x256xf32>
    %cst_22 = arith.constant dense<0.000000e+00> : vector<4x256xf32>
    %33 = tpu.matmul %32, %2, %cst_22 {dimension_numbers = #tpu.dot_dimension_numbers<[1], [0], [0], [1], [0, 0, 1, 1], [], []>, precision = #tpu.contract_precision<fp32>} : vector<4x256xf32>, vector<256x256xf32>, vector<4x256xf32> -> vector<4x256xf32>
    %cst_23 = arith.constant 9.99999974E-6 : f32
    %34 = vector.broadcast %cst_23 : f32 to vector<4x256xf32>
    %35 = arith.addf %33, %34 : vector<4x256xf32>
    %36 = math.rsqrt %35 : vector<4x256xf32>
    %37 = arith.mulf %31, %36 : vector<4x256xf32>
    %c0_24 = arith.constant 0 : index
    %c0_25 = arith.constant 0 : index
    %38 = vector.load %arg10[%c0_24, %c0_25] : memref<1x256xf32, #tpu.memory_space<vmem>>, vector<1x256xf32>
    %39 = vector.broadcast %38 : vector<1x256xf32> to vector<4x256xf32>
    %40 = arith.mulf %37, %39 : vector<4x256xf32>
    %c0_26 = arith.constant 0 : index
    %c0_27 = arith.constant 0 : index
    %41 = vector.load %arg11[%c0_26, %c0_27] : memref<1x256xf32, #tpu.memory_space<vmem>>, vector<1x256xf32>
    %42 = vector.broadcast %41 : vector<1x256xf32> to vector<4x256xf32>
    %43 = arith.addf %40, %42 : vector<4x256xf32>
    %c0_28 = arith.constant 0 : index
    %c0_29 = arith.constant 0 : index
    %c0_30 = arith.constant 0 : index
    %44 = vector.load %arg12[%c0_28, %c0_29, %c0_30] : memref<1x4x256xf32, #tpu.memory_space<vmem>>, vector<1x4x256xf32>
    %45 = vector.shape_cast %44 : vector<1x4x256xf32> to vector<4x256xf32>
    %46 = vector.shape_cast %43 : vector<4x256xf32> to vector<1x4x256xf32>
    tpu.vector_store %arg12[%c0_28, %c0_29, %c0_30], %46 {strides = array<i32>} : memref<1x4x256xf32, #tpu.memory_space<vmem>>, vector<1x4x256xf32>,
    return
  }
  func.func @transform_0(%arg0: i32, %arg1: i32) -> (i32, i32, i32) {
    %c0_i32 = arith.constant 0 : i32
    %c0_i32_0 = arith.constant 0 : i32
    return %arg0, %c0_i32, %arg1 : i32, i32, i32
  }
  func.func @transform_1(%arg0: i32, %arg1: i32) -> (i32, i32) {
    %c0_i32 = arith.constant 0 : i32
    %c0_i32_0 = arith.constant 0 : i32
    %c0_i32_1 = arith.constant 0 : i32
    return %c0_i32, %c0_i32_0 : i32, i32
  }
  func.func @transform_2(%arg0: i32, %arg1: i32) -> (i32, i32) {
    %c0_i32 = arith.constant 0 : i32
    %c0_i32_0 = arith.constant 0 : i32
    %c0_i32_1 = arith.constant 0 : i32
    return %c0_i32, %c0_i32_0 : i32, i32
  }
  func.func @transform_3(%arg0: i32, %arg1: i32) -> (i32, i32) {
    %c0_i32 = arith.constant 0 : i32
    %c0_i32_0 = arith.constant 0 : i32
    %c0_i32_1 = arith.constant 0 : i32
    return %c0_i32, %c0_i32_0 : i32, i32
  }
  func.func @transform_4(%arg0: i32, %arg1: i32) -> (i32, i32) {
    %c0_i32 = arith.constant 0 : i32
    %c0_i32_0 = arith.constant 0 : i32
    %c0_i32_1 = arith.constant 0 : i32
    return %c0_i32, %c0_i32_0 : i32, i32
  }
  func.func @transform_5(%arg0: i32, %arg1: i32) -> (i32, i32) {
    %c0_i32 = arith.constant 0 : i32
    %c0_i32_0 = arith.constant 0 : i32
    %c0_i32_1 = arith.constant 0 : i32
    return %c0_i32, %c0_i32_0 : i32, i32
  }
  func.func @transform_6(%arg0: i32, %arg1: i32) -> (i32, i32) {
    %c0_i32 = arith.constant 0 : i32
    %c0_i32_0 = arith.constant 0 : i32
    %c0_i32_1 = arith.constant 0 : i32
    return %c0_i32, %c0_i32_0 : i32, i32
  }
  func.func @transform_7(%arg0: i32, %arg1: i32) -> (i32, i32) {
    %c0_i32 = arith.constant 0 : i32
    %c0_i32_0 = arith.constant 0 : i32
    %c0_i32_1 = arith.constant 0 : i32
    return %c0_i32, %c0_i32_0 : i32, i32
  }
  func.func @transform_8(%arg0: i32, %arg1: i32) -> (i32, i32) {
    %c0_i32 = arith.constant 0 : i32
    %c0_i32_0 = arith.constant 0 : i32
    %c0_i32_1 = arith.constant 0 : i32
    return %c0_i32, %c0_i32_0 : i32, i32
  }
  func.func @transform_9(%arg0: i32, %arg1: i32) -> (i32, i32) {
    %c0_i32 = arith.constant 0 : i32
    %c0_i32_0 = arith.constant 0 : i32
    %c0_i32_1 = arith.constant 0 : i32
    return %c0_i32, %c0_i32_0 : i32, i32
  }
  func.func @transform_10(%arg0: i32, %arg1: i32) -> (i32, i32, i32) {
    %c0_i32 = arith.constant 0 : i32
    %c0_i32_0 = arith.constant 0 : i32
    return %arg0, %c0_i32, %arg1 : i32, i32, i32
  }
}

module attributes {stable_mosaic.version = 11 : i64} {
  func.func @ff_kernel(%arg0: i32, %arg1: i32, %arg2: memref<1x4x256xf32, #tpu.memory_space<vmem>>, %arg3: memref<256x256xf32, #tpu.memory_space<vmem>>, %arg4: memref<8x4xf32, #tpu.memory_space<vmem>>, %arg5: memref<8x1xf32, #tpu.memory_space<vmem>>, %arg6: memref<4x8xf32, #tpu.memory_space<vmem>>, %arg7: memref<4x1xf32, #tpu.memory_space<vmem>>, %arg8: memref<1x256xf32, #tpu.memory_space<vmem>>, %arg9: memref<1x256xf32, #tpu.memory_space<vmem>>, %arg10: memref<1x256xf32, #tpu.memory_space<vmem>>, %arg11: memref<1x256xf32, #tpu.memory_space<vmem>>, %arg12: memref<1x4x256xf32, #tpu.memory_space<vmem>>) attributes {dimension_semantics = [#tpu.dimension_semantics<parallel>, #tpu.dimension_semantics<parallel>], iteration_bounds = array<i64: 2, 1>, scalar_prefetch = 0 : i64, scratch_operands = 0 : i64, tpu.core_type = #tpu.core_type<tc>, window_params = [{transform_indices = @transform_0, window_bounds = array<i64: 1, 4, 256>}, {pipeline_mode = #tpu.pipeline_mode<synchronous>, transform_indices = @transform_1, window_bounds = array<i64: 256, 256>}, {pipeline_mode = #tpu.pipeline_mode<synchronous>, transform_indices = @transform_2, window_bounds = array<i64: 8, 4>}, {pipeline_mode = #tpu.pipeline_mode<synchronous>, transform_indices = @transform_3, window_bounds = array<i64: 8, 1>}, {pipeline_mode = #tpu.pipeline_mode<synchronous>, transform_indices = @transform_4, window_bounds = array<i64: 4, 8>}, {pipeline_mode = #tpu.pipeline_mode<synchronous>, transform_indices = @transform_5, window_bounds = array<i64: 4, 1>}, {pipeline_mode = #tpu.pipeline_mode<synchronous>, transform_indices = @transform_6, window_bounds = array<i64: 1, 256>}, {pipeline_mode = #tpu.pipeline_mode<synchronous>, transform_indices = @transform_7, window_bounds = array<i64: 1, 256>}, {pipeline_mode = #tpu.pipeline_mode<synchronous>, transform_indices = @transform_8, window_bounds = array<i64: 1, 256>}, {pipeline_mode = #tpu.pipeline_mode<synchronous>, transform_indices = @transform_9, window_bounds = array<i64: 1, 256>}, {transform_indices = @transform_10, window_bounds = array<i64: 1, 4, 256>}]} {
    %c0 = arith.constant 0 : index
    %c0_0 = arith.constant 0 : index
    %c0_1 = arith.constant 0 : index
    %0 = vector.load %arg2[%c0, %c0_0, %c0_1] : memref<1x4x256xf32, #tpu.memory_space<vmem>>, vector<1x4x256xf32>
    %1 = vector.shape_cast %0 : vector<1x4x256xf32> to vector<4x256xf32>
    %c0_2 = arith.constant 0 : index
    %c0_3 = arith.constant 0 : index
    %2 = vector.load %arg3[%c0_2, %c0_3] : memref<256x256xf32, #tpu.memory_space<vmem>>, vector<256x256xf32>
    %cst = arith.constant dense<0.000000e+00> : vector<4x256xf32>
    %3 = tpu.matmul %1, %2, %cst {dimension_numbers = #tpu.dot_dimension_numbers<[1], [0], [0], [1], [0, 0, 1, 1], [], []>, precision = #tpu.contract_precision<fp32>} : vector<4x256xf32>, vector<256x256xf32>, vector<4x256xf32> -> vector<4x256xf32>
    %4 = arith.subf %1, %3 : vector<4x256xf32>
    %5 = arith.mulf %4, %4 : vector<4x256xf32>
    %cst_4 = arith.constant dense<0.000000e+00> : vector<4x256xf32>
    %6 = tpu.matmul %5, %2, %cst_4 {dimension_numbers = #tpu.dot_dimension_numbers<[1], [0], [0], [1], [0, 0, 1, 1], [], []>, precision = #tpu.contract_precision<fp32>} : vector<4x256xf32>, vector<256x256xf32>, vector<4x256xf32> -> vector<4x256xf32>
    %cst_5 = arith.constant 9.99999974E-6 : f32
    %7 = vector.broadcast %cst_5 : f32 to vector<4x256xf32>
    %8 = arith.addf %6, %7 : vector<4x256xf32>
    %9 = math.rsqrt %8 : vector<4x256xf32>
    %10 = arith.mulf %4, %9 : vector<4x256xf32>
    %c0_6 = arith.constant 0 : index
    %c0_7 = arith.constant 0 : index
    %11 = vector.load %arg8[%c0_6, %c0_7] : memref<1x256xf32, #tpu.memory_space<vmem>>, vector<1x256xf32>
    %12 = vector.broadcast %11 : vector<1x256xf32> to vector<4x256xf32>
    %13 = arith.mulf %10, %12 : vector<4x256xf32>
    %c0_8 = arith.constant 0 : index
    %c0_9 = arith.constant 0 : index
    %14 = vector.load %arg9[%c0_8, %c0_9] : memref<1x256xf32, #tpu.memory_space<vmem>>, vector<1x256xf32>
    %15 = vector.broadcast %14 : vector<1x256xf32> to vector<4x256xf32>
    %16 = arith.addf %13, %15 : vector<4x256xf32>
    %c0_10 = arith.constant 0 : index
    %c0_11 = arith.constant 0 : index
    %17 = vector.load %arg4[%c0_10, %c0_11] : memref<8x4xf32, #tpu.memory_space<vmem>>, vector<8x4xf32>
    %cst_12 = arith.constant dense<0.000000e+00> : vector<8x256xf32>
    %18 = tpu.matmul %17, %16, %cst_12 {dimension_numbers = #tpu.dot_dimension_numbers<[1], [0], [0], [1], [0, 0, 1, 1], [], []>, precision = #tpu.contract_precision<fp32>} : vector<8x4xf32>, vector<4x256xf32>, vector<8x256xf32> -> vector<8x256xf32>
    %c0_13 = arith.constant 0 : index
    %c0_14 = arith.constant 0 : index
    %19 = vector.load %arg5[%c0_13, %c0_14] : memref<8x1xf32, #tpu.memory_space<vmem>>, vector<8x1xf32>
    %20 = vector.broadcast %19 : vector<8x1xf32> to vector<8x256xf32>
    %21 = arith.addf %18, %20 : vector<8x256xf32>
    %cst_15 = arith.constant 0.000000e+00 : f32
    %22 = vector.broadcast %cst_15 : f32 to vector<8x256xf32>
    %23 = arith.maximumf %21, %22 : vector<8x256xf32>
    %c0_16 = arith.constant 0 : index
    %c0_17 = arith.constant 0 : index
    %24 = vector.load %arg6[%c0_16, %c0_17] : memref<4x8xf32, #tpu.memory_space<vmem>>, vector<4x8xf32>
    %cst_18 = arith.constant dense<0.000000e+00> : vector<4x256xf32>
    %25 = tpu.matmul %24, %23, %cst_18 {dimension_numbers = #tpu.dot_dimension_numbers<[1], [0], [0], [1], [0, 0, 1, 1], [], []>, precision = #tpu.contract_precision<fp32>} : vector<4x8xf32>, vector<8x256xf32>, vector<4x256xf32> -> vector<4x256xf32>
    %c0_19 = arith.constant 0 : index
    %c0_20 = arith.constant 0 : index
    %26 = vector.load %arg7[%c0_19, %c0_20] : memref<4x1xf32, #tpu.memory_space<vmem>>, vector<4x1xf32>
    %27 = vector.broadcast %26 : vector<4x1xf32> to vector<4x256xf32>
    %28 = arith.addf %25, %27 : vector<4x256xf32>
    %29 = arith.addf %16, %28 : vector<4x256xf32>
    %cst_21 = arith.constant dense<0.000000e+00> : vector<4x256xf32>
    %30 = tpu.matmul %29, %2, %cst_21 {dimension_numbers = #tpu.dot_dimension_numbers<[1], [0], [0], [1], [0, 0, 1, 1], [], []>, precision = #tpu.contract_precision<fp32>} : vector<4x256xf32>, vector<256x256xf32>, vector<4x256xf32> -> vector<4x256xf32>
    %31 = arith.subf %29, %30 : vector<4x256xf32>
    %32 = arith.mulf %31, %31 : vector<4x256xf32>
    %cst_22 = arith.constant dense<0.000000e+00> : vector<4x256xf32>
    %33 = tpu.matmul %32, %2, %cst_22 {dimension_numbers = #tpu.dot_dimension_numbers<[1], [0], [0], [1], [0, 0, 1, 1], [], []>, precision = #tpu.contract_precision<fp32>} : vector<4x256xf32>, vector<256x256xf32>, vector<4x256xf32> -> vector<4x256xf32>
    %cst_23 = arith.constant 9.99999974E-6 : f32
    %34 = vector.broadcast %cst_23 : f32 to vector<4x256xf32>
    %35 = arith.addf %33, %34 : vector<4x256xf32>
    %36 = math.rsqrt %35 : vector<4x256xf32>
    %37 = arith.mulf %31, %36 : vector<4x256xf32>
    %c0_24 = arith.constant 0 : index
    %c0_25 = arith.constant 0 : index
    %38 = vector.load %arg10[%c0_24, %c0_25] : memref<1x256xf32, #tpu.memory_space<vmem>>, vector<1x256xf32>
    %39 = vector.broadcast %38 : vector<1x256xf32> to vector<4x256xf32>
    %40 = arith.mulf %37, %39 : vector<4x256xf32>
    %c0_26 = arith.constant 0 : index
    %c0_27 = arith.constant 0 : index
    %41 = vector.load %arg11[%c0_26, %c0_27] : memref<1x256xf32, #tpu.memory_space<vmem>>, vector<1x256xf32>
    %42 = vector.broadcast %41 : vector<1x256xf32> to vector<4x256xf32>
    %43 = arith.addf %40, %42 : vector<4x256xf32>
    %c0_28 = arith.constant 0 : index
    %c0_29 = arith.constant 0 : index
    %c0_30 = arith.constant 0 : index
    %44 = vector.load %arg12[%c0_28, %c0_29, %c0_30] : memref<1x4x256xf32, #tpu.memory_space<vmem>>, vector<1x4x256xf32>
    %45 = vector.shape_cast %44 : vector<1x4x256xf32> to vector<4x256xf32>
    %46 = vector.shape_cast %43 : vector<4x256xf32> to vector<1x4x256xf32>
    tpu.vector_store %arg12[%c0_28, %c0_29, %c0_30], %46 {strides = array<i32>} : memref<1x4x256xf32, #tpu.memory_space<vmem>>, vector<1x4x256xf32>,
    return
  }
  func.func @transform_0(%arg0: i32, %arg1: i32) -> (i32, i32, i32) {
    %c0_i32 = arith.constant 0 : i32
    %c0_i32_0 = arith.constant 0 : i32
    return %arg0, %c0_i32, %arg1 : i32, i32, i32
  }
  func.func @transform_1(%arg0: i32, %arg1: i32) -> (i32, i32) {
    %c0_i32 = arith.constant 0 : i32
    %c0_i32_0 = arith.constant 0 : i32
    %c0_i32_1 = arith.constant 0 : i32
    return %c0_i32, %c0_i32_0 : i32, i32
  }
  func.func @transform_2(%arg0: i32, %arg1: i32) -> (i32, i32) {
    %c0_i32 = arith.constant 0 : i32
    %c0_i32_0 = arith.constant 0 : i32
    %c0_i32_1 = arith.constant 0 : i32
    return %c0_i32, %c0_i32_0 : i32, i32
  }
  func.func @transform_3(%arg0: i32, %arg1: i32) -> (i32, i32) {
    %c0_i32 = arith.constant 0 : i32
    %c0_i32_0 = arith.constant 0 : i32
    %c0_i32_1 = arith.constant 0 : i32
    return %c0_i32, %c0_i32_0 : i32, i32
  }
  func.func @transform_4(%arg0: i32, %arg1: i32) -> (i32, i32) {
    %c0_i32 = arith.constant 0 : i32
    %c0_i32_0 = arith.constant 0 : i32
    %c0_i32_1 = arith.constant 0 : i32
    return %c0_i32, %c0_i32_0 : i32, i32
  }
  func.func @transform_5(%arg0: i32, %arg1: i32) -> (i32, i32) {
    %c0_i32 = arith.constant 0 : i32
    %c0_i32_0 = arith.constant 0 : i32
    %c0_i32_1 = arith.constant 0 : i32
    return %c0_i32, %c0_i32_0 : i32, i32
  }
  func.func @transform_6(%arg0: i32, %arg1: i32) -> (i32, i32) {
    %c0_i32 = arith.constant 0 : i32
    %c0_i32_0 = arith.constant 0 : i32
    %c0_i32_1 = arith.constant 0 : i32
    return %c0_i32, %c0_i32_0 : i32, i32
  }
  func.func @transform_7(%arg0: i32, %arg1: i32) -> (i32, i32) {
    %c0_i32 = arith.constant 0 : i32
    %c0_i32_0 = arith.constant 0 : i32
    %c0_i32_1 = arith.constant 0 : i32
    return %c0_i32, %c0_i32_0 : i32, i32
  }
  func.func @transform_8(%arg0: i32, %arg1: i32) -> (i32, i32) {
    %c0_i32 = arith.constant 0 : i32
    %c0_i32_0 = arith.constant 0 : i32
    %c0_i32_1 = arith.constant 0 : i32
    return %c0_i32, %c0_i32_0 : i32, i32
  }
  func.func @transform_9(%arg0: i32, %arg1: i32) -> (i32, i32) {
    %c0_i32 = arith.constant 0 : i32
    %c0_i32_0 = arith.constant 0 : i32
    %c0_i32_1 = arith.constant 0 : i32
    return %c0_i32, %c0_i32_0 : i32, i32
  }
  func.func @transform_10(%arg0: i32, %arg1: i32) -> (i32, i32, i32) {
    %c0_i32 = arith.constant 0 : i32
    %c0_i32_0 = arith.constant 0 : i32
    return %arg0, %c0_i32, %arg1 : i32, i32, i32
  }
}

</mosaic_0001>

<bundles_post_ra>
// kernel: tpu_custom_call.1
= control target key start
LH: loop header
LB: loop body
LE: loop exit
PB: predicated region body
PF: predicated region fallthrough
CT: control target
= control target key end

     0   :  { %s9719_s0 = inlined_call_operand.vmem [shape: f32[2,4,256], index: 0, kind: input, shape index: {}]   ;;  %s9720_s1 = inlined_call_operand.hbm [shape: f32[256,256], index: 1, kind: input, shape index: {}]   ;;  %s9721_s2 = inlined_call_operand.vmem [shape: f32[8,4], index: 2, kind: input, shape index: {}]   ;;  %s9722_s3 = inlined_call_operand.vmem [shape: f32[8,1], index: 3, kind: input, shape index: {}]   ;;  %s9723_s4 = inlined_call_operand.vmem [shape: f32[4,8], index: 4, kind: input, shape index: {}]   ;;  %s9724_s5 = inlined_call_operand.vmem [shape: f32[4,1], index: 5, kind: input, shape index: {}]   ;;  %s9725_s6 = inlined_call_operand.vmem [shape: f32[1,256], index: 6, kind: input, shape index: {}]   ;;  %s9726_s7 = inlined_call_operand.vmem [shape: f32[1,256], index: 7, kind: input, shape index: {}]   ;;  %s9727_s8 = inlined_call_operand.vmem [shape: f32[1,256], index: 8, kind: input, shape index: {}]   ;;  %s9728_s9 = inlined_call_operand.vmem [shape: f32[1,256], index: 9, kind: input, shape index: {}]   ;;  %s9729_s10 = inlined_call_operand.hbm [shape: f32[2,4,256], index: 10, kind: output, shape index: {}]  }
   0x1   :  { %10330 = sst [smem:[#allocation271_spill]] %s9719_s0 }
   0x2   :  { %15 = vsyncpa [#allocation3], 0 }
   0x3   :  { %16 = vsyncpa [#allocation4], 0 }
   0x4   :  { %18 = vsyncpa [#allocation4 + $0x1], 0  ;;  %s7048_s13 = smov 0   ;;  %s7050_s14 = smov 0  }
   0x5   :  { %s7052_s15 = smov 0   ;;  %s7054_s16 = smov 0  }
   0x6   :  { %s7056_s17 = smov 0   ;;  %s7058_s18 = smov 0  }
   0x7 LB: > { %s6780_s19 = sadd.s32 4294967295, %s6987_s18   ;;  %s6781_s20 = sadd.s32 4294967294, %s6987_s18   ;;  %s6987_s18 = sphi %s7058_s18, %s24_s18   ;;  %s6983_s17 = sphi %s7056_s17, %s11311_s17   ;;  %s6979_s16 = sphi %s7054_s16, %s11310_s16   ;;  %s6975_s15 = sphi %s7052_s15, %s11309_s15   ;;  %s6971_s14 = sphi %s7050_s14, %s11308_s14   ;;  %s6967_s13 = sphi %s7048_s13, %s11307_s13  }
   0x8   : > { %s36_s21 = sadd.s32 1, %s6983_s17  ;;  %s262_s22 = sadd.s32 1, %s6975_s15 }
   0x9   : > { %p38_p0 = scmp.ge.s32.totalorder %s36_s21, 2  ;;  %p272_p1 = scmp.ne.s32.totalorder %s6975_s15, %s6971_s14 }
   0xa   : > { %p273_p2 = scmp.eq.s32.totalorder %s6780_s19, 1  ;;  %p278_p3 = scmp.ne.s32.totalorder %s6971_s14, %s6967_s13 }
   0xb   : > { %s11313_s21 = smov (%p38_p0, %s36_s21), 0  ;;  %p279_p5 = scmp.eq.s32.totalorder %s6781_s20, 1 }
   0xc   : > { %p7088_p4 = por %p273_p2, %p272_p1  ;;  %s257_s24 = ssub.s32 %s6983_s17, %s11313_s21 }
   0xd   : > { %p6782_p6 = scmp.ge.s32.totalorder %s6987_s18, 1  ;;  %p260_p7 = scmp.eq.s32.totalorder %s257_s24, 0 }
   0xe   : > { %p7095_p8 = por %p279_p5, %p278_p3  ;;  %p286_p9 = scmp.lt.s32.totalorder %s6987_s18, 3 }
   0xf   : > { %s7101_s26 = scalar_select %p260_p7, %s6975_s15, %s262_s22  }
  0x10   : > { %p287_p10 = pnand %p6782_p6, %p286_p9  ;;  %p6811_p11 = scmp.eq.s32.totalorder %s6780_s19, 0 }
  0x11   : > { %s297_s29 = sshll.u32 %s9720_s1, 4  ;;  %s6989_s30 = smov [#allocation2]   ;;  %s298_s29 = int_to_ptr.hbm [resolvable:$true] %s297_s29 }
  0x12   : > { %p6803_p12 = pneg %p287_p10  ;;  %s299_s11 = sshll.u32 %s6989_s30, 4  ;;  %s300_s11 = int_to_ptr.vmem [resolvable:$true] %s299_s11 }
  0x13   : > { %s6990_s12 = smov 256   ;;  %s6991_s20 = smov 16  }
  0x14   : > { %p6804_p13 = pnand %p6811_p11, %p6803_p12  ;;  %352 = sbr.rel (%p287_p10) target bundleno = 1721 (0x6b9), region = 60 }
  0x16   : > { %6806 = dma.hbm_to_vmem [thread:$0]  (!%p6804_p13), %s298_s29, 8192, %s300_s11, [#allocation3], %s6990_s12, %s6990_s12, %s6991_s20  }
  0x19   : > { %6958 = dma.done.wait (%p6811_p11), [#allocation3], 8192  }
  0x1a   : > { %6960 = vsyncadd (%p6811_p11), [#allocation3], 4294959104  ;;  %v437_v0 = vld [vmem:[#allocation2 + $0xf0] sm:$0xff]  ;;  %v435_v1 = vld [vmem:[#allocation2 + $0xe0] sm:$0xff]  ;;  %p396_p0 = scmp.lt.s32.totalorder %s6979_s16, 1  ;;  %s10363_s0 = sld [smem:[#allocation271_spill]] }
  0x1b   : > { %v433_v2 = vld [vmem:[#allocation2 + $0xd0] sm:$0xff]  ;;  %v7107_v3 = vand.u32 4294901760, %v437_v0  ;;  %v7109_v4 = vand.u32 4294901760, %v435_v1  ;;  %v431_v6 = vld [vmem:[#allocation2 + $0xc0] sm:$0xff]  ;;  %vm1844_vm0 = vcmask 1043456   ;;  %vm3272_vm2 = vcmask 31744  }
  0x1c   : > { %v7111_v5 = vand.u32 4294901760, %v433_v2  ;;  %v429_v7 = vld [vmem:[#allocation2 + $0xb0] sm:$0xff]  ;;  %v427_v8 = vld [vmem:[#allocation2 + $0xa0] sm:$0xff]  ;;  %v7113_v9 = vand.u32 4294901760, %v431_v6  ;;  %s7144_s19 = scalar_select %p396_p0, %s6979_s16, 1  ;;  %vm3581_vm8 = vcmask 64512  }
  0x1d   : > { %10333 = vst [vmem:[#allocation8_spill] sm:$0xff] %v7107_v3  ;;  %v7115_v10 = vand.u32 4294901760, %v429_v7  ;;  %v7117_v11 = vand.u32 4294901760, %v427_v8  ;;  %v425_v12 = vld [vmem:[#allocation2 + $0x90] sm:$0xff]  ;;  %v423_v13 = vld [vmem:[#allocation2 + $0x80] sm:$0xff]  ;;  %478 = vmatpush.msra.mxu0 %v7107_v3  ;;  %v7121_v14 = vsub.f32 %v437_v0, %v7107_v3  ;;  %v7124_v15 = vsub.f32 %v435_v1, %v7109_v4  ;;  %674 = vmatpush.msra.mxu3 %v7107_v3  ;;  %s6796_s27 = sshll.u32 %s6979_s16, 3 }
  0x1e   : > { %10334 = vst [vmem:[#allocation9_spill] sm:$0xff] %v7109_v4  ;;  %v7128_v16 = vsub.f32 %v433_v2, %v7111_v5  ;;  %v7130_v17 = vand.u32 4294901760, %v425_v12  ;;  %v421_v18 = vld [vmem:[#allocation2 + $0x70] sm:$0xff]  ;;  %v7133_v19 = vsub.f32 %v431_v6, %v7113_v9  ;;  %v7157_v25 = vand.u32 4294901760, %v423_v13  ;;  %v419_v26 = vld [vmem:[#allocation2 + $0x60] sm:$0xff]  ;;  %s6795_s22 = sshll.u32 %s7144_s19, 3  ;;  %s6687_s30 = scalar_lea.hbm %s9729_s10, %s6796_s27 }
  0x1f   : > { %10335 = vst [vmem:[#allocation10_spill] sm:$0xff] %v7111_v5  ;;  %v7136_v20 = vsub.f32 %v429_v7, %v7115_v10  ;;  %v7139_v21 = vsub.f32 %v427_v8, %v7117_v11  ;;  %480 = vmatpush.msra.mxu0 %v7109_v4  ;;  %621 = vmatpush.msra.mxu2 %v7121_v14  ;;  %v7149_v22 = vand.u32 4294901760, %v7121_v14  ;;  %v7152_v23 = vand.u32 4294901760, %v7124_v15  ;;  %v417_v34 = vld [vmem:[#allocation2 + $0x50] sm:$0xff]  ;;  %v415_v42 = vld [vmem:[#allocation2 + $0x40] sm:$0xff]  ;;  %s6691_s12 = sshll.u32 %s6687_s30, 4  ;;  %s6692_s12 = int_to_ptr.hbm [resolvable:$true] %s6691_s12 }
  0x20   : > { %10336 = vst [vmem:[#allocation11_spill] sm:$0xff] %v7113_v9  ;;  %v7155_v24 = vand.u32 4294901760, %v7128_v16  ;;  %676 = vmatpush.msra.mxu3 %v7109_v4  ;;  %v7161_v27 = vand.u32 4294901760, %v7133_v19  ;;  %v7163_v28 = vand.u32 4294901760, %v421_v18  ;;  %v7166_v29 = vsub.f32 %v425_v12, %v7130_v17  ;;  %s403_s28 = scalar_lea.vmem %s10363_s0, %s6795_s22  ;;  %v413_v48 = vld [vmem:[#allocation2 + $0x30] sm:$0xff]  ;;  %v411_v54 = vld [vmem:[#allocation2 + $0x20] sm:$0xff] }
  0x21   : > { %10337 = vst [vmem:[#allocation12_spill] sm:$0xff] %v7115_v10  ;;  %482 = vmatpush.msra.mxu0 %v7111_v5  ;;  %624 = vmatpush.msra.mxu2 %v7124_v15  ;;  %v521_v30 = vsub.f32 %v7121_v14, %v7149_v22  ;;  %v527_v31 = vsub.f32 %v7124_v15, %v7152_v23  ;;  %v7177_v33 = vand.u32 4294901760, %v7136_v20  ;;  %v7180_v35 = vand.u32 4294901760, %v419_v26  ;;  %v7236_v55 = vld [vmem:[%s403_s28] sm:$0xff]  ;;  %v469_v60 = vld [vmem:[#allocation2 + $0x1f0] sm:$0xff]  ;;  %v407_v6 = vld [vmem:[#allocation2] sm:$0xff] }
  0x22   : > { %10338 = vst [vmem:[#allocation13_spill] sm:$0xff] %v7117_v11  ;;  %v533_v32 = vsub.f32 %v7128_v16, %v7155_v24  ;;  %678 = vmatpush.msra.mxu3 %v7111_v5  ;;  %v7183_v36 = vand.u32 4294901760, %v7139_v21  ;;  %v539_v39 = vsub.f32 %v7133_v19, %v7161_v27  ;;  %v7195_v40 = vsub.f32 %v423_v13, %v7157_v25  ;;  %v409_v62 = vld [vmem:[#allocation2 + $0x10] sm:$0xff]  ;;  %v467_v7 = vld [vmem:[#allocation2 + $0x1e0] sm:$0xff]  ;;  %s392_s22 = sand.u32 1, %s6971_s14   ;;  %s6919_s19 = sshra.s32 %s6692_s12, 4  ;;  %s6920_s19 = int_to_ptr.hbm [resolvable:$true] %s6919_s19 }
  0x23   : > { %10339 = vst [vmem:[#allocation14_spill] sm:$0xff] %v7121_v14  ;;  %484 = vmatpush.msra.mxu0 %v7113_v9  ;;  %v7187_v37 = vand.u32 4294901760, %v521_v30  ;;  %627 = vmatpush.msra.mxu2 %v7128_v16  ;;  %v7190_v38 = vand.u32 4294901760, %v527_v31  ;;  %v7198_v41 = vand.u32 4294901760, %v417_v34  ;;  %v545_v44 = vsub.f32 %v7136_v20, %v7177_v33  ;;  %s6787_s24 = sshll.u32 %s392_s22, 3  ;;  %s6674_s20 = scalar_lea.sflag [#allocation4], %s392_s22 }
  0x24   : > { %10340 = vst [vmem:[#allocation15_spill] sm:$0xff] %v7124_v15  ;;  %680 = vmatpush.msra.mxu3 %v7113_v9  ;;  %v7202_v43 = vand.u32 4294901760, %v533_v32  ;;  %v7207_v45 = vand.u32 4294901760, %v7166_v29  ;;  %v7210_v46 = vsub.f32 %v421_v18, %v7163_v28  ;;  %v551_v47 = vsub.f32 %v7139_v21, %v7183_v36  ;;  %s394_s16 = scalar_lea.vmem [#allocation5], %s6787_s24  ;;  %s6921_s27 = scalar_lea.hbm %s6920_s19, 8 }
  0x25   : > { %10341 = vst [vmem:[#allocation16_spill] sm:$0xff] %v7128_v16  ;;  %486 = vmatpush.msra.mxu0 %v7115_v10  ;;  %523 = vmatpush.msra.mxu1 %v7187_v37  ;;  %v7221_v49 = vand.u32 4294901760, %v539_v39  ;;  %v7223_v50 = vand.u32 4294901760, %v415_v42  ;;  %v7226_v51 = vand.u32 4294901760, %v7195_v40  ;;  %v7229_v52 = vsub.f32 %v419_v26, %v7180_v35  ;;  %s6689_s11 = sshll.u32 %s394_s16, 4  ;;  %p6922_p1 = scmp.ne.s32.totalorder %s6920_s19, %s6921_s27  ;;  %s6690_s11 = int_to_ptr.vmem [resolvable:$true] %s6689_s11 }
  0x26   : > { %10342 = vst [vmem:[#allocation17_spill] sm:$0xff] %v7130_v17  ;;  %630 = vmatpush.msra.mxu2 %v7133_v19  ;;  %682 = vmatpush.msra.mxu3 %v7115_v10  ;;  %v7234_v53 = vsub.f32 %v417_v34, %v7198_v41  ;;  %v7240_v56 = vand.u32 4294901760, %v545_v44  ;;  %v557_v57 = vsub.f32 %v7166_v29, %v7207_v45  ;;  %v7244_v58 = vand.u32 4294901760, %v413_v48  ;;  %v465_v34 = vld [vmem:[#allocation2 + $0x1d0] sm:$0xff]  ;;  %s6925_s24 = scalar_lea.hbm %s9729_s10, 16  ;;  %p6926_p5 = scmp.lt.s32.totalorder %s6920_s19, %s9729_s10 }
  0x27   : > { %10343 = vst [vmem:[#allocation18_spill] sm:$0xff] %v7133_v19  ;;  %488 = vmatpush.msra.mxu0 %v7117_v11  ;;  %529 = vmatpush.msra.mxu1 %v7190_v38  ;;  %v7247_v59 = vand.u32 4294901760, %v7210_v46  ;;  %v7251_v61 = vand.u32 4294901760, %v551_v47  ;;  %v563_v63 = vsub.f32 %v7195_v40, %v7226_v51  ;;  %v7258_v0 = vand.u32 4294901760, %v411_v54  ;;  %v455_v19 = vld [vmem:[#allocation2 + $0x180] sm:$0xff]  ;;  %p6923_p2 = pnand %p6922_p1, %p7088_p4  ;;  %p6927_p6 = scmp.lt.s32.totalorder %s6925_s24, %s6921_s27 }
  0x28   : > { %10344 = vst [vmem:[#allocation19_spill] sm:$0xff] %v7136_v20  ;;  %633 = vmatpush.msra.mxu2 %v7136_v20  ;;  %684 = vmatpush.msra.mxu3 %v7117_v11  ;;  %v7261_v1 = vand.u32 4294901760, %v7229_v52  ;;  %v7264_v2 = vsub.f32 %v415_v42, %v7223_v50  ;;  %v7269_v8 = vand.u32 4294901760, %v7234_v53  ;;  %v7271_v12 = vand.u32 4294901760, %v469_v60 }
  0x29   : > { %10345 = vst [vmem:[#allocation20_spill] sm:$0xff] %v7139_v21  ;;  %490 = vmatpush.msra.mxu0 %v7130_v17  ;;  %535 = vmatpush.msra.mxu1 %v7202_v43  ;;  %v7275_v13 = vand.u32 4294901760, %v557_v57  ;;  %v569_v18 = vsub.f32 %v7210_v46, %v7247_v59  ;;  %v7279_v26 = vand.u32 4294901760, %v409_v62  ;;  %v7282_v30 = vsub.f32 %v413_v48, %v7244_v58  ;;  %p6924_p3 = pneg %p6923_p2  ;;  %p6928_p7 = por %p6927_p6, %p6926_p5 }
  0x2a   : > { %10346 = vst [vmem:[#allocation21_spill] sm:$0xff] %v7149_v22  ;;  %636 = vmatpush.msra.mxu2 %v7139_v21  ;;  %686 = vmatpush.msra.mxu3 %v7130_v17  ;;  %v7286_v31 = vand.u32 4294901760, %v407_v6  ;;  %v7288_v32 = vand.u32 4294901760, %v467_v7  ;;  %v7292_v39 = vand.u32 4294901760, %v563_v63  ;;  %v575_v42 = vsub.f32 %v7229_v52, %v7261_v1  ;;  %v463_v63 = vld [vmem:[#allocation2 + $0x1c0] sm:$0xff]  ;;  %v457_v21 = vld [vmem:[#allocation2 + $0x190] sm:$0xff] }
  0x2b   : > { %10347 = vst [vmem:[#allocation22_spill] sm:$0xff] %v7152_v23  ;;  %492 = vmatpush.msra.mxu0 %v7157_v25  ;;  %541 = vmatpush.msra.mxu1 %v7221_v49  ;;  %v7297_v44 = vand.u32 4294901760, %v7264_v2  ;;  %v7300_v47 = vsub.f32 %v411_v54, %v7258_v0  ;;  %v581_v48 = vsub.f32 %v7234_v53, %v7269_v8  ;;  %v7314_v54 = vand.u32 4294901760, %v7282_v30  ;;  %p6929_p9 = pnand %p6928_p7, %p6924_p3 }
  0x2c   : > { %10348 = vst [vmem:[#allocation23_spill] sm:$0xff] %v7155_v24  ;;  %639 = vmatpush.msra.mxu2 %v7166_v29  ;;  %688 = vmatpush.msra.mxu3 %v7157_v25  ;;  %v7307_v57 = vsub.f32 %v469_v60, %v7271_v12  ;;  %v7324_v60 = vsub.f32 %v407_v6, %v7286_v31  ;;  %v7382_v16 = vand.u32 4294901760, %v457_v21  ;;  %v7400_v15 = vand.u32 4294901760, %v455_v19 }
  0x2d   : > { %10349 = vst [vmem:[#allocation24_spill] sm:$0xff] %v7157_v25  ;;  %494 = vmatpush.msra.mxu0 %v7163_v28  ;;  %547 = vmatpush.msra.mxu1 %v7240_v56  ;;  %v7341_v6 = vand.u32 4294901760, %v581_v48 }
  0x2e   : > { %10350 = vst [vmem:[#allocation25_spill] sm:$0xff] %v7161_v27  ;;  %642 = vmatpush.msra.mxu2 %v7195_v40  ;;  %690 = vmatpush.msra.mxu3 %v7163_v28 }
  0x2f   : > { %10351 = vst [vmem:[#allocation26_spill] sm:$0xff] %v7163_v28  ;;  %496 = vmatpush.msra.mxu0 %v7180_v35  ;;  %553 = vmatpush.msra.mxu1 %v7251_v61 }
  0x30   : > { %10352 = vst [vmem:[#allocation27_spill] sm:$0xff] %v7166_v29  ;;  %645 = vmatpush.msra.mxu2 %v7210_v46  ;;  %692 = vmatpush.msra.mxu3 %v7180_v35  ;;  %v7338_v29 = vand.u32 4294901760, %v463_v63 }
  0x31   : > { %10353 = vst [vmem:[#allocation28_spill] sm:$0xff] %v7177_v33  ;;  %498 = vmatpush.msra.mxu0 %v7198_v41  ;;  %559 = vmatpush.msra.mxu1 %v7275_v13 }
  0x32   : > { %10354 = vst [vmem:[#allocation29_spill] sm:$0xff] %v7180_v35  ;;  %648 = vmatpush.msra.mxu2 %v7229_v52  ;;  %694 = vmatpush.msra.mxu3 %v7198_v41 }
  0x33   : > { %10355 = vst [vmem:[#allocation30_spill] sm:$0xff] %v7183_v36  ;;  %500 = vmatpush.msra.mxu0 %v7223_v50  ;;  %565 = vmatpush.msra.mxu1 %v7292_v39 }
  0x34   : > { %10356 = vst [vmem:[#allocation31_spill] sm:$0xff] %v7187_v37  ;;  %651 = vmatpush.msra.mxu2 %v7234_v53  ;;  %696 = vmatpush.msra.mxu3 %v7223_v50 }
  0x35   : > { %10357 = vst [vmem:[#allocation32_spill] sm:$0xff] %v7190_v38  ;;  %502 = vmatpush.msra.mxu0 %v7244_v58 }
  0x36   : > { %10358 = vst [vmem:[#allocation33_spill] sm:$0xff] %v7195_v40  ;;  %v7319_v40 = vand.u32 4294901760, %v465_v34  ;;  %654 = vmatpush.msra.mxu2 %v7264_v2  ;;  %698 = vmatpush.msra.mxu3 %v7244_v58 }
  0x37   : > { %10359 = vst [vmem:[#allocation34_spill] sm:$0xff] %v7198_v41  ;;  %504 = vmatpush.msra.mxu0 %v7258_v0 }
  0x38   : > { %10360 = vst [vmem:[#allocation35_spill] sm:$0xff] %v7202_v43  ;;  %v7374_v43 = vsub.f32 %v463_v63, %v7338_v29  ;;  %657 = vmatpush.msra.mxu2 %v7282_v30  ;;  %700 = vmatpush.msra.mxu3 %v7258_v0 }
  0x39   : > { %10361 = vst [vmem:[#allocation36_spill] sm:$0xff] %v7207_v45  ;;  %506 = vmatpush.msra.mxu0 %v7279_v26 }
  0x3a   : > { %10362 = vst [vmem:[#allocation37_spill] sm:$0xff] %v7210_v46  ;;  %v7317_v46 = vsub.f32 %v409_v62, %v7279_v26  ;;  %v587_v62 = vsub.f32 %v7264_v2, %v7297_v44  ;;  %660 = vmatpush.msra.mxu2 %v7300_v47  ;;  %702 = vmatpush.msra.mxu3 %v7279_v26  ;;  %v7409_v14 = vand.u32 4294901760, %v7374_v43 }
  0x3b   : > { %10364 = vst [vmem:[#allocation38_spill] sm:$0xff] %v7221_v49  ;;  %v7362_v49 = vand.u32 4294901760, %v7324_v60  ;;  %508 = vmatpush.msra.mxu0 %v7286_v31 }
  0x3c   : > { %10365 = vst [vmem:[#allocation39_spill] sm:$0xff] %v7223_v50  ;;  %v7369_v20 = vand.u32 4294901760, %v587_v62  ;;  %663 = vmatpush.msra.mxu2 %v7317_v46  ;;  %704 = vmatpush.msra.mxu3 %v7286_v31 }
  0x3d   : > { %10366 = vst [vmem:[#allocation40_spill] sm:$0xff] %v7226_v51  ;;  %715 = vmatpush.msrb.mxu0 %v7149_v22 }
  0x3e   : > { %10367 = vst [vmem:[#allocation41_spill] sm:$0xff] %v7229_v52  ;;  %v7336_v52 = vand.u32 4294901760, %v7300_v47  ;;  %666 = vmatpush.msra.mxu2 %v7324_v60 }
  0x3f   : > { %10368 = vst [vmem:[#allocation42_spill] sm:$0xff] %v7234_v53  ;;  %v7355_v53 = vsub.f32 %v465_v34, %v7319_v40  ;;  %719 = vmatpush.msrb.mxu0 %v7152_v23 }
  0x40   : > { %10369 = vst [vmem:[#allocation43_spill] sm:$0xff] %v7236_v55  ;;  %v599_v34 = vsub.f32 %v7300_v47, %v7336_v52  ;;  %819 = vmatpush.msrb.mxu2 %v7271_v12 }
  0x41   : > { %10370 = vst [vmem:[#allocation44_spill] sm:$0xff] %v7240_v56  ;;  %v7352_v56 = vand.u32 4294901760, %v7317_v46  ;;  %723 = vmatpush.msrb.mxu0 %v7155_v24 }
  0x42   : > { %10371 = vst [vmem:[#allocation45_spill] sm:$0xff] %v7244_v58  ;;  %821 = vmatpush.msrb.mxu2 %v7288_v32 }
  0x43   : > { %10372 = vst [vmem:[#allocation46_spill] sm:$0xff] %v7247_v59  ;;  %v605_v63 = vsub.f32 %v7317_v46, %v7352_v56  ;;  %727 = vmatpush.msrb.mxu0 %v7161_v27 }
  0x44   : > { %472 = vst [vmem:[#allocation1] ss:$2 sm:$0xff] %v7236_v55  ;;  %v7311_v55 = vand.u32 4294901760, %v569_v18  ;;  %v461_v18 = vld [vmem:[#allocation2 + $0x1b0] sm:$0xff]  ;;  %823 = vmatpush.msrb.mxu2 %v7319_v40 }
  0x45   : > { %10373 = vst [vmem:[#allocation47_spill] sm:$0xff] %v7251_v61  ;;  %v7327_v61 = vsub.f32 %v467_v7, %v7288_v32  ;;  %v7345_v7 = vand.u32 4294901760, %v7307_v57  ;;  %v7357_v48 = vand.u32 4294901760, %v461_v18  ;;  %731 = vmatpush.msrb.mxu0 %v7177_v33 }
  0x46   : > { %10374 = vst [vmem:[#allocation48_spill] sm:$0xff] %v7258_v0  ;;  %571 = vmatpush.msra.mxu1 %v7311_v55  ;;  %825 = vmatpush.msrb.mxu2 %v7338_v29 }
  0x47   : > { %10375 = vst [vmem:[#allocation49_spill] sm:$0xff] %v7261_v1  ;;  %v862_v38 = vsub.f32 %v7307_v57, %v7345_v7  ;;  %735 = vmatpush.msrb.mxu0 %v7183_v36 }
  0x48   : > { %10376 = vst [vmem:[#allocation50_spill] sm:$0xff] %v7264_v2  ;;  %827 = vmatpush.msrb.mxu2 %v7357_v48 }
  0x49   : > { %10377 = vst [vmem:[#allocation51_spill] sm:$0xff] %v7269_v8  ;;  %739 = vmatpush.msrb.mxu0 %v7207_v45 }
  0x4a   : > { %10378 = vst [vmem:[#allocation52_spill] sm:$0xff] %v7271_v12 }
  0x4b   : > { %10379 = vst [vmem:[#allocation53_spill] sm:$0xff] %v7275_v13  ;;  %v7331_v13 = vand.u32 4294901760, %v575_v42  ;;  %v593_v42 = vsub.f32 %v7282_v30, %v7314_v54  ;;  %743 = vmatpush.msrb.mxu0 %v7226_v51  ;;  %v439_v51 = vld [vmem:[#allocation2 + $0x100] sm:$0xff] }
  0x4c   : > { %10380 = vst [vmem:[#allocation54_spill] sm:$0xff] %v7279_v26  ;;  %v7419_v26 = vsub.f32 %v457_v21, %v7382_v16 }
  0x4d   : > { %10381 = vst [vmem:[#allocation55_spill] sm:$0xff] %v7282_v30  ;;  %577 = vmatpush.msra.mxu1 %v7331_v13  ;;  %v7386_v62 = vand.u32 4294901760, %v593_v42  ;;  %v7394_v30 = vsub.f32 %v461_v18, %v7357_v48  ;;  %v453_v42 = vld [vmem:[#allocation2 + $0x170] sm:$0xff]  ;;  %v611_v18 = vsub.f32 %v7324_v60, %v7362_v49  ;;  %747 = vmatpush.msrb.mxu0 %v7247_v59  ;;  %v7562_v59 = vand.u32 4294901760, %v439_v51 }
  0x4e   : > { %10382 = vst [vmem:[#allocation56_spill] sm:$0xff] %v7286_v31  ;;  %v7430_v22 = vand.u32 4294901760, %v453_v42 }
  0x4f   : > { %10383 = vst [vmem:[#allocation57_spill] sm:$0xff] %v7288_v32  ;;  %583 = vmatpush.msra.mxu1 %v7341_v6  ;;  %751 = vmatpush.msrb.mxu0 %v7261_v1  ;;  %v474_v1 = vld.sshfl [vmem:[#allocation1 + $0x8] sm:$0xff pattern:$0x75316420] }
  0x50   : > { %10384 = vst [vmem:[#allocation58_spill] sm:$0xff] %v7292_v39  ;;  %v459_v39 = vld [vmem:[#allocation2 + $0x1a0] sm:$0xff] }
  0x51   : > { %10385 = vst [vmem:[#allocation59_spill] sm:$0xff] %v7297_v44  ;;  %v7376_v2 = vand.u32 4294901760, %v459_v39  ;;  %589 = vmatpush.msra.mxu1 %v7369_v20  ;;  %755 = vmatpush.msrb.mxu0 %v7269_v8 }
  0x52   : > { %10386 = vst [vmem:[#allocation60_spill] sm:$0xff] %v7300_v47 }
  0x53   : > { %10387 = vst [vmem:[#allocation61_spill] sm:$0xff] %v7307_v57  ;;  %v7412_v47 = vsub.f32 %v459_v39, %v7376_v2  ;;  %595 = vmatpush.msra.mxu1 %v7386_v62  ;;  %829 = vmatpush.msrb.mxu2 %v7376_v2 }
  0x54   : > { %10388 = vst [vmem:[#allocation62_spill] sm:$0xff] %v7311_v55  ;;  %v7365_v55 = vand.u32 4294901760, %v7327_v61  ;;  %759 = vmatpush.msrb.mxu0 %v7297_v44 }
  0x55   : > { %10389 = vst [vmem:[#allocation63_spill] sm:$0xff] %v7314_v54  ;;  %831 = vmatpush.msrb.mxu2 %v7382_v16 }
  0x56   : > { %10390 = vst [vmem:[#allocation64_spill] sm:$0xff] %v7317_v46  ;;  %v868_v37 = vsub.f32 %v7327_v61, %v7365_v55  ;;  %v7441_v46 = vand.u32 4294901760, %v611_v18  ;;  %763 = vmatpush.msrb.mxu0 %v7314_v54 }
  0x57   : > { %10391 = vst [vmem:[#allocation65_spill] sm:$0xff] %v7319_v40  ;;  %833 = vmatpush.msrb.mxu2 %v7400_v15 }
  0x58   : > { %10392 = vst [vmem:[#allocation66_spill] sm:$0xff] %v7324_v60  ;;  %v7434_v21 = vand.u32 4294901760, %v868_v37  ;;  %v447_v37 = vld [vmem:[#allocation2 + $0x140] sm:$0xff]  ;;  %767 = vmatpush.msrb.mxu0 %v7336_v52 }
  0x59   : > { %10393 = vst [vmem:[#allocation67_spill] sm:$0xff] %v7327_v61  ;;  %835 = vmatpush.msrb.mxu2 %v7430_v22 }
  0x5a   : > { %10394 = vst [vmem:[#allocation68_spill] sm:$0xff] %v7331_v13  ;;  %v7391_v13 = vand.u32 4294901760, %v7355_v53  ;;  %771 = vmatpush.msrb.mxu0 %v7352_v56 }
  0x5b   : > { %10395 = vst [vmem:[#allocation69_spill] sm:$0xff] %v7336_v52 }
  0x5c   : > { %10396 = vst [vmem:[#allocation70_spill] sm:$0xff] %v7338_v29  ;;  %v874_v39 = vsub.f32 %v7355_v53, %v7391_v13  ;;  %775 = vmatpush.msrb.mxu0 %v7362_v49 }
  0x5d   : > { %10397 = vst [vmem:[#allocation71_spill] sm:$0xff] %v7341_v6  ;;  %v7404_v6 = vand.u32 4294901760, %v599_v34  ;;  %v451_v34 = vld [vmem:[#allocation2 + $0x160] sm:$0xff] }
  0x5e   : > { %10398 = vst [vmem:[#allocation72_spill] sm:$0xff] %v7345_v7  ;;  %v7428_v7 = vand.u32 4294901760, %v7394_v30  ;;  %v7448_v23 = vand.u32 4294901760, %v451_v34  ;;  %v7457_v18 = vand.u32 4294901760, %v874_v39 }
  0x5f   : > { %10399 = vst [vmem:[#allocation73_spill] sm:$0xff] %v7352_v56  ;;  %601 = vmatpush.msra.mxu1 %v7404_v6 }
  0x60   : > { %10400 = vst [vmem:[#allocation74_spill] sm:$0xff] %v7355_v53  ;;  %v886_v60 = vsub.f32 %v7394_v30, %v7428_v7  ;;  %837 = vmatpush.msrb.mxu2 %v7448_v23 }
  0x61   : > { %10401 = vst [vmem:[#allocation75_spill] sm:$0xff] %v7357_v48 }
  0x62   : > { %10402 = vst [vmem:[#allocation76_spill] sm:$0xff] %v7362_v49  ;;  %v10469_v49 = vld [vmem:[#allocation54_spill] sm:$0xff] }
  0x63   : > { %10403 = vst [vmem:[#allocation77_spill] sm:$0xff] %v7365_v55  ;;  %v7416_v55 = vand.u32 4294901760, %v862_v38  ;;  %v7437_v38 = vsub.f32 %v455_v19, %v7400_v15  ;;  %v7453_v19 = vand.u32 4294901760, %v7419_v26 }
  0x64   : > { %10404 = vst [vmem:[#allocation78_spill] sm:$0xff] %v7369_v20  ;;  %v7422_v20 = vand.u32 4294901760, %v605_v63  ;;  %v449_v63 = vld [vmem:[#allocation2 + $0x150] sm:$0xff] }
  0x65   : > { %10405 = vst [vmem:[#allocation79_spill] sm:$0xff] %v7374_v43  ;;  %864 = vmatpush.msrb.mxu3 %v7416_v55  ;;  %v7469_v24 = vand.u32 4294901760, %v7437_v38  ;;  %v898_v27 = vsub.f32 %v7419_v26, %v7453_v19 }
  0x66   : > { %10406 = vst [vmem:[#allocation80_spill] sm:$0xff] %v7376_v2  ;;  %607 = vmatpush.msra.mxu1 %v7422_v20 }
  0x67   : > { %10407 = vst [vmem:[#allocation81_spill] sm:$0xff] %v7382_v16  ;;  %870 = vmatpush.msrb.mxu3 %v7434_v21  ;;  %v904_v33 = vsub.f32 %v7437_v38, %v7469_v24  ;;  %v7516_v36 = vand.u32 4294901760, %v898_v27 }
  0x68   : > { %10408 = vst [vmem:[#allocation82_spill] sm:$0xff] %v7386_v62  ;;  %v880_v62 = vsub.f32 %v7374_v43, %v7409_v14  ;;  %613 = vmatpush.msra.mxu1 %v7441_v46 }
  0x69   : > { %10409 = vst [vmem:[#allocation83_spill] sm:$0xff] %v7391_v13  ;;  %v7446_v13 = vand.u32 4294901760, %v7412_v47  ;;  %876 = vmatpush.msrb.mxu3 %v7457_v18  ;;  %v7532_v27 = vand.u32 4294901760, %v904_v33 }
  0x6a   : > { %10410 = vst [vmem:[#allocation84_spill] sm:$0xff] %v7394_v30  ;;  %v7473_v39 = vand.u32 4294901760, %v880_v62  ;;  %782 = vmatpush.msrb.mxu1 %v7107_v3  ;;  %v7488_v62 = vand.u32 4294901760, %v886_v60  ;;  %v443_v3 = vld [vmem:[#allocation2 + $0x120] sm:$0xff] }
  0x6b   : > { %10411 = vst [vmem:[#allocation85_spill] sm:$0xff] %v7400_v15 }
  0x6c   : > { %10412 = vst [vmem:[#allocation86_spill] sm:$0xff] %v7404_v6  ;;  %v7462_v6 = vsub.f32 %v453_v42, %v7430_v22  ;;  %v892_v42 = vsub.f32 %v7412_v47, %v7446_v13  ;;  %784 = vmatpush.msrb.mxu1 %v7109_v4  ;;  %882 = vmatpush.msrb.mxu3 %v7473_v39  ;;  %v441_v4 = vld [vmem:[#allocation2 + $0x110] sm:$0xff] }
  0x6d   : > { %10413 = vst [vmem:[#allocation87_spill] sm:$0xff] %v7409_v14  ;;  %v7464_v14 = vand.u32 4294901760, %v449_v63 }
  0x6e   : > { %10414 = vst [vmem:[#allocation88_spill] sm:$0xff] %v7412_v47  ;;  %v7504_v60 = vand.u32 4294901760, %v892_v42  ;;  %786 = vmatpush.msrb.mxu1 %v7111_v5  ;;  %888 = vmatpush.msrb.mxu3 %v7488_v62 }
  0x6f   : > { %10415 = vst [vmem:[#allocation89_spill] sm:$0xff] %v7416_v55  ;;  %v445_v55 = vld [vmem:[#allocation2 + $0x130] sm:$0xff]  ;;  %839 = vmatpush.msrb.mxu2 %v7464_v14 }
  0x70   : > { %10416 = vst [vmem:[#allocation90_spill] sm:$0xff] %v7419_v26  ;;  %788 = vmatpush.msrb.mxu1 %v7113_v9  ;;  %894 = vmatpush.msrb.mxu3 %v7504_v60 }
  0x71   : > { %10417 = vst [vmem:[#allocation91_spill] sm:$0xff] %v7422_v20  ;;  %v7478_v20 = vsub.f32 %v451_v34, %v7448_v23  ;;  %v7494_v34 = vsub.f32 %v449_v63, %v7464_v14 }
  0x72   : > { %10418 = vst [vmem:[#allocation92_spill] sm:$0xff] %v7428_v7  ;;  %v7480_v7 = vand.u32 4294901760, %v447_v37  ;;  %790 = vmatpush.msrb.mxu1 %v7115_v10  ;;  %900 = vmatpush.msrb.mxu3 %v7516_v36 }
  0x73   : > { %10419 = vst [vmem:[#allocation93_spill] sm:$0xff] %v7430_v22 }
  0x74   : > { %10420 = vst [vmem:[#allocation94_spill] sm:$0xff] %v7434_v21  ;;  %v473_v21 = vld.sshfl [vmem:[#allocation1] sm:$0xff pattern:$0x75316420]  ;;  %v7510_v63 = vsub.f32 %v447_v37, %v7480_v7  ;;  %v7525_v37 = vand.u32 4294901760, %v443_v3  ;;  %792 = vmatpush.msrb.mxu1 %v7117_v11  ;;  %906 = vmatpush.msrb.mxu3 %v7532_v27 }
  0x75   : > { %10421 = vst [vmem:[#allocation95_spill] sm:$0xff] %v7437_v38  ;;  %841 = vmatpush.msrb.mxu2 %v7480_v7 }
  0x76   : > { %10422 = vst [vmem:[#allocation96_spill] sm:$0xff] %v7441_v46  ;;  %v7491_v46 = vand.u32 4294901760, %v7462_v6  ;;  %794 = vmatpush.msrb.mxu1 %v7130_v17  ;;  %v7601_v17 = vand.u32 4294901760, %v474_v1 }
  0x77   : > { %10423 = vst [vmem:[#allocation97_spill] sm:$0xff] %v7446_v13  ;;  %v7496_v13 = vand.u32 4294901760, %v445_v55 }
  0x78   : > { %10424 = vst [vmem:[#allocation98_spill] sm:$0xff] %v7448_v23  ;;  %v910_v42 = vsub.f32 %v7462_v6, %v7491_v46  ;;  %796 = vmatpush.msrb.mxu1 %v7157_v25 }
  0x79   : > { %10425 = vst [vmem:[#allocation99_spill] sm:$0xff] %v7453_v19  ;;  %v7512_v19 = vand.u32 4294901760, %v473_v21  ;;  %843 = vmatpush.msrb.mxu2 %v7496_v13 }
  0x7a   : > { %10426 = vst [vmem:[#allocation100_spill] sm:$0xff] %v7457_v18  ;;  %v7507_v18 = vand.u32 4294901760, %v7478_v20  ;;  %v7550_v33 = vand.u32 4294901760, %v910_v42  ;;  %798 = vmatpush.msrb.mxu1 %v7163_v28 }
  0x7b   : > { %10427 = vst [vmem:[#allocation101_spill] sm:$0xff] %v7462_v6  ;;  %v7542_v5 = vsub.f32 %v473_v21, %v7512_v19  ;;  %v7558_v21 = vsub.f32 %v443_v3, %v7525_v37  ;;  %845 = vmatpush.msrb.mxu2 %v7525_v37  ;;  %615 = vmatmul.f32.vlgmr.msra.gmra.mxu1 %v7512_v19 }
  0x7c   : > { %10428 = vst [vmem:[#allocation102_spill] sm:$0xff] %v7464_v14  ;;  %v916_v45 = vsub.f32 %v7478_v20, %v7507_v18  ;;  %912 = vmatpush.msrb.mxu3 %v7550_v33  ;;  %800 = vmatpush.msrb.mxu1 %v7180_v35 }
  0x7d   : > { %10429 = vst [vmem:[#allocation103_spill] sm:$0xff] %v7469_v24  ;;  %v7528_v24 = vsub.f32 %v445_v55, %v7496_v13  ;;  %v7544_v55 = vand.u32 4294901760, %v441_v4  ;;  %v7571_v10 = vand.u32 4294901760, %v7542_v5  ;;  %v7585_v11 = vand.u32 4294901760, %v7558_v21  ;;  %669 = vmatmul.f32.vlgmr.msra.gmra.mxu2 %v7542_v5 }
  0x7e   : > { %10430 = vst [vmem:[#allocation104_spill] sm:$0xff] %v7473_v39  ;;  %v7523_v39 = vand.u32 4294901760, %v7494_v34  ;;  %v7566_v42 = vand.u32 4294901760, %v916_v45  ;;  %802 = vmatpush.msrb.mxu1 %v7198_v41 }
  0x7f   : > { %10431 = vst [vmem:[#allocation105_spill] sm:$0xff] %v7478_v20  ;;  %v7555_v9 = vand.u32 4294901760, %v7528_v24  ;;  %v7574_v3 = vsub.f32 %v441_v4, %v7544_v55  ;;  %v7590_v4 = vsub.f32 %v439_v51, %v7562_v59  ;;  %847 = vmatpush.msrb.mxu2 %v7544_v55  ;;  %708 = vmatmul.f32.vlgmr.msra.gmra.mxu3 %v7571_v10 }
  0x80   : > { %10432 = vst [vmem:[#allocation106_spill] sm:$0xff] %v7480_v7  ;;  %918 = vmatpush.msrb.mxu3 %v7566_v42  ;;  %804 = vmatpush.msrb.mxu1 %v7223_v50 }
  0x81   : > { %10433 = vst [vmem:[#allocation107_spill] sm:$0xff] %v7488_v62  ;;  %v7539_v62 = vand.u32 4294901760, %v7510_v63  ;;  %v7614_v44 = vand.u32 4294901760, %v7590_v4  ;;  %849 = vmatpush.msrb.mxu2 %v7562_v59 }
  0x82   : > { %10434 = vst [vmem:[#allocation108_spill] sm:$0xff] %v7491_v46  ;;  %806 = vmatpush.msrb.mxu1 %v7244_v58 }
  0x83   : > { %10435 = vst [vmem:[#allocation109_spill] sm:$0xff] %v7494_v34 }
  0x84   : > { %10436 = vst [vmem:[#allocation110_spill] sm:$0xff] %v7496_v13  ;;  %808 = vmatpush.msrb.mxu1 %v7258_v0  ;;  %v464_v0 = vld [vmem:[#allocation2 + $0x1c8] sm:$0xff] }
  0x85   : > { %10437 = vst [vmem:[#allocation111_spill] sm:$0xff] %v7504_v60  ;;  %v922_v60 = vsub.f32 %v7494_v34, %v7523_v39 }
  0x86   : > { %10438 = vst [vmem:[#allocation112_spill] sm:$0xff] %v7507_v18  ;;  %810 = vmatpush.msrb.mxu1 %v10469_v49 }
  0x87   : > { %10439 = vst [vmem:[#allocation113_spill] sm:$0xff] %v7510_v63  ;;  %v7580_v45 = vand.u32 4294901760, %v922_v60  ;;  %v512_v60 = vsub.f32 %v7542_v5, %v7571_v10 }
  0x88   : > { %10440 = vst [vmem:[#allocation114_spill] sm:$0xff] %v7512_v19  ;;  %812 = vmatpush.msrb.mxu1 %v7286_v31 }
  0x89   : > { %10441 = vst [vmem:[#allocation115_spill] sm:$0xff] %v7516_v36  ;;  %v928_v36 = vsub.f32 %v7510_v63, %v7539_v62  ;;  %924 = vmatpush.msrb.mxu3 %v7580_v45  ;;  %v7618_v54 = vand.u32 4294901760, %v512_v60  ;;  %v952_v60 = vsub.f32 %v7590_v4, %v7614_v44  ;;  %814 = vmatmul.f32.vlgmr.msrb.gmra.mxu1 %v7512_v19 }
  0x8a   : > { %10442 = vst [vmem:[#allocation116_spill] sm:$0xff] %v7523_v39  ;;  %1015 = vmatpush.msra.mxu1 %v7271_v12 }
  0x8b   : > { %10443 = vst [vmem:[#allocation117_spill] sm:$0xff] %v7525_v37  ;;  %v7594_v8 = vand.u32 4294901760, %v928_v36  ;;  %v940_v36 = vsub.f32 %v7558_v21, %v7585_v11  ;;  %514 = vmatmul.f32.vlgmr.msra.gmra.mxu0 %v7618_v54 }
  0x8c   : > { %10444 = vst [vmem:[#allocation118_spill] sm:$0xff] %v7528_v24  ;;  %962 = vmatpush.msra.mxu0 %v7307_v57  ;;  %v10468_v57 = vld [vmem:[#allocation72_spill] sm:$0xff]  ;;  %1017 = vmatpush.msra.mxu1 %v7288_v32 }
  0x8d   : > { %10445 = vst [vmem:[#allocation119_spill] sm:$0xff] %v7532_v27  ;;  %v934_v27 = vsub.f32 %v7528_v24, %v7555_v9  ;;  %930 = vmatpush.msrb.mxu3 %v7594_v8  ;;  %v7629_v52 = vand.u32 4294901760, %v940_v36  ;;  %v7648_v36 = vand.u32 4294901760, %v952_v60  ;;  %1056 = vmatpush.msra.mxu2 %v10468_v57  ;;  %v10470_v60 = vld [vmem:[#allocation77_spill] sm:$0xff]  ;;  %v420_v57 = vld [vmem:[#allocation2 + $0x68] sm:$0xff] }
  0x8e   : > { %10446 = vst [vmem:[#allocation120_spill] sm:$0xff] %v7539_v62  ;;  %965 = vmatpush.msra.mxu0 %v7327_v61  ;;  %1019 = vmatpush.msra.mxu1 %v7319_v40 }
  0x8f   : > { %10447 = vst [vmem:[#allocation121_spill] sm:$0xff] %v7544_v55  ;;  %v7607_v51 = vand.u32 4294901760, %v934_v27  ;;  %1060 = vmatpush.msra.mxu2 %v10470_v60 }
  0x90   : > { %10448 = vst [vmem:[#allocation122_spill] sm:$0xff] %v7550_v33  ;;  %v7599_v33 = vand.u32 4294901760, %v7574_v3  ;;  %968 = vmatpush.msra.mxu0 %v7355_v53  ;;  %v10472_v53 = vld [vmem:[#allocation83_spill] sm:$0xff]  ;;  %1021 = vmatpush.msra.mxu1 %v7338_v29 }
  0x91   : > { %10449 = vst [vmem:[#allocation123_spill] sm:$0xff] %v7555_v9  ;;  %936 = vmatpush.msrb.mxu3 %v7607_v51  ;;  %1064 = vmatpush.msra.mxu2 %v10472_v53 }
  0x92   : > { %10450 = vst [vmem:[#allocation124_spill] sm:$0xff] %v7558_v21  ;;  %v946_v27 = vsub.f32 %v7574_v3, %v7599_v33  ;;  %971 = vmatpush.msra.mxu0 %v7374_v43  ;;  %1023 = vmatpush.msra.mxu1 %v7357_v48  ;;  %v10477_v43 = vld [vmem:[#allocation103_spill] sm:$0xff] }
  0x93   : > { %10451 = vst [vmem:[#allocation125_spill] sm:$0xff] %v7562_v59  ;;  %942 = vmatpush.msrb.mxu3 %v7629_v52  ;;  %777 = vmatmul.f32.vlgmr.msrb.gmra.mxu0 %v7512_v19 }
  0x94   : > { %10452 = vst [vmem:[#allocation126_spill] sm:$0xff] %v7566_v42  ;;  %974 = vmatpush.msra.mxu0 %v7394_v30  ;;  %v10474_v30 = vld [vmem:[#allocation92_spill] sm:$0xff]  ;;  %1025 = vmatpush.msra.mxu1 %v7376_v2 }
  0x95   : > { %10453 = vst [vmem:[#allocation127_spill] sm:$0xff] %v7571_v10 }
  0x96   : > { %10454 = vst [vmem:[#allocation128_spill] sm:$0xff] %v7574_v3  ;;  %977 = vmatpush.msra.mxu0 %v7412_v47  ;;  %v10475_v47 = vld [vmem:[#allocation97_spill] sm:$0xff]  ;;  %1027 = vmatpush.msra.mxu1 %v7382_v16 }
  0x97   : > { %10455 = vst [vmem:[#allocation129_spill] sm:$0xff] %v7580_v45  ;;  %v7623_v45 = vsub.f32 %v474_v1, %v7601_v17  ;;  %v7637_v1 = vand.u32 4294901760, %v946_v27 }
  0x98   : > { %10456 = vst [vmem:[#allocation130_spill] sm:$0xff] %v7585_v11  ;;  %980 = vmatpush.msra.mxu0 %v7419_v26  ;;  %v10476_v26 = vld [vmem:[#allocation99_spill] sm:$0xff]  ;;  %1029 = vmatpush.msra.mxu1 %v7400_v15 }
  0x99   : > { %10457 = vst [vmem:[#allocation131_spill] sm:$0xff] %v7590_v4  ;;  %v7640_v56 = vand.u32 4294901760, %v7623_v45  ;;  %948 = vmatpush.msrb.mxu3 %v7637_v1 }
  0x9a   : > { %10458 = vst [vmem:[#allocation132_spill] sm:$0xff] %v7594_v8  ;;  %983 = vmatpush.msra.mxu0 %v7437_v38  ;;  %v438_v38 = vld [vmem:[#allocation2 + $0xf8] sm:$0xff]  ;;  %1031 = vmatpush.msra.mxu1 %v7430_v22 }
  0x9b   : > { %10459 = vst [vmem:[#allocation133_spill] sm:$0xff] %v7599_v33  ;;  %v853_v27 = vsub.f32 %v7623_v45, %v7640_v56  ;;  %954 = vmatpush.msrb.mxu3 %v7648_v36 }
  0x9c   : > { %10460 = vst [vmem:[#allocation134_spill] sm:$0xff] %v7601_v17  ;;  %956 = vmatmul.f32.vlgmr.msrb.gmra.mxu3 %v7601_v17  ;;  %986 = vmatpush.msra.mxu0 %v7462_v6  ;;  %v7702_v6 = vand.u32 4294901760, %v438_v38 }
  0x9d   : > { %10461 = vst [vmem:[#allocation135_spill] sm:$0xff] %v7607_v51  ;;  %v7662_v61 = vand.u32 4294901760, %v853_v27  ;;  %1123 = vmatpush.msra.mxu3 %v7271_v12  ;;  %v10473_v27 = vld [vmem:[#allocation87_spill] sm:$0xff]  ;;  %1033 = vmatpush.msra.mxu1 %v7448_v23  ;;  %v418_v51 = vld [vmem:[#allocation2 + $0x58] sm:$0xff] }
  0x9e   : > { %10462 = vst [vmem:[#allocation136_spill] sm:$0xff] %v7614_v44  ;;  %1068 = vmatpush.msra.mxu2 %v10473_v27  ;;  %989 = vmatpush.msra.mxu0 %v7478_v20  ;;  %v436_v20 = vld [vmem:[#allocation2 + $0xe8] sm:$0xff]  ;;  %v422_v27 = vld [vmem:[#allocation2 + $0x78] sm:$0xff] }
  0x9f   : > { %10463 = vst [vmem:[#allocation137_spill] sm:$0xff] %v7623_v45  ;;  %1125 = vmatpush.msra.mxu3 %v7288_v32  ;;  %855 = vmatmul.f32.vlgmr.msrb.gmra.mxu2 %v7662_v61  ;;  %v466_v12 = vld [vmem:[#allocation2 + $0x1d8] sm:$0xff] }
  0xa0   : > { %10464 = vst [vmem:[#allocation138_spill] sm:$0xff] %v7629_v52  ;;  %1072 = vmatpush.msra.mxu2 %v10474_v30  ;;  %992 = vmatpush.msra.mxu0 %v7494_v34  ;;  %v434_v34 = vld [vmem:[#allocation2 + $0xd8] sm:$0xff]  ;;  %v7943_v50 = vand.u32 4294901760, %v466_v12 }
  0xa1   : > { %10465 = vst [vmem:[#allocation139_spill] sm:$0xff] %v7637_v1  ;;  %1127 = vmatpush.msra.mxu3 %v7319_v40  ;;  %1035 = vmatpush.msra.mxu1 %v7464_v14  ;;  %v468_v40 = vld [vmem:[#allocation2 + $0x1e8] sm:$0xff] }
  0xa2   : > { %10466 = vst [vmem:[#allocation140_spill] sm:$0xff] %v7640_v56  ;;  %1076 = vmatpush.msra.mxu2 %v10475_v47  ;;  %995 = vmatpush.msra.mxu0 %v7510_v63  ;;  %v432_v63 = vld [vmem:[#allocation2 + $0xc8] sm:$0xff]  ;;  %v7924_v49 = vand.u32 4294901760, %v468_v40 }
  0xa3   : > { %10467 = vst [vmem:[#allocation141_spill] sm:$0xff] %v7648_v36  ;;  %1129 = vmatpush.msra.mxu3 %v7338_v29  ;;  %1037 = vmatpush.msra.mxu1 %v7480_v7  ;;  %v7782_v36 = vand.u32 4294901760, %v422_v27 }
  0xa4   : > { %10471 = vst [vmem:[#allocation142_spill] sm:$0xff] %v7662_v61  ;;  %1080 = vmatpush.msra.mxu2 %v10476_v26  ;;  %998 = vmatpush.msra.mxu0 %v7528_v24  ;;  %v7717_v24 = vsub.f32 %v438_v38, %v7702_v6  ;;  %v428_v38 = vld [vmem:[#allocation2 + $0xa8] sm:$0xff]  ;;  %v7959_v41 = vsub.f32 %v468_v40, %v7924_v49 }
  0xa5   : > { %1131 = vmatpush.msra.mxu3 %v7357_v48  ;;  %10478 = vst [vmem:[#allocation143_spill] sm:$0xff] %v7702_v6  ;;  %1039 = vmatpush.msra.mxu1 %v7496_v13 }
  0xa6   : > { %1084 = vmatpush.msra.mxu2 %v10477_v43  ;;  %1001 = vmatpush.msra.mxu0 %v7558_v21  ;;  %10481 = vst [vmem:[#allocation146_spill] sm:$0xff] %v7717_v24  ;;  %v7723_v21 = vand.u32 4294901760, %v432_v63 }
  0xa7   : > { %1133 = vmatpush.msra.mxu3 %v7376_v2  ;;  %1041 = vmatpush.msra.mxu1 %v7525_v37  ;;  %10496 = vst [vmem:[#allocation161_spill] sm:$0xff] %v7782_v36  ;;  %v470_v2 = vld [vmem:[#allocation2 + $0x1f8] sm:$0xff] }
  0xa8   : > { %1088 = vmatpush.msra.mxu2 %v7491_v46  ;;  %v7708_v46 = vand.u32 4294901760, %v436_v20  ;;  %1004 = vmatpush.msra.mxu0 %v7574_v3  ;;  %10482 = vst [vmem:[#allocation147_spill] sm:$0xff] %v7723_v21  ;;  %v7750_v26 = vsub.f32 %v432_v63, %v7723_v21 }
  0xa9   : > { %1135 = vmatpush.msra.mxu3 %v7382_v16  ;;  %1043 = vmatpush.msra.mxu1 %v7544_v55  ;;  %10532 = vst [vmem:[#allocation197_spill] sm:$0xff] %v7924_v49 }
  0xaa   : > { %1092 = vmatpush.msra.mxu2 %v7507_v18  ;;  %10479 = vst [vmem:[#allocation144_spill] sm:$0xff] %v7708_v46  ;;  %v7714_v18 = vand.u32 4294901760, %v434_v34  ;;  %1007 = vmatpush.msra.mxu0 %v7590_v4  ;;  %v7744_v4 = vand.u32 4294901760, %v428_v38  ;;  %v7775_v60 = vand.u32 4294901760, %v7750_v26 }
  0xab   : > { %1137 = vmatpush.msra.mxu3 %v7400_v15  ;;  %1010 = vmatmul.f32.vlgmr.msra.gmra.mxu0 %v7623_v45  ;;  %10489 = vst [vmem:[#allocation154_spill] sm:$0xff] %v7750_v26 }
  0xac   : > { %1096 = vmatpush.msra.mxu2 %v7523_v39  ;;  %10480 = vst [vmem:[#allocation145_spill] sm:$0xff] %v7714_v18  ;;  %v430_v39 = vld [vmem:[#allocation2 + $0xb8] sm:$0xff]  ;;  %v7738_v43 = vsub.f32 %v434_v34, %v7714_v18  ;;  %1160 = vmatpush.msrb.mxu0 %v7702_v6  ;;  %v424_v34 = vld [vmem:[#allocation2 + $0x88] sm:$0xff] }
  0xad   : > { %1139 = vmatpush.msra.mxu3 %v7430_v22  ;;  %v7732_v3 = vand.u32 4294901760, %v430_v39  ;;  %10487 = vst [vmem:[#allocation152_spill] sm:$0xff] %v7744_v4  ;;  %v7772_v53 = vand.u32 4294901760, %v424_v34  ;;  %1045 = vmatpush.msra.mxu1 %v7562_v59 }
  0xae   : > { %1100 = vmatpush.msra.mxu2 %v7539_v62  ;;  %v7726_v62 = vsub.f32 %v436_v20, %v7708_v46  ;;  %10486 = vst [vmem:[#allocation151_spill] sm:$0xff] %v7738_v43  ;;  %v426_v20 = vld [vmem:[#allocation2 + $0x98] sm:$0xff]  ;;  %1162 = vmatpush.msrb.mxu0 %v7708_v46  ;;  %v7761_v30 = vand.u32 4294901760, %v7738_v43 }
  0xaf   : > { %1141 = vmatpush.msra.mxu3 %v7448_v23  ;;  %10484 = vst [vmem:[#allocation149_spill] sm:$0xff] %v7732_v3  ;;  %v7758_v47 = vand.u32 4294901760, %v426_v20  ;;  %v7764_v63 = vsub.f32 %v430_v39, %v7732_v3  ;;  %v7778_v39 = vsub.f32 %v428_v38, %v7744_v4  ;;  %1049 = vmatmul.f32.vlgmr.msra.gmra.mxu1 %v7640_v56 }
  0xb0   : > { %1104 = vmatpush.msra.mxu2 %v7555_v9  ;;  %10483 = vst [vmem:[#allocation148_spill] sm:$0xff] %v7726_v62  ;;  %v7735_v9 = vand.u32 4294901760, %v7717_v24  ;;  %1164 = vmatpush.msrb.mxu0 %v7714_v18  ;;  %v1215_v1 = vsub.f32 %v7738_v43, %v7761_v30 }
  0xb1   : > { %1143 = vmatpush.msra.mxu3 %v7464_v14  ;;  %10490 = vst [vmem:[#allocation155_spill] sm:$0xff] %v7758_v47  ;;  %v7791_v52 = vand.u32 4294901760, %v7764_v63  ;;  %v7794_v38 = vsub.f32 %v426_v20, %v7758_v47  ;;  %v7807_v8 = vand.u32 4294901760, %v7778_v39  ;;  %v7810_v20 = vsub.f32 %v424_v34, %v7772_v53 }
  0xb2   : > { %1108 = vmatpush.msra.mxu2 %v7585_v11  ;;  %10485 = vst [vmem:[#allocation150_spill] sm:$0xff] %v7735_v9  ;;  %v7747_v11 = vand.u32 4294901760, %v7726_v62  ;;  %1166 = vmatpush.msrb.mxu0 %v7723_v21 }
  0xb3   : > { %1145 = vmatpush.msra.mxu3 %v7480_v7  ;;  %10491 = vst [vmem:[#allocation156_spill] sm:$0xff] %v7761_v30  ;;  %v7823_v7 = vand.u32 4294901760, %v418_v51  ;;  %v7826_v34 = vand.u32 4294901760, %v7794_v38  ;;  %v7842_v14 = vand.u32 4294901760, %v7810_v20 }
  0xb4   : > { %1112 = vmatpush.msra.mxu2 %v7599_v33  ;;  %10488 = vst [vmem:[#allocation153_spill] sm:$0xff] %v7747_v11  ;;  %v1203_v33 = vsub.f32 %v7717_v24, %v7735_v9  ;;  %1168 = vmatpush.msrb.mxu0 %v7732_v3 }
  0xb5   : > { %1147 = vmatpush.msra.mxu3 %v7496_v13  ;;  %10492 = vst [vmem:[#allocation157_spill] sm:$0xff] %v7764_v63  ;;  %v1227_v13 = vsub.f32 %v7764_v63, %v7791_v52  ;;  %v7858_v22 = vsub.f32 %v418_v51, %v7823_v7  ;;  %v1245_v15 = vsub.f32 %v7810_v20, %v7842_v14 }
  0xb6   : > { %1116 = vmatpush.msra.mxu2 %v7614_v44  ;;  %v1209_v44 = vsub.f32 %v7726_v62, %v7747_v11  ;;  %10493 = vst [vmem:[#allocation158_spill] sm:$0xff] %v7772_v53  ;;  %1170 = vmatpush.msrb.mxu0 %v7744_v4 }
  0xb7   : > { %1149 = vmatpush.msra.mxu3 %v7525_v37  ;;  %1118 = vmatmul.f32.vlgmr.msra.gmra.mxu2 %v7601_v17  ;;  %10494 = vst [vmem:[#allocation159_spill] sm:$0xff] %v7775_v60  ;;  %v1221_v37 = vsub.f32 %v7750_v26, %v7775_v60 }
  0xb8   : > { %1303 = vmatpush.msrb.mxu2 %v7717_v24  ;;  %10495 = vst [vmem:[#allocation160_spill] sm:$0xff] %v7778_v39  ;;  %v7786_v24 = vand.u32 4294901760, %v1203_v33  ;;  %v7802_v33 = vand.u32 4294901760, %v1209_v44  ;;  %v7819_v44 = vand.u32 4294901760, %v1215_v1  ;;  %1172 = vmatpush.msrb.mxu0 %v7758_v47 }
  0xb9   : > { %1151 = vmatpush.msra.mxu3 %v7544_v55  ;;  %10498 = vst [vmem:[#allocation163_spill] sm:$0xff] %v7791_v52  ;;  %v7798_v55 = vand.u32 4294901760, %v420_v57  ;;  %v7835_v1 = vand.u32 4294901760, %v1221_v37  ;;  %v7851_v37 = vand.u32 4294901760, %v1227_v13 }
  0xba   : > { %10497 = vst [vmem:[#allocation162_spill] sm:$0xff] %v7786_v24  ;;  %1306 = vmatpush.msrb.mxu2 %v7726_v62  ;;  %v7815_v62 = vsub.f32 %v422_v27, %v7782_v36  ;;  %1205 = vmatpush.msrb.mxu1 %v7786_v24  ;;  %v1233_v24 = vsub.f32 %v7778_v39, %v7807_v8 }
  0xbb   : > { %1153 = vmatpush.msra.mxu3 %v7562_v59  ;;  %10499 = vst [vmem:[#allocation164_spill] sm:$0xff] %v7794_v38  ;;  %v416_v59 = vld [vmem:[#allocation2 + $0x48] sm:$0xff]  ;;  %v7831_v27 = vsub.f32 %v420_v57, %v7798_v55  ;;  %1174 = vmatpush.msrb.mxu0 %v7772_v53 }
  0xbc   : > { %1155 = vmatmul.f32.vlgmr.msra.gmra.mxu3 %v7601_v17  ;;  %10500 = vst [vmem:[#allocation165_spill] sm:$0xff] %v7798_v55  ;;  %1309 = vmatpush.msrb.mxu2 %v7738_v43  ;;  %v414_v43 = vld [vmem:[#allocation2 + $0x38] sm:$0xff]  ;;  %v7839_v42 = vand.u32 4294901760, %v416_v59  ;;  %v7847_v57 = vand.u32 4294901760, %v7815_v62  ;;  %v7867_v13 = vand.u32 4294901760, %v1233_v24 }
  0xbd   : > { %1356 = vmatpush.msrb.mxu3 %v7702_v6  ;;  %10501 = vst [vmem:[#allocation166_spill] sm:$0xff] %v7802_v33  ;;  %1211 = vmatpush.msrb.mxu1 %v7802_v33  ;;  %v1239_v33 = vsub.f32 %v7794_v38, %v7826_v34  ;;  %v7855_v23 = vand.u32 4294901760, %v414_v43 }
  0xbe   : > { %10502 = vst [vmem:[#allocation167_spill] sm:$0xff] %v7807_v8  ;;  %1312 = vmatpush.msrb.mxu2 %v7750_v26  ;;  %v412_v26 = vld [vmem:[#allocation2 + $0x28] sm:$0xff]  ;;  %v7874_v51 = vsub.f32 %v416_v59, %v7839_v42  ;;  %1176 = vmatpush.msrb.mxu0 %v7782_v36  ;;  %v7887_v59 = vand.u32 4294901760, %v7858_v22 }
  0xbf   : > { %10503 = vst [vmem:[#allocation168_spill] sm:$0xff] %v7810_v20  ;;  %1358 = vmatpush.msrb.mxu3 %v7708_v46  ;;  %1217 = vmatpush.msrb.mxu1 %v7819_v44  ;;  %v7871_v16 = vand.u32 4294901760, %v412_v26  ;;  %v7882_v24 = vand.u32 4294901760, %v1239_v33  ;;  %v7890_v29 = vsub.f32 %v414_v43, %v7855_v23  ;;  %v7900_v33 = vand.u32 4294901760, %v1245_v15 }
  0xc0   : > { %10504 = vst [vmem:[#allocation169_spill] sm:$0xff] %v7815_v62  ;;  %1315 = vmatpush.msrb.mxu2 %v7764_v63  ;;  %v7863_v63 = vand.u32 4294901760, %v7831_v27  ;;  %1178 = vmatpush.msrb.mxu0 %v7798_v55  ;;  %v7905_v43 = vand.u32 4294901760, %v7874_v51  ;;  %v1263_v15 = vsub.f32 %v7858_v22, %v7887_v59 }
  0xc1   : > { %10505 = vst [vmem:[#allocation170_spill] sm:$0xff] %v7819_v44  ;;  %1360 = vmatpush.msrb.mxu3 %v7714_v18  ;;  %v410_v44 = vld [vmem:[#allocation2 + $0x18] sm:$0xff]  ;;  %1223 = vmatpush.msrb.mxu1 %v7835_v1  ;;  %v7908_v31 = vsub.f32 %v412_v26, %v7871_v16 }
  0xc2   : > { %10506 = vst [vmem:[#allocation171_spill] sm:$0xff] %v7823_v7  ;;  %1318 = vmatpush.msrb.mxu2 %v7778_v39  ;;  %v1251_v39 = vsub.f32 %v7815_v62, %v7847_v57  ;;  %v7884_v48 = vand.u32 4294901760, %v410_v44  ;;  %1180 = vmatpush.msrb.mxu0 %v7823_v7 }
  0xc3   : > { %10507 = vst [vmem:[#allocation172_spill] sm:$0xff] %v7826_v34  ;;  %1362 = vmatpush.msrb.mxu3 %v7723_v21  ;;  %1229 = vmatpush.msrb.mxu1 %v7851_v37 }
  0xc4   : > { %10508 = vst [vmem:[#allocation173_spill] sm:$0xff] %v7831_v27  ;;  %1321 = vmatpush.msrb.mxu2 %v7794_v38  ;;  %v1257_v38 = vsub.f32 %v7831_v27, %v7863_v63  ;;  %v7922_v26 = vsub.f32 %v410_v44, %v7884_v48  ;;  %1182 = vmatpush.msrb.mxu0 %v7839_v42 }
  0xc5   : > { %10509 = vst [vmem:[#allocation174_spill] sm:$0xff] %v7835_v1  ;;  %1364 = vmatpush.msrb.mxu3 %v7732_v3  ;;  %v408_v1 = vld [vmem:[#allocation2 + $0x8] sm:$0xff]  ;;  %1235 = vmatpush.msrb.mxu1 %v7867_v13  ;;  %v1269_v44 = vsub.f32 %v7874_v51, %v7905_v43 }
  0xc6   : > { %10510 = vst [vmem:[#allocation175_spill] sm:$0xff] %v7839_v42  ;;  %1324 = vmatpush.msrb.mxu2 %v7810_v20  ;;  %v7902_v32 = vand.u32 4294901760, %v408_v1  ;;  %v7912_v20 = vand.u32 4294901760, %v1251_v39  ;;  %v7928_v39 = vand.u32 4294901760, %v1257_v38  ;;  %v462_v38 = vld [vmem:[#allocation2 + $0x1b8] sm:$0xff]  ;;  %1184 = vmatpush.msrb.mxu0 %v7855_v23 }
  0xc7   : > { %10511 = vst [vmem:[#allocation176_spill] sm:$0xff] %v7842_v14  ;;  %1366 = vmatpush.msrb.mxu3 %v7744_v4  ;;  %1241 = vmatpush.msrb.mxu1 %v7882_v24  ;;  %v7970_v35 = vand.u32 4294901760, %v1269_v44 }
  0xc8   : > { %10512 = vst [vmem:[#allocation177_spill] sm:$0xff] %v7847_v57  ;;  %1327 = vmatpush.msrb.mxu2 %v7815_v62  ;;  %v7941_v58 = vsub.f32 %v408_v1, %v7902_v32  ;;  %v7956_v1 = vand.u32 4294901760, %v7922_v26  ;;  %1186 = vmatpush.msrb.mxu0 %v7871_v16 }
  0xc9   : > { %10513 = vst [vmem:[#allocation178_spill] sm:$0xff] %v7851_v37  ;;  %v7896_v37 = vand.u32 4294901760, %v470_v2  ;;  %1368 = vmatpush.msrb.mxu3 %v7758_v47  ;;  %1247 = vmatpush.msrb.mxu1 %v7900_v33 }
  0xca   : > { %10514 = vst [vmem:[#allocation179_spill] sm:$0xff] %v7855_v23  ;;  %1330 = vmatpush.msrb.mxu2 %v7831_v27  ;;  %v7951_v27 = vand.u32 4294901760, %v1263_v15  ;;  %v460_v15 = vld [vmem:[#allocation2 + $0x1a8] sm:$0xff]  ;;  %v7975_v28 = vand.u32 4294901760, %v7941_v58  ;;  %1188 = vmatpush.msrb.mxu0 %v7884_v48  ;;  %v1287_v56 = vsub.f32 %v7922_v26, %v7956_v1 }
  0xcb   : > { %10515 = vst [vmem:[#allocation180_spill] sm:$0xff] %v7858_v22  ;;  %1370 = vmatpush.msrb.mxu3 %v7772_v53  ;;  %v7931_v62 = vsub.f32 %v470_v2, %v7896_v37  ;;  %v7947_v2 = vand.u32 4294901760, %v464_v0  ;;  %1253 = vmatpush.msrb.mxu1 %v7912_v20  ;;  %v7994_v45 = vand.u32 4294901760, %v460_v15 }
  0xcc   : > { %10516 = vst [vmem:[#allocation181_spill] sm:$0xff] %v7863_v63  ;;  %1333 = vmatpush.msrb.mxu2 %v7858_v22  ;;  %1190 = vmatpush.msrb.mxu0 %v7902_v32  ;;  %v1293_v17 = vsub.f32 %v7941_v58, %v7975_v28 }
  0xcd   : > { %10517 = vst [vmem:[#allocation182_spill] sm:$0xff] %v7867_v13  ;;  %v7919_v13 = vand.u32 4294901760, %v7890_v29  ;;  %1372 = vmatpush.msrb.mxu3 %v7782_v36  ;;  %v7964_v22 = vand.u32 4294901760, %v7931_v62  ;;  %1259 = vmatpush.msrb.mxu1 %v7928_v39  ;;  %v7983_v25 = vsub.f32 %v464_v0, %v7947_v2 }
  0xce   : > { %10518 = vst [vmem:[#allocation183_spill] sm:$0xff] %v7871_v16  ;;  %1336 = vmatpush.msrb.mxu2 %v7874_v51  ;;  %1397 = vmatpush.msra.mxu0 %v7735_v9 }
  0xcf   : > { %10519 = vst [vmem:[#allocation184_spill] sm:$0xff] %v7874_v51  ;;  %1374 = vmatpush.msrb.mxu3 %v7798_v55  ;;  %v7978_v51 = vsub.f32 %v466_v12, %v7943_v50  ;;  %1265 = vmatpush.msrb.mxu1 %v7951_v27  ;;  %v7992_v12 = vand.u32 4294901760, %v7959_v41  ;;  %v1544_v0 = vsub.f32 %v7931_v62, %v7964_v22 }
  0xd0   : > { %10520 = vst [vmem:[#allocation185_spill] sm:$0xff] %v7882_v24  ;;  %v7938_v24 = vand.u32 4294901760, %v7908_v31  ;;  %1339 = vmatpush.msrb.mxu2 %v7890_v29  ;;  %1401 = vmatpush.msra.mxu0 %v7747_v11 }
  0xd1   : > { %10521 = vst [vmem:[#allocation186_spill] sm:$0xff] %v7884_v48  ;;  %1376 = vmatpush.msrb.mxu3 %v7823_v7  ;;  %1271 = vmatpush.msrb.mxu1 %v7970_v35  ;;  %v8010_v61 = vand.u32 4294901760, %v7978_v51  ;;  %v1550_v19 = vsub.f32 %v7959_v41, %v7992_v12  ;;  %v8032_v9 = vand.u32 4294901760, %v1544_v0 }
  0xd2   : > { %10522 = vst [vmem:[#allocation187_spill] sm:$0xff] %v7887_v59  ;;  %v1281_v40 = vsub.f32 %v7908_v31, %v7938_v24  ;;  %1342 = vmatpush.msrb.mxu2 %v7908_v31  ;;  %1405 = vmatpush.msra.mxu0 %v7761_v30 }
  0xd3   : > { %10523 = vst [vmem:[#allocation188_spill] sm:$0xff] %v7890_v29  ;;  %1378 = vmatpush.msrb.mxu3 %v7839_v42  ;;  %1196 = vmatmul.f32.vlgmr.msrb.gmra.mxu0 %v7618_v54  ;;  %v10606_v54 = vld [vmem:[#allocation127_spill] sm:$0xff] }
  0xd4   : > { %10524 = vst [vmem:[#allocation189_spill] sm:$0xff] %v7896_v37  ;;  %1345 = vmatpush.msrb.mxu2 %v7922_v26  ;;  %1409 = vmatpush.msra.mxu0 %v7775_v60 }
  0xd5   : > { %10525 = vst [vmem:[#allocation190_spill] sm:$0xff] %v7900_v33  ;;  %v1275_v33 = vsub.f32 %v7890_v29, %v7919_v13  ;;  %1380 = vmatpush.msrb.mxu3 %v7855_v23 }
  0xd6   : > { %10526 = vst [vmem:[#allocation191_spill] sm:$0xff] %v7902_v32  ;;  %1348 = vmatpush.msrb.mxu2 %v7941_v58  ;;  %1413 = vmatpush.msra.mxu0 %v7791_v52 }
  0xd7   : > { %10527 = vst [vmem:[#allocation192_spill] sm:$0xff] %v7905_v43  ;;  %v7987_v44 = vand.u32 4294901760, %v1275_v33  ;;  %v456_v33 = vld [vmem:[#allocation2 + $0x188] sm:$0xff]  ;;  %1382 = vmatpush.msrb.mxu3 %v7871_v16  ;;  %1351 = vmatmul.f32.vlgmr.msrb.gmra.mxu2 %v7542_v5  ;;  %v10608_v5 = vld [vmem:[#allocation114_spill] sm:$0xff] }
  0xd8   : > { %10528 = vst [vmem:[#allocation193_spill] sm:$0xff] %v7908_v31  ;;  %v8028_v10 = vand.u32 4294901760, %v456_v33  ;;  %1501 = vmatpush.msra.mxu2 %v7896_v37  ;;  %1417 = vmatpush.msra.mxu0 %v7807_v8  ;;  %v444_v8 = vld [vmem:[#allocation2 + $0x128] sm:$0xff] }
  0xd9   : > { %10529 = vst [vmem:[#allocation194_spill] sm:$0xff] %v7912_v20  ;;  %v7966_v20 = vand.u32 4294901760, %v462_v38  ;;  %1277 = vmatpush.msrb.mxu1 %v7987_v44  ;;  %1384 = vmatpush.msrb.mxu3 %v7884_v48 }
  0xda   : > { %10530 = vst [vmem:[#allocation195_spill] sm:$0xff] %v7919_v13  ;;  %1503 = vmatpush.msra.mxu2 %v7924_v49  ;;  %1421 = vmatpush.msra.mxu0 %v7826_v34  ;;  %v8128_v34 = vand.u32 4294901760, %v444_v8 }
  0xdb   : > { %10531 = vst [vmem:[#allocation196_spill] sm:$0xff] %v7922_v26  ;;  %v8001_v29 = vsub.f32 %v462_v38, %v7966_v20  ;;  %v8017_v38 = vand.u32 4294901760, %v7983_v25  ;;  %1386 = vmatpush.msrb.mxu3 %v7902_v32 }
  0xdc   : > { %10533 = vst [vmem:[#allocation198_spill] sm:$0xff] %v7928_v39  ;;  %v458_v39 = vld [vmem:[#allocation2 + $0x198] sm:$0xff]  ;;  %1505 = vmatpush.msra.mxu2 %v7943_v50  ;;  %1425 = vmatpush.msra.mxu0 %v7842_v14 }
  0xdd   : > { %10534 = vst [vmem:[#allocation199_spill] sm:$0xff] %v7931_v62  ;;  %v8012_v31 = vand.u32 4294901760, %v458_v39  ;;  %v8035_v26 = vand.u32 4294901760, %v8001_v29  ;;  %v1562_v0 = vsub.f32 %v7983_v25, %v8017_v38  ;;  %1546 = vmatpush.msra.mxu3 %v8032_v9 }
  0xde   : > { %10535 = vst [vmem:[#allocation200_spill] sm:$0xff] %v7938_v24  ;;  %1507 = vmatpush.msra.mxu2 %v7947_v2  ;;  %1429 = vmatpush.msra.mxu0 %v7847_v57 }
  0xdf   : > { %10536 = vst [vmem:[#allocation201_spill] sm:$0xff] %v7941_v58  ;;  %v450_v58 = vld [vmem:[#allocation2 + $0x158] sm:$0xff]  ;;  %v1568_v30 = vsub.f32 %v8001_v29, %v8035_v26  ;;  %v8082_v60 = vand.u32 4294901760, %v1562_v0  ;;  %1390 = vmatmul.f32.vlgmr.msrb.gmra.mxu3 %v10606_v54 }
  0xe0   : > { %10537 = vst [vmem:[#allocation202_spill] sm:$0xff] %v7943_v50  ;;  %v8078_v32 = vand.u32 4294901760, %v450_v58  ;;  %1509 = vmatpush.msra.mxu2 %v7966_v20  ;;  %1433 = vmatpush.msra.mxu0 %v7863_v63 }
  0xe1   : > { %10538 = vst [vmem:[#allocation203_spill] sm:$0xff] %v7947_v2  ;;  %v8098_v0 = vand.u32 4294901760, %v1568_v30 }
  0xe2   : > { %10539 = vst [vmem:[#allocation204_spill] sm:$0xff] %v7951_v27  ;;  %v8005_v27 = vand.u32 4294901760, %v1281_v40  ;;  %v8021_v40 = vand.u32 4294901760, %v1287_v56  ;;  %v8039_v56 = vand.u32 4294901760, %v1293_v17  ;;  %v8054_v17 = vand.u32 4294901760, %v1550_v19  ;;  %1511 = vmatpush.msra.mxu2 %v7994_v45  ;;  %1437 = vmatpush.msra.mxu0 %v7887_v59 }
  0xe3   : > { %10540 = vst [vmem:[#allocation205_spill] sm:$0xff] %v7956_v1 }
  0xe4   : > { %10541 = vst [vmem:[#allocation206_spill] sm:$0xff] %v7959_v41  ;;  %1283 = vmatpush.msrb.mxu1 %v8005_v27  ;;  %1552 = vmatpush.msra.mxu3 %v8054_v17 }
  0xe5   : > { %10542 = vst [vmem:[#allocation207_spill] sm:$0xff] %v7964_v22  ;;  %v8026_v22 = vsub.f32 %v460_v15, %v7994_v45  ;;  %v1556_v15 = vsub.f32 %v7978_v51, %v8010_v61  ;;  %1513 = vmatpush.msra.mxu2 %v8012_v31  ;;  %1441 = vmatpush.msra.mxu0 %v7905_v43 }
  0xe6   : > { %10543 = vst [vmem:[#allocation208_spill] sm:$0xff] %v7966_v20  ;;  %1289 = vmatpush.msrb.mxu1 %v8021_v40 }
  0xe7   : > { %10544 = vst [vmem:[#allocation209_spill] sm:$0xff] %v7970_v35  ;;  %v454_v35 = vld [vmem:[#allocation2 + $0x178] sm:$0xff]  ;;  %v8070_v19 = vand.u32 4294901760, %v1556_v15  ;;  %1515 = vmatpush.msra.mxu2 %v8028_v10  ;;  %1445 = vmatpush.msra.mxu0 %v7919_v13 }
  0xe8   : > { %10545 = vst [vmem:[#allocation210_spill] sm:$0xff] %v7975_v28  ;;  %v8046_v11 = vand.u32 4294901760, %v454_v35  ;;  %1295 = vmatpush.msrb.mxu1 %v8039_v56 }
  0xe9   : > { %10546 = vst [vmem:[#allocation211_spill] sm:$0xff] %v7978_v51  ;;  %1558 = vmatpush.msra.mxu3 %v8070_v19  ;;  %1449 = vmatpush.msra.mxu0 %v7938_v24 }
  0xea   : > { %10547 = vst [vmem:[#allocation212_spill] sm:$0xff] %v7983_v25  ;;  %1464 = vmatpush.msra.mxu1 %v7702_v6  ;;  %1517 = vmatpush.msra.mxu2 %v8046_v11 }
  0xeb   : > { %10548 = vst [vmem:[#allocation213_spill] sm:$0xff] %v7987_v44  ;;  %v452_v44 = vld [vmem:[#allocation2 + $0x168] sm:$0xff]  ;;  %1564 = vmatpush.msra.mxu3 %v8082_v60  ;;  %1453 = vmatpush.msra.mxu0 %v7956_v1 }
  0xec   : > { %10549 = vst [vmem:[#allocation214_spill] sm:$0xff] %v7992_v12  ;;  %v8044_v12 = vsub.f32 %v458_v39, %v8012_v31  ;;  %v8060_v39 = vsub.f32 %v456_v33, %v8028_v10  ;;  %v8076_v33 = vsub.f32 %v454_v35, %v8046_v11  ;;  %1466 = vmatpush.msra.mxu1 %v7708_v46 }
  0xed   : > { %10550 = vst [vmem:[#allocation215_spill] sm:$0xff] %v7994_v45  ;;  %1570 = vmatpush.msra.mxu3 %v8098_v0  ;;  %1457 = vmatpush.msra.mxu0 %v7975_v28 }
  0xee   : > { %10551 = vst [vmem:[#allocation216_spill] sm:$0xff] %v8001_v29  ;;  %1468 = vmatpush.msra.mxu1 %v7714_v18  ;;  %1459 = vmatmul.f32.vlgmr.msra.gmra.mxu0 %v10608_v5 }
  0xef   : > { %10552 = vst [vmem:[#allocation217_spill] sm:$0xff] %v8005_v27  ;;  %v8057_v27 = vand.u32 4294901760, %v8026_v22  ;;  %1644 = vmatpush.msrb.mxu0 %v7931_v62  ;;  %1297 = vmatmul.f32.vlgmr.msrb.gmra.mxu1 %v10608_v5  ;;  %v10614_v62 = vld [vmem:[#allocation134_spill] sm:$0xff] }
  0xf0   : > { %10553 = vst [vmem:[#allocation218_spill] sm:$0xff] %v8010_v61  ;;  %v8062_v61 = vand.u32 4294901760, %v452_v44  ;;  %1470 = vmatpush.msra.mxu1 %v7723_v21  ;;  %v440_v21 = vld [vmem:[#allocation2 + $0x108] sm:$0xff] }
  0xf1   : > { %10554 = vst [vmem:[#allocation219_spill] sm:$0xff] %v8012_v31  ;;  %v1574_v15 = vsub.f32 %v8026_v22, %v8057_v27  ;;  %1647 = vmatpush.msrb.mxu0 %v7959_v41  ;;  %v10610_v41 = vld [vmem:[#allocation191_spill] sm:$0xff] }
  0xf2   : > { %10555 = vst [vmem:[#allocation220_spill] sm:$0xff] %v8017_v38  ;;  %v8073_v38 = vand.u32 4294901760, %v8044_v12  ;;  %v8092_v35 = vsub.f32 %v452_v44, %v8062_v61  ;;  %v8108_v44 = vsub.f32 %v450_v58, %v8078_v32  ;;  %1472 = vmatpush.msra.mxu1 %v7732_v3  ;;  %v8169_v3 = vand.u32 4294901760, %v440_v21  ;;  %1519 = vmatpush.msra.mxu2 %v8062_v61 }
  0xf3   : > { %10556 = vst [vmem:[#allocation221_spill] sm:$0xff] %v8021_v40  ;;  %v448_v40 = vld [vmem:[#allocation2 + $0x148] sm:$0xff]  ;;  %v8116_v30 = vand.u32 4294901760, %v1574_v15  ;;  %1650 = vmatpush.msrb.mxu0 %v7978_v51  ;;  %v10612_v51 = vld [vmem:[#allocation142_spill] sm:$0xff] }
  0xf4   : > { %10557 = vst [vmem:[#allocation222_spill] sm:$0xff] %v8026_v22  ;;  %v1580_v52 = vsub.f32 %v8044_v12, %v8073_v38  ;;  %v8121_v46 = vand.u32 4294901760, %v8092_v35  ;;  %v8137_v18 = vand.u32 4294901760, %v8108_v44  ;;  %1474 = vmatpush.msra.mxu1 %v7744_v4  ;;  %1521 = vmatpush.msra.mxu2 %v8078_v32 }
  0xf5   : > { %10558 = vst [vmem:[#allocation223_spill] sm:$0xff] %v8028_v10  ;;  %1576 = vmatpush.msra.mxu3 %v8116_v30  ;;  %1653 = vmatpush.msrb.mxu0 %v7983_v25 }
  0xf6   : > { %10559 = vst [vmem:[#allocation224_spill] sm:$0xff] %v8032_v9  ;;  %v8089_v9 = vand.u32 4294901760, %v8060_v39  ;;  %v8132_v15 = vand.u32 4294901760, %v1580_v52  ;;  %1476 = vmatpush.msra.mxu1 %v7758_v47 }
  0xf7   : > { %10560 = vst [vmem:[#allocation225_spill] sm:$0xff] %v8035_v26  ;;  %v446_v26 = vld [vmem:[#allocation2 + $0x138] sm:$0xff]  ;;  %1656 = vmatpush.msrb.mxu0 %v8001_v29  ;;  %v10611_v54 = vld [vmem:[#allocation218_spill] sm:$0xff] }
  0xf8   : > { %10561 = vst [vmem:[#allocation226_spill] sm:$0xff] %v8039_v56  ;;  %v8094_v56 = vand.u32 4294901760, %v448_v40  ;;  %v8110_v6 = vand.u32 4294901760, %v446_v26  ;;  %1582 = vmatpush.msra.mxu3 %v8132_v15  ;;  %1478 = vmatpush.msra.mxu1 %v7772_v53 }
  0xf9   : > { %10562 = vst [vmem:[#allocation227_spill] sm:$0xff] %v8044_v12  ;;  %1659 = vmatpush.msrb.mxu0 %v8026_v22  ;;  %v10613_v25 = vld [vmem:[#allocation220_spill] sm:$0xff]  ;;  %v10659_v22 = vld [vmem:[#allocation82_spill] sm:$0xff] }
  0xfa   : > { %10563 = vst [vmem:[#allocation228_spill] sm:$0xff] %v8046_v11  ;;  %v8124_v58 = vsub.f32 %v448_v40, %v8094_v56  ;;  %v8140_v40 = vsub.f32 %v446_v26, %v8110_v6  ;;  %v8158_v26 = vsub.f32 %v444_v8, %v8128_v34  ;;  %1480 = vmatpush.msra.mxu1 %v7782_v36 }
  0xfb   : > { %10564 = vst [vmem:[#allocation229_spill] sm:$0xff] %v8054_v17  ;;  %v8105_v17 = vand.u32 4294901760, %v8076_v33  ;;  %1523 = vmatpush.msra.mxu2 %v8094_v56  ;;  %1662 = vmatpush.msrb.mxu0 %v8044_v12  ;;  %v10653_v12 = vld [vmem:[#allocation71_spill] sm:$0xff] }
  0xfc   : > { %10565 = vst [vmem:[#allocation230_spill] sm:$0xff] %v8057_v27  ;;  %v8185_v59 = vand.u32 4294901760, %v8158_v26  ;;  %1482 = vmatpush.msra.mxu1 %v7798_v55 }
  0xfd   : > { %10566 = vst [vmem:[#allocation231_spill] sm:$0xff] %v8060_v39  ;;  %1525 = vmatpush.msra.mxu2 %v8110_v6  ;;  %1665 = vmatpush.msrb.mxu0 %v8060_v39 }
  0xfe   : > { %10567 = vst [vmem:[#allocation232_spill] sm:$0xff] %v8062_v61  ;;  %1484 = vmatpush.msra.mxu1 %v7823_v7  ;;  %v10615_v29 = vld [vmem:[#allocation225_spill] sm:$0xff] }
  0xff   : > { %10568 = vst [vmem:[#allocation233_spill] sm:$0xff] %v8070_v19  ;;  %v1586_v19 = vsub.f32 %v8060_v39, %v8089_v9  ;;  %1527 = vmatpush.msra.mxu2 %v8128_v34  ;;  %1668 = vmatpush.msrb.mxu0 %v8076_v33  ;;  %v10647_v39 = vld [vmem:[#allocation62_spill] sm:$0xff] }
 0x100   : > { %10569 = vst [vmem:[#allocation234_spill] sm:$0xff] %v8073_v38  ;;  %v442_v38 = vld [vmem:[#allocation2 + $0x118] sm:$0xff]  ;;  %1486 = vmatpush.msra.mxu1 %v7839_v42 }
 0x101   : > { %10570 = vst [vmem:[#allocation235_spill] sm:$0xff] %v8076_v33  ;;  %v8144_v14 = vand.u32 4294901760, %v442_v38  ;;  %v8148_v52 = vand.u32 4294901760, %v1586_v19  ;;  %v1604_v19 = vsub.f32 %v8108_v44, %v8137_v18  ;;  %1671 = vmatpush.msrb.mxu0 %v8092_v35 }
 0x102   : > { %10571 = vst [vmem:[#allocation236_spill] sm:$0xff] %v8078_v32  ;;  %1488 = vmatpush.msra.mxu1 %v7855_v23 }
 0x103   : > { %10572 = vst [vmem:[#allocation237_spill] sm:$0xff] %v8082_v60  ;;  %v1592_v60 = vsub.f32 %v8076_v33, %v8105_v17  ;;  %v8174_v8 = vsub.f32 %v442_v38, %v8144_v14  ;;  %1588 = vmatpush.msra.mxu3 %v8148_v52  ;;  %v8189_v38 = vand.u32 4294901760, %v1604_v19  ;;  %1529 = vmatpush.msra.mxu2 %v8144_v14  ;;  %v10641_v33 = vld [vmem:[#allocation53_spill] sm:$0xff] }
 0x104   : > { %10573 = vst [vmem:[#allocation238_spill] sm:$0xff] %v8089_v9  ;;  %1490 = vmatpush.msra.mxu1 %v7871_v16  ;;  %1674 = vmatpush.msrb.mxu0 %v8108_v44 }
 0x105   : > { %10574 = vst [vmem:[#allocation239_spill] sm:$0xff] %v8092_v35  ;;  %v8162_v57 = vand.u32 4294901760, %v1592_v60  ;;  %v8199_v43 = vand.u32 4294901760, %v8174_v8  ;;  %1531 = vmatpush.msra.mxu2 %v8169_v3 }
 0x106   : > { %10575 = vst [vmem:[#allocation240_spill] sm:$0xff] %v8094_v56  ;;  %1492 = vmatpush.msra.mxu1 %v7884_v48  ;;  %1537 = vmatmul.f32.vlgmr.msra.gmra.mxu2 %v10612_v51 }
 0x107   : > { %10576 = vst [vmem:[#allocation241_spill] sm:$0xff] %v8098_v0  ;;  %v1598_v0 = vsub.f32 %v8092_v35, %v8121_v46  ;;  %1594 = vmatpush.msra.mxu3 %v8162_v57  ;;  %v10616_v51 = vld [vmem:[#allocation234_spill] sm:$0xff]  ;;  %1677 = vmatpush.msrb.mxu0 %v8124_v58  ;;  %v10635_v35 = vld [vmem:[#allocation44_spill] sm:$0xff] }
 0x108   : > { %10577 = vst [vmem:[#allocation242_spill] sm:$0xff] %v8105_v17  ;;  %v8153_v17 = vand.u32 4294901760, %v8124_v58  ;;  %1494 = vmatpush.msra.mxu1 %v10610_v41  ;;  %v515_v28 = vpop.f32.mrf.mxu0 }
 0x109   : > { %10578 = vst [vmem:[#allocation243_spill] sm:$0xff] %v8108_v44  ;;  %v8178_v60 = vand.u32 4294901760, %v1598_v0  ;;  %1496 = vmatmul.f32.vlgmr.msra.gmra.mxu1 %v10608_v5  ;;  %1680 = vmatpush.msrb.mxu0 %v8140_v40  ;;  %v10626_v44 = vld [vmem:[#allocation32_spill] sm:$0xff] }
 0x10a   : > { %10579 = vst [vmem:[#allocation244_spill] sm:$0xff] %v8110_v6  ;;  %v1610_v63 = vsub.f32 %v8124_v58, %v8153_v17  ;;  %1697 = vmatpush.msrb.mxu1 %v7896_v37 }
 0x10b   : > { %10580 = vst [vmem:[#allocation245_spill] sm:$0xff] %v8116_v30  ;;  %v8167_v30 = vand.u32 4294901760, %v8140_v40  ;;  %1600 = vmatpush.msra.mxu3 %v8178_v60  ;;  %1683 = vmatpush.msrb.mxu0 %v8158_v26 }
 0x10c   : > { %10581 = vst [vmem:[#allocation246_spill] sm:$0xff] %v8121_v46  ;;  %1699 = vmatpush.msrb.mxu1 %v7924_v49 }
 0x10d   : > { %10582 = vst [vmem:[#allocation247_spill] sm:$0xff] %v8124_v58  ;;  %v1616_v0 = vsub.f32 %v8140_v40, %v8167_v30  ;;  %1606 = vmatpush.msra.mxu3 %v8189_v38  ;;  %1686 = vmatpush.msrb.mxu0 %v8174_v8  ;;  %v10623_v58 = vld [vmem:[#allocation31_spill] sm:$0xff] }
 0x10e   : > { %10583 = vst [vmem:[#allocation248_spill] sm:$0xff] %v8128_v34  ;;  %1701 = vmatpush.msrb.mxu1 %v7943_v50 }
 0x10f   : > { %10584 = vst [vmem:[#allocation249_spill] sm:$0xff] %v8132_v15  ;;  %v8211_v19 = vand.u32 4294901760, %v1616_v0  ;;  %v10617_v5 = vld [vmem:[#allocation242_spill] sm:$0xff] }
 0x110   : > { %10585 = vst [vmem:[#allocation250_spill] sm:$0xff] %v8137_v18  ;;  %1703 = vmatpush.msrb.mxu1 %v7947_v2 }
 0x111   : > { %10586 = vst [vmem:[#allocation251_spill] sm:$0xff] %v8140_v40  ;;  %v10622_v40 = vld [vmem:[#allocation15_spill] sm:$0xff] }
 0x112   : > { %10587 = vst [vmem:[#allocation252_spill] sm:$0xff] %v8144_v14  ;;  %1705 = vmatpush.msrb.mxu1 %v7966_v20 }
 0x113   : > { %10588 = vst [vmem:[#allocation253_spill] sm:$0xff] %v8148_v52  ;;  %v8194_v52 = vsub.f32 %v440_v21, %v8169_v3  ;;  %v1622_v21 = vsub.f32 %v8158_v26, %v8185_v59 }
 0x114   : > { %10589 = vst [vmem:[#allocation254_spill] sm:$0xff] %v8153_v17  ;;  %1707 = vmatpush.msrb.mxu1 %v7994_v45 }
 0x115   : > { %10590 = vst [vmem:[#allocation255_spill] sm:$0xff] %v8158_v26  ;;  %v8214_v13 = vand.u32 4294901760, %v8194_v52  ;;  %v8224_v0 = vand.u32 4294901760, %v1622_v21  ;;  %1689 = vmatpush.msrb.mxu0 %v8194_v52  ;;  %v10618_v26 = vld [vmem:[#allocation137_spill] sm:$0xff] }
 0x116   : > { %10591 = vst [vmem:[#allocation256_spill] sm:$0xff] %v8162_v57  ;;  %v8203_v57 = vand.u32 4294901760, %v1610_v63  ;;  %v1628_v63 = vsub.f32 %v8174_v8, %v8199_v43  ;;  %1709 = vmatpush.msrb.mxu1 %v8012_v31  ;;  %1692 = vmatmul.f32.vlgmr.msrb.gmra.mxu0 %v10618_v26  ;;  %v10620_v26 = vld [vmem:[#allocation14_spill] sm:$0xff] }
 0x117   : > { %10592 = vst [vmem:[#allocation257_spill] sm:$0xff] %v8167_v30  ;;  %v1634_v1 = vsub.f32 %v8194_v52, %v8214_v13 }
 0x118   : > { %10593 = vst [vmem:[#allocation258_spill] sm:$0xff] %v8169_v3  ;;  %1612 = vmatpush.msra.mxu3 %v8203_v57  ;;  %v8232_v24 = vand.u32 4294901760, %v1628_v63  ;;  %v10607_v63 = vld [vmem:[#allocation207_spill] sm:$0xff]  ;;  %1711 = vmatpush.msrb.mxu1 %v8028_v10 }
 0x119   : > { %10594 = vst [vmem:[#allocation259_spill] sm:$0xff] %v8174_v8  ;;  %v8240_v21 = vand.u32 4294901760, %v1634_v1  ;;  %1738 = vmatpush.msrb.mxu2 %v10607_v63  ;;  %v10609_v1 = vld [vmem:[#allocation214_spill] sm:$0xff]  ;;  %v10619_v8 = vld [vmem:[#allocation8_spill] sm:$0xff] }
 0x11a   : > { %10595 = vst [vmem:[#allocation260_spill] sm:$0xff] %v8178_v60  ;;  %1618 = vmatpush.msra.mxu3 %v8211_v19  ;;  %1713 = vmatpush.msrb.mxu1 %v8046_v11 }
 0x11b   : > { %10596 = vst [vmem:[#allocation261_spill] sm:$0xff] %v8185_v59  ;;  %1742 = vmatpush.msrb.mxu2 %v10609_v1  ;;  %1856 = vmatpush.msra.mxu0 %v10619_v8 }
 0x11c   : > { %10597 = vst [vmem:[#allocation262_spill] sm:$0xff] %v8189_v38  ;;  %1624 = vmatpush.msra.mxu3 %v8224_v0  ;;  %1715 = vmatpush.msrb.mxu1 %v8062_v61 }
 0x11d   : > { %10598 = vst [vmem:[#allocation263_spill] sm:$0xff] %v8194_v52  ;;  %1746 = vmatpush.msrb.mxu2 %v10611_v54  ;;  %v10621_v52 = vld [vmem:[#allocation140_spill] sm:$0xff]  ;;  %v670_v54 = vpop.f32.mrf.mxu2 }
 0x11e   : > { %10599 = vst [vmem:[#allocation264_spill] sm:$0xff] %v8199_v43  ;;  %1630 = vmatpush.msra.mxu3 %v8232_v24  ;;  %1717 = vmatpush.msrb.mxu1 %v8078_v32 }
 0x11f   : > { %10600 = vst [vmem:[#allocation265_spill] sm:$0xff] %v8203_v57  ;;  %1750 = vmatpush.msrb.mxu2 %v10613_v25  ;;  %v10676_v25 = vld [vmem:[#allocation100_spill] sm:$0xff] }
 0x120   : > { %10601 = vst [vmem:[#allocation266_spill] sm:$0xff] %v8211_v19  ;;  %1636 = vmatpush.msra.mxu3 %v8240_v21  ;;  %1719 = vmatpush.msrb.mxu1 %v8094_v56 }
 0x121   : > { %10602 = vst [vmem:[#allocation267_spill] sm:$0xff] %v8214_v13  ;;  %1638 = vmatmul.f32.vlgmr.msra.gmra.mxu3 %v10614_v62  ;;  %1754 = vmatpush.msrb.mxu2 %v10615_v29  ;;  %v10674_v29 = vld [vmem:[#allocation22_spill] sm:$0xff] }
 0x122   : > { %10603 = vst [vmem:[#allocation268_spill] sm:$0xff] %v8224_v0  ;;  %1805 = vmatpush.msrb.mxu3 %v7896_v37  ;;  %1721 = vmatpush.msrb.mxu1 %v8110_v6 }
 0x123   : > { %10604 = vst [vmem:[#allocation269_spill] sm:$0xff] %v8232_v24  ;;  %1758 = vmatpush.msrb.mxu2 %v8057_v27  ;;  %v10673_v27 = vld [vmem:[#allocation94_spill] sm:$0xff] }
 0x124   : > { %10605 = vst [vmem:[#allocation270_spill] sm:$0xff] %v8240_v21  ;;  %1807 = vmatpush.msrb.mxu3 %v7924_v49  ;;  %1723 = vmatpush.msrb.mxu1 %v8128_v34 }
 0x125   : > { %1762 = vmatpush.msrb.mxu2 %v10616_v51  ;;  %v10668_v51 = vld [vmem:[#allocation96_spill] sm:$0xff]  ;;  %v856_v21 = vpop.f32.mrf.mxu2 }
 0x126   : > { %1809 = vmatpush.msrb.mxu3 %v7943_v50  ;;  %1725 = vmatpush.msrb.mxu1 %v8144_v14 }
 0x127   : > { %1766 = vmatpush.msrb.mxu2 %v8089_v9  ;;  %v10665_v9 = vld [vmem:[#allocation91_spill] sm:$0xff] }
 0x128   : > { %1811 = vmatpush.msrb.mxu3 %v7947_v2  ;;  %1727 = vmatpush.msrb.mxu1 %v8169_v3 }
 0x129   : > { %1770 = vmatpush.msrb.mxu2 %v10617_v5  ;;  %1731 = vmatmul.f32.vlgmr.msrb.gmra.mxu1 %v10621_v52  ;;  %v10630_v52 = vld [vmem:[#allocation19_spill] sm:$0xff]  ;;  %v10662_v5 = vld [vmem:[#allocation86_spill] sm:$0xff] }
 0x12a   : > { %1813 = vmatpush.msrb.mxu3 %v7966_v20  ;;  %1901 = vmatpush.msra.mxu1 %v10623_v58  ;;  %v10632_v58 = vld [vmem:[#allocation38_spill] sm:$0xff] }
 0x12b   : > { %1774 = vmatpush.msrb.mxu2 %v8121_v46  ;;  %v10656_v46 = vld [vmem:[#allocation78_spill] sm:$0xff] }
 0x12c   : > { %1815 = vmatpush.msrb.mxu3 %v7994_v45  ;;  %1907 = vmatpush.msra.mxu1 %v10626_v44  ;;  %v10634_v44 = vld [vmem:[#allocation12_spill] sm:$0xff] }
 0x12d   : > { %1778 = vmatpush.msrb.mxu2 %v8137_v18  ;;  %v10650_v18 = vld [vmem:[#allocation68_spill] sm:$0xff] }
 0x12e   : > { %1817 = vmatpush.msrb.mxu3 %v8012_v31 }
 0x12f   : > { %1782 = vmatpush.msrb.mxu2 %v8153_v17  ;;  %v10644_v17 = vld [vmem:[#allocation58_spill] sm:$0xff] }
 0x130   : > { %1819 = vmatpush.msrb.mxu3 %v8028_v10 }
 0x131   : > { %1786 = vmatpush.msrb.mxu2 %v8167_v30  ;;  %v10638_v30 = vld [vmem:[#allocation47_spill] sm:$0xff] }
 0x132   : > { %1821 = vmatpush.msrb.mxu3 %v8046_v11 }
 0x133   : > { %1790 = vmatpush.msrb.mxu2 %v8185_v59  ;;  %v10629_v59 = vld [vmem:[#allocation35_spill] sm:$0xff] }
 0x134   : > { %1823 = vmatpush.msrb.mxu3 %v8062_v61  ;;  %1913 = vmatpush.msra.mxu1 %v10629_v59  ;;  %v10637_v59 = vld [vmem:[#allocation13_spill] sm:$0xff] }
 0x135   : > { %1794 = vmatpush.msrb.mxu2 %v8199_v43  ;;  %v10625_v43 = vld [vmem:[#allocation9_spill] sm:$0xff] }
 0x136   : > { %1825 = vmatpush.msrb.mxu3 %v8078_v32  ;;  %1858 = vmatpush.msra.mxu0 %v10625_v43 }
 0x137   : > { %1798 = vmatpush.msrb.mxu2 %v8214_v13  ;;  %v10624_v13 = vld [vmem:[#allocation16_spill] sm:$0xff]  ;;  %1919 = vmatpush.msra.mxu1 %v10632_v58  ;;  %v10640_v58 = vld [vmem:[#allocation17_spill] sm:$0xff] }
 0x138   : > { %1827 = vmatpush.msrb.mxu3 %v8094_v56  ;;  %1800 = vmatmul.f32.vlgmr.msrb.gmra.mxu2 %v10614_v62 }
 0x139   : > { %1999 = vmatpush.msra.mxu2 %v10620_v26  ;;  %v10627_v26 = vld [vmem:[#allocation18_spill] sm:$0xff]  ;;  %1925 = vmatpush.msra.mxu1 %v10635_v35  ;;  %v10643_v35 = vld [vmem:[#allocation24_spill] sm:$0xff] }
 0x13a   : > { %1829 = vmatpush.msrb.mxu3 %v8110_v6 }
 0x13b   : > { %2002 = vmatpush.msra.mxu2 %v10622_v40  ;;  %v10631_v40 = vld [vmem:[#allocation11_spill] sm:$0xff]  ;;  %1931 = vmatpush.msra.mxu1 %v10638_v30  ;;  %v10646_v30 = vld [vmem:[#allocation26_spill] sm:$0xff] }
 0x13c   : > { %1831 = vmatpush.msrb.mxu3 %v8128_v34 }
 0x13d   : > { %2005 = vmatpush.msra.mxu2 %v10624_v13  ;;  %v10633_v13 = vld [vmem:[#allocation20_spill] sm:$0xff]  ;;  %1937 = vmatpush.msra.mxu1 %v10641_v33  ;;  %v10649_v33 = vld [vmem:[#allocation29_spill] sm:$0xff] }
 0x13e   : > { %1833 = vmatpush.msrb.mxu3 %v8144_v14 }
 0x13f   : > { %2008 = vmatpush.msra.mxu2 %v10627_v26  ;;  %v10636_v26 = vld [vmem:[#allocation27_spill] sm:$0xff]  ;;  %1943 = vmatpush.msra.mxu1 %v10644_v17  ;;  %v10652_v17 = vld [vmem:[#allocation34_spill] sm:$0xff] }
 0x140   : > { %1835 = vmatpush.msrb.mxu3 %v8169_v3  ;;  %v1119_v3 = vpop.f32.mrf.mxu2 }
 0x141   : > { %1837 = vmatmul.f32.vlgmr.msrb.gmra.mxu3 %v10614_v62  ;;  %v10628_v62 = vld [vmem:[#allocation10_spill] sm:$0xff]  ;;  %2011 = vmatpush.msra.mxu2 %v10630_v52  ;;  %v10639_v52 = vld [vmem:[#allocation33_spill] sm:$0xff] }
 0x142   : > { %2052 = vmatpush.msra.mxu3 %v10619_v8  ;;  %1860 = vmatpush.msra.mxu0 %v10628_v62 }
 0x143   : > { %2014 = vmatpush.msra.mxu2 %v10633_v13  ;;  %v10642_v13 = vld [vmem:[#allocation37_spill] sm:$0xff]  ;;  %1949 = vmatpush.msra.mxu1 %v10647_v39  ;;  %v10655_v39 = vld [vmem:[#allocation39_spill] sm:$0xff] }
 0x144   : > { %2054 = vmatpush.msra.mxu3 %v10625_v43  ;;  %1862 = vmatpush.msra.mxu0 %v10631_v40 }
 0x145   : > { %2017 = vmatpush.msra.mxu2 %v10636_v26  ;;  %v10645_v26 = vld [vmem:[#allocation41_spill] sm:$0xff]  ;;  %1955 = vmatpush.msra.mxu1 %v10650_v18 }
 0x146   : > { %2056 = vmatpush.msra.mxu3 %v10628_v62  ;;  %1864 = vmatpush.msra.mxu0 %v10634_v44  ;;  %v10658_v18 = vld [vmem:[#allocation45_spill] sm:$0xff] }
 0x147   : > { %2020 = vmatpush.msra.mxu2 %v10639_v52  ;;  %v10648_v52 = vld [vmem:[#allocation42_spill] sm:$0xff]  ;;  %1961 = vmatpush.msra.mxu1 %v10653_v12  ;;  %v10661_v12 = vld [vmem:[#allocation48_spill] sm:$0xff] }
 0x148   : > { %2058 = vmatpush.msra.mxu3 %v10631_v40  ;;  %1866 = vmatpush.msra.mxu0 %v10637_v59 }
 0x149   : > { %2023 = vmatpush.msra.mxu2 %v10642_v13  ;;  %v10651_v13 = vld [vmem:[#allocation50_spill] sm:$0xff]  ;;  %1967 = vmatpush.msra.mxu1 %v10656_v46 }
 0x14a   : > { %2060 = vmatpush.msra.mxu3 %v10634_v44  ;;  %1868 = vmatpush.msra.mxu0 %v10640_v58  ;;  %v10664_v46 = vld [vmem:[#allocation54_spill] sm:$0xff] }
 0x14b   : > { %2026 = vmatpush.msra.mxu2 %v10645_v26  ;;  %v10654_v26 = vld [vmem:[#allocation55_spill] sm:$0xff]  ;;  %1973 = vmatpush.msra.mxu1 %v10659_v22  ;;  %v10667_v22 = vld [vmem:[#allocation56_spill] sm:$0xff] }
 0x14c   : > { %2062 = vmatpush.msra.mxu3 %v10637_v59  ;;  %1870 = vmatpush.msra.mxu0 %v10643_v35 }
 0x14d   : > { %2029 = vmatpush.msra.mxu2 %v10648_v52  ;;  %v10657_v52 = vld [vmem:[#allocation60_spill] sm:$0xff]  ;;  %1979 = vmatpush.msra.mxu1 %v10662_v5  ;;  %v10670_v5 = vld [vmem:[#allocation89_spill] sm:$0xff] }
 0x14e   : > { %2064 = vmatpush.msra.mxu3 %v10640_v58  ;;  %1872 = vmatpush.msra.mxu0 %v10646_v30 }
 0x14f   : > { %2032 = vmatpush.msra.mxu2 %v10651_v13  ;;  %v10660_v13 = vld [vmem:[#allocation64_spill] sm:$0xff]  ;;  %1985 = vmatpush.msra.mxu1 %v10665_v9  ;;  %v10672_v9 = vld [vmem:[#allocation65_spill] sm:$0xff] }
 0x150   : > { %2066 = vmatpush.msra.mxu3 %v10643_v35  ;;  %1874 = vmatpush.msra.mxu0 %v10649_v33 }
 0x151   : > { %2035 = vmatpush.msra.mxu2 %v10654_v26  ;;  %v10663_v26 = vld [vmem:[#allocation66_spill] sm:$0xff]  ;;  %1991 = vmatpush.msra.mxu1 %v10668_v51 }
 0x152   : > { %2068 = vmatpush.msra.mxu3 %v10646_v30  ;;  %1876 = vmatpush.msra.mxu0 %v10652_v17  ;;  %v10675_v51 = vld [vmem:[#allocation70_spill] sm:$0xff] }
 0x153   : > { %2038 = vmatpush.msra.mxu2 %v10657_v52  ;;  %v10666_v52 = vld [vmem:[#allocation52_spill] sm:$0xff]  ;;  %2160 = vmatpush.msrb.mxu1 %v10619_v8  ;;  %v10677_v8 = vld [vmem:[#allocation23_spill] sm:$0xff] }
 0x154   : > { %2070 = vmatpush.msra.mxu3 %v10649_v33  ;;  %1878 = vmatpush.msra.mxu0 %v10655_v39 }
 0x155   : > { %2041 = vmatpush.msra.mxu2 %v10660_v13  ;;  %v10669_v13 = vld [vmem:[#allocation57_spill] sm:$0xff]  ;;  %2162 = vmatpush.msrb.mxu1 %v10625_v43 }
 0x156   : > { %2072 = vmatpush.msra.mxu3 %v10652_v17  ;;  %1880 = vmatpush.msra.mxu0 %v10658_v18  ;;  %v10680_v43 = vld [vmem:[#allocation25_spill] sm:$0xff] }
 0x157   : > { %2044 = vmatpush.msra.mxu2 %v10663_v26  ;;  %v10671_v26 = vld [vmem:[#allocation21_spill] sm:$0xff]  ;;  %2164 = vmatpush.msrb.mxu1 %v10628_v62  ;;  %v10683_v62 = vld [vmem:[#allocation28_spill] sm:$0xff] }
 0x158   : > { %2074 = vmatpush.msra.mxu3 %v10655_v39  ;;  %1882 = vmatpush.msra.mxu0 %v10661_v12 }
 0x159   : > { %2197 = vmatpush.msrb.mxu2 %v10666_v52  ;;  %2166 = vmatpush.msrb.mxu1 %v10631_v40  ;;  %v10686_v40 = vld [vmem:[#allocation30_spill] sm:$0xff] }
 0x15a   : > { %2076 = vmatpush.msra.mxu3 %v10658_v18  ;;  %1884 = vmatpush.msra.mxu0 %v10664_v46  ;;  %v1352_v19 = vpop.f32.mrf.mxu2 }
 0x15b   : > { %2199 = vmatpush.msrb.mxu2 %v10669_v13  ;;  %2168 = vmatpush.msrb.mxu1 %v10634_v44  ;;  %v10689_v44 = vld [vmem:[#allocation36_spill] sm:$0xff] }
 0x15c   : > { %2078 = vmatpush.msra.mxu3 %v10661_v12  ;;  %1886 = vmatpush.msra.mxu0 %v10667_v22 }
 0x15d   : > { %2201 = vmatpush.msrb.mxu2 %v10672_v9  ;;  %2170 = vmatpush.msrb.mxu1 %v10637_v59  ;;  %v10692_v59 = vld [vmem:[#allocation40_spill] sm:$0xff] }
 0x15e   : > { %2080 = vmatpush.msra.mxu3 %v10664_v46  ;;  %2093 = vmatpush.msrb.mxu0 %v10671_v26  ;;  %v10679_v26 = vld [vmem:[#allocation104_spill] sm:$0xff] }
 0x15f   : > { %2203 = vmatpush.msrb.mxu2 %v10675_v51  ;;  %2172 = vmatpush.msrb.mxu1 %v10640_v58  ;;  %v10695_v58 = vld [vmem:[#allocation46_spill] sm:$0xff] }
 0x160   : > { %2082 = vmatpush.msra.mxu3 %v10667_v22  ;;  %2097 = vmatpush.msrb.mxu0 %v10674_v29  ;;  %v10682_v29 = vld [vmem:[#allocation107_spill] sm:$0xff] }
 0x161   : > { %2174 = vmatpush.msrb.mxu1 %v10643_v35  ;;  %v10698_v35 = vld [vmem:[#allocation49_spill] sm:$0xff] }
 0x162   : > { %2242 = vmatpush.msrb.mxu3 %v10670_v5  ;;  %2101 = vmatpush.msrb.mxu0 %v10677_v8  ;;  %v10678_v5 = vld [vmem:[#allocation75_spill] sm:$0xff] }
 0x163   : > { %2205 = vmatpush.msrb.mxu2 %v10678_v5  ;;  %v10685_v8 = vld [vmem:[#allocation111_spill] sm:$0xff]  ;;  %2176 = vmatpush.msrb.mxu1 %v10646_v30 }
 0x164   : > { %2248 = vmatpush.msrb.mxu3 %v10673_v27  ;;  %2105 = vmatpush.msrb.mxu0 %v10680_v43  ;;  %v10681_v27 = vld [vmem:[#allocation80_spill] sm:$0xff]  ;;  %v10688_v43 = vld [vmem:[#allocation115_spill] sm:$0xff] }
 0x165   : > { %2207 = vmatpush.msrb.mxu2 %v10681_v27  ;;  %2178 = vmatpush.msrb.mxu1 %v10649_v33  ;;  %v10701_v30 = vld [vmem:[#allocation51_spill] sm:$0xff] }
 0x166   : > { %2254 = vmatpush.msrb.mxu3 %v10676_v25  ;;  %2109 = vmatpush.msrb.mxu0 %v10683_v62  ;;  %v10684_v25 = vld [vmem:[#allocation81_spill] sm:$0xff]  ;;  %v10691_v62 = vld [vmem:[#allocation119_spill] sm:$0xff] }
 0x167   : > { %2209 = vmatpush.msrb.mxu2 %v10684_v25  ;;  %2180 = vmatpush.msrb.mxu1 %v10652_v17  ;;  %v10704_v33 = vld [vmem:[#allocation59_spill] sm:$0xff] }
 0x168   : > { %2260 = vmatpush.msrb.mxu3 %v10679_v26  ;;  %2113 = vmatpush.msrb.mxu0 %v10686_v40  ;;  %v10687_v26 = vld [vmem:[#allocation85_spill] sm:$0xff]  ;;  %v10694_v40 = vld [vmem:[#allocation122_spill] sm:$0xff]  ;;  %v10707_v17 = vld [vmem:[#allocation63_spill] sm:$0xff] }
 0x169   : > { %2211 = vmatpush.msrb.mxu2 %v10687_v26  ;;  %2182 = vmatpush.msrb.mxu1 %v10655_v39  ;;  %v10710_v39 = vld [vmem:[#allocation69_spill] sm:$0xff] }
 0x16a   : > { %2266 = vmatpush.msrb.mxu3 %v10682_v29  ;;  %2117 = vmatpush.msrb.mxu0 %v10689_v44  ;;  %v10690_v29 = vld [vmem:[#allocation93_spill] sm:$0xff]  ;;  %v10697_v44 = vld [vmem:[#allocation126_spill] sm:$0xff] }
 0x16b   : > { %2213 = vmatpush.msrb.mxu2 %v10690_v29  ;;  %2184 = vmatpush.msrb.mxu1 %v10658_v18  ;;  %v10713_v18 = vld [vmem:[#allocation73_spill] sm:$0xff] }
 0x16c   : > { %2272 = vmatpush.msrb.mxu3 %v10685_v8  ;;  %2121 = vmatpush.msrb.mxu0 %v10692_v59  ;;  %v10693_v8 = vld [vmem:[#allocation98_spill] sm:$0xff]  ;;  %v10700_v59 = vld [vmem:[#allocation129_spill] sm:$0xff] }
 0x16d   : > { %2215 = vmatpush.msrb.mxu2 %v10693_v8  ;;  %2186 = vmatpush.msrb.mxu1 %v10661_v12  ;;  %v616_v12 = vpop.f32.mrf.mxu1 }
 0x16e   : > { %2278 = vmatpush.msrb.mxu3 %v10688_v43  ;;  %2125 = vmatpush.msrb.mxu0 %v10695_v58  ;;  %v10696_v43 = vld [vmem:[#allocation102_spill] sm:$0xff]  ;;  %v10703_v58 = vld [vmem:[#allocation132_spill] sm:$0xff] }
 0x16f   : > { %2217 = vmatpush.msrb.mxu2 %v10696_v43  ;;  %2188 = vmatpush.msrb.mxu1 %v10664_v46 }
 0x170   : > { %2284 = vmatpush.msrb.mxu3 %v10691_v62  ;;  %2129 = vmatpush.msrb.mxu0 %v10698_v35  ;;  %v10699_v62 = vld [vmem:[#allocation106_spill] sm:$0xff]  ;;  %v10706_v35 = vld [vmem:[#allocation135_spill] sm:$0xff] }
 0x171   : > { %2219 = vmatpush.msrb.mxu2 %v10699_v62  ;;  %2190 = vmatpush.msrb.mxu1 %v10667_v22 }
 0x172   : > { %2290 = vmatpush.msrb.mxu3 %v10694_v40  ;;  %2133 = vmatpush.msrb.mxu0 %v10701_v30  ;;  %v10702_v40 = vld [vmem:[#allocation110_spill] sm:$0xff] }
 0x173   : > { %2221 = vmatpush.msrb.mxu2 %v10702_v40  ;;  %v10709_v30 = vld [vmem:[#allocation138_spill] sm:$0xff] }
 0x174   : > { %2296 = vmatpush.msrb.mxu3 %v10697_v44  ;;  %2137 = vmatpush.msrb.mxu0 %v10704_v33  ;;  %v10705_v44 = vld [vmem:[#allocation117_spill] sm:$0xff]  ;;  %v10712_v33 = vld [vmem:[#allocation139_spill] sm:$0xff] }
 0x175   : > { %2223 = vmatpush.msrb.mxu2 %v10705_v44  ;;  %v815_v1 = vpop.f32.mrf.mxu1 }
 0x176   : > { %2302 = vmatpush.msrb.mxu3 %v10700_v59  ;;  %2141 = vmatpush.msrb.mxu0 %v10707_v17  ;;  %v10708_v59 = vld [vmem:[#allocation121_spill] sm:$0xff]  ;;  %v10715_v17 = vld [vmem:[#allocation76_spill] sm:$0xff] }
 0x177   : > { %2225 = vmatpush.msrb.mxu2 %v10708_v59 }
 0x178   : > { %2308 = vmatpush.msrb.mxu3 %v10703_v58  ;;  %2145 = vmatpush.msrb.mxu0 %v10710_v39  ;;  %v10711_v58 = vld [vmem:[#allocation125_spill] sm:$0xff]  ;;  %v778_v39 = vpop.f32.mrf.mxu0 }
 0x179   : > { %2227 = vmatpush.msrb.mxu2 %v10711_v58 }
 0x17a   : > { %2314 = vmatpush.msrb.mxu3 %v10706_v35  ;;  %2149 = vmatpush.msrb.mxu0 %v10713_v18  ;;  %v10714_v35 = vld [vmem:[#allocation141_spill] sm:$0xff]  ;;  %v617_v18 = vadd.f32 %v616_v12, %v515_v28 }
 0x17c   : > { %2320 = vmatpush.msrb.mxu3 %v10709_v30  ;;  %2153 = vmatpush.msrb.mxu0 %v10715_v17  ;;  %v709_v30 = vpop.f32.mrf.mxu3 }
 0x17d   : > { %v1050_v63 = vpop.f32.mrf.mxu1 }
 0x17e   : > { %2326 = vmatpush.msrb.mxu3 %v10712_v33 }
 0x180   : > { %2332 = vmatpush.msrb.mxu3 %v10714_v35  ;;  %v1011_v24 = vpop.f32.mrf.mxu0  ;;  %v671_v35 = vadd.f32 %v670_v54, %v617_v18  ;;  %v10720_v54 = vld [vmem:[#allocation61_spill] sm:$0xff] }
 0x182   : > { %v710_v57 = vadd.f32 %v709_v30, %v671_v35 }
 0x184   : > { %v957_v46 = vpop.f32.mrf.mxu3  ;;  %v779_v56 = vadd.f32 %v778_v39, %v710_v57 }
 0x185   : > { %v1298_v0 = vpop.f32.mrf.mxu1 }
 0x186   : > { %v816_v61 = vadd.f32 %v815_v1, %v779_v56  ;;  %v10719_v1 = vld [vmem:[#allocation83_spill] sm:$0xff] }
 0x188   : > { %v1197_v14 = vpop.f32.mrf.mxu0  ;;  %v857_v10 = vadd.f32 %v856_v21, %v816_v61 }
 0x189   : > { %v1299_v22 = vadd.f32 %v1298_v0, %v1197_v14  ;;  %v1538_v15 = vpop.f32.mrf.mxu2 }
 0x18a   : > { %v958_v20 = vadd.f32 %v957_v46, %v857_v10 }
 0x18b   : > { %v1353_v34 = vadd.f32 %v1352_v19, %v1299_v22 }
 0x18c   : > { %v1156_v33 = vpop.f32.mrf.mxu3  ;;  %v1012_v14 = vadd.f32 %v1011_v24, %v958_v20 }
 0x18d   : > { %v1497_v32 = vpop.f32.mrf.mxu1 }
 0x18e   : > { %v1051_v18 = vadd.f32 %v1050_v63, %v1012_v14  ;;  %v10722_v14 = vld [vmem:[#allocation67_spill] sm:$0xff] }
 0x190   : > { %v1460_v38 = vpop.f32.mrf.mxu0 }
 0x194   : > { %v1391_v17 = vpop.f32.mrf.mxu3 }
 0x195   : > { %v1392_v6 = vadd.f32 %v1391_v17, %v1353_v34  ;;  %v1120_v34 = vadd.f32 %v1119_v3, %v1051_v18  ;;  %v10724_v18 = vld [vmem:[#allocation74_spill] sm:$0xff] }
 0x197   : > { %v1461_v60 = vadd.f32 %v1460_v38, %v1392_v6  ;;  %v1157_v56 = vadd.f32 %v1156_v33, %v1120_v34  ;;  %v10718_v38 = vld [vmem:[#allocation77_spill] sm:$0xff]  ;;  %v10728_v34 = vld [vmem:[#allocation84_spill] sm:$0xff] }
 0x198   : > { %v1693_v28 = vpop.f32.mrf.mxu0 }
 0x199   : > { %v1498_v11 = vadd.f32 %v1497_v32, %v1461_v60 }
 0x19b   : > { %v1539_v31 = vadd.f32 %v1538_v15, %v1498_v11  ;;  %v10716_v11 = vld [vmem:[#allocation43_spill] sm:$0xff]  ;;  %v10717_v15 = vld [vmem:[#allocation72_spill] sm:$0xff] }
 0x1a4   : > { %v1639_v45 = vpop.f32.mrf.mxu3 }
 0x1a5   : > { %v1640_v12 = vadd.f32 %v1639_v45, %v1539_v31 }
 0x1a6   : > { %v1732_v22 = vpop.f32.mrf.mxu1 }
 0x1a7   : > { %v1694_v0 = vadd.f32 %v1693_v28, %v1640_v12  ;;  %v10721_v12 = vld [vmem:[#allocation87_spill] sm:$0xff] }
 0x1a9   : > { %v1733_v19 = vadd.f32 %v1732_v22, %v1694_v0  ;;  %v10723_v0 = vld [vmem:[#allocation92_spill] sm:$0xff]  ;;  %v10725_v22 = vld [vmem:[#allocation97_spill] sm:$0xff] }
 0x1bb   : > { %v1801_v35 = vpop.f32.mrf.mxu2 }
 0x1bc   : > { %v1802_v17 = vadd.f32 %v1801_v35, %v1733_v19  ;;  %v10726_v19 = vld [vmem:[#allocation79_spill] sm:$0xff] }
 0x1bd   : > { %v10727_v35 = vld [vmem:[#allocation99_spill] sm:$0xff] }
 0x1c4   : > { %v1838_v57 = vpop.f32.mrf.mxu3 }
 0x1c5   : > { %v1839_v6 = vadd.f32 %v1838_v57, %v1802_v17  ;;  %v10729_v17 = vld [vmem:[#allocation103_spill] sm:$0xff]  ;;  %v10730_v57 = vld [vmem:[#allocation88_spill] sm:$0xff] }
 0x1c7   : > { %v1843_v32 = vrot.slane %v1839_v6, 4  ;;  %v10731_v6 = vld [vmem:[#allocation108_spill] sm:$0xff] }
 0x1c9   : > { %v1845_v61 = vsel %vm1844_vm0, %v1157_v56, %v1843_v32  ;;  %v10732_v56 = vld [vmem:[#allocation90_spill] sm:$0xff]  ;;  %v10733_v32 = vld [vmem:[#allocation112_spill] sm:$0xff] }
 0x1ca   : > { %v8449_v39 = vsub.f32 %v10716_v11, %v1845_v61  ;;  %v10734_v61 = vld [vmem:[#allocation95_spill] sm:$0xff]  ;;  %v10735_v11 = vld [vmem:[#allocation116_spill] sm:$0xff] }
 0x1cc   : > { %v1848_v10 = vmul.f32 %v8449_v39, %v8449_v39 }
 0x1ce   : > { %1850 = vst [vmem:[#allocation1] ss:$2 sm:$0xff] %v1848_v10  ;;  %v10736_v10 = vld [vmem:[#allocation101_spill] sm:$0xff] }
 0x1d5   : > { %v1851_v46 = vld.sshfl [vmem:[#allocation1] sm:$0xff pattern:$0x75316420]  ;;  %v1852_v31 = vld.sshfl [vmem:[#allocation1 + $0x8] sm:$0xff pattern:$0x75316420] }
 0x1d6   : > { %v8453_v45 = vand.u32 4294901760, %v1851_v46  ;;  %v8455_v3 = vand.u32 4294901760, %v1852_v31 }
 0x1d8   : > { %1993 = vmatmul.f32.vlgmr.msra.gmra.mxu1 %v8453_v45  ;;  %v8459_v20 = vsub.f32 %v1851_v46, %v8453_v45  ;;  %v8462_v24 = vsub.f32 %v1852_v31, %v8455_v3  ;;  %v10737_v46 = vld [vmem:[#allocation120_spill] sm:$0xff]  ;;  %v10738_v31 = vld [vmem:[#allocation105_spill] sm:$0xff] }
 0x1d9   : > { %2393 = vmatpush.msra.mxu1 %v10666_v52 }
 0x1da   : > { %2047 = vmatmul.f32.vlgmr.msra.gmra.mxu2 %v8459_v20  ;;  %v8467_v33 = vand.u32 4294901760, %v8459_v20  ;;  %v8470_v30 = vand.u32 4294901760, %v8462_v24 }
 0x1db   : > { %2395 = vmatpush.msra.mxu1 %v10669_v13  ;;  %2434 = vmatpush.msra.mxu2 %v10717_v15 }
 0x1dc   : > { %2086 = vmatmul.f32.vlgmr.msra.gmra.mxu3 %v8467_v33  ;;  %v1890_v60 = vsub.f32 %v8459_v20, %v8467_v33  ;;  %v2231_v21 = vsub.f32 %v8462_v24, %v8470_v30 }
 0x1dd   : > { %2397 = vmatpush.msra.mxu1 %v10672_v9  ;;  %2438 = vmatpush.msra.mxu2 %v10718_v38 }
 0x1de   : > { %2501 = vmatpush.msra.mxu3 %v10666_v52  ;;  %v8482_v63 = vand.u32 4294901760, %v1890_v60  ;;  %v8490_v28 = vand.u32 4294901760, %v2231_v21  ;;  %v10739_v60 = vld [vmem:[#allocation123_spill] sm:$0xff]  ;;  %v10740_v21 = vld [vmem:[#allocation109_spill] sm:$0xff] }
 0x1df   : > { %2399 = vmatpush.msra.mxu1 %v10675_v51  ;;  %2442 = vmatpush.msra.mxu2 %v10719_v1 }
 0x1e0   : > { %2503 = vmatpush.msra.mxu3 %v10669_v13  ;;  %1892 = vmatmul.f32.vlgmr.msra.gmra.mxu0 %v8482_v63 }
 0x1e1   : > { %2192 = vmatmul.f32.vlgmr.msrb.gmra.mxu1 %v8453_v45  ;;  %2340 = vmatpush.msra.mxu0 %v10720_v54 }
 0x1e2   : > { %2401 = vmatpush.msra.mxu1 %v10678_v5  ;;  %2446 = vmatpush.msra.mxu2 %v10721_v12 }
 0x1e3   : > { %2505 = vmatpush.msra.mxu3 %v10672_v9  ;;  %2233 = vmatmul.f32.vlgmr.msrb.gmra.mxu2 %v8490_v28 }
 0x1e4   : > { %2343 = vmatpush.msra.mxu0 %v10722_v14  ;;  %2403 = vmatpush.msra.mxu1 %v10681_v27 }
 0x1e5   : > { %2450 = vmatpush.msra.mxu2 %v10723_v0  ;;  %2507 = vmatpush.msra.mxu3 %v10675_v51 }
 0x1e6   : > { %2334 = vmatmul.f32.vlgmr.msrb.gmra.mxu3 %v8455_v3  ;;  %2346 = vmatpush.msra.mxu0 %v10724_v18 }
 0x1e7   : > { %2405 = vmatpush.msra.mxu1 %v10684_v25  ;;  %2454 = vmatpush.msra.mxu2 %v10725_v22 }
 0x1e8   : > { %2509 = vmatpush.msra.mxu3 %v10678_v5  ;;  %2349 = vmatpush.msra.mxu0 %v10726_v19 }
 0x1e9   : > { %2407 = vmatpush.msra.mxu1 %v10687_v26  ;;  %2458 = vmatpush.msra.mxu2 %v10727_v35 }
 0x1ea   : > { %2511 = vmatpush.msra.mxu3 %v10681_v27  ;;  %2155 = vmatmul.f32.vlgmr.msrb.gmra.mxu0 %v8453_v45 }
 0x1eb   : > { %2352 = vmatpush.msra.mxu0 %v10728_v34  ;;  %2409 = vmatpush.msra.mxu1 %v10690_v29 }
 0x1ec   : > { %2462 = vmatpush.msra.mxu2 %v10729_v17  ;;  %2513 = vmatpush.msra.mxu3 %v10684_v25 }
 0x1ed   : > { %2355 = vmatpush.msra.mxu0 %v10730_v57  ;;  %2411 = vmatpush.msra.mxu1 %v10693_v8  ;;  %v10768_v57 = vld [vmem:[#allocation164_spill] sm:$0xff] }
 0x1ee   : > { %2466 = vmatpush.msra.mxu2 %v10731_v6  ;;  %2515 = vmatpush.msra.mxu3 %v10687_v26  ;;  %v10759_v6 = vld [vmem:[#allocation154_spill] sm:$0xff] }
 0x1ef   : > { %2358 = vmatpush.msra.mxu0 %v10732_v56  ;;  %2413 = vmatpush.msra.mxu1 %v10696_v43  ;;  %v10755_v56 = vld [vmem:[#allocation151_spill] sm:$0xff] }
 0x1f0   : > { %2470 = vmatpush.msra.mxu2 %v10733_v32  ;;  %2517 = vmatpush.msra.mxu3 %v10690_v29  ;;  %v10754_v32 = vld [vmem:[#allocation174_spill] sm:$0xff] }
 0x1f1   : > { %2361 = vmatpush.msra.mxu0 %v10734_v61  ;;  %2415 = vmatpush.msra.mxu1 %v10699_v62  ;;  %v10749_v61 = vld [vmem:[#allocation124_spill] sm:$0xff] }
 0x1f2   : > { %2474 = vmatpush.msra.mxu2 %v10735_v11  ;;  %2519 = vmatpush.msra.mxu3 %v10693_v8  ;;  %v10741_v11 = vld [vmem:[#allocation130_spill] sm:$0xff] }
 0x1f3   : > { %2364 = vmatpush.msra.mxu0 %v10736_v10  ;;  %2417 = vmatpush.msra.mxu1 %v10702_v40  ;;  %v10742_v10 = vld [vmem:[#allocation113_spill] sm:$0xff] }
 0x1f4   : > { %2478 = vmatpush.msra.mxu2 %v10737_v46  ;;  %2521 = vmatpush.msra.mxu3 %v10696_v43  ;;  %v10743_v46 = vld [vmem:[#allocation133_spill] sm:$0xff] }
 0x1f5   : > { %2367 = vmatpush.msra.mxu0 %v10738_v31  ;;  %2419 = vmatpush.msra.mxu1 %v10705_v44  ;;  %v10745_v31 = vld [vmem:[#allocation162_spill] sm:$0xff] }
 0x1f6   : > { %2482 = vmatpush.msra.mxu2 %v10739_v60  ;;  %2523 = vmatpush.msra.mxu3 %v10699_v62  ;;  %v10744_v60 = vld [vmem:[#allocation118_spill] sm:$0xff] }
 0x1f7   : > { %2370 = vmatpush.msra.mxu0 %v10740_v21  ;;  %2421 = vmatpush.msra.mxu1 %v10708_v59  ;;  %v10746_v21 = vld [vmem:[#allocation136_spill] sm:$0xff] }
 0x1f8   : > { %2486 = vmatpush.msra.mxu2 %v10741_v11  ;;  %2525 = vmatpush.msra.mxu3 %v10702_v40  ;;  %v10747_v11 = vld [vmem:[#allocation166_spill] sm:$0xff] }
 0x1f9   : > { %2373 = vmatpush.msra.mxu0 %v10742_v10  ;;  %2423 = vmatpush.msra.mxu1 %v10711_v58  ;;  %v10748_v10 = vld [vmem:[#allocation146_spill] sm:$0xff] }
 0x1fa   : > { %2490 = vmatpush.msra.mxu2 %v10743_v46  ;;  %2527 = vmatpush.msra.mxu3 %v10705_v44  ;;  %v10750_v46 = vld [vmem:[#allocation170_spill] sm:$0xff] }
 0x1fb   : > { %2427 = vmatmul.f32.vlgmr.msra.gmra.mxu1 %v8470_v30  ;;  %2376 = vmatpush.msra.mxu0 %v10744_v60  ;;  %v10751_v60 = vld [vmem:[#allocation148_spill] sm:$0xff] }
 0x1fc   : > { %2583 = vmatpush.msrb.mxu1 %v10745_v31  ;;  %2494 = vmatpush.msra.mxu2 %v10746_v21  ;;  %v10752_v31 = vld [vmem:[#allocation143_spill] sm:$0xff]  ;;  %v10753_v21 = vld [vmem:[#allocation128_spill] sm:$0xff] }
 0x1fd   : > { %2529 = vmatpush.msra.mxu3 %v10708_v59  ;;  %2496 = vmatmul.f32.vlgmr.msra.gmra.mxu2 %v8455_v3 }
 0x1fe   : > { %2589 = vmatpush.msrb.mxu1 %v10747_v11  ;;  %2681 = vmatpush.msrb.mxu2 %v10748_v10  ;;  %v10756_v11 = vld [vmem:[#allocation144_spill] sm:$0xff]  ;;  %v10757_v10 = vld [vmem:[#allocation131_spill] sm:$0xff] }
 0x1ff   : > { %2379 = vmatpush.msra.mxu0 %v10749_v61  ;;  %2531 = vmatpush.msra.mxu3 %v10711_v58  ;;  %v10758_v61 = vld [vmem:[#allocation178_spill] sm:$0xff] }
 0x200   : > { %2533 = vmatmul.f32.vlgmr.msra.gmra.mxu3 %v8455_v3  ;;  %2595 = vmatpush.msrb.mxu1 %v10750_v46  ;;  %v10761_v46 = vld [vmem:[#allocation182_spill] sm:$0xff] }
 0x201   : > { %2684 = vmatpush.msrb.mxu2 %v10751_v60  ;;  %2734 = vmatpush.msrb.mxu3 %v10752_v31  ;;  %v10760_v60 = vld [vmem:[#allocation145_spill] sm:$0xff] }
 0x202   : > { %2382 = vmatpush.msra.mxu0 %v10753_v21  ;;  %2601 = vmatpush.msrb.mxu1 %v10754_v32  ;;  %v10762_v21 = vld [vmem:[#allocation157_spill] sm:$0xff] }
 0x203   : > { %2687 = vmatpush.msrb.mxu2 %v10755_v56  ;;  %2736 = vmatpush.msrb.mxu3 %v10756_v11  ;;  %v10763_v56 = vld [vmem:[#allocation147_spill] sm:$0xff]  ;;  %v10764_v32 = vld [vmem:[#allocation185_spill] sm:$0xff] }
 0x204   : > { %2385 = vmatpush.msra.mxu0 %v10757_v10  ;;  %2607 = vmatpush.msrb.mxu1 %v10758_v61  ;;  %v10765_v10 = vld [vmem:[#allocation160_spill] sm:$0xff]  ;;  %v10766_v61 = vld [vmem:[#allocation149_spill] sm:$0xff] }
 0x205   : > { %2388 = vmatmul.f32.vlgmr.msra.gmra.mxu0 %v8462_v24  ;;  %2690 = vmatpush.msrb.mxu2 %v10759_v6  ;;  %v10767_v6 = vld [vmem:[#allocation190_spill] sm:$0xff] }
 0x206   : > { %2538 = vmatpush.msrb.mxu0 %v10752_v31  ;;  %2738 = vmatpush.msrb.mxu3 %v10760_v60 }
 0x207   : > { %2613 = vmatpush.msrb.mxu1 %v10761_v46  ;;  %2693 = vmatpush.msrb.mxu2 %v10762_v21  ;;  %v10769_v21 = vld [vmem:[#allocation194_spill] sm:$0xff]  ;;  %v10770_v46 = vld [vmem:[#allocation168_spill] sm:$0xff] }
 0x208   : > { %2540 = vmatpush.msrb.mxu0 %v10756_v11  ;;  %2740 = vmatpush.msrb.mxu3 %v10763_v56 }
 0x209   : > { %2619 = vmatpush.msrb.mxu1 %v10764_v32  ;;  %2696 = vmatpush.msrb.mxu2 %v10765_v10  ;;  %v10771_v10 = vld [vmem:[#allocation198_spill] sm:$0xff]  ;;  %v10772_v32 = vld [vmem:[#allocation169_spill] sm:$0xff] }
 0x20a   : > { %2542 = vmatpush.msrb.mxu0 %v10760_v60  ;;  %2742 = vmatpush.msrb.mxu3 %v10766_v61 }
 0x20b   : > { %2625 = vmatpush.msrb.mxu1 %v10767_v6  ;;  %2699 = vmatpush.msrb.mxu2 %v10768_v57  ;;  %v10773_v57 = vld [vmem:[#allocation204_spill] sm:$0xff]  ;;  %v10774_v6 = vld [vmem:[#allocation173_spill] sm:$0xff] }
 0x20c   : > { %2544 = vmatpush.msrb.mxu0 %v10763_v56  ;;  %2744 = vmatpush.msrb.mxu3 %v7744_v4 }
 0x20d   : > { %2631 = vmatpush.msrb.mxu1 %v10769_v21  ;;  %2702 = vmatpush.msrb.mxu2 %v10770_v46  ;;  %v10775_v46 = vld [vmem:[#allocation209_spill] sm:$0xff]  ;;  %v10776_v21 = vld [vmem:[#allocation180_spill] sm:$0xff] }
 0x20e   : > { %2546 = vmatpush.msrb.mxu0 %v10766_v61  ;;  %2746 = vmatpush.msrb.mxu3 %v7758_v47 }
 0x20f   : > { %2637 = vmatpush.msrb.mxu1 %v10771_v10  ;;  %2705 = vmatpush.msrb.mxu2 %v10772_v32  ;;  %v10777_v32 = vld [vmem:[#allocation213_spill] sm:$0xff]  ;;  %v10778_v10 = vld [vmem:[#allocation184_spill] sm:$0xff] }
 0x210   : > { %2548 = vmatpush.msrb.mxu0 %v7744_v4  ;;  %2748 = vmatpush.msrb.mxu3 %v7772_v53 }
 0x211   : > { %2643 = vmatpush.msrb.mxu1 %v10773_v57  ;;  %2708 = vmatpush.msrb.mxu2 %v10774_v6  ;;  %v10779_v6 = vld [vmem:[#allocation217_spill] sm:$0xff]  ;;  %v10780_v57 = vld [vmem:[#allocation188_spill] sm:$0xff] }
 0x212   : > { %2550 = vmatpush.msrb.mxu0 %v7758_v47  ;;  %2750 = vmatpush.msrb.mxu3 %v7782_v36 }
 0x213   : > { %2649 = vmatpush.msrb.mxu1 %v10775_v46  ;;  %2711 = vmatpush.msrb.mxu2 %v10776_v21  ;;  %v10781_v21 = vld [vmem:[#allocation221_spill] sm:$0xff] }
 0x214   : > { %2552 = vmatpush.msrb.mxu0 %v7772_v53  ;;  %2752 = vmatpush.msrb.mxu3 %v7798_v55  ;;  %v10782_v46 = vld [vmem:[#allocation193_spill] sm:$0xff] }
 0x215   : > { %2655 = vmatpush.msrb.mxu1 %v10777_v32  ;;  %2714 = vmatpush.msrb.mxu2 %v10778_v10  ;;  %v10783_v10 = vld [vmem:[#allocation226_spill] sm:$0xff]  ;;  %v10784_v32 = vld [vmem:[#allocation196_spill] sm:$0xff] }
 0x216   : > { %2554 = vmatpush.msrb.mxu0 %v7782_v36  ;;  %2754 = vmatpush.msrb.mxu3 %v7823_v7 }
 0x217   : > { %2661 = vmatpush.msrb.mxu1 %v10779_v6  ;;  %2717 = vmatpush.msrb.mxu2 %v10780_v57  ;;  %v10785_v57 = vld [vmem:[#allocation201_spill] sm:$0xff] }
 0x218   : > { %2556 = vmatpush.msrb.mxu0 %v7798_v55  ;;  %2756 = vmatpush.msrb.mxu3 %v7839_v42  ;;  %v10798_v6 = vld [vmem:[#allocation245_spill] sm:$0xff] }
 0x219   : > { %2667 = vmatpush.msrb.mxu1 %v10781_v21  ;;  %2720 = vmatpush.msrb.mxu2 %v10782_v46  ;;  %v10792_v46 = vld [vmem:[#allocation237_spill] sm:$0xff]  ;;  %v10794_v21 = vld [vmem:[#allocation156_spill] sm:$0xff] }
 0x21a   : > { %2558 = vmatpush.msrb.mxu0 %v7823_v7  ;;  %2758 = vmatpush.msrb.mxu3 %v7855_v23 }
 0x21b   : > { %2673 = vmatpush.msrb.mxu1 %v10783_v10  ;;  %2723 = vmatpush.msrb.mxu2 %v10784_v32  ;;  %v10789_v32 = vld [vmem:[#allocation233_spill] sm:$0xff] }
 0x21c   : > { %2560 = vmatpush.msrb.mxu0 %v7839_v42  ;;  %2760 = vmatpush.msrb.mxu3 %v7871_v16  ;;  %v10791_v10 = vld [vmem:[#allocation153_spill] sm:$0xff] }
 0x21d   : > { %2675 = vmatmul.f32.vlgmr.msrb.gmra.mxu1 %v8453_v45  ;;  %2726 = vmatpush.msrb.mxu2 %v10785_v57  ;;  %v10786_v57 = vld [vmem:[#allocation224_spill] sm:$0xff] }
 0x21e   : > { %2842 = vmatpush.msra.mxu1 %v10752_v31  ;;  %2562 = vmatpush.msrb.mxu0 %v7855_v23 }
 0x21f   : > { %2762 = vmatpush.msrb.mxu3 %v7884_v48  ;;  %2729 = vmatmul.f32.vlgmr.msrb.gmra.mxu2 %v8459_v20  ;;  %v10787_v20 = vld [vmem:[#allocation229_spill] sm:$0xff] }
 0x220   : > { %2844 = vmatpush.msra.mxu1 %v10756_v11  ;;  %2879 = vmatpush.msra.mxu2 %v7896_v37 }
 0x221   : > { %2564 = vmatpush.msrb.mxu0 %v7871_v16  ;;  %2764 = vmatpush.msrb.mxu3 %v10610_v41 }
 0x222   : > { %2768 = vmatmul.f32.vlgmr.msrb.gmra.mxu3 %v8467_v33  ;;  %2846 = vmatpush.msra.mxu1 %v10760_v60  ;;  %v10788_v33 = vld [vmem:[#allocation150_spill] sm:$0xff] }
 0x223   : > { %2881 = vmatpush.msra.mxu2 %v7924_v49  ;;  %2924 = vmatpush.msra.mxu3 %v10786_v57  ;;  %v10790_v57 = vld [vmem:[#allocation208_spill] sm:$0xff] }
 0x224   : > { %2566 = vmatpush.msrb.mxu0 %v7884_v48  ;;  %2848 = vmatpush.msra.mxu1 %v10763_v56 }
 0x225   : > { %2883 = vmatpush.msra.mxu2 %v7943_v50  ;;  %2930 = vmatpush.msra.mxu3 %v10787_v20  ;;  %v10793_v20 = vld [vmem:[#allocation215_spill] sm:$0xff] }
 0x226   : > { %2568 = vmatpush.msrb.mxu0 %v10610_v41  ;;  %2850 = vmatpush.msra.mxu1 %v10766_v61 }
 0x227   : > { %2574 = vmatmul.f32.vlgmr.msrb.gmra.mxu0 %v8482_v63  ;;  %2885 = vmatpush.msra.mxu2 %v7947_v2  ;;  %v10795_v63 = vld [vmem:[#allocation241_spill] sm:$0xff] }
 0x228   : > { %2775 = vmatpush.msra.mxu0 %v10788_v33  ;;  %2936 = vmatpush.msra.mxu3 %v10789_v32  ;;  %v10796_v33 = vld [vmem:[#allocation219_spill] sm:$0xff] }
 0x229   : > { %2852 = vmatpush.msra.mxu1 %v7744_v4  ;;  %2887 = vmatpush.msra.mxu2 %v10790_v57  ;;  %v10797_v32 = vld [vmem:[#allocation159_spill] sm:$0xff] }
 0x22a   : > { %2779 = vmatpush.msra.mxu0 %v10791_v10  ;;  %2942 = vmatpush.msra.mxu3 %v10792_v46  ;;  %v10799_v10 = vld [vmem:[#allocation223_spill] sm:$0xff] }
 0x22b   : > { %2854 = vmatpush.msra.mxu1 %v7758_v47  ;;  %2889 = vmatpush.msra.mxu2 %v10793_v20  ;;  %v10800_v46 = vld [vmem:[#allocation163_spill] sm:$0xff]  ;;  %v10801_v47 = vld [vmem:[#allocation249_spill] sm:$0xff] }
 0x22c   : > { %2783 = vmatpush.msra.mxu0 %v10794_v21  ;;  %2948 = vmatpush.msra.mxu3 %v10795_v63  ;;  %v10802_v21 = vld [vmem:[#allocation228_spill] sm:$0xff]  ;;  %v10803_v63 = vld [vmem:[#allocation167_spill] sm:$0xff] }
 0x22d   : > { %2856 = vmatpush.msra.mxu1 %v7772_v53  ;;  %2891 = vmatpush.msra.mxu2 %v10796_v33  ;;  %v10804_v53 = vld [vmem:[#allocation253_spill] sm:$0xff] }
 0x22e   : > { %2787 = vmatpush.msra.mxu0 %v10797_v32  ;;  %2954 = vmatpush.msra.mxu3 %v10798_v6  ;;  %v10805_v32 = vld [vmem:[#allocation232_spill] sm:$0xff] }
 0x22f   : > { %2858 = vmatpush.msra.mxu1 %v7782_v36  ;;  %2893 = vmatpush.msra.mxu2 %v10799_v10  ;;  %v10806_v6 = vld [vmem:[#allocation172_spill] sm:$0xff] }
 0x230   : > { %2791 = vmatpush.msra.mxu0 %v10800_v46  ;;  %2960 = vmatpush.msra.mxu3 %v10801_v47  ;;  %v10807_v36 = vld [vmem:[#allocation256_spill] sm:$0xff] }
 0x231   : > { %2860 = vmatpush.msra.mxu1 %v7798_v55  ;;  %2895 = vmatpush.msra.mxu2 %v10802_v21  ;;  %v10808_v46 = vld [vmem:[#allocation236_spill] sm:$0xff] }
 0x232   : > { %2795 = vmatpush.msra.mxu0 %v10803_v63  ;;  %2966 = vmatpush.msra.mxu3 %v10804_v53  ;;  %v10809_v47 = vld [vmem:[#allocation176_spill] sm:$0xff]  ;;  %v10812_v53 = vld [vmem:[#allocation177_spill] sm:$0xff] }
 0x233   : > { %2862 = vmatpush.msra.mxu1 %v7823_v7  ;;  %2897 = vmatpush.msra.mxu2 %v10805_v32  ;;  %v10810_v55 = vld [vmem:[#allocation260_spill] sm:$0xff]  ;;  %v10813_v7 = vld [vmem:[#allocation262_spill] sm:$0xff] }
 0x234   : > { %2799 = vmatpush.msra.mxu0 %v10806_v6  ;;  %2972 = vmatpush.msra.mxu3 %v10807_v36  ;;  %v10811_v63 = vld [vmem:[#allocation240_spill] sm:$0xff]  ;;  %v10815_v36 = vld [vmem:[#allocation181_spill] sm:$0xff] }
 0x235   : > { %2864 = vmatpush.msra.mxu1 %v7839_v42  ;;  %2899 = vmatpush.msra.mxu2 %v10808_v46  ;;  %v10814_v6 = vld [vmem:[#allocation244_spill] sm:$0xff]  ;;  %v10816_v42 = vld [vmem:[#allocation265_spill] sm:$0xff] }
 0x236   : > { %2803 = vmatpush.msra.mxu0 %v10809_v47  ;;  %2978 = vmatpush.msra.mxu3 %v10810_v55  ;;  %v10817_v47 = vld [vmem:[#allocation248_spill] sm:$0xff]  ;;  %v10818_v55 = vld [vmem:[#allocation187_spill] sm:$0xff] }
 0x237   : > { %2866 = vmatpush.msra.mxu1 %v7855_v23  ;;  %2901 = vmatpush.msra.mxu2 %v10811_v63  ;;  %v10819_v23 = vld [vmem:[#allocation266_spill] sm:$0xff] }
 0x238   : > { %2807 = vmatpush.msra.mxu0 %v10812_v53  ;;  %2984 = vmatpush.msra.mxu3 %v10813_v7  ;;  %v10820_v53 = vld [vmem:[#allocation252_spill] sm:$0xff] }
 0x239   : > { %2868 = vmatpush.msra.mxu1 %v7871_v16  ;;  %2903 = vmatpush.msra.mxu2 %v10814_v6  ;;  %v10821_v7 = vld [vmem:[#allocation192_spill] sm:$0xff] }
 0x23a   : > { %2811 = vmatpush.msra.mxu0 %v10815_v36  ;;  %2990 = vmatpush.msra.mxu3 %v10816_v42  ;;  %v10822_v16 = vld [vmem:[#allocation268_spill] sm:$0xff]  ;;  %v10823_v36 = vld [vmem:[#allocation258_spill] sm:$0xff]  ;;  %v10824_v42 = vld [vmem:[#allocation195_spill] sm:$0xff] }
 0x23b   : > { %2870 = vmatpush.msra.mxu1 %v7884_v48  ;;  %2905 = vmatpush.msra.mxu2 %v10817_v47  ;;  %v10825_v48 = vld [vmem:[#allocation269_spill] sm:$0xff] }
 0x23c   : > { %2815 = vmatpush.msra.mxu0 %v10818_v55  ;;  %2996 = vmatpush.msra.mxu3 %v10819_v23  ;;  %v10826_v23 = vld [vmem:[#allocation207_spill] sm:$0xff]  ;;  %v10827_v55 = vld [vmem:[#allocation200_spill] sm:$0xff] }
 0x23d   : > { %2872 = vmatpush.msra.mxu1 %v10610_v41  ;;  %2907 = vmatpush.msra.mxu2 %v10820_v53 }
 0x23e   : > { %2819 = vmatpush.msra.mxu0 %v10821_v7  ;;  %3002 = vmatpush.msra.mxu3 %v10822_v16  ;;  %v10828_v7 = vld [vmem:[#allocation270_spill] sm:$0xff] }
 0x23f   : > { %2874 = vmatmul.f32.vlgmr.msra.gmra.mxu1 %v8453_v45  ;;  %2909 = vmatpush.msra.mxu2 %v10823_v36  ;;  %v10829_v16 = vld [vmem:[#allocation214_spill] sm:$0xff] }
 0x240   : > { %3075 = vmatpush.msrb.mxu1 %v7896_v37  ;;  %2823 = vmatpush.msra.mxu0 %v10824_v42  ;;  %v10830_v42 = vld [vmem:[#allocation205_spill] sm:$0xff] }
 0x241   : > { %3008 = vmatpush.msra.mxu3 %v10825_v48  ;;  %2915 = vmatmul.f32.vlgmr.msra.gmra.mxu2 %v8490_v28  ;;  %v10831_v28 = vld [vmem:[#allocation218_spill] sm:$0xff] }
 0x242   : > { %3077 = vmatpush.msrb.mxu1 %v7924_v49  ;;  %3116 = vmatpush.msrb.mxu2 %v10826_v23  ;;  %v10832_v23 = vld [vmem:[#allocation210_spill] sm:$0xff] }
 0x243   : > { %2827 = vmatpush.msra.mxu0 %v10827_v55  ;;  %3014 = vmatpush.msra.mxu3 %v10828_v7  ;;  %v10833_v7 = vld [vmem:[#allocation220_spill] sm:$0xff]  ;;  %v10834_v55 = vld [vmem:[#allocation199_spill] sm:$0xff] }
 0x244   : > { %3016 = vmatmul.f32.vlgmr.msra.gmra.mxu3 %v8455_v3  ;;  %3079 = vmatpush.msrb.mxu1 %v7943_v50 }
 0x245   : > { %3120 = vmatpush.msrb.mxu2 %v10829_v16  ;;  %3183 = vmatpush.msrb.mxu3 %v7896_v37  ;;  %v10836_v16 = vld [vmem:[#allocation206_spill] sm:$0xff] }
 0x246   : > { %2831 = vmatpush.msra.mxu0 %v10830_v42  ;;  %3081 = vmatpush.msrb.mxu1 %v7947_v2  ;;  %v10835_v42 = vld [vmem:[#allocation225_spill] sm:$0xff] }
 0x247   : > { %3124 = vmatpush.msrb.mxu2 %v10831_v28  ;;  %3185 = vmatpush.msrb.mxu3 %v7924_v49  ;;  %v10838_v28 = vld [vmem:[#allocation211_spill] sm:$0xff] }
 0x248   : > { %2835 = vmatpush.msra.mxu0 %v10832_v23  ;;  %3083 = vmatpush.msrb.mxu1 %v10790_v57  ;;  %v10837_v23 = vld [vmem:[#allocation230_spill] sm:$0xff] }
 0x249   : > { %2837 = vmatmul.f32.vlgmr.msra.gmra.mxu0 %v8453_v45  ;;  %3128 = vmatpush.msrb.mxu2 %v10833_v7  ;;  %v10839_v45 = vld [vmem:[#allocation234_spill] sm:$0xff] }
 0x24a   : > { %3022 = vmatpush.msrb.mxu0 %v10834_v55  ;;  %3187 = vmatpush.msrb.mxu3 %v7943_v50  ;;  %v10840_v55 = vld [vmem:[#allocation212_spill] sm:$0xff] }
 0x24b   : > { %3085 = vmatpush.msrb.mxu1 %v10793_v20  ;;  %3132 = vmatpush.msrb.mxu2 %v10835_v42  ;;  %v10842_v42 = vld [vmem:[#allocation216_spill] sm:$0xff] }
 0x24c   : > { %3025 = vmatpush.msrb.mxu0 %v10836_v16  ;;  %3189 = vmatpush.msrb.mxu3 %v7947_v2  ;;  %v10841_v16 = vld [vmem:[#allocation238_spill] sm:$0xff] }
 0x24d   : > { %3087 = vmatpush.msrb.mxu1 %v10796_v33  ;;  %3136 = vmatpush.msrb.mxu2 %v10837_v23  ;;  %v10844_v23 = vld [vmem:[#allocation222_spill] sm:$0xff] }
 0x24e   : > { %3028 = vmatpush.msrb.mxu0 %v10838_v28  ;;  %3191 = vmatpush.msrb.mxu3 %v10790_v57  ;;  %v10843_v28 = vld [vmem:[#allocation242_spill] sm:$0xff] }
 0x24f   : > { %3089 = vmatpush.msrb.mxu1 %v10799_v10  ;;  %3140 = vmatpush.msrb.mxu2 %v10839_v45  ;;  %v10846_v45 = vld [vmem:[#allocation227_spill] sm:$0xff] }
 0x250   : > { %3031 = vmatpush.msrb.mxu0 %v10840_v55  ;;  %3193 = vmatpush.msrb.mxu3 %v10793_v20  ;;  %v10845_v55 = vld [vmem:[#allocation246_spill] sm:$0xff] }
 0x251   : > { %3091 = vmatpush.msrb.mxu1 %v10802_v21  ;;  %3144 = vmatpush.msrb.mxu2 %v10841_v16  ;;  %v10848_v16 = vld [vmem:[#allocation231_spill] sm:$0xff] }
 0x252   : > { %3034 = vmatpush.msrb.mxu0 %v10842_v42  ;;  %3195 = vmatpush.msrb.mxu3 %v10796_v33  ;;  %v10847_v42 = vld [vmem:[#allocation250_spill] sm:$0xff] }
 0x253   : > { %3093 = vmatpush.msrb.mxu1 %v10805_v32  ;;  %3148 = vmatpush.msrb.mxu2 %v10843_v28  ;;  %v10850_v28 = vld [vmem:[#allocation235_spill] sm:$0xff] }
 0x254   : > { %3037 = vmatpush.msrb.mxu0 %v10844_v23  ;;  %3197 = vmatpush.msrb.mxu3 %v10799_v10  ;;  %v10849_v23 = vld [vmem:[#allocation254_spill] sm:$0xff] }
 0x255   : > { %3095 = vmatpush.msrb.mxu1 %v10808_v46  ;;  %3152 = vmatpush.msrb.mxu2 %v10845_v55  ;;  %v10852_v55 = vld [vmem:[#allocation239_spill] sm:$0xff] }
 0x256   : > { %3040 = vmatpush.msrb.mxu0 %v10846_v45  ;;  %3199 = vmatpush.msrb.mxu3 %v10802_v21  ;;  %v10851_v45 = vld [vmem:[#allocation257_spill] sm:$0xff] }
 0x257   : > { %3097 = vmatpush.msrb.mxu1 %v10811_v63  ;;  %3156 = vmatpush.msrb.mxu2 %v10847_v42  ;;  %v10854_v42 = vld [vmem:[#allocation243_spill] sm:$0xff] }
 0x258   : > { %3043 = vmatpush.msrb.mxu0 %v10848_v16  ;;  %3201 = vmatpush.msrb.mxu3 %v10805_v32  ;;  %v10853_v16 = vld [vmem:[#allocation261_spill] sm:$0xff] }
 0x259   : > { %3099 = vmatpush.msrb.mxu1 %v10814_v6  ;;  %3160 = vmatpush.msrb.mxu2 %v10849_v23  ;;  %v10856_v23 = vld [vmem:[#allocation247_spill] sm:$0xff] }
 0x25a   : > { %3046 = vmatpush.msrb.mxu0 %v10850_v28  ;;  %3203 = vmatpush.msrb.mxu3 %v10808_v46  ;;  %v10855_v28 = vld [vmem:[#allocation264_spill] sm:$0xff] }
 0x25b   : > { %3101 = vmatpush.msrb.mxu1 %v10817_v47  ;;  %3164 = vmatpush.msrb.mxu2 %v10851_v45  ;;  %v10858_v45 = vld [vmem:[#allocation251_spill] sm:$0xff] }
 0x25c   : > { %3049 = vmatpush.msrb.mxu0 %v10852_v55  ;;  %3205 = vmatpush.msrb.mxu3 %v10811_v63  ;;  %v10857_v55 = vld [vmem:[#allocation267_spill] sm:$0xff] }
 0x25d   : > { %3103 = vmatpush.msrb.mxu1 %v10820_v53  ;;  %3168 = vmatpush.msrb.mxu2 %v10853_v16 }
 0x25e   : > { %3052 = vmatpush.msrb.mxu0 %v10854_v42  ;;  %3207 = vmatpush.msrb.mxu3 %v10814_v6  ;;  %v10859_v42 = vld [vmem:[#allocation255_spill] sm:$0xff] }
 0x25f   : > { %3105 = vmatpush.msrb.mxu1 %v10823_v36  ;;  %3172 = vmatpush.msrb.mxu2 %v10855_v28  ;;  %v10860_v28 = vld [vmem:[#allocation259_spill] sm:$0xff] }
 0x260   : > { %3055 = vmatpush.msrb.mxu0 %v10856_v23  ;;  %3209 = vmatpush.msrb.mxu3 %v10817_v47  ;;  %v10861_v23 = vld [vmem:[#allocation263_spill] sm:$0xff] }
 0x261   : > { %3109 = vmatmul.f32.vlgmr.msrb.gmra.mxu1 %v8470_v30  ;;  %3176 = vmatpush.msrb.mxu2 %v10857_v55  ;;  %v1893_v30 = vpop.f32.mrf.mxu0  ;;  %v1994_v55 = vpop.f32.mrf.mxu1 }
 0x262   : > { %3058 = vmatpush.msrb.mxu0 %v10858_v45  ;;  %3211 = vmatpush.msrb.mxu3 %v10820_v53  ;;  %v1894_v16 = vadd.f32 1e-05, %v1893_v30  ;;  %v2048_v45 = vpop.f32.mrf.mxu2  ;;  %v2087_v53 = vpop.f32.mrf.mxu3 }
 0x263   : > { %3178 = vmatmul.f32.vlgmr.msrb.gmra.mxu2 %v8455_v3 }
 0x264   : > { %3061 = vmatpush.msrb.mxu0 %v10859_v42  ;;  %3213 = vmatpush.msrb.mxu3 %v10823_v36  ;;  %v1995_v48 = vadd.f32 %v1994_v55, %v1894_v16 }
 0x265   : > { %3215 = vmatmul.f32.vlgmr.msrb.gmra.mxu3 %v8455_v3 }
 0x266   : > { %3064 = vmatpush.msrb.mxu0 %v10860_v28  ;;  %v2049_v6 = vadd.f32 %v2048_v45, %v1995_v48 }
 0x268   : > { %3067 = vmatpush.msrb.mxu0 %v10861_v23  ;;  %v2088_v36 = vadd.f32 %v2087_v53, %v2049_v6 }
 0x269   : > { %3070 = vmatmul.f32.vlgmr.msrb.gmra.mxu0 %v8462_v24  ;;  %v2156_v7 = vpop.f32.mrf.mxu0  ;;  %v2193_v47 = vpop.f32.mrf.mxu1 }
 0x26a   : > { %v2234_v63 = vpop.f32.mrf.mxu2  ;;  %v2335_v46 = vpop.f32.mrf.mxu3  ;;  %v2157_v32 = vadd.f32 %v2156_v7, %v2088_v36 }
 0x26c   : > { %v2194_v23 = vadd.f32 %v2193_v47, %v2157_v32 }
 0x26e   : > { %v2235_v20 = vadd.f32 %v2234_v63, %v2194_v23 }
 0x270   : > { %v2336_v2 = vadd.f32 %v2335_v46, %v2235_v20 }
 0x278   : > { %v2428_v3 = vpop.f32.mrf.mxu1 }
 0x280   : > { %v2497_v21 = vpop.f32.mrf.mxu2 }
 0x282   : > { %v2389_v42 = vpop.f32.mrf.mxu0 }
 0x283   : > { %v2534_v24 = vpop.f32.mrf.mxu3  ;;  %v2390_v55 = vadd.f32 %v2389_v42, %v2336_v2 }
 0x285   : > { %v2429_v49 = vadd.f32 %v2428_v3, %v2390_v55 }
 0x287   : > { %v2498_v41 = vadd.f32 %v2497_v21, %v2429_v49 }
 0x289   : > { %v2535_v37 = vadd.f32 %v2534_v24, %v2498_v41  ;;  %v3245_v24 = vld [vmem:[%s9725_s6] sm:$0x3] }
 0x28b   : > { %6867 = vrsqrt.f32 %v2535_v37  ;;  %vm3225_vm6 = vweird.f32 %v2535_v37 }
 0x291   : > { %v6868_v42 = vpop.eup %6867 }
 0x292   : > { %v3220_v63 = vmul.f32 %v6868_v42, %v2535_v37  ;;  %vm3226_vm3 = vweird.f32 %v6868_v42 }
 0x293   : > { %vm3227_vm7 = vmor %vm3225_vm6, %vm3226_vm3 }
 0x294   : > { %v3221_v3 = vmul.f32 %v6868_v42, %v3220_v63 }
 0x296   : > { %v3222_v21 = vmul.f32 0.5, %v3221_v3  ;;  %v6992_v3 = vmov 0  }
 0x297   : > { %6866 = vset.pattern.permute.xlu0 %v6992_v3 }
 0x29a   : > { %v2676_v33 = vpop.f32.mrf.mxu1 }
 0x2a2   : > { %v2730_v57 = vpop.f32.mrf.mxu2 }
 0x2a4   : > { %v2575_v28 = vpop.f32.mrf.mxu0 }
 0x2a5   : > { %v2576_v10 = vadd.f32 1e-05, %v2575_v28  ;;  %v2769_v50 = vpop.f32.mrf.mxu3 }
 0x2a7   : > { %v2677_v30 = vadd.f32 %v2676_v33, %v2576_v10 }
 0x2a9   : > { %v2731_v16 = vadd.f32 %v2730_v57, %v2677_v30 }
 0x2ab   : > { %v2770_v45 = vadd.f32 %v2769_v50, %v2731_v16  ;;  %v3223_v16 = vsub.f32 1.5, %v3222_v21 }
 0x2bc   : > { %v2875_v6 = vpop.f32.mrf.mxu1 }
 0x2c4   : > { %v2916_v36 = vpop.f32.mrf.mxu2 }
 0x2c6   : > { %v2838_v48 = vpop.f32.mrf.mxu0 }
 0x2c7   : > { %v2839_v53 = vadd.f32 %v2838_v48, %v2770_v45  ;;  %v3017_v32 = vpop.f32.mrf.mxu3  ;;  %v3253_v48 = vld [vmem:[%s9726_s7] sm:$0x3]  ;;  %v3248_v45 = vperm.slane %v3245_v24, 1 }
 0x2c9   : > { %v2876_v7 = vadd.f32 %v2875_v6, %v2839_v53  ;;  %v3261_v6 = vld [vmem:[%s9721_s2] sm:$0xff] }
 0x2cb   : > { %v2917_v47 = vadd.f32 %v2916_v36, %v2876_v7  ;;  %v3256_v7 = vperm.slane %v3253_v48, 1  ;;  %v3224_v36 = vmul.f32 %v6868_v42, %v3223_v16 }
 0x2cd   : > { %v3018_v28 = vadd.f32 %v3017_v32, %v2917_v47  ;;  %v3247_v32 = vperm.slane %v3245_v24, 0 }
 0x2de   : > { %v3110_v33 = vpop.f32.mrf.mxu1 }
 0x2e6   : > { %v3071_v23 = vpop.f32.mrf.mxu0  ;;  %v3179_v57 = vpop.f32.mrf.mxu2 }
 0x2e7   : > { %v3072_v10 = vadd.f32 %v3071_v23, %v3018_v28  ;;  %v3249_v28 = vrot.slane %v3248_v45, 4  ;;  %v3274_v23 = vsel %vm3272_vm2, %v3261_v6, 0 }
 0x2e8   : > { %v3216_v20 = vpop.f32.mrf.mxu3  ;;  %v3297_v63 = vand.u32 4294901760, %v3274_v23 }
 0x2e9   : > { %v3111_v46 = vadd.f32 %v3110_v33, %v3072_v10  ;;  %v3250_v21 = vsel %vm1844_vm0, %v3247_v32, %v3249_v28 }
 0x2eb   : > { %v3180_v2 = vadd.f32 %v3179_v57, %v3111_v46  ;;  %v3255_v46 = vperm.slane %v3253_v48, 0  ;;  %v3257_v57 = vrot.slane %v3256_v7, 4 }
 0x2ed   : > { %v3217_v50 = vadd.f32 %v3216_v20, %v3180_v2  ;;  %v3262_v2 = vld [vmem:[%s9722_s3] sm:$0xff]  ;;  %v3228_v20 = vsel %vm3227_vm7, %v6868_v42, %v3224_v36 }
 0x2ee   : > { %3265 = vperm.xlu0 %6866, %v3262_v2   ;;  %v3575_v42 = vld [vmem:[%s9724_s5] sm:$0xf] }
 0x2ef   : > { %6869 = vrsqrt.f32 %v3217_v50  ;;  %vm3235_vm4 = vweird.f32 %v3217_v50  ;;  %v3574_v2 = vld [vmem:[%s9723_s4] sm:$0xf] }
 0x2f0   : > { %v3583_v3 = vsel %vm3581_vm8, %v3574_v2, 0 }
 0x2f5   : > { %v6870_v49 = vpop.eup %6869 }
 0x2f6   : > { %v3230_v30 = vmul.f32 %v6870_v49, %v3217_v50  ;;  %vm3236_vm1 = vweird.f32 %v6870_v49  ;;  %3578 = vperm.xlu0 %6866, %v3575_v42  }
 0x2f7   : > { %vm3237_vm5 = vmor %vm3235_vm4, %vm3236_vm1 }
 0x2f8   : > { %v3231_v41 = vmul.f32 %v6870_v49, %v3230_v30 }
 0x2fa   : > { %v3232_v55 = vmul.f32 0.5, %v3231_v41  ;;  %v3298_v41 = vsub.f32 %v3274_v23, %v3297_v63 }
 0x2fc   : > { %v3233_v53 = vsub.f32 1.5, %v3232_v55  ;;  %v3299_v16 = vand.u32 4294901760, %v3298_v41 }
 0x2fe   : > { %v3234_v47 = vmul.f32 %v6870_v49, %v3233_v53  ;;  %v3300_v55 = vsub.f32 %v3298_v41, %v3299_v16 }
 0x300   : > { %v3238_v10 = vsel %vm3237_vm5, %v6870_v49, %v3234_v47  ;;  %v3258_v49 = vsel %vm1844_vm0, %v3255_v46, %v3257_v57  ;;  %v3301_v6 = vand.u32 4294901760, %v3300_v55 }
 0x301   : > { %v3241_v33 = vrot.slane %v3238_v10, 4 }
 0x303   : > { %v3242_v50 = vsel %vm1844_vm0, %v3228_v20, %v3241_v33 }
 0x304   : > { %v3244_v37 = vmul.f32 %v3242_v50, %v8449_v39 }
 0x306   : > { %v3252_v30 = vmul.f32 %v3250_v21, %v3244_v37  ;;  %v8784_v21 = vand.u32 4294901760, %v3583_v3 }
 0x308   : > { %v8773_v24 = vadd.f32 %v3258_v49, %v3252_v30  ;;  %v3603_v55 = vsub.f32 %v3583_v3, %v8784_v21 }
 0x30a   : > { %3269 = vst [vmem:[#allocation1] ss:$2 sm:$0xff] %v8773_v24 }
 0x311   : > { %v3270_v48 = vld.sshfl [vmem:[#allocation1] sm:$0xff pattern:$0x75316420]  ;;  %v3271_v45 = vld.sshfl [vmem:[#allocation1 + $0x8] sm:$0xff pattern:$0x75316420] }
 0x312   : > { %v3276_v53 = vsel %vm1844_vm0, %v3270_v48, 0  ;;  %v3278_v39 = vsel %vm1844_vm0, %v3271_v45, 0 }
 0x313   : > { %v3295_v7 = vand.u32 4294901760, %v3276_v53  ;;  %v3441_v36 = vand.u32 4294901760, %v3278_v39 }
 0x315   : > { %3296 = vmatpush.msra.mxu0 %v3295_v7  ;;  %3372 = vmatpush.msra.mxu3 %v3295_v7  ;;  %v3322_v47 = vsub.f32 %v3276_v53, %v3295_v7  ;;  %v3468_v32 = vsub.f32 %v3278_v39, %v3441_v36 }
 0x316   : > { %3302 = vmatmul.f32.vlgmr.msra.gmra.mxu0 %v3301_v6  ;;  %3376 = vmatmul.f32.vlgmr.msra.gmra.mxu3 %v3299_v16 }
 0x317   : > { %3349 = vmatpush.msra.mxu2 %v3322_v47  ;;  %v3323_v28 = vand.u32 4294901760, %v3322_v47  ;;  %v3469_v23 = vand.u32 4294901760, %v3468_v32 }
 0x318   : > { %3352 = vmatmul.f32.vlgmr.msra.gmra.mxu2 %v3298_v41 }
 0x319   : > { %3442 = vmatpush.msrb.mxu2 %v3441_v36  ;;  %3398 = vmatpush.msrb.mxu0 %v3323_v28  ;;  %v3324_v10 = vsub.f32 %v3322_v47, %v3323_v28  ;;  %v3470_v33 = vsub.f32 %v3468_v32, %v3469_v23 }
 0x31b   : > { %3544 = vmatpush.msra.mxu2 %v3469_v23  ;;  %3495 = vmatpush.msra.mxu0 %v3468_v32  ;;  %v3325_v46 = vand.u32 4294901760, %v3324_v10  ;;  %v3471_v57 = vand.u32 4294901760, %v3470_v33 }
 0x31d   : > { %3326 = vmatpush.msra.mxu1 %v3325_v46  ;;  %3472 = vmatpush.msrb.mxu3 %v3471_v57 }
 0x31e   : > { %3328 = vmatmul.f32.vlgmr.msra.gmra.mxu1 %v3297_v63  ;;  %3400 = vmatmul.f32.vlgmr.msrb.gmra.mxu0 %v3297_v63 }
 0x31f   : > { %3566 = vmatpush.msra.mxu3 %v3441_v36  ;;  %3420 = vmatpush.msrb.mxu1 %v3295_v7 }
 0x320   : > { %3448 = vmatmul.f32.vlgmr.msrb.gmra.mxu2 %v3301_v6  ;;  %3474 = vmatmul.f32.vlgmr.msrb.gmra.mxu3 %v3297_v63 }
 0x321   : > { %3518 = vmatpush.msra.mxu1 %v3441_v36 }
 0x326   : > { %3422 = vmatmul.f32.vlgmr.msrb.gmra.mxu1 %v3297_v63  ;;  %3498 = vmatmul.f32.vlgmr.msra.gmra.mxu0 %v3298_v41 }
 0x328   : > { %3546 = vmatmul.f32.vlgmr.msra.gmra.mxu2 %v3297_v63  ;;  %3568 = vmatmul.f32.vlgmr.msra.gmra.mxu3 %v3297_v63 }
 0x32e   : > { %3522 = vmatmul.f32.vlgmr.msra.gmra.mxu1 %v3299_v16  ;;  %v3604_v16 = vand.u32 4294901760, %v3603_v55 }
 0x330   : > { %v3605_v7 = vsub.f32 %v3603_v55, %v3604_v16 }
 0x332   : > { %v3606_v33 = vand.u32 4294901760, %v3605_v7 }
 0x360   : > { %v3266_v50 = vpop.permute.xlu0 %3265 }
 0x393   : > { %v3303_v20 = vpop.f32.mrf.mxu0 }
 0x394   : > { %v3304_v37 = vadd.f32 %v3303_v20, %v3266_v50 }
 0x399   : > { %v3377_v49 = vpop.f32.mrf.mxu3 }
 0x39b   : > { %v3329_v30 = vpop.f32.mrf.mxu1  ;;  %v3353_v42 = vpop.f32.mrf.mxu2 }
 0x39c   : > { %v3330_v41 = vadd.f32 %v3329_v30, %v3304_v37  ;;  %v3401_v48 = vpop.f32.mrf.mxu0 }
 0x39e   : > { %v3354_v63 = vadd.f32 %v3353_v42, %v3330_v41 }
 0x3a0   : > { %v3378_v45 = vadd.f32 %v3377_v49, %v3354_v63 }
 0x3a2   : > { %v3402_v53 = vadd.f32 %v3401_v48, %v3378_v45 }
 0x3a3   : > { %v3423_v39 = vpop.f32.mrf.mxu1  ;;  %v3449_v6 = vpop.f32.mrf.mxu2 }
 0x3a4   : > { %v3424_v36 = vadd.f32 %v3423_v39, %v3402_v53  ;;  %v3450_v47 = vadd.f32 %v3449_v6, %v3266_v50  ;;  %v3475_v32 = vpop.f32.mrf.mxu3  ;;  %v3499_v10 = vpop.f32.mrf.mxu0  ;;  %v10862_v6 = vld [vmem:[#allocation8_spill] sm:$0xff] }
 0x3a6   : > { %v3572_v28 = vmax.f32 %v3424_v36, 0.0  ;;  %v3476_v23 = vadd.f32 %v3475_v32, %v3450_v47  ;;  %v10863_v47 = vld [vmem:[#allocation31_spill] sm:$0xff]  ;;  %v10864_v32 = vld [vmem:[#allocation14_spill] sm:$0xff] }
 0x3a8   : > { %v3600_v46 = vand.u32 4294901760, %v3572_v28  ;;  %v3500_v2 = vadd.f32 %v3499_v10, %v3476_v23  ;;  %v10866_v23 = vld [vmem:[#allocation32_spill] sm:$0xff]  ;;  %v10867_v10 = vld [vmem:[#allocation35_spill] sm:$0xff] }
 0x3aa   : > { %v3627_v57 = vsub.f32 %v3572_v28, %v3600_v46  ;;  %3601 = vmatpush.msrb.mxu0 %v3600_v46  ;;  %3677 = vmatpush.msrb.mxu3 %v3600_v46  ;;  %v10865_v28 = vld [vmem:[#allocation9_spill] sm:$0xff] }
 0x3ab   : > { %v3523_v20 = vpop.f32.mrf.mxu1  ;;  %3607 = vmatmul.f32.vlgmr.msrb.gmra.mxu0 %v3606_v33  ;;  %v3547_v3 = vpop.f32.mrf.mxu2  ;;  %3681 = vmatmul.f32.vlgmr.msrb.gmra.mxu3 %v3604_v16 }
 0x3ac   : > { %v3628_v37 = vand.u32 4294901760, %v3627_v57  ;;  %v3524_v49 = vadd.f32 %v3523_v20, %v3500_v2  ;;  %3654 = vmatpush.msrb.mxu2 %v3627_v57  ;;  %v3569_v30 = vpop.f32.mrf.mxu3  ;;  %v10872_v2 = vld [vmem:[#allocation44_spill] sm:$0xff]  ;;  %v10873_v20 = vld [vmem:[#allocation18_spill] sm:$0xff] }
 0x3ad   : > { %3657 = vmatmul.f32.vlgmr.msrb.gmra.mxu2 %v3603_v55 }
 0x3ae   : > { %v3629_v50 = vsub.f32 %v3627_v57, %v3628_v37  ;;  %v3548_v42 = vadd.f32 %v3547_v3, %v3524_v49  ;;  %3703 = vmatpush.msra.mxu0 %v3628_v37  ;;  %v10871_v57 = vld [vmem:[#allocation16_spill] sm:$0xff]  ;;  %v10874_v3 = vld [vmem:[#allocation11_spill] sm:$0xff] }
 0x3af   : > { %v10875_v37 = vld [vmem:[#allocation47_spill] sm:$0xff] }
 0x3b0   : > { %v3570_v41 = vadd.f32 %v3569_v30, %v3548_v42  ;;  %v3630_v48 = vand.u32 4294901760, %v3629_v50  ;;  %v10876_v49 = vld [vmem:[#allocation19_spill] sm:$0xff]  ;;  %v10878_v30 = vld [vmem:[#allocation20_spill] sm:$0xff]  ;;  %v10880_v42 = vld [vmem:[#allocation58_spill] sm:$0xff] }
 0x3b1   : > { %v10879_v50 = vld [vmem:[#allocation12_spill] sm:$0xff] }
 0x3b2   : > { %v3573_v63 = vmax.f32 %v3570_v41, 0.0  ;;  %3631 = vmatpush.msrb.mxu1 %v3630_v48  ;;  %v10881_v41 = vld [vmem:[#allocation27_spill] sm:$0xff]  ;;  %v10882_v48 = vld [vmem:[#allocation13_spill] sm:$0xff] }
 0x3b3   : > { %3633 = vmatmul.f32.vlgmr.msrb.gmra.mxu1 %v8784_v21  ;;  %3705 = vmatmul.f32.vlgmr.msra.gmra.mxu0 %v8784_v21 }
 0x3b4   : > { %v3746_v45 = vand.u32 4294901760, %v3573_v63  ;;  %3725 = vmatpush.msra.mxu1 %v3600_v46  ;;  %v10870_v46 = vld [vmem:[#allocation10_spill] sm:$0xff] }
 0x3b6   : > { %v3773_v53 = vsub.f32 %v3573_v63, %v3746_v45  ;;  %3747 = vmatpush.msra.mxu2 %v3746_v45  ;;  %3823 = vmatpush.msrb.mxu1 %v3746_v45  ;;  %v10884_v63 = vld [vmem:[#allocation33_spill] sm:$0xff] }
 0x3b7   : > { %3753 = vmatmul.f32.vlgmr.msra.gmra.mxu2 %v3606_v33  ;;  %v10868_v33 = vld [vmem:[#allocation15_spill] sm:$0xff] }
 0x3b8   : > { %v3774_v39 = vand.u32 4294901760, %v3773_v53  ;;  %3800 = vmatpush.msrb.mxu0 %v3773_v53 }
 0x3ba   : > { %3890 = vmatpush.msra.mxu0 %v10862_v6  ;;  %v3775_v7 = vsub.f32 %v3773_v53, %v3774_v39  ;;  %3849 = vmatpush.msrb.mxu2 %v3774_v39  ;;  %v10886_v53 = vld [vmem:[#allocation68_spill] sm:$0xff]  ;;  %v10887_v39 = vld [vmem:[#allocation37_spill] sm:$0xff] }
 0x3bb   : > { %3727 = vmatmul.f32.vlgmr.msra.gmra.mxu1 %v8784_v21  ;;  %3803 = vmatmul.f32.vlgmr.msrb.gmra.mxu0 %v3603_v55  ;;  %v10869_v55 = vld [vmem:[#allocation38_spill] sm:$0xff] }
 0x3bc   : > { %v3776_v36 = vand.u32 4294901760, %v3775_v7  ;;  %3935 = vmatpush.msra.mxu1 %v10863_v47  ;;  %4033 = vmatpush.msra.mxu2 %v10864_v32  ;;  %v10888_v7 = vld [vmem:[#allocation24_spill] sm:$0xff] }
 0x3bd   : > { %3892 = vmatpush.msra.mxu0 %v10865_v28 }
 0x3be   : > { %3777 = vmatpush.msra.mxu3 %v3776_v36  ;;  %3941 = vmatpush.msra.mxu1 %v10866_v23  ;;  %v10889_v36 = vld [vmem:[#allocation71_spill] sm:$0xff] }
 0x3bf   : > { %3779 = vmatmul.f32.vlgmr.msra.gmra.mxu3 %v8784_v21  ;;  %3851 = vmatmul.f32.vlgmr.msrb.gmra.mxu2 %v8784_v21 }
 0x3c0   : > { %3871 = vmatpush.msrb.mxu3 %v3746_v45  ;;  %3947 = vmatpush.msra.mxu1 %v10867_v10  ;;  %v10885_v45 = vld [vmem:[#allocation17_spill] sm:$0xff] }
 0x3c1   : > { %4036 = vmatpush.msra.mxu2 %v10868_v33  ;;  %3894 = vmatpush.msra.mxu0 %v10870_v46 }
 0x3c2   : > { %4086 = vmatpush.msra.mxu3 %v10862_v6  ;;  %3953 = vmatpush.msra.mxu1 %v10869_v55 }
 0x3c3   : > { %3827 = vmatmul.f32.vlgmr.msrb.gmra.mxu1 %v3604_v16  ;;  %4039 = vmatpush.msra.mxu2 %v10871_v57  ;;  %v10877_v16 = vld [vmem:[#allocation53_spill] sm:$0xff] }
 0x3c4   : > { %4088 = vmatpush.msra.mxu3 %v10865_v28  ;;  %3959 = vmatpush.msra.mxu1 %v10872_v2 }
 0x3c5   : > { %4042 = vmatpush.msra.mxu2 %v10873_v20  ;;  %3896 = vmatpush.msra.mxu0 %v10874_v3  ;;  %v10914_v20 = vld [vmem:[#allocation22_spill] sm:$0xff] }
 0x3c6   : > { %4090 = vmatpush.msra.mxu3 %v10870_v46  ;;  %3965 = vmatpush.msra.mxu1 %v10875_v37  ;;  %v10903_v37 = vld [vmem:[#allocation45_spill] sm:$0xff] }
 0x3c7   : > { %3873 = vmatmul.f32.vlgmr.msrb.gmra.mxu3 %v8784_v21  ;;  %4045 = vmatpush.msra.mxu2 %v10876_v49  ;;  %v10883_v21 = vld [vmem:[#allocation62_spill] sm:$0xff]  ;;  %v10900_v49 = vld [vmem:[#allocation39_spill] sm:$0xff] }
 0x3c8   : > { %4092 = vmatpush.msra.mxu3 %v10874_v3  ;;  %3971 = vmatpush.msra.mxu1 %v10877_v16  ;;  %v10897_v16 = vld [vmem:[#allocation34_spill] sm:$0xff] }
 0x3c9   : > { %4048 = vmatpush.msra.mxu2 %v10878_v30  ;;  %3898 = vmatpush.msra.mxu0 %v10879_v50  ;;  %v10894_v30 = vld [vmem:[#allocation29_spill] sm:$0xff] }
 0x3ca   : > { %4094 = vmatpush.msra.mxu3 %v10879_v50  ;;  %3977 = vmatpush.msra.mxu1 %v10880_v42  ;;  %v10891_v42 = vld [vmem:[#allocation26_spill] sm:$0xff] }
 0x3cb   : > { %4051 = vmatpush.msra.mxu2 %v10881_v41  ;;  %3900 = vmatpush.msra.mxu0 %v10882_v48  ;;  %v10890_v41 = vld [vmem:[#allocation41_spill] sm:$0xff] }
 0x3cc   : > { %4096 = vmatpush.msra.mxu3 %v10882_v48  ;;  %3983 = vmatpush.msra.mxu1 %v10883_v21  ;;  %v10893_v21 = vld [vmem:[#allocation42_spill] sm:$0xff] }
 0x3cd   : > { %4054 = vmatpush.msra.mxu2 %v10884_v63  ;;  %3902 = vmatpush.msra.mxu0 %v10885_v45  ;;  %v10892_v63 = vld [vmem:[#allocation78_spill] sm:$0xff] }
 0x3ce   : > { %4098 = vmatpush.msra.mxu3 %v10885_v45  ;;  %3989 = vmatpush.msra.mxu1 %v10886_v53  ;;  %v10896_v53 = vld [vmem:[#allocation50_spill] sm:$0xff] }
 0x3cf   : > { %4057 = vmatpush.msra.mxu2 %v10887_v39  ;;  %3904 = vmatpush.msra.mxu0 %v10888_v7  ;;  %v10895_v39 = vld [vmem:[#allocation82_spill] sm:$0xff] }
 0x3d0   : > { %4100 = vmatpush.msra.mxu3 %v10888_v7  ;;  %3995 = vmatpush.msra.mxu1 %v10889_v36  ;;  %v10899_v36 = vld [vmem:[#allocation55_spill] sm:$0xff] }
 0x3d1   : > { %4060 = vmatpush.msra.mxu2 %v10890_v41  ;;  %3906 = vmatpush.msra.mxu0 %v10891_v42  ;;  %v10898_v41 = vld [vmem:[#allocation86_spill] sm:$0xff] }
 0x3d2   : > { %4102 = vmatpush.msra.mxu3 %v10891_v42  ;;  %4001 = vmatpush.msra.mxu1 %v10892_v63  ;;  %v10902_v63 = vld [vmem:[#allocation60_spill] sm:$0xff] }
 0x3d3   : > { %4063 = vmatpush.msra.mxu2 %v10893_v21  ;;  %3908 = vmatpush.msra.mxu0 %v10894_v30  ;;  %v10901_v21 = vld [vmem:[#allocation91_spill] sm:$0xff] }
 0x3d4   : > { %4104 = vmatpush.msra.mxu3 %v10894_v30  ;;  %4007 = vmatpush.msra.mxu1 %v10895_v39  ;;  %v10905_v39 = vld [vmem:[#allocation64_spill] sm:$0xff] }
 0x3d5   : > { %4066 = vmatpush.msra.mxu2 %v10896_v53  ;;  %3910 = vmatpush.msra.mxu0 %v10897_v16  ;;  %v10904_v53 = vld [vmem:[#allocation96_spill] sm:$0xff] }
 0x3d6   : > { %4106 = vmatpush.msra.mxu3 %v10897_v16  ;;  %4013 = vmatpush.msra.mxu1 %v10898_v41  ;;  %v10906_v41 = vld [vmem:[#allocation48_spill] sm:$0xff] }
 0x3d7   : > { %4069 = vmatpush.msra.mxu2 %v10899_v36  ;;  %3912 = vmatpush.msra.mxu0 %v10900_v49  ;;  %v10907_v36 = vld [vmem:[#allocation66_spill] sm:$0xff] }
 0x3d8   : > { %4108 = vmatpush.msra.mxu3 %v10900_v49  ;;  %4019 = vmatpush.msra.mxu1 %v10901_v21  ;;  %v10908_v21 = vld [vmem:[#allocation54_spill] sm:$0xff] }
 0x3d9   : > { %4072 = vmatpush.msra.mxu2 %v10902_v63  ;;  %3914 = vmatpush.msra.mxu0 %v10903_v37  ;;  %v10912_v63 = vld [vmem:[#allocation21_spill] sm:$0xff] }
 0x3da   : > { %4110 = vmatpush.msra.mxu3 %v10903_v37  ;;  %4025 = vmatpush.msra.mxu1 %v10904_v53  ;;  %v10909_v53 = vld [vmem:[#allocation56_spill] sm:$0xff] }
 0x3db   : > { %4075 = vmatpush.msra.mxu2 %v10905_v39  ;;  %3916 = vmatpush.msra.mxu0 %v10906_v41  ;;  %v10910_v39 = vld [vmem:[#allocation89_spill] sm:$0xff] }
 0x3dc   : > { %4194 = vmatpush.msrb.mxu1 %v10862_v6  ;;  %4112 = vmatpush.msra.mxu3 %v10906_v41 }
 0x3dd   : > { %4078 = vmatpush.msra.mxu2 %v10907_v36  ;;  %3918 = vmatpush.msra.mxu0 %v10908_v21  ;;  %v10911_v36 = vld [vmem:[#allocation94_spill] sm:$0xff] }
 0x3de   : > { %4196 = vmatpush.msrb.mxu1 %v10865_v28  ;;  %4114 = vmatpush.msra.mxu3 %v10908_v21 }
 0x3df   : > { %4231 = vmatpush.msrb.mxu2 %v10666_v52  ;;  %3920 = vmatpush.msra.mxu0 %v10909_v53 }
 0x3e0   : > { %4198 = vmatpush.msrb.mxu1 %v10870_v46  ;;  %4116 = vmatpush.msra.mxu3 %v10909_v53  ;;  %v10913_v46 = vld [vmem:[#allocation100_spill] sm:$0xff] }
 0x3e1   : > { %4233 = vmatpush.msrb.mxu2 %v10669_v13  ;;  %4127 = vmatpush.msrb.mxu0 %v10912_v63  ;;  %v10917_v63 = vld [vmem:[#allocation107_spill] sm:$0xff] }
 0x3e2   : > { %4276 = vmatpush.msrb.mxu3 %v10910_v39  ;;  %4200 = vmatpush.msrb.mxu1 %v10874_v3  ;;  %v10915_v39 = vld [vmem:[#allocation104_spill] sm:$0xff]  ;;  %v10916_v3 = vld [vmem:[#allocation23_spill] sm:$0xff] }
 0x3e3   : > { %4235 = vmatpush.msrb.mxu2 %v10672_v9  ;;  %4131 = vmatpush.msrb.mxu0 %v10914_v20  ;;  %v10919_v20 = vld [vmem:[#allocation111_spill] sm:$0xff] }
 0x3e4   : > { %4282 = vmatpush.msrb.mxu3 %v10911_v36  ;;  %4202 = vmatpush.msrb.mxu1 %v10879_v50  ;;  %v10918_v36 = vld [vmem:[#allocation25_spill] sm:$0xff] }
 0x3e5   : > { %4237 = vmatpush.msrb.mxu2 %v10675_v51  ;;  %4135 = vmatpush.msrb.mxu0 %v10916_v3  ;;  %v10921_v3 = vld [vmem:[#allocation115_spill] sm:$0xff] }
 0x3e6   : > { %4288 = vmatpush.msrb.mxu3 %v10913_v46  ;;  %4204 = vmatpush.msrb.mxu1 %v10882_v48  ;;  %v10920_v46 = vld [vmem:[#allocation28_spill] sm:$0xff] }
 0x3e7   : > { %4239 = vmatpush.msrb.mxu2 %v10678_v5  ;;  %4139 = vmatpush.msrb.mxu0 %v10918_v36  ;;  %v10923_v36 = vld [vmem:[#allocation119_spill] sm:$0xff] }
 0x3e8   : > { %4294 = vmatpush.msrb.mxu3 %v10915_v39  ;;  %4206 = vmatpush.msrb.mxu1 %v10885_v45  ;;  %v10922_v39 = vld [vmem:[#allocation30_spill] sm:$0xff] }
 0x3e9   : > { %4241 = vmatpush.msrb.mxu2 %v10681_v27  ;;  %4143 = vmatpush.msrb.mxu0 %v10920_v46  ;;  %v10925_v46 = vld [vmem:[#allocation122_spill] sm:$0xff] }
 0x3ea   : > { %4300 = vmatpush.msrb.mxu3 %v10917_v63  ;;  %4208 = vmatpush.msrb.mxu1 %v10888_v7  ;;  %v10924_v63 = vld [vmem:[#allocation36_spill] sm:$0xff] }
 0x3eb   : > { %4243 = vmatpush.msrb.mxu2 %v10684_v25  ;;  %4147 = vmatpush.msrb.mxu0 %v10922_v39  ;;  %v10927_v39 = vld [vmem:[#allocation126_spill] sm:$0xff] }
 0x3ec   : > { %4306 = vmatpush.msrb.mxu3 %v10919_v20  ;;  %4210 = vmatpush.msrb.mxu1 %v10891_v42  ;;  %v10926_v20 = vld [vmem:[#allocation40_spill] sm:$0xff] }
 0x3ed   : > { %4245 = vmatpush.msrb.mxu2 %v10687_v26  ;;  %4151 = vmatpush.msrb.mxu0 %v10924_v63  ;;  %v10929_v63 = vld [vmem:[#allocation129_spill] sm:$0xff] }
 0x3ee   : > { %4312 = vmatpush.msrb.mxu3 %v10921_v3  ;;  %4212 = vmatpush.msrb.mxu1 %v10894_v30  ;;  %v10928_v3 = vld [vmem:[#allocation46_spill] sm:$0xff] }
 0x3ef   : > { %4247 = vmatpush.msrb.mxu2 %v10690_v29  ;;  %4155 = vmatpush.msrb.mxu0 %v10926_v20  ;;  %v10931_v20 = vld [vmem:[#allocation132_spill] sm:$0xff] }
 0x3f0   : > { %4318 = vmatpush.msrb.mxu3 %v10923_v36  ;;  %4214 = vmatpush.msrb.mxu1 %v10897_v16  ;;  %v10930_v36 = vld [vmem:[#allocation49_spill] sm:$0xff] }
 0x3f1   : > { %4249 = vmatpush.msrb.mxu2 %v10693_v8  ;;  %4159 = vmatpush.msrb.mxu0 %v10928_v3  ;;  %v10933_v3 = vld [vmem:[#allocation135_spill] sm:$0xff] }
 0x3f2   : > { %4324 = vmatpush.msrb.mxu3 %v10925_v46  ;;  %4216 = vmatpush.msrb.mxu1 %v10900_v49  ;;  %v10932_v46 = vld [vmem:[#allocation51_spill] sm:$0xff]  ;;  %v3579_v49 = vpop.permute.xlu0 %3578 }
 0x3f3   : > { %4251 = vmatpush.msrb.mxu2 %v10696_v43  ;;  %4163 = vmatpush.msrb.mxu0 %v10930_v36  ;;  %v10935_v36 = vld [vmem:[#allocation138_spill] sm:$0xff] }
 0x3f4   : > { %4330 = vmatpush.msrb.mxu3 %v10927_v39  ;;  %4218 = vmatpush.msrb.mxu1 %v10903_v37  ;;  %v10934_v39 = vld [vmem:[#allocation59_spill] sm:$0xff] }
 0x3f5   : > { %4253 = vmatpush.msrb.mxu2 %v10699_v62  ;;  %4167 = vmatpush.msrb.mxu0 %v10932_v46  ;;  %v10938_v46 = vld [vmem:[#allocation69_spill] sm:$0xff] }
 0x3f6   : > { %4336 = vmatpush.msrb.mxu3 %v10929_v63  ;;  %4220 = vmatpush.msrb.mxu1 %v10906_v41  ;;  %v10936_v63 = vld [vmem:[#allocation63_spill] sm:$0xff]  ;;  %v10940_v41 = vld [vmem:[#allocation73_spill] sm:$0xff] }
 0x3f7   : > { %4255 = vmatpush.msrb.mxu2 %v10702_v40  ;;  %4171 = vmatpush.msrb.mxu0 %v10934_v39 }
 0x3f8   : > { %4342 = vmatpush.msrb.mxu3 %v10931_v20  ;;  %4222 = vmatpush.msrb.mxu1 %v10908_v21  ;;  %v10937_v20 = vld [vmem:[#allocation139_spill] sm:$0xff]  ;;  %v10939_v21 = vld [vmem:[#allocation141_spill] sm:$0xff] }
 0x3f9   : > { %4257 = vmatpush.msrb.mxu2 %v10705_v44  ;;  %4175 = vmatpush.msrb.mxu0 %v10936_v63 }
 0x3fa   : > { %4348 = vmatpush.msrb.mxu3 %v10933_v3  ;;  %4224 = vmatpush.msrb.mxu1 %v10909_v53  ;;  %v10941_v3 = vld [vmem:[#allocation76_spill] sm:$0xff] }
 0x3fb   : > { %4259 = vmatpush.msrb.mxu2 %v10708_v59  ;;  %4179 = vmatpush.msrb.mxu0 %v10938_v46 }
 0x3fc   : > { %4354 = vmatpush.msrb.mxu3 %v10935_v36 }
 0x3fd   : > { %4261 = vmatpush.msrb.mxu2 %v10711_v58  ;;  %4183 = vmatpush.msrb.mxu0 %v10940_v41 }
 0x3fe   : > { %4360 = vmatpush.msrb.mxu3 %v10937_v20 }
 0x3ff   : > { %4187 = vmatpush.msrb.mxu0 %v10941_v3 }
 0x400   : > { %4366 = vmatpush.msrb.mxu3 %v10939_v21 }
 0x428   : > { %v3608_v39 = vpop.f32.mrf.mxu0 }
 0x429   : > { %v3609_v30 = vadd.f32 %v3608_v39, %v3579_v49 }
 0x42e   : > { %v3682_v16 = vpop.f32.mrf.mxu3 }
 0x430   : > { %v3634_v53 = vpop.f32.mrf.mxu1  ;;  %v3658_v37 = vpop.f32.mrf.mxu2 }
 0x431   : > { %v3706_v36 = vpop.f32.mrf.mxu0  ;;  %v3635_v42 = vadd.f32 %v3634_v53, %v3609_v30  ;;  %v10952_v53 = vld [vmem:[#allocation109_spill] sm:$0xff] }
 0x433   : > { %v3659_v45 = vadd.f32 %v3658_v37, %v3635_v42  ;;  %v10946_v42 = vld [vmem:[#allocation95_spill] sm:$0xff] }
 0x435   : > { %v3683_v2 = vadd.f32 %v3682_v16, %v3659_v45  ;;  %v10944_v16 = vld [vmem:[#allocation90_spill] sm:$0xff]  ;;  %v10951_v45 = vld [vmem:[#allocation123_spill] sm:$0xff] }
 0x437   : > { %v3707_v57 = vadd.f32 %v3706_v36, %v3683_v2  ;;  %v10942_v2 = vld [vmem:[#allocation88_spill] sm:$0xff]  ;;  %v10954_v36 = vld [vmem:[#allocation113_spill] sm:$0xff] }
 0x438   : > { %v3728_v63 = vpop.f32.mrf.mxu1 }
 0x439   : > { %v3804_v46 = vpop.f32.mrf.mxu0  ;;  %v3729_v10 = vadd.f32 %v3728_v63, %v3707_v57  ;;  %v10950_v63 = vld [vmem:[#allocation105_spill] sm:$0xff] }
 0x43a   : > { %v3754_v7 = vpop.f32.mrf.mxu2 }
 0x43b   : > { %v3755_v20 = vadd.f32 %v3754_v7, %v3579_v49  ;;  %v10953_v7 = vld [vmem:[#allocation130_spill] sm:$0xff] }
 0x440   : > { %v3828_v21 = vpop.f32.mrf.mxu1 }
 0x442   : > { %v3780_v48 = vpop.f32.mrf.mxu3  ;;  %v3852_v28 = vpop.f32.mrf.mxu2 }
 0x443   : > { %v3781_v50 = vadd.f32 %v3780_v48, %v3755_v20  ;;  %v10948_v48 = vld [vmem:[#allocation101_spill] sm:$0xff] }
 0x445   : > { %v3805_v41 = vadd.f32 %v3804_v46, %v3781_v50  ;;  %v10945_v50 = vld [vmem:[#allocation112_spill] sm:$0xff] }
 0x447   : > { %v3829_v3 = vadd.f32 %v3828_v21, %v3805_v41  ;;  %v10947_v41 = vld [vmem:[#allocation116_spill] sm:$0xff] }
 0x448   : > { %v10949_v21 = vld [vmem:[#allocation120_spill] sm:$0xff] }
 0x449   : > { %v3853_v55 = vadd.f32 %v3852_v28, %v3829_v3  ;;  %v10943_v3 = vld [vmem:[#allocation108_spill] sm:$0xff] }
 0x44a   : > { %v3874_v33 = vpop.f32.mrf.mxu3 }
 0x44b   : > { %v3875_v6 = vadd.f32 %v3874_v33, %v3853_v55 }
 0x44d   : > { %v3879_v32 = vrot.slane %v3875_v6, 4 }
 0x44f   : > { %v3880_v39 = vsel %vm1844_vm0, %v3729_v10, %v3879_v32 }
 0x450   : > { %v8923_v30 = vadd.f32 %v3880_v39, %v8773_v24  ;;  %v10955_v39 = vld [vmem:[#allocation133_spill] sm:$0xff] }
 0x452   : > { %3884 = vst [vmem:[#allocation1] ss:$2 sm:$0xff] %v8923_v30 }
 0x459   : > { %v3885_v37 = vld.sshfl [vmem:[#allocation1] sm:$0xff pattern:$0x75316420]  ;;  %v3886_v20 = vld.sshfl [vmem:[#allocation1 + $0x8] sm:$0xff pattern:$0x75316420] }
 0x45a   : > { %v8926_v49 = vand.u32 4294901760, %v3885_v37  ;;  %v8928_v46 = vand.u32 4294901760, %v3886_v20 }
 0x45c   : > { %4027 = vmatmul.f32.vlgmr.msra.gmra.mxu1 %v8926_v49  ;;  %v8932_v28 = vsub.f32 %v3885_v37, %v8926_v49  ;;  %v8935_v6 = vsub.f32 %v3886_v20, %v8928_v46  ;;  %v10956_v37 = vld [vmem:[#allocation118_spill] sm:$0xff] }
 0x45d   : > { %4427 = vmatpush.msra.mxu1 %v10666_v52  ;;  %v10957_v20 = vld [vmem:[#allocation162_spill] sm:$0xff] }
 0x45e   : > { %4081 = vmatmul.f32.vlgmr.msra.gmra.mxu2 %v8932_v28  ;;  %v8940_v24 = vand.u32 4294901760, %v8932_v28  ;;  %v8943_v32 = vand.u32 4294901760, %v8935_v6 }
 0x45f   : > { %4429 = vmatpush.msra.mxu1 %v10669_v13  ;;  %4468 = vmatpush.msra.mxu2 %v10717_v15 }
 0x460   : > { %4120 = vmatmul.f32.vlgmr.msra.gmra.mxu3 %v8940_v24  ;;  %v3924_v10 = vsub.f32 %v8932_v28, %v8940_v24  ;;  %v4265_v33 = vsub.f32 %v8935_v6, %v8943_v32 }
 0x461   : > { %4431 = vmatpush.msra.mxu1 %v10672_v9  ;;  %4472 = vmatpush.msra.mxu2 %v10718_v38 }
 0x462   : > { %4535 = vmatpush.msra.mxu3 %v10666_v52  ;;  %v8955_v55 = vand.u32 4294901760, %v3924_v10  ;;  %v8963_v57 = vand.u32 4294901760, %v4265_v33  ;;  %v10958_v10 = vld [vmem:[#allocation136_spill] sm:$0xff]  ;;  %v10959_v33 = vld [vmem:[#allocation166_spill] sm:$0xff] }
 0x463   : > { %4433 = vmatpush.msra.mxu1 %v10675_v51  ;;  %4476 = vmatpush.msra.mxu2 %v10719_v1 }
 0x464   : > { %4537 = vmatpush.msra.mxu3 %v10669_v13  ;;  %3926 = vmatmul.f32.vlgmr.msra.gmra.mxu0 %v8955_v55 }
 0x465   : > { %4226 = vmatmul.f32.vlgmr.msrb.gmra.mxu1 %v8926_v49  ;;  %4374 = vmatpush.msra.mxu0 %v10720_v54 }
 0x466   : > { %4435 = vmatpush.msra.mxu1 %v10678_v5  ;;  %4480 = vmatpush.msra.mxu2 %v10721_v12 }
 0x467   : > { %4539 = vmatpush.msra.mxu3 %v10672_v9  ;;  %4267 = vmatmul.f32.vlgmr.msrb.gmra.mxu2 %v8963_v57 }
 0x468   : > { %4377 = vmatpush.msra.mxu0 %v10722_v14  ;;  %4437 = vmatpush.msra.mxu1 %v10681_v27 }
 0x469   : > { %4484 = vmatpush.msra.mxu2 %v10723_v0  ;;  %4541 = vmatpush.msra.mxu3 %v10675_v51 }
 0x46a   : > { %4368 = vmatmul.f32.vlgmr.msrb.gmra.mxu3 %v8928_v46  ;;  %4380 = vmatpush.msra.mxu0 %v10724_v18 }
 0x46b   : > { %4439 = vmatpush.msra.mxu1 %v10684_v25  ;;  %4488 = vmatpush.msra.mxu2 %v10725_v22 }
 0x46c   : > { %4543 = vmatpush.msra.mxu3 %v10678_v5  ;;  %4383 = vmatpush.msra.mxu0 %v10726_v19 }
 0x46d   : > { %4441 = vmatpush.msra.mxu1 %v10687_v26  ;;  %4492 = vmatpush.msra.mxu2 %v10727_v35 }
 0x46e   : > { %4545 = vmatpush.msra.mxu3 %v10681_v27  ;;  %4189 = vmatmul.f32.vlgmr.msrb.gmra.mxu0 %v8926_v49 }
 0x46f   : > { %4386 = vmatpush.msra.mxu0 %v10728_v34  ;;  %4443 = vmatpush.msra.mxu1 %v10690_v29 }
 0x470   : > { %4496 = vmatpush.msra.mxu2 %v10729_v17  ;;  %4547 = vmatpush.msra.mxu3 %v10684_v25 }
 0x471   : > { %4389 = vmatpush.msra.mxu0 %v10942_v2  ;;  %4445 = vmatpush.msra.mxu1 %v10693_v8 }
 0x472   : > { %4500 = vmatpush.msra.mxu2 %v10943_v3  ;;  %4549 = vmatpush.msra.mxu3 %v10687_v26 }
 0x473   : > { %4392 = vmatpush.msra.mxu0 %v10944_v16  ;;  %4447 = vmatpush.msra.mxu1 %v10696_v43 }
 0x474   : > { %4504 = vmatpush.msra.mxu2 %v10945_v50  ;;  %4551 = vmatpush.msra.mxu3 %v10690_v29 }
 0x475   : > { %4395 = vmatpush.msra.mxu0 %v10946_v42  ;;  %4449 = vmatpush.msra.mxu1 %v10699_v62  ;;  %v11013_v42 = vld [vmem:[#allocation237_spill] sm:$0xff] }
 0x476   : > { %4508 = vmatpush.msra.mxu2 %v10947_v41  ;;  %4553 = vmatpush.msra.mxu3 %v10693_v8  ;;  %v10998_v41 = vld [vmem:[#allocation196_spill] sm:$0xff] }
 0x477   : > { %4398 = vmatpush.msra.mxu0 %v10948_v48  ;;  %4451 = vmatpush.msra.mxu1 %v10702_v40  ;;  %v10995_v48 = vld [vmem:[#allocation193_spill] sm:$0xff] }
 0x478   : > { %4512 = vmatpush.msra.mxu2 %v10949_v21  ;;  %4555 = vmatpush.msra.mxu3 %v10696_v43  ;;  %v10992_v21 = vld [vmem:[#allocation188_spill] sm:$0xff] }
 0x479   : > { %4401 = vmatpush.msra.mxu0 %v10950_v63  ;;  %4453 = vmatpush.msra.mxu1 %v10705_v44  ;;  %v10989_v63 = vld [vmem:[#allocation184_spill] sm:$0xff] }
 0x47a   : > { %4516 = vmatpush.msra.mxu2 %v10951_v45  ;;  %4557 = vmatpush.msra.mxu3 %v10699_v62  ;;  %v10986_v45 = vld [vmem:[#allocation180_spill] sm:$0xff] }
 0x47b   : > { %4404 = vmatpush.msra.mxu0 %v10952_v53  ;;  %4455 = vmatpush.msra.mxu1 %v10708_v59  ;;  %v10966_v53 = vld [vmem:[#allocation151_spill] sm:$0xff] }
 0x47c   : > { %4520 = vmatpush.msra.mxu2 %v10953_v7  ;;  %4559 = vmatpush.msra.mxu3 %v10702_v40  ;;  %v10961_v7 = vld [vmem:[#allocation124_spill] sm:$0xff] }
 0x47d   : > { %4407 = vmatpush.msra.mxu0 %v10954_v36  ;;  %4457 = vmatpush.msra.mxu1 %v10711_v58  ;;  %v10960_v36 = vld [vmem:[#allocation146_spill] sm:$0xff] }
 0x47e   : > { %4524 = vmatpush.msra.mxu2 %v10955_v39  ;;  %4561 = vmatpush.msra.mxu3 %v10705_v44  ;;  %v10962_v39 = vld [vmem:[#allocation170_spill] sm:$0xff] }
 0x47f   : > { %4461 = vmatmul.f32.vlgmr.msra.gmra.mxu1 %v8943_v32  ;;  %4410 = vmatpush.msra.mxu0 %v10956_v37  ;;  %v10963_v37 = vld [vmem:[#allocation148_spill] sm:$0xff] }
 0x480   : > { %4617 = vmatpush.msrb.mxu1 %v10957_v20  ;;  %4528 = vmatpush.msra.mxu2 %v10958_v10  ;;  %v10964_v10 = vld [vmem:[#allocation128_spill] sm:$0xff]  ;;  %v10965_v20 = vld [vmem:[#allocation174_spill] sm:$0xff] }
 0x481   : > { %4563 = vmatpush.msra.mxu3 %v10708_v59  ;;  %4530 = vmatmul.f32.vlgmr.msra.gmra.mxu2 %v8928_v46 }
 0x482   : > { %4623 = vmatpush.msrb.mxu1 %v10959_v33  ;;  %4715 = vmatpush.msrb.mxu2 %v10960_v36  ;;  %v10967_v36 = vld [vmem:[#allocation131_spill] sm:$0xff]  ;;  %v10969_v33 = vld [vmem:[#allocation154_spill] sm:$0xff] }
 0x483   : > { %4413 = vmatpush.msra.mxu0 %v10961_v7  ;;  %4565 = vmatpush.msra.mxu3 %v10711_v58  ;;  %v10968_v7 = vld [vmem:[#allocation178_spill] sm:$0xff] }
 0x484   : > { %4567 = vmatmul.f32.vlgmr.msra.gmra.mxu3 %v8928_v46  ;;  %4629 = vmatpush.msrb.mxu1 %v10962_v39  ;;  %v10983_v39 = vld [vmem:[#allocation173_spill] sm:$0xff] }
 0x485   : > { %4718 = vmatpush.msrb.mxu2 %v10963_v37  ;;  %4768 = vmatpush.msrb.mxu3 %v10752_v31  ;;  %v10970_v37 = vld [vmem:[#allocation182_spill] sm:$0xff] }
 0x486   : > { %4416 = vmatpush.msra.mxu0 %v10964_v10  ;;  %4635 = vmatpush.msrb.mxu1 %v10965_v20  ;;  %v10971_v10 = vld [vmem:[#allocation157_spill] sm:$0xff] }
 0x487   : > { %4721 = vmatpush.msrb.mxu2 %v10966_v53  ;;  %4770 = vmatpush.msrb.mxu3 %v10756_v11  ;;  %v10972_v53 = vld [vmem:[#allocation185_spill] sm:$0xff] }
 0x488   : > { %4419 = vmatpush.msra.mxu0 %v10967_v36  ;;  %4641 = vmatpush.msrb.mxu1 %v10968_v7  ;;  %v10973_v36 = vld [vmem:[#allocation160_spill] sm:$0xff]  ;;  %v10980_v20 = vld [vmem:[#allocation169_spill] sm:$0xff] }
 0x489   : > { %4422 = vmatmul.f32.vlgmr.msra.gmra.mxu0 %v8935_v6  ;;  %4724 = vmatpush.msrb.mxu2 %v10969_v33  ;;  %v10974_v33 = vld [vmem:[#allocation190_spill] sm:$0xff]  ;;  %v10975_v7 = vld [vmem:[#allocation164_spill] sm:$0xff] }
 0x48a   : > { %4572 = vmatpush.msrb.mxu0 %v10752_v31  ;;  %4772 = vmatpush.msrb.mxu3 %v10760_v60 }
 0x48b   : > { %4647 = vmatpush.msrb.mxu1 %v10970_v37  ;;  %4727 = vmatpush.msrb.mxu2 %v10971_v10  ;;  %v10976_v10 = vld [vmem:[#allocation194_spill] sm:$0xff]  ;;  %v10977_v37 = vld [vmem:[#allocation168_spill] sm:$0xff] }
 0x48c   : > { %4574 = vmatpush.msrb.mxu0 %v10756_v11  ;;  %4774 = vmatpush.msrb.mxu3 %v10763_v56 }
 0x48d   : > { %4653 = vmatpush.msrb.mxu1 %v10972_v53  ;;  %4730 = vmatpush.msrb.mxu2 %v10973_v36  ;;  %v10978_v53 = vld [vmem:[#allocation155_spill] sm:$0xff]  ;;  %v10979_v36 = vld [vmem:[#allocation198_spill] sm:$0xff] }
 0x48e   : > { %4576 = vmatpush.msrb.mxu0 %v10760_v60  ;;  %4776 = vmatpush.msrb.mxu3 %v10766_v61 }
 0x48f   : > { %4659 = vmatpush.msrb.mxu1 %v10974_v33  ;;  %4733 = vmatpush.msrb.mxu2 %v10975_v7  ;;  %v10981_v33 = vld [vmem:[#allocation158_spill] sm:$0xff]  ;;  %v10982_v7 = vld [vmem:[#allocation204_spill] sm:$0xff] }
 0x490   : > { %4578 = vmatpush.msrb.mxu0 %v10763_v56  ;;  %4778 = vmatpush.msrb.mxu3 %v7744_v4 }
 0x491   : > { %4665 = vmatpush.msrb.mxu1 %v10976_v10  ;;  %4736 = vmatpush.msrb.mxu2 %v10977_v37  ;;  %v10984_v10 = vld [vmem:[#allocation161_spill] sm:$0xff] }
 0x492   : > { %4580 = vmatpush.msrb.mxu0 %v10766_v61  ;;  %4780 = vmatpush.msrb.mxu3 %v10978_v53  ;;  %v10985_v37 = vld [vmem:[#allocation209_spill] sm:$0xff] }
 0x493   : > { %4671 = vmatpush.msrb.mxu1 %v10979_v36  ;;  %4739 = vmatpush.msrb.mxu2 %v10980_v20  ;;  %v10987_v36 = vld [vmem:[#allocation165_spill] sm:$0xff] }
 0x494   : > { %4582 = vmatpush.msrb.mxu0 %v7744_v4  ;;  %4782 = vmatpush.msrb.mxu3 %v10981_v33  ;;  %v10988_v20 = vld [vmem:[#allocation213_spill] sm:$0xff] }
 0x495   : > { %4677 = vmatpush.msrb.mxu1 %v10982_v7  ;;  %4742 = vmatpush.msrb.mxu2 %v10983_v39  ;;  %v10990_v7 = vld [vmem:[#allocation171_spill] sm:$0xff]  ;;  %v10991_v39 = vld [vmem:[#allocation217_spill] sm:$0xff] }
 0x496   : > { %4584 = vmatpush.msrb.mxu0 %v10978_v53  ;;  %4784 = vmatpush.msrb.mxu3 %v10984_v10 }
 0x497   : > { %4683 = vmatpush.msrb.mxu1 %v10985_v37  ;;  %4745 = vmatpush.msrb.mxu2 %v10986_v45  ;;  %v10993_v37 = vld [vmem:[#allocation175_spill] sm:$0xff]  ;;  %v10994_v45 = vld [vmem:[#allocation221_spill] sm:$0xff] }
 0x498   : > { %4586 = vmatpush.msrb.mxu0 %v10981_v33  ;;  %4786 = vmatpush.msrb.mxu3 %v10987_v36 }
 0x499   : > { %4689 = vmatpush.msrb.mxu1 %v10988_v20  ;;  %4748 = vmatpush.msrb.mxu2 %v10989_v63  ;;  %v10996_v20 = vld [vmem:[#allocation179_spill] sm:$0xff]  ;;  %v10997_v63 = vld [vmem:[#allocation226_spill] sm:$0xff] }
 0x49a   : > { %4588 = vmatpush.msrb.mxu0 %v10984_v10  ;;  %4788 = vmatpush.msrb.mxu3 %v10990_v7 }
 0x49b   : > { %4695 = vmatpush.msrb.mxu1 %v10991_v39  ;;  %4751 = vmatpush.msrb.mxu2 %v10992_v21  ;;  %v10999_v39 = vld [vmem:[#allocation183_spill] sm:$0xff]  ;;  %v11000_v21 = vld [vmem:[#allocation201_spill] sm:$0xff] }
 0x49c   : > { %4590 = vmatpush.msrb.mxu0 %v10987_v36  ;;  %4790 = vmatpush.msrb.mxu3 %v10993_v37 }
 0x49d   : > { %4701 = vmatpush.msrb.mxu1 %v10994_v45  ;;  %4754 = vmatpush.msrb.mxu2 %v10995_v48  ;;  %v11001_v48 = vld [vmem:[#allocation186_spill] sm:$0xff]  ;;  %v11005_v45 = vld [vmem:[#allocation224_spill] sm:$0xff] }
 0x49e   : > { %4592 = vmatpush.msrb.mxu0 %v10990_v7  ;;  %4792 = vmatpush.msrb.mxu3 %v10996_v20 }
 0x49f   : > { %4707 = vmatpush.msrb.mxu1 %v10997_v63  ;;  %4757 = vmatpush.msrb.mxu2 %v10998_v41  ;;  %v11002_v63 = vld [vmem:[#allocation189_spill] sm:$0xff]  ;;  %v11003_v41 = vld [vmem:[#allocation191_spill] sm:$0xff] }
 0x4a0   : > { %4594 = vmatpush.msrb.mxu0 %v10993_v37  ;;  %4794 = vmatpush.msrb.mxu3 %v10999_v39 }
 0x4a1   : > { %4709 = vmatmul.f32.vlgmr.msrb.gmra.mxu1 %v8926_v49  ;;  %4760 = vmatpush.msrb.mxu2 %v11000_v21  ;;  %v11004_v21 = vld [vmem:[#allocation197_spill] sm:$0xff] }
 0x4a2   : > { %4876 = vmatpush.msra.mxu1 %v10752_v31  ;;  %4596 = vmatpush.msrb.mxu0 %v10996_v20  ;;  %v11010_v31 = vld [vmem:[#allocation233_spill] sm:$0xff] }
 0x4a3   : > { %4796 = vmatpush.msrb.mxu3 %v11001_v48  ;;  %4763 = vmatmul.f32.vlgmr.msrb.gmra.mxu2 %v8932_v28  ;;  %v11006_v28 = vld [vmem:[#allocation202_spill] sm:$0xff] }
 0x4a4   : > { %4878 = vmatpush.msra.mxu1 %v10756_v11  ;;  %4913 = vmatpush.msra.mxu2 %v11002_v63  ;;  %v11007_v11 = vld [vmem:[#allocation229_spill] sm:$0xff] }
 0x4a5   : > { %4598 = vmatpush.msrb.mxu0 %v10999_v39  ;;  %4798 = vmatpush.msrb.mxu3 %v11003_v41 }
 0x4a6   : > { %4802 = vmatmul.f32.vlgmr.msrb.gmra.mxu3 %v8940_v24  ;;  %4880 = vmatpush.msra.mxu1 %v10760_v60  ;;  %v11008_v24 = vld [vmem:[#allocation203_spill] sm:$0xff]  ;;  %v11009_v60 = vld [vmem:[#allocation150_spill] sm:$0xff] }
 0x4a7   : > { %4915 = vmatpush.msra.mxu2 %v11004_v21  ;;  %4958 = vmatpush.msra.mxu3 %v11005_v45  ;;  %v11011_v45 = vld [vmem:[#allocation208_spill] sm:$0xff] }
 0x4a8   : > { %4600 = vmatpush.msrb.mxu0 %v11001_v48  ;;  %4882 = vmatpush.msra.mxu1 %v10763_v56  ;;  %v11012_v56 = vld [vmem:[#allocation153_spill] sm:$0xff] }
 0x4a9   : > { %4917 = vmatpush.msra.mxu2 %v11006_v28  ;;  %4964 = vmatpush.msra.mxu3 %v11007_v11  ;;  %v11014_v11 = vld [vmem:[#allocation215_spill] sm:$0xff] }
 0x4aa   : > { %4602 = vmatpush.msrb.mxu0 %v11003_v41  ;;  %4884 = vmatpush.msra.mxu1 %v10766_v61  ;;  %v11015_v61 = vld [vmem:[#allocation156_spill] sm:$0xff] }
 0x4ab   : > { %4608 = vmatmul.f32.vlgmr.msrb.gmra.mxu0 %v8955_v55  ;;  %4919 = vmatpush.msra.mxu2 %v11008_v24  ;;  %v11016_v55 = vld [vmem:[#allocation241_spill] sm:$0xff] }
 0x4ac   : > { %4809 = vmatpush.msra.mxu0 %v11009_v60  ;;  %4970 = vmatpush.msra.mxu3 %v11010_v31  ;;  %v11017_v60 = vld [vmem:[#allocation219_spill] sm:$0xff] }
 0x4ad   : > { %4886 = vmatpush.msra.mxu1 %v7744_v4  ;;  %4921 = vmatpush.msra.mxu2 %v11011_v45  ;;  %v11018_v31 = vld [vmem:[#allocation159_spill] sm:$0xff]  ;;  %v11019_v4 = vld [vmem:[#allocation245_spill] sm:$0xff] }
 0x4ae   : > { %4813 = vmatpush.msra.mxu0 %v11012_v56  ;;  %4976 = vmatpush.msra.mxu3 %v11013_v42  ;;  %v11020_v56 = vld [vmem:[#allocation223_spill] sm:$0xff] }
 0x4af   : > { %4888 = vmatpush.msra.mxu1 %v10978_v53  ;;  %4923 = vmatpush.msra.mxu2 %v11014_v11  ;;  %v11021_v42 = vld [vmem:[#allocation163_spill] sm:$0xff]  ;;  %v11022_v53 = vld [vmem:[#allocation249_spill] sm:$0xff] }
 0x4b0   : > { %4817 = vmatpush.msra.mxu0 %v11015_v61  ;;  %4982 = vmatpush.msra.mxu3 %v11016_v55  ;;  %v11023_v61 = vld [vmem:[#allocation228_spill] sm:$0xff]  ;;  %v11024_v55 = vld [vmem:[#allocation167_spill] sm:$0xff] }
 0x4b1   : > { %4890 = vmatpush.msra.mxu1 %v10981_v33  ;;  %4925 = vmatpush.msra.mxu2 %v11017_v60  ;;  %v11025_v33 = vld [vmem:[#allocation253_spill] sm:$0xff] }
 0x4b2   : > { %4821 = vmatpush.msra.mxu0 %v11018_v31  ;;  %4988 = vmatpush.msra.mxu3 %v11019_v4  ;;  %v11026_v31 = vld [vmem:[#allocation232_spill] sm:$0xff] }
 0x4b3   : > { %4892 = vmatpush.msra.mxu1 %v10984_v10  ;;  %4927 = vmatpush.msra.mxu2 %v11020_v56  ;;  %v11027_v4 = vld [vmem:[#allocation172_spill] sm:$0xff] }
 0x4b4   : > { %4825 = vmatpush.msra.mxu0 %v11021_v42  ;;  %4994 = vmatpush.msra.mxu3 %v11022_v53  ;;  %v11028_v10 = vld [vmem:[#allocation256_spill] sm:$0xff] }
 0x4b5   : > { %4894 = vmatpush.msra.mxu1 %v10987_v36  ;;  %4929 = vmatpush.msra.mxu2 %v11023_v61  ;;  %v11029_v42 = vld [vmem:[#allocation236_spill] sm:$0xff] }
 0x4b6   : > { %4829 = vmatpush.msra.mxu0 %v11024_v55  ;;  %5000 = vmatpush.msra.mxu3 %v11025_v33  ;;  %v11030_v53 = vld [vmem:[#allocation176_spill] sm:$0xff]  ;;  %v11033_v33 = vld [vmem:[#allocation177_spill] sm:$0xff] }
 0x4b7   : > { %4896 = vmatpush.msra.mxu1 %v10990_v7  ;;  %4931 = vmatpush.msra.mxu2 %v11026_v31  ;;  %v11031_v36 = vld [vmem:[#allocation260_spill] sm:$0xff]  ;;  %v11034_v7 = vld [vmem:[#allocation262_spill] sm:$0xff] }
 0x4b8   : > { %4833 = vmatpush.msra.mxu0 %v11027_v4  ;;  %5006 = vmatpush.msra.mxu3 %v11028_v10  ;;  %v11032_v55 = vld [vmem:[#allocation240_spill] sm:$0xff]  ;;  %v11036_v10 = vld [vmem:[#allocation181_spill] sm:$0xff] }
 0x4b9   : > { %4898 = vmatpush.msra.mxu1 %v10993_v37  ;;  %4933 = vmatpush.msra.mxu2 %v11029_v42  ;;  %v11035_v4 = vld [vmem:[#allocation244_spill] sm:$0xff]  ;;  %v11037_v37 = vld [vmem:[#allocation265_spill] sm:$0xff] }
 0x4ba   : > { %4837 = vmatpush.msra.mxu0 %v11030_v53  ;;  %5012 = vmatpush.msra.mxu3 %v11031_v36  ;;  %v11038_v53 = vld [vmem:[#allocation248_spill] sm:$0xff]  ;;  %v11039_v36 = vld [vmem:[#allocation187_spill] sm:$0xff] }
 0x4bb   : > { %4900 = vmatpush.msra.mxu1 %v10996_v20  ;;  %4935 = vmatpush.msra.mxu2 %v11032_v55  ;;  %v11040_v20 = vld [vmem:[#allocation266_spill] sm:$0xff] }
 0x4bc   : > { %4841 = vmatpush.msra.mxu0 %v11033_v33  ;;  %5018 = vmatpush.msra.mxu3 %v11034_v7  ;;  %v11041_v33 = vld [vmem:[#allocation252_spill] sm:$0xff] }
 0x4bd   : > { %4902 = vmatpush.msra.mxu1 %v10999_v39  ;;  %4937 = vmatpush.msra.mxu2 %v11035_v4  ;;  %v11042_v7 = vld [vmem:[#allocation192_spill] sm:$0xff] }
 0x4be   : > { %4845 = vmatpush.msra.mxu0 %v11036_v10  ;;  %5024 = vmatpush.msra.mxu3 %v11037_v37  ;;  %v11043_v39 = vld [vmem:[#allocation268_spill] sm:$0xff]  ;;  %v11044_v10 = vld [vmem:[#allocation258_spill] sm:$0xff]  ;;  %v11045_v37 = vld [vmem:[#allocation195_spill] sm:$0xff] }
 0x4bf   : > { %4904 = vmatpush.msra.mxu1 %v11001_v48  ;;  %4939 = vmatpush.msra.mxu2 %v11038_v53  ;;  %v11046_v48 = vld [vmem:[#allocation269_spill] sm:$0xff] }
 0x4c0   : > { %4849 = vmatpush.msra.mxu0 %v11039_v36  ;;  %5030 = vmatpush.msra.mxu3 %v11040_v20  ;;  %v11047_v20 = vld [vmem:[#allocation207_spill] sm:$0xff]  ;;  %v11048_v36 = vld [vmem:[#allocation200_spill] sm:$0xff] }
 0x4c1   : > { %4906 = vmatpush.msra.mxu1 %v11003_v41  ;;  %4941 = vmatpush.msra.mxu2 %v11041_v33 }
 0x4c2   : > { %4853 = vmatpush.msra.mxu0 %v11042_v7  ;;  %5036 = vmatpush.msra.mxu3 %v11043_v39  ;;  %v11049_v7 = vld [vmem:[#allocation270_spill] sm:$0xff] }
 0x4c3   : > { %4908 = vmatmul.f32.vlgmr.msra.gmra.mxu1 %v8926_v49  ;;  %4943 = vmatpush.msra.mxu2 %v11044_v10  ;;  %v11050_v39 = vld [vmem:[#allocation214_spill] sm:$0xff] }
 0x4c4   : > { %5109 = vmatpush.msrb.mxu1 %v11002_v63  ;;  %4857 = vmatpush.msra.mxu0 %v11045_v37  ;;  %v11051_v37 = vld [vmem:[#allocation205_spill] sm:$0xff] }
 0x4c5   : > { %5042 = vmatpush.msra.mxu3 %v11046_v48  ;;  %4949 = vmatmul.f32.vlgmr.msra.gmra.mxu2 %v8963_v57  ;;  %v11052_v57 = vld [vmem:[#allocation218_spill] sm:$0xff]  ;;  %v11104_v48 = vld [vmem:[#allocation17_spill] sm:$0xff] }
 0x4c6   : > { %5111 = vmatpush.msrb.mxu1 %v11004_v21  ;;  %5150 = vmatpush.msrb.mxu2 %v11047_v20  ;;  %v11053_v20 = vld [vmem:[#allocation210_spill] sm:$0xff] }
 0x4c7   : > { %4861 = vmatpush.msra.mxu0 %v11048_v36  ;;  %5048 = vmatpush.msra.mxu3 %v11049_v7  ;;  %v11054_v7 = vld [vmem:[#allocation220_spill] sm:$0xff]  ;;  %v11055_v36 = vld [vmem:[#allocation199_spill] sm:$0xff] }
 0x4c8   : > { %5050 = vmatmul.f32.vlgmr.msra.gmra.mxu3 %v8928_v46  ;;  %5113 = vmatpush.msrb.mxu1 %v11006_v28 }
 0x4c9   : > { %5154 = vmatpush.msrb.mxu2 %v11050_v39  ;;  %5217 = vmatpush.msrb.mxu3 %v11002_v63  ;;  %v11057_v39 = vld [vmem:[#allocation206_spill] sm:$0xff] }
 0x4ca   : > { %4865 = vmatpush.msra.mxu0 %v11051_v37  ;;  %5115 = vmatpush.msrb.mxu1 %v11008_v24  ;;  %v11056_v37 = vld [vmem:[#allocation225_spill] sm:$0xff] }
 0x4cb   : > { %5158 = vmatpush.msrb.mxu2 %v11052_v57  ;;  %5219 = vmatpush.msrb.mxu3 %v11004_v21  ;;  %v11059_v57 = vld [vmem:[#allocation211_spill] sm:$0xff] }
 0x4cc   : > { %4869 = vmatpush.msra.mxu0 %v11053_v20  ;;  %5117 = vmatpush.msrb.mxu1 %v11011_v45  ;;  %v11058_v20 = vld [vmem:[#allocation230_spill] sm:$0xff] }
 0x4cd   : > { %4871 = vmatmul.f32.vlgmr.msra.gmra.mxu0 %v8926_v49  ;;  %5162 = vmatpush.msrb.mxu2 %v11054_v7  ;;  %v11060_v49 = vld [vmem:[#allocation234_spill] sm:$0xff]  ;;  %v11101_v7 = vld [vmem:[#allocation13_spill] sm:$0xff] }
 0x4ce   : > { %5056 = vmatpush.msrb.mxu0 %v11055_v36  ;;  %5221 = vmatpush.msrb.mxu3 %v11006_v28  ;;  %v11061_v36 = vld [vmem:[#allocation212_spill] sm:$0xff] }
 0x4cf   : > { %5119 = vmatpush.msrb.mxu1 %v11014_v11  ;;  %5166 = vmatpush.msrb.mxu2 %v11056_v37  ;;  %v11063_v37 = vld [vmem:[#allocation216_spill] sm:$0xff] }
 0x4d0   : > { %5059 = vmatpush.msrb.mxu0 %v11057_v39  ;;  %5223 = vmatpush.msrb.mxu3 %v11008_v24  ;;  %v11062_v39 = vld [vmem:[#allocation238_spill] sm:$0xff] }
 0x4d1   : > { %5121 = vmatpush.msrb.mxu1 %v11017_v60  ;;  %5170 = vmatpush.msrb.mxu2 %v11058_v20  ;;  %v11065_v20 = vld [vmem:[#allocation222_spill] sm:$0xff] }
 0x4d2   : > { %5062 = vmatpush.msrb.mxu0 %v11059_v57  ;;  %5225 = vmatpush.msrb.mxu3 %v11011_v45  ;;  %v11064_v57 = vld [vmem:[#allocation242_spill] sm:$0xff] }
 0x4d3   : > { %5123 = vmatpush.msrb.mxu1 %v11020_v56  ;;  %5174 = vmatpush.msrb.mxu2 %v11060_v49  ;;  %v11067_v49 = vld [vmem:[#allocation227_spill] sm:$0xff] }
 0x4d4   : > { %5065 = vmatpush.msrb.mxu0 %v11061_v36  ;;  %5227 = vmatpush.msrb.mxu3 %v11014_v11  ;;  %v11066_v36 = vld [vmem:[#allocation246_spill] sm:$0xff] }
 0x4d5   : > { %5125 = vmatpush.msrb.mxu1 %v11023_v61  ;;  %5178 = vmatpush.msrb.mxu2 %v11062_v39  ;;  %v11069_v39 = vld [vmem:[#allocation231_spill] sm:$0xff] }
 0x4d6   : > { %5068 = vmatpush.msrb.mxu0 %v11063_v37  ;;  %5229 = vmatpush.msrb.mxu3 %v11017_v60  ;;  %v11068_v37 = vld [vmem:[#allocation250_spill] sm:$0xff] }
 0x4d7   : > { %5127 = vmatpush.msrb.mxu1 %v11026_v31  ;;  %5182 = vmatpush.msrb.mxu2 %v11064_v57  ;;  %v11071_v57 = vld [vmem:[#allocation235_spill] sm:$0xff] }
 0x4d8   : > { %5071 = vmatpush.msrb.mxu0 %v11065_v20  ;;  %5231 = vmatpush.msrb.mxu3 %v11020_v56  ;;  %v11070_v20 = vld [vmem:[#allocation254_spill] sm:$0xff] }
 0x4d9   : > { %5129 = vmatpush.msrb.mxu1 %v11029_v42  ;;  %5186 = vmatpush.msrb.mxu2 %v11066_v36  ;;  %v11073_v36 = vld [vmem:[#allocation239_spill] sm:$0xff] }
 0x4da   : > { %5074 = vmatpush.msrb.mxu0 %v11067_v49  ;;  %5233 = vmatpush.msrb.mxu3 %v11023_v61  ;;  %v11072_v49 = vld [vmem:[#allocation257_spill] sm:$0xff] }
 0x4db   : > { %5131 = vmatpush.msrb.mxu1 %v11032_v55  ;;  %5190 = vmatpush.msrb.mxu2 %v11068_v37  ;;  %v11075_v37 = vld [vmem:[#allocation243_spill] sm:$0xff] }
 0x4dc   : > { %5077 = vmatpush.msrb.mxu0 %v11069_v39  ;;  %5235 = vmatpush.msrb.mxu3 %v11026_v31  ;;  %v11074_v39 = vld [vmem:[#allocation261_spill] sm:$0xff]  ;;  %v11125_v31 = vld [vmem:[#allocation48_spill] sm:$0xff] }
 0x4dd   : > { %5133 = vmatpush.msrb.mxu1 %v11035_v4  ;;  %5194 = vmatpush.msrb.mxu2 %v11070_v20  ;;  %v11077_v20 = vld [vmem:[#allocation247_spill] sm:$0xff] }
 0x4de   : > { %5080 = vmatpush.msrb.mxu0 %v11071_v57  ;;  %5237 = vmatpush.msrb.mxu3 %v11029_v42  ;;  %v11076_v57 = vld [vmem:[#allocation264_spill] sm:$0xff]  ;;  %v11122_v42 = vld [vmem:[#allocation45_spill] sm:$0xff] }
 0x4df   : > { %5135 = vmatpush.msrb.mxu1 %v11038_v53  ;;  %5198 = vmatpush.msrb.mxu2 %v11072_v49  ;;  %v11079_v49 = vld [vmem:[#allocation251_spill] sm:$0xff] }
 0x4e0   : > { %5083 = vmatpush.msrb.mxu0 %v11073_v36  ;;  %5239 = vmatpush.msrb.mxu3 %v11032_v55  ;;  %v11078_v36 = vld [vmem:[#allocation267_spill] sm:$0xff] }
 0x4e1   : > { %5137 = vmatpush.msrb.mxu1 %v11041_v33  ;;  %5202 = vmatpush.msrb.mxu2 %v11074_v39  ;;  %v11086_v39 = vld [vmem:[#allocation15_spill] sm:$0xff] }
 0x4e2   : > { %5086 = vmatpush.msrb.mxu0 %v11075_v37  ;;  %5241 = vmatpush.msrb.mxu3 %v11035_v4  ;;  %v11080_v37 = vld [vmem:[#allocation255_spill] sm:$0xff]  ;;  %v11116_v4 = vld [vmem:[#allocation34_spill] sm:$0xff] }
 0x4e3   : > { %5139 = vmatpush.msrb.mxu1 %v11044_v10  ;;  %5206 = vmatpush.msrb.mxu2 %v11076_v57  ;;  %v11085_v57 = vld [vmem:[#allocation263_spill] sm:$0xff] }
 0x4e4   : > { %5089 = vmatpush.msrb.mxu0 %v11077_v20  ;;  %5243 = vmatpush.msrb.mxu3 %v11038_v53  ;;  %v11081_v20 = vld [vmem:[#allocation259_spill] sm:$0xff]  ;;  %v11113_v53 = vld [vmem:[#allocation29_spill] sm:$0xff] }
 0x4e5   : > { %5143 = vmatmul.f32.vlgmr.msrb.gmra.mxu1 %v8943_v32  ;;  %5210 = vmatpush.msrb.mxu2 %v11078_v36  ;;  %v11082_v32 = vld [vmem:[#allocation14_spill] sm:$0xff]  ;;  %v11083_v36 = vld [vmem:[#allocation35_spill] sm:$0xff] }
 0x4e6   : > { %5092 = vmatpush.msrb.mxu0 %v11079_v49  ;;  %5245 = vmatpush.msrb.mxu3 %v11041_v33  ;;  %v11084_v49 = vld [vmem:[#allocation8_spill] sm:$0xff]  ;;  %v11110_v33 = vld [vmem:[#allocation26_spill] sm:$0xff]  ;;  %v11119_v55 = vld [vmem:[#allocation39_spill] sm:$0xff] }
 0x4e7   : > { %5212 = vmatmul.f32.vlgmr.msrb.gmra.mxu2 %v8928_v46  ;;  %5312 = vmatpush.msra.mxu1 %v10863_v47  ;;  %v11087_v47 = vld [vmem:[#allocation38_spill] sm:$0xff] }
 0x4e8   : > { %5095 = vmatpush.msrb.mxu0 %v11080_v37  ;;  %5247 = vmatpush.msrb.mxu3 %v11044_v10  ;;  %v11088_v37 = vld [vmem:[#allocation16_spill] sm:$0xff] }
 0x4e9   : > { %5249 = vmatmul.f32.vlgmr.msrb.gmra.mxu3 %v8928_v46  ;;  %5318 = vmatpush.msra.mxu1 %v10866_v23  ;;  %v11089_v46 = vld [vmem:[#allocation9_spill] sm:$0xff]  ;;  %v11090_v23 = vld [vmem:[#allocation44_spill] sm:$0xff] }
 0x4ea   : > { %5098 = vmatpush.msrb.mxu0 %v11081_v20  ;;  %5410 = vmatpush.msra.mxu2 %v11082_v32  ;;  %v11091_v32 = vld [vmem:[#allocation18_spill] sm:$0xff]  ;;  %v11098_v20 = vld [vmem:[#allocation12_spill] sm:$0xff] }
 0x4eb   : > { %5324 = vmatpush.msra.mxu1 %v11083_v36  ;;  %5463 = vmatpush.msra.mxu3 %v11084_v49  ;;  %v11092_v36 = vld [vmem:[#allocation10_spill] sm:$0xff]  ;;  %v11107_v10 = vld [vmem:[#allocation24_spill] sm:$0xff] }
 0x4ec   : > { %5101 = vmatpush.msrb.mxu0 %v11085_v57  ;;  %5413 = vmatpush.msra.mxu2 %v11086_v39  ;;  %v11093_v57 = vld [vmem:[#allocation47_spill] sm:$0xff] }
 0x4ed   : > { %5104 = vmatmul.f32.vlgmr.msrb.gmra.mxu0 %v8935_v6  ;;  %5330 = vmatpush.msra.mxu1 %v11087_v47  ;;  %v11094_v39 = vld [vmem:[#allocation19_spill] sm:$0xff]  ;;  %v11097_v47 = vld [vmem:[#allocation20_spill] sm:$0xff] }
 0x4ee   : > { %5416 = vmatpush.msra.mxu2 %v11088_v37  ;;  %5465 = vmatpush.msra.mxu3 %v11089_v46  ;;  %v11095_v6 = vld [vmem:[#allocation11_spill] sm:$0xff]  ;;  %v11096_v37 = vld [vmem:[#allocation53_spill] sm:$0xff] }
 0x4ef   : > { %5267 = vmatpush.msra.mxu0 %v11084_v49  ;;  %5336 = vmatpush.msra.mxu1 %v11090_v23  ;;  %v11099_v23 = vld [vmem:[#allocation58_spill] sm:$0xff] }
 0x4f0   : > { %5419 = vmatpush.msra.mxu2 %v11091_v32  ;;  %5467 = vmatpush.msra.mxu3 %v11092_v36  ;;  %v11100_v32 = vld [vmem:[#allocation27_spill] sm:$0xff] }
 0x4f1   : > { %5269 = vmatpush.msra.mxu0 %v11089_v46  ;;  %5342 = vmatpush.msra.mxu1 %v11093_v57  ;;  %v11102_v57 = vld [vmem:[#allocation62_spill] sm:$0xff] }
 0x4f2   : > { %5422 = vmatpush.msra.mxu2 %v11094_v39  ;;  %5469 = vmatpush.msra.mxu3 %v11095_v6  ;;  %v11103_v39 = vld [vmem:[#allocation33_spill] sm:$0xff] }
 0x4f3   : > { %5271 = vmatpush.msra.mxu0 %v11092_v36  ;;  %5348 = vmatpush.msra.mxu1 %v11096_v37  ;;  %v11105_v37 = vld [vmem:[#allocation68_spill] sm:$0xff] }
 0x4f4   : > { %5425 = vmatpush.msra.mxu2 %v11097_v47  ;;  %5471 = vmatpush.msra.mxu3 %v11098_v20  ;;  %v11106_v47 = vld [vmem:[#allocation37_spill] sm:$0xff] }
 0x4f5   : > { %5273 = vmatpush.msra.mxu0 %v11095_v6  ;;  %5354 = vmatpush.msra.mxu1 %v11099_v23  ;;  %v11108_v23 = vld [vmem:[#allocation71_spill] sm:$0xff] }
 0x4f6   : > { %5428 = vmatpush.msra.mxu2 %v11100_v32  ;;  %5473 = vmatpush.msra.mxu3 %v11101_v7  ;;  %v11109_v32 = vld [vmem:[#allocation41_spill] sm:$0xff] }
 0x4f7   : > { %5275 = vmatpush.msra.mxu0 %v11098_v20  ;;  %5360 = vmatpush.msra.mxu1 %v11102_v57  ;;  %v11111_v57 = vld [vmem:[#allocation78_spill] sm:$0xff] }
 0x4f8   : > { %5431 = vmatpush.msra.mxu2 %v11103_v39  ;;  %5475 = vmatpush.msra.mxu3 %v11104_v48  ;;  %v11112_v39 = vld [vmem:[#allocation42_spill] sm:$0xff] }
 0x4f9   : > { %5277 = vmatpush.msra.mxu0 %v11101_v7  ;;  %5366 = vmatpush.msra.mxu1 %v11105_v37  ;;  %v11114_v37 = vld [vmem:[#allocation82_spill] sm:$0xff] }
 0x4fa   : > { %5434 = vmatpush.msra.mxu2 %v11106_v47  ;;  %5477 = vmatpush.msra.mxu3 %v11107_v10  ;;  %v11115_v47 = vld [vmem:[#allocation50_spill] sm:$0xff] }
 0x4fb   : > { %5279 = vmatpush.msra.mxu0 %v11104_v48  ;;  %5372 = vmatpush.msra.mxu1 %v11108_v23  ;;  %v11117_v23 = vld [vmem:[#allocation86_spill] sm:$0xff] }
 0x4fc   : > { %5437 = vmatpush.msra.mxu2 %v11109_v32  ;;  %5479 = vmatpush.msra.mxu3 %v11110_v33  ;;  %v11118_v32 = vld [vmem:[#allocation55_spill] sm:$0xff] }
 0x4fd   : > { %5281 = vmatpush.msra.mxu0 %v11107_v10  ;;  %5378 = vmatpush.msra.mxu1 %v11111_v57  ;;  %v11120_v57 = vld [vmem:[#allocation91_spill] sm:$0xff] }
 0x4fe   : > { %5440 = vmatpush.msra.mxu2 %v11112_v39  ;;  %5481 = vmatpush.msra.mxu3 %v11113_v53  ;;  %v11121_v39 = vld [vmem:[#allocation60_spill] sm:$0xff] }
 0x4ff   : > { %5283 = vmatpush.msra.mxu0 %v11110_v33  ;;  %5384 = vmatpush.msra.mxu1 %v11114_v37  ;;  %v11123_v37 = vld [vmem:[#allocation96_spill] sm:$0xff] }
 0x500   : > { %5443 = vmatpush.msra.mxu2 %v11115_v47  ;;  %5483 = vmatpush.msra.mxu3 %v11116_v4  ;;  %v11124_v47 = vld [vmem:[#allocation64_spill] sm:$0xff] }
 0x501   : > { %5285 = vmatpush.msra.mxu0 %v11113_v53  ;;  %5390 = vmatpush.msra.mxu1 %v11117_v23  ;;  %v11126_v23 = vld [vmem:[#allocation66_spill] sm:$0xff] }
 0x502   : > { %5446 = vmatpush.msra.mxu2 %v11118_v32  ;;  %5485 = vmatpush.msra.mxu3 %v11119_v55  ;;  %v11127_v32 = vld [vmem:[#allocation54_spill] sm:$0xff] }
 0x503   : > { %5287 = vmatpush.msra.mxu0 %v11116_v4  ;;  %5396 = vmatpush.msra.mxu1 %v11120_v57  ;;  %v11128_v57 = vld [vmem:[#allocation56_spill] sm:$0xff] }
 0x504   : > { %5449 = vmatpush.msra.mxu2 %v11121_v39  ;;  %5487 = vmatpush.msra.mxu3 %v11122_v42  ;;  %v11129_v39 = vld [vmem:[#allocation89_spill] sm:$0xff] }
 0x505   : > { %5289 = vmatpush.msra.mxu0 %v11119_v55  ;;  %5402 = vmatpush.msra.mxu1 %v11123_v37  ;;  %v11133_v37 = vld [vmem:[#allocation22_spill] sm:$0xff] }
 0x506   : > { %5452 = vmatpush.msra.mxu2 %v11124_v47  ;;  %5489 = vmatpush.msra.mxu3 %v11125_v31  ;;  %v11135_v47 = vld [vmem:[#allocation23_spill] sm:$0xff] }
 0x507   : > { %5571 = vmatpush.msrb.mxu1 %v11084_v49  ;;  %5291 = vmatpush.msra.mxu0 %v11122_v42  ;;  %v11130_v49 = vld [vmem:[#allocation94_spill] sm:$0xff] }
 0x508   : > { %5455 = vmatpush.msra.mxu2 %v11126_v23  ;;  %5491 = vmatpush.msra.mxu3 %v11127_v32  ;;  %v11136_v23 = vld [vmem:[#allocation107_spill] sm:$0xff] }
 0x509   : > { %5573 = vmatpush.msrb.mxu1 %v11089_v46  ;;  %5293 = vmatpush.msra.mxu0 %v11125_v31  ;;  %v11131_v46 = vld [vmem:[#allocation21_spill] sm:$0xff] }
 0x50a   : > { %5608 = vmatpush.msrb.mxu2 %v10666_v52  ;;  %5493 = vmatpush.msra.mxu3 %v11128_v57 }
 0x50b   : > { %5575 = vmatpush.msrb.mxu1 %v11092_v36  ;;  %5295 = vmatpush.msra.mxu0 %v11127_v32  ;;  %v11132_v36 = vld [vmem:[#allocation100_spill] sm:$0xff] }
 0x50c   : > { %5610 = vmatpush.msrb.mxu2 %v10669_v13  ;;  %5653 = vmatpush.msrb.mxu3 %v11129_v39  ;;  %v11138_v39 = vld [vmem:[#allocation111_spill] sm:$0xff] }
 0x50d   : > { %5577 = vmatpush.msrb.mxu1 %v11095_v6  ;;  %5297 = vmatpush.msra.mxu0 %v11128_v57  ;;  %v11134_v6 = vld [vmem:[#allocation104_spill] sm:$0xff] }
 0x50e   : > { %5612 = vmatpush.msrb.mxu2 %v10672_v9  ;;  %5659 = vmatpush.msrb.mxu3 %v11130_v49  ;;  %v11140_v49 = vld [vmem:[#allocation115_spill] sm:$0xff] }
 0x50f   : > { %5504 = vmatpush.msrb.mxu0 %v11131_v46  ;;  %5579 = vmatpush.msrb.mxu1 %v11098_v20  ;;  %v11137_v20 = vld [vmem:[#allocation25_spill] sm:$0xff]  ;;  %v11142_v46 = vld [vmem:[#allocation119_spill] sm:$0xff] }
 0x510   : > { %5614 = vmatpush.msrb.mxu2 %v10675_v51  ;;  %5665 = vmatpush.msrb.mxu3 %v11132_v36  ;;  %v11144_v36 = vld [vmem:[#allocation122_spill] sm:$0xff] }
 0x511   : > { %5508 = vmatpush.msrb.mxu0 %v11133_v37  ;;  %5581 = vmatpush.msrb.mxu1 %v11101_v7  ;;  %v11139_v7 = vld [vmem:[#allocation28_spill] sm:$0xff]  ;;  %v11146_v37 = vld [vmem:[#allocation126_spill] sm:$0xff] }
 0x512   : > { %5616 = vmatpush.msrb.mxu2 %v10678_v5  ;;  %5671 = vmatpush.msrb.mxu3 %v11134_v6  ;;  %v11148_v6 = vld [vmem:[#allocation129_spill] sm:$0xff] }
 0x513   : > { %5512 = vmatpush.msrb.mxu0 %v11135_v47  ;;  %5583 = vmatpush.msrb.mxu1 %v11104_v48  ;;  %v11141_v48 = vld [vmem:[#allocation30_spill] sm:$0xff]  ;;  %v11150_v47 = vld [vmem:[#allocation132_spill] sm:$0xff] }
 0x514   : > { %5618 = vmatpush.msrb.mxu2 %v10681_v27  ;;  %5677 = vmatpush.msrb.mxu3 %v11136_v23  ;;  %v11152_v23 = vld [vmem:[#allocation135_spill] sm:$0xff] }
 0x515   : > { %5516 = vmatpush.msrb.mxu0 %v11137_v20  ;;  %5585 = vmatpush.msrb.mxu1 %v11107_v10  ;;  %v11143_v10 = vld [vmem:[#allocation36_spill] sm:$0xff]  ;;  %v11154_v20 = vld [vmem:[#allocation138_spill] sm:$0xff] }
 0x516   : > { %5620 = vmatpush.msrb.mxu2 %v10684_v25  ;;  %5683 = vmatpush.msrb.mxu3 %v11138_v39  ;;  %v11156_v39 = vld [vmem:[#allocation139_spill] sm:$0xff] }
 0x517   : > { %5520 = vmatpush.msrb.mxu0 %v11139_v7  ;;  %5587 = vmatpush.msrb.mxu1 %v11110_v33  ;;  %v11145_v33 = vld [vmem:[#allocation40_spill] sm:$0xff]  ;;  %v11157_v7 = vld [vmem:[#allocation69_spill] sm:$0xff] }
 0x518   : > { %5622 = vmatpush.msrb.mxu2 %v10687_v26  ;;  %5689 = vmatpush.msrb.mxu3 %v11140_v49  ;;  %v11159_v49 = vld [vmem:[#allocation73_spill] sm:$0xff] }
 0x519   : > { %5524 = vmatpush.msrb.mxu0 %v11141_v48  ;;  %5589 = vmatpush.msrb.mxu1 %v11113_v53  ;;  %v11147_v53 = vld [vmem:[#allocation46_spill] sm:$0xff]  ;;  %v11160_v48 = vld [vmem:[#allocation76_spill] sm:$0xff] }
 0x51a   : > { %5624 = vmatpush.msrb.mxu2 %v10690_v29  ;;  %5695 = vmatpush.msrb.mxu3 %v11142_v46  ;;  %v3927_v46 = vpop.f32.mrf.mxu0 }
 0x51b   : > { %5528 = vmatpush.msrb.mxu0 %v11143_v10  ;;  %5591 = vmatpush.msrb.mxu1 %v11116_v4  ;;  %v11149_v4 = vld [vmem:[#allocation49_spill] sm:$0xff]  ;;  %v4082_v10 = vpop.f32.mrf.mxu2 }
 0x51c   : > { %5626 = vmatpush.msrb.mxu2 %v10693_v8  ;;  %5701 = vmatpush.msrb.mxu3 %v11144_v36  ;;  %v4121_v36 = vpop.f32.mrf.mxu3 }
 0x51d   : > { %5532 = vmatpush.msrb.mxu0 %v11145_v33  ;;  %5593 = vmatpush.msrb.mxu1 %v11119_v55  ;;  %v11151_v55 = vld [vmem:[#allocation51_spill] sm:$0xff] }
 0x51e   : > { %5628 = vmatpush.msrb.mxu2 %v10696_v43  ;;  %5707 = vmatpush.msrb.mxu3 %v11146_v37 }
 0x51f   : > { %5536 = vmatpush.msrb.mxu0 %v11147_v53  ;;  %5595 = vmatpush.msrb.mxu1 %v11122_v42  ;;  %v11153_v42 = vld [vmem:[#allocation59_spill] sm:$0xff] }
 0x520   : > { %5630 = vmatpush.msrb.mxu2 %v10699_v62  ;;  %5713 = vmatpush.msrb.mxu3 %v11148_v6 }
 0x521   : > { %5540 = vmatpush.msrb.mxu0 %v11149_v4  ;;  %5597 = vmatpush.msrb.mxu1 %v11125_v31  ;;  %v11155_v31 = vld [vmem:[#allocation63_spill] sm:$0xff] }
 0x522   : > { %5632 = vmatpush.msrb.mxu2 %v10702_v40  ;;  %5719 = vmatpush.msrb.mxu3 %v11150_v47  ;;  %v4190_v33 = vpop.f32.mrf.mxu0 }
 0x523   : > { %5544 = vmatpush.msrb.mxu0 %v11151_v55  ;;  %5599 = vmatpush.msrb.mxu1 %v11127_v32  ;;  %v11158_v32 = vld [vmem:[#allocation141_spill] sm:$0xff]  ;;  %v4268_v53 = vpop.f32.mrf.mxu2 }
 0x524   : > { %5634 = vmatpush.msrb.mxu2 %v10705_v44  ;;  %5725 = vmatpush.msrb.mxu3 %v11152_v23  ;;  %v4369_v4 = vpop.f32.mrf.mxu3 }
 0x525   : > { %5548 = vmatpush.msrb.mxu0 %v11153_v42  ;;  %5601 = vmatpush.msrb.mxu1 %v11128_v57  ;;  %v4028_v57 = vpop.f32.mrf.mxu1 }
 0x526   : > { %5636 = vmatpush.msrb.mxu2 %v10708_v59  ;;  %5731 = vmatpush.msrb.mxu3 %v11154_v20  ;;  %v4029_v23 = vadd.f32 %v4028_v57, %v3927_v46 }
 0x527   : > { %5552 = vmatpush.msrb.mxu0 %v11155_v31 }
 0x528   : > { %5638 = vmatpush.msrb.mxu2 %v10711_v58  ;;  %5737 = vmatpush.msrb.mxu3 %v11156_v39  ;;  %v4083_v39 = vadd.f32 %v4082_v10, %v4029_v23 }
 0x529   : > { %5556 = vmatpush.msrb.mxu0 %v11157_v7 }
 0x52a   : > { %5743 = vmatpush.msrb.mxu3 %v11158_v32  ;;  %v4423_v6 = vpop.f32.mrf.mxu0 }
 0x52b   : > { %5560 = vmatpush.msrb.mxu0 %v11159_v49  ;;  %v4531_v55 = vpop.f32.mrf.mxu2  ;;  %v4122_v49 = vadd.f32 %v4121_v36, %v4083_v39 }
 0x52c   : > { %v4568_v20 = vpop.f32.mrf.mxu3 }
 0x52d   : > { %5564 = vmatpush.msrb.mxu0 %v11160_v48  ;;  %v4227_v37 = vpop.f32.mrf.mxu1  ;;  %v4191_v61 = vadd.f32 %v4190_v33, %v4122_v49  ;;  %v11194_v49 = vld [vmem:[#allocation185_spill] sm:$0xff] }
 0x52f   : > { %v4228_v45 = vadd.f32 %v4227_v37, %v4191_v61 }
 0x531   : > { %v4269_v21 = vadd.f32 %v4268_v53, %v4228_v45 }
 0x532   : > { %v4609_v42 = vpop.f32.mrf.mxu0 }
 0x533   : > { %v4764_v32 = vpop.f32.mrf.mxu2  ;;  %v4370_v58 = vadd.f32 %v4369_v4, %v4269_v21 }
 0x534   : > { %v4803_v56 = vpop.f32.mrf.mxu3 }
 0x535   : > { %v4462_v47 = vpop.f32.mrf.mxu1  ;;  %v4424_v57 = vadd.f32 %v4423_v6, %v4370_v58 }
 0x537   : > { %v4463_v23 = vadd.f32 %v4462_v47, %v4424_v57  ;;  %v11190_v47 = vld [vmem:[#allocation145_spill] sm:$0xff]  ;;  %v11197_v57 = vld [vmem:[#allocation190_spill] sm:$0xff] }
 0x539   : > { %v4532_v39 = vadd.f32 %v4531_v55, %v4463_v23  ;;  %v11191_v55 = vld [vmem:[#allocation182_spill] sm:$0xff]  ;;  %v11199_v23 = vld [vmem:[#allocation152_spill] sm:$0xff] }
 0x53d   : > { %v4710_v31 = vpop.f32.mrf.mxu1 }
 0x53e   : > { %v4711_v7 = vadd.f32 %v4710_v31, %v4609_v42 }
 0x540   : > { %v4765_v48 = vadd.f32 %v4764_v32, %v4711_v7  ;;  %v11193_v32 = vld [vmem:[#allocation147_spill] sm:$0xff] }
 0x542   : > { %v4804_v11 = vadd.f32 %v4803_v56, %v4765_v48  ;;  %v11195_v48 = vld [vmem:[#allocation160_spill] sm:$0xff] }
 0x545   : > { %v4909_v28 = vpop.f32.mrf.mxu1 }
 0x548   : > { %v4950_v63 = vpop.f32.mrf.mxu2 }
 0x54a   : > { %v4872_v60 = vpop.f32.mrf.mxu0 }
 0x54b   : > { %v4873_v24 = vadd.f32 %v4872_v60, %v4804_v11  ;;  %v5051_v59 = vpop.f32.mrf.mxu3  ;;  %v4569_v11 = vadd.f32 %v4568_v20, %v4532_v39  ;;  %v11192_v20 = vld [vmem:[#allocation157_spill] sm:$0xff] }
 0x54c   : > { %v11204_v39 = vld [vmem:[#allocation169_spill] sm:$0xff] }
 0x54d   : > { %v4910_v41 = vadd.f32 %v4909_v28, %v4873_v24 }
 0x54f   : > { %v4951_v46 = vadd.f32 %v4950_v63, %v4910_v41 }
 0x551   : > { %v5052_v44 = vadd.f32 %v5051_v59, %v4951_v46  ;;  %v11196_v46 = vld [vmem:[#allocation149_spill] sm:$0xff] }
 0x562   : > { %v5144_v36 = vpop.f32.mrf.mxu1 }
 0x56a   : > { %v5105_v10 = vpop.f32.mrf.mxu0  ;;  %v5213_v33 = vpop.f32.mrf.mxu2 }
 0x56b   : > { %v5106_v42 = vadd.f32 %v5105_v10, %v5052_v44  ;;  %v11198_v10 = vld [vmem:[#allocation164_spill] sm:$0xff] }
 0x56c   : > { %v5250_v56 = vpop.f32.mrf.mxu3 }
 0x56d   : > { %v5145_v31 = vadd.f32 %v5144_v36, %v5106_v42  ;;  %v11200_v42 = vld [vmem:[#allocation194_spill] sm:$0xff]  ;;  %v11201_v36 = vld [vmem:[#allocation168_spill] sm:$0xff] }
 0x56f   : > { %v5214_v7 = vadd.f32 %v5213_v33, %v5145_v31  ;;  %v11202_v31 = vld [vmem:[#allocation155_spill] sm:$0xff]  ;;  %v11203_v33 = vld [vmem:[#allocation198_spill] sm:$0xff] }
 0x571   : > { %v5251_v61 = vadd.f32 %v5250_v56, %v5214_v7  ;;  %v11205_v7 = vld [vmem:[#allocation158_spill] sm:$0xff]  ;;  %v11206_v56 = vld [vmem:[#allocation204_spill] sm:$0xff] }
 0x573   : > { %v5255_v60 = vrot.slane %v5251_v61, 4  ;;  %v11207_v61 = vld [vmem:[#allocation173_spill] sm:$0xff] }
 0x575   : > { %v5256_v45 = vsel %vm1844_vm0, %v4569_v11, %v5255_v60  ;;  %v11208_v11 = vld [vmem:[#allocation161_spill] sm:$0xff] }
 0x576   : > { %v9360_v21 = vsub.f32 %v8923_v30, %v5256_v45  ;;  %v11209_v60 = vld [vmem:[#allocation209_spill] sm:$0xff]  ;;  %v11210_v45 = vld [vmem:[#allocation180_spill] sm:$0xff] }
 0x578   : > { %v5259_v59 = vmul.f32 %v9360_v21, %v9360_v21 }
 0x57a   : > { %5261 = vst [vmem:[#allocation1] ss:$2 sm:$0xff] %v5259_v59  ;;  %v11211_v59 = vld [vmem:[#allocation165_spill] sm:$0xff] }
 0x581   : > { %v5262_v58 = vld.sshfl [vmem:[#allocation1] sm:$0xff pattern:$0x75316420]  ;;  %v5263_v44 = vld.sshfl [vmem:[#allocation1 + $0x8] sm:$0xff pattern:$0x75316420] }
 0x582   : > { %v9364_v41 = vand.u32 4294901760, %v5262_v58  ;;  %v9366_v63 = vand.u32 4294901760, %v5263_v44 }
 0x584   : > { %5404 = vmatmul.f32.vlgmr.msra.gmra.mxu1 %v9364_v41  ;;  %v9370_v28 = vsub.f32 %v5262_v58, %v9364_v41  ;;  %v9373_v24 = vsub.f32 %v5263_v44, %v9366_v63  ;;  %v11212_v58 = vld [vmem:[#allocation213_spill] sm:$0xff]  ;;  %v11213_v44 = vld [vmem:[#allocation184_spill] sm:$0xff] }
 0x585   : > { %5804 = vmatpush.msra.mxu1 %v10666_v52 }
 0x586   : > { %5458 = vmatmul.f32.vlgmr.msra.gmra.mxu2 %v9370_v28  ;;  %v9378_v30 = vand.u32 4294901760, %v9370_v28  ;;  %v9381_v37 = vand.u32 4294901760, %v9373_v24 }
 0x587   : > { %5806 = vmatpush.msra.mxu1 %v10669_v13  ;;  %5845 = vmatpush.msra.mxu2 %v10717_v15 }
 0x588   : > { %5497 = vmatmul.f32.vlgmr.msra.gmra.mxu3 %v9378_v30  ;;  %v5301_v53 = vsub.f32 %v9370_v28, %v9378_v30  ;;  %v5642_v6 = vsub.f32 %v9373_v24, %v9381_v37 }
 0x589   : > { %5808 = vmatpush.msra.mxu1 %v10672_v9  ;;  %5849 = vmatpush.msra.mxu2 %v10718_v38  ;;  %v11171_v38 = vld [vmem:[#allocation113_spill] sm:$0xff] }
 0x58a   : > { %5912 = vmatpush.msra.mxu3 %v10666_v52  ;;  %v9393_v4 = vand.u32 4294901760, %v5301_v53  ;;  %v9401_v15 = vand.u32 4294901760, %v5642_v6  ;;  %v11169_v52 = vld [vmem:[#allocation121_spill] sm:$0xff]  ;;  %v11214_v53 = vld [vmem:[#allocation171_spill] sm:$0xff] }
 0x58b   : > { %5810 = vmatpush.msra.mxu1 %v10675_v51  ;;  %5853 = vmatpush.msra.mxu2 %v10719_v1  ;;  %v11172_v1 = vld [vmem:[#allocation125_spill] sm:$0xff] }
 0x58c   : > { %5914 = vmatpush.msra.mxu3 %v10669_v13  ;;  %5303 = vmatmul.f32.vlgmr.msra.gmra.mxu0 %v9393_v4  ;;  %v11164_v13 = vld [vmem:[#allocation120_spill] sm:$0xff]  ;;  %v11215_v6 = vld [vmem:[#allocation217_spill] sm:$0xff] }
 0x58d   : > { %5603 = vmatmul.f32.vlgmr.msrb.gmra.mxu1 %v9364_v41  ;;  %5751 = vmatpush.msra.mxu0 %v10720_v54  ;;  %v11174_v54 = vld [vmem:[#allocation118_spill] sm:$0xff] }
 0x58e   : > { %5812 = vmatpush.msra.mxu1 %v10678_v5  ;;  %5857 = vmatpush.msra.mxu2 %v10721_v12  ;;  %v11176_v12 = vld [vmem:[#allocation136_spill] sm:$0xff] }
 0x58f   : > { %5916 = vmatpush.msra.mxu3 %v10672_v9  ;;  %5644 = vmatmul.f32.vlgmr.msrb.gmra.mxu2 %v9401_v15  ;;  %v11161_v9 = vld [vmem:[#allocation95_spill] sm:$0xff] }
 0x590   : > { %5754 = vmatpush.msra.mxu0 %v10722_v14  ;;  %5814 = vmatpush.msra.mxu1 %v10681_v27  ;;  %v11178_v14 = vld [vmem:[#allocation146_spill] sm:$0xff] }
 0x591   : > { %5861 = vmatpush.msra.mxu2 %v10723_v0  ;;  %5918 = vmatpush.msra.mxu3 %v10675_v51  ;;  %v11165_v51 = vld [vmem:[#allocation105_spill] sm:$0xff]  ;;  %v11179_v0 = vld [vmem:[#allocation124_spill] sm:$0xff] }
 0x592   : > { %5745 = vmatmul.f32.vlgmr.msrb.gmra.mxu3 %v9366_v63  ;;  %5757 = vmatpush.msra.mxu0 %v10724_v18  ;;  %v11180_v18 = vld [vmem:[#allocation170_spill] sm:$0xff] }
 0x593   : > { %5816 = vmatpush.msra.mxu1 %v10684_v25  ;;  %5865 = vmatpush.msra.mxu2 %v10725_v22  ;;  %v11181_v22 = vld [vmem:[#allocation148_spill] sm:$0xff] }
 0x594   : > { %5920 = vmatpush.msra.mxu3 %v10678_v5  ;;  %5760 = vmatpush.msra.mxu0 %v10726_v19  ;;  %v11166_v5 = vld [vmem:[#allocation117_spill] sm:$0xff]  ;;  %v11182_v19 = vld [vmem:[#allocation143_spill] sm:$0xff] }
 0x595   : > { %5818 = vmatpush.msra.mxu1 %v10687_v26  ;;  %5869 = vmatpush.msra.mxu2 %v10727_v35  ;;  %v11183_v35 = vld [vmem:[#allocation128_spill] sm:$0xff] }
 0x596   : > { %5922 = vmatpush.msra.mxu3 %v10681_v27  ;;  %5566 = vmatmul.f32.vlgmr.msrb.gmra.mxu0 %v9364_v41  ;;  %v11163_v27 = vld [vmem:[#allocation101_spill] sm:$0xff] }
 0x597   : > { %5763 = vmatpush.msra.mxu0 %v10728_v34  ;;  %5820 = vmatpush.msra.mxu1 %v10690_v29  ;;  %v11184_v34 = vld [vmem:[#allocation174_spill] sm:$0xff] }
 0x598   : > { %5873 = vmatpush.msra.mxu2 %v10729_v17  ;;  %5924 = vmatpush.msra.mxu3 %v10684_v25  ;;  %v11162_v25 = vld [vmem:[#allocation116_spill] sm:$0xff]  ;;  %v11185_v17 = vld [vmem:[#allocation151_spill] sm:$0xff] }
 0x599   : > { %5766 = vmatpush.msra.mxu0 %v10942_v2  ;;  %5822 = vmatpush.msra.mxu1 %v10693_v8  ;;  %v11186_v2 = vld [vmem:[#allocation144_spill] sm:$0xff] }
 0x59a   : > { %5877 = vmatpush.msra.mxu2 %v10943_v3  ;;  %5926 = vmatpush.msra.mxu3 %v10687_v26  ;;  %v11168_v26 = vld [vmem:[#allocation109_spill] sm:$0xff]  ;;  %v11187_v3 = vld [vmem:[#allocation131_spill] sm:$0xff] }
 0x59b   : > { %5769 = vmatpush.msra.mxu0 %v10944_v16  ;;  %5824 = vmatpush.msra.mxu1 %v10696_v43  ;;  %v11188_v16 = vld [vmem:[#allocation178_spill] sm:$0xff] }
 0x59c   : > { %5881 = vmatpush.msra.mxu2 %v10945_v50  ;;  %5928 = vmatpush.msra.mxu3 %v10690_v29  ;;  %v11167_v29 = vld [vmem:[#allocation123_spill] sm:$0xff]  ;;  %v11189_v50 = vld [vmem:[#allocation154_spill] sm:$0xff] }
 0x59d   : > { %5772 = vmatpush.msra.mxu0 %v11161_v9  ;;  %5826 = vmatpush.msra.mxu1 %v10699_v62  ;;  %v11216_v9 = vld [vmem:[#allocation188_spill] sm:$0xff] }
 0x59e   : > { %5885 = vmatpush.msra.mxu2 %v11162_v25  ;;  %5930 = vmatpush.msra.mxu3 %v10693_v8  ;;  %v11170_v8 = vld [vmem:[#allocation130_spill] sm:$0xff]  ;;  %v11217_v25 = vld [vmem:[#allocation175_spill] sm:$0xff] }
 0x59f   : > { %5775 = vmatpush.msra.mxu0 %v11163_v27  ;;  %5828 = vmatpush.msra.mxu1 %v10702_v40  ;;  %v11218_v27 = vld [vmem:[#allocation221_spill] sm:$0xff] }
 0x5a0   : > { %5889 = vmatpush.msra.mxu2 %v11164_v13  ;;  %5932 = vmatpush.msra.mxu3 %v10696_v43  ;;  %v11173_v43 = vld [vmem:[#allocation133_spill] sm:$0xff] }
 0x5a1   : > { %5778 = vmatpush.msra.mxu0 %v11165_v51  ;;  %5830 = vmatpush.msra.mxu1 %v11166_v5  ;;  %v11219_v13 = vld [vmem:[#allocation193_spill] sm:$0xff]  ;;  %v11220_v51 = vld [vmem:[#allocation179_spill] sm:$0xff] }
 0x5a2   : > { %5893 = vmatpush.msra.mxu2 %v11167_v29  ;;  %5934 = vmatpush.msra.mxu3 %v10699_v62  ;;  %v11175_v62 = vld [vmem:[#allocation162_spill] sm:$0xff]  ;;  %v11222_v29 = vld [vmem:[#allocation196_spill] sm:$0xff] }
 0x5a3   : > { %5781 = vmatpush.msra.mxu0 %v11168_v26  ;;  %5832 = vmatpush.msra.mxu1 %v11169_v52  ;;  %v11223_v26 = vld [vmem:[#allocation183_spill] sm:$0xff] }
 0x5a4   : > { %5897 = vmatpush.msra.mxu2 %v11170_v8  ;;  %5936 = vmatpush.msra.mxu3 %v10702_v40  ;;  %v11177_v40 = vld [vmem:[#allocation166_spill] sm:$0xff] }
 0x5a5   : > { %5784 = vmatpush.msra.mxu0 %v11171_v38  ;;  %5834 = vmatpush.msra.mxu1 %v11172_v1  ;;  %v11225_v8 = vld [vmem:[#allocation186_spill] sm:$0xff]  ;;  %v11226_v38 = vld [vmem:[#allocation189_spill] sm:$0xff] }
 0x5a6   : > { %5901 = vmatpush.msra.mxu2 %v11173_v43  ;;  %5938 = vmatpush.msra.mxu3 %v11166_v5  ;;  %v11221_v5 = vld [vmem:[#allocation226_spill] sm:$0xff]  ;;  %v11228_v43 = vld [vmem:[#allocation197_spill] sm:$0xff] }
 0x5a7   : > { %5838 = vmatmul.f32.vlgmr.msra.gmra.mxu1 %v9381_v37  ;;  %5787 = vmatpush.msra.mxu0 %v11174_v54  ;;  %v11229_v54 = vld [vmem:[#allocation224_spill] sm:$0xff] }
 0x5a8   : > { %5994 = vmatpush.msrb.mxu1 %v11175_v62  ;;  %5905 = vmatpush.msra.mxu2 %v11176_v12  ;;  %v11231_v62 = vld [vmem:[#allocation229_spill] sm:$0xff]  ;;  %v11233_v12 = vld [vmem:[#allocation150_spill] sm:$0xff] }
 0x5a9   : > { %5940 = vmatpush.msra.mxu3 %v11169_v52  ;;  %5907 = vmatmul.f32.vlgmr.msra.gmra.mxu2 %v9366_v63  ;;  %v11224_v52 = vld [vmem:[#allocation201_spill] sm:$0xff] }
 0x5aa   : > { %6000 = vmatpush.msrb.mxu1 %v11177_v40  ;;  %6092 = vmatpush.msrb.mxu2 %v11178_v14  ;;  %v11234_v40 = vld [vmem:[#allocation233_spill] sm:$0xff]  ;;  %v11235_v14 = vld [vmem:[#allocation208_spill] sm:$0xff] }
 0x5ab   : > { %5790 = vmatpush.msra.mxu0 %v11179_v0  ;;  %5942 = vmatpush.msra.mxu3 %v11172_v1  ;;  %v11227_v1 = vld [vmem:[#allocation191_spill] sm:$0xff]  ;;  %v11236_v0 = vld [vmem:[#allocation153_spill] sm:$0xff] }
 0x5ac   : > { %5944 = vmatmul.f32.vlgmr.msra.gmra.mxu3 %v9366_v63  ;;  %6006 = vmatpush.msrb.mxu1 %v11180_v18  ;;  %v11237_v18 = vld [vmem:[#allocation237_spill] sm:$0xff] }
 0x5ad   : > { %6095 = vmatpush.msrb.mxu2 %v11181_v22  ;;  %6145 = vmatpush.msrb.mxu3 %v11182_v19  ;;  %v11238_v22 = vld [vmem:[#allocation215_spill] sm:$0xff] }
 0x5ae   : > { %5793 = vmatpush.msra.mxu0 %v11183_v35  ;;  %6012 = vmatpush.msrb.mxu1 %v11184_v34  ;;  %v11241_v35 = vld [vmem:[#allocation219_spill] sm:$0xff] }
 0x5af   : > { %6098 = vmatpush.msrb.mxu2 %v11185_v17  ;;  %6147 = vmatpush.msrb.mxu3 %v11186_v2  ;;  %v11242_v34 = vld [vmem:[#allocation159_spill] sm:$0xff]  ;;  %v11243_v17 = vld [vmem:[#allocation245_spill] sm:$0xff] }
 0x5b0   : > { %5796 = vmatpush.msra.mxu0 %v11187_v3  ;;  %6018 = vmatpush.msrb.mxu1 %v11188_v16  ;;  %v11245_v3 = vld [vmem:[#allocation163_spill] sm:$0xff]  ;;  %v11246_v16 = vld [vmem:[#allocation249_spill] sm:$0xff] }
 0x5b1   : > { %5799 = vmatmul.f32.vlgmr.msra.gmra.mxu0 %v9373_v24  ;;  %6101 = vmatpush.msrb.mxu2 %v11189_v50  ;;  %v11247_v50 = vld [vmem:[#allocation228_spill] sm:$0xff] }
 0x5b2   : > { %5949 = vmatpush.msrb.mxu0 %v11182_v19  ;;  %6149 = vmatpush.msrb.mxu3 %v11190_v47 }
 0x5b3   : > { %6024 = vmatpush.msrb.mxu1 %v11191_v55  ;;  %6104 = vmatpush.msrb.mxu2 %v11192_v20  ;;  %v11249_v55 = vld [vmem:[#allocation253_spill] sm:$0xff]  ;;  %v11250_v20 = vld [vmem:[#allocation232_spill] sm:$0xff] }
 0x5b4   : > { %5951 = vmatpush.msrb.mxu0 %v11186_v2  ;;  %6151 = vmatpush.msrb.mxu3 %v11193_v32 }
 0x5b5   : > { %6030 = vmatpush.msrb.mxu1 %v11194_v49  ;;  %6107 = vmatpush.msrb.mxu2 %v11195_v48  ;;  %v11252_v49 = vld [vmem:[#allocation256_spill] sm:$0xff] }
 0x5b6   : > { %5953 = vmatpush.msrb.mxu0 %v11190_v47  ;;  %6153 = vmatpush.msrb.mxu3 %v11196_v46  ;;  %v11253_v48 = vld [vmem:[#allocation236_spill] sm:$0xff] }
 0x5b7   : > { %6036 = vmatpush.msrb.mxu1 %v11197_v57  ;;  %6110 = vmatpush.msrb.mxu2 %v11198_v10  ;;  %v11255_v57 = vld [vmem:[#allocation260_spill] sm:$0xff] }
 0x5b8   : > { %5955 = vmatpush.msrb.mxu0 %v11193_v32  ;;  %6155 = vmatpush.msrb.mxu3 %v11199_v23  ;;  %v11256_v10 = vld [vmem:[#allocation240_spill] sm:$0xff] }
 0x5b9   : > { %6042 = vmatpush.msrb.mxu1 %v11200_v42  ;;  %6113 = vmatpush.msrb.mxu2 %v11201_v36  ;;  %v11258_v42 = vld [vmem:[#allocation262_spill] sm:$0xff]  ;;  %v11259_v36 = vld [vmem:[#allocation244_spill] sm:$0xff] }
 0x5ba   : > { %5957 = vmatpush.msrb.mxu0 %v11196_v46  ;;  %6157 = vmatpush.msrb.mxu3 %v11202_v31 }
 0x5bb   : > { %6048 = vmatpush.msrb.mxu1 %v11203_v33  ;;  %6116 = vmatpush.msrb.mxu2 %v11204_v39  ;;  %v11261_v33 = vld [vmem:[#allocation265_spill] sm:$0xff]  ;;  %v11262_v39 = vld [vmem:[#allocation248_spill] sm:$0xff] }
 0x5bc   : > { %5959 = vmatpush.msrb.mxu0 %v11199_v23  ;;  %6159 = vmatpush.msrb.mxu3 %v11205_v7 }
 0x5bd   : > { %6054 = vmatpush.msrb.mxu1 %v11206_v56  ;;  %6119 = vmatpush.msrb.mxu2 %v11207_v61  ;;  %v11264_v56 = vld [vmem:[#allocation266_spill] sm:$0xff]  ;;  %v11265_v61 = vld [vmem:[#allocation252_spill] sm:$0xff] }
 0x5be   : > { %5961 = vmatpush.msrb.mxu0 %v11202_v31  ;;  %6161 = vmatpush.msrb.mxu3 %v11208_v11 }
 0x5bf   : > { %6060 = vmatpush.msrb.mxu1 %v11209_v60  ;;  %6122 = vmatpush.msrb.mxu2 %v11210_v45  ;;  %v11267_v60 = vld [vmem:[#allocation268_spill] sm:$0xff]  ;;  %v11268_v45 = vld [vmem:[#allocation258_spill] sm:$0xff] }
 0x5c0   : > { %5963 = vmatpush.msrb.mxu0 %v11205_v7  ;;  %6163 = vmatpush.msrb.mxu3 %v11211_v59 }
 0x5c1   : > { %6066 = vmatpush.msrb.mxu1 %v11212_v58  ;;  %6125 = vmatpush.msrb.mxu2 %v11213_v44  ;;  %v11270_v58 = vld [vmem:[#allocation269_spill] sm:$0xff]  ;;  %v11271_v44 = vld [vmem:[#allocation207_spill] sm:$0xff] }
 0x5c2   : > { %5965 = vmatpush.msrb.mxu0 %v11208_v11  ;;  %6165 = vmatpush.msrb.mxu3 %v11214_v53 }
 0x5c3   : > { %6072 = vmatpush.msrb.mxu1 %v11215_v6  ;;  %6128 = vmatpush.msrb.mxu2 %v11216_v9  ;;  %v11273_v6 = vld [vmem:[#allocation270_spill] sm:$0xff] }
 0x5c4   : > { %5967 = vmatpush.msrb.mxu0 %v11211_v59  ;;  %6167 = vmatpush.msrb.mxu3 %v11217_v25  ;;  %v11274_v9 = vld [vmem:[#allocation214_spill] sm:$0xff] }
 0x5c5   : > { %6078 = vmatpush.msrb.mxu1 %v11218_v27  ;;  %6131 = vmatpush.msrb.mxu2 %v11219_v13  ;;  %v11277_v27 = vld [vmem:[#allocation210_spill] sm:$0xff]  ;;  %v11278_v13 = vld [vmem:[#allocation220_spill] sm:$0xff] }
 0x5c6   : > { %5969 = vmatpush.msrb.mxu0 %v11214_v53  ;;  %6169 = vmatpush.msrb.mxu3 %v11220_v51 }
 0x5c7   : > { %6084 = vmatpush.msrb.mxu1 %v11221_v5  ;;  %6134 = vmatpush.msrb.mxu2 %v11222_v29  ;;  %v11280_v5 = vld [vmem:[#allocation225_spill] sm:$0xff]  ;;  %v11281_v29 = vld [vmem:[#allocation206_spill] sm:$0xff] }
 0x5c8   : > { %5971 = vmatpush.msrb.mxu0 %v11217_v25  ;;  %6171 = vmatpush.msrb.mxu3 %v11223_v26 }
 0x5c9   : > { %6086 = vmatmul.f32.vlgmr.msrb.gmra.mxu1 %v9364_v41  ;;  %6137 = vmatpush.msrb.mxu2 %v11224_v52  ;;  %v11283_v52 = vld [vmem:[#allocation211_spill] sm:$0xff] }
 0x5ca   : > { %6253 = vmatpush.msra.mxu1 %v11182_v19  ;;  %5973 = vmatpush.msrb.mxu0 %v11220_v51  ;;  %v11239_v19 = vld [vmem:[#allocation156_spill] sm:$0xff] }
 0x5cb   : > { %6173 = vmatpush.msrb.mxu3 %v11225_v8  ;;  %6140 = vmatmul.f32.vlgmr.msrb.gmra.mxu2 %v9370_v28  ;;  %v11230_v28 = vld [vmem:[#allocation202_spill] sm:$0xff] }
 0x5cc   : > { %6255 = vmatpush.msra.mxu1 %v11186_v2  ;;  %6290 = vmatpush.msra.mxu2 %v11226_v38  ;;  %v11244_v2 = vld [vmem:[#allocation223_spill] sm:$0xff] }
 0x5cd   : > { %5975 = vmatpush.msrb.mxu0 %v11223_v26  ;;  %6175 = vmatpush.msrb.mxu3 %v11227_v1 }
 0x5ce   : > { %6179 = vmatmul.f32.vlgmr.msrb.gmra.mxu3 %v9378_v30  ;;  %6257 = vmatpush.msra.mxu1 %v11190_v47  ;;  %v11232_v30 = vld [vmem:[#allocation203_spill] sm:$0xff] }
 0x5cf   : > { %6292 = vmatpush.msra.mxu2 %v11228_v43  ;;  %6335 = vmatpush.msra.mxu3 %v11229_v54  ;;  %v11248_v47 = vld [vmem:[#allocation167_spill] sm:$0xff]  ;;  %v11289_v54 = vld [vmem:[#allocation222_spill] sm:$0xff] }
 0x5d0   : > { %5977 = vmatpush.msrb.mxu0 %v11225_v8  ;;  %6259 = vmatpush.msra.mxu1 %v11193_v32  ;;  %v11251_v32 = vld [vmem:[#allocation172_spill] sm:$0xff] }
 0x5d1   : > { %6294 = vmatpush.msra.mxu2 %v11230_v28  ;;  %6341 = vmatpush.msra.mxu3 %v11231_v62  ;;  %v11291_v62 = vld [vmem:[#allocation227_spill] sm:$0xff] }
 0x5d2   : > { %5979 = vmatpush.msrb.mxu0 %v11227_v1  ;;  %6261 = vmatpush.msra.mxu1 %v11196_v46  ;;  %v11254_v46 = vld [vmem:[#allocation176_spill] sm:$0xff] }
 0x5d3   : > { %5985 = vmatmul.f32.vlgmr.msrb.gmra.mxu0 %v9393_v4  ;;  %6296 = vmatpush.msra.mxu2 %v11232_v30  ;;  %v11240_v4 = vld [vmem:[#allocation241_spill] sm:$0xff] }
 0x5d4   : > { %6186 = vmatpush.msra.mxu0 %v11233_v12  ;;  %6347 = vmatpush.msra.mxu3 %v11234_v40  ;;  %v11293_v12 = vld [vmem:[#allocation231_spill] sm:$0xff]  ;;  %v11294_v40 = vld [vmem:[#allocation254_spill] sm:$0xff] }
 0x5d5   : > { %6263 = vmatpush.msra.mxu1 %v11199_v23  ;;  %6298 = vmatpush.msra.mxu2 %v11235_v14  ;;  %v11257_v23 = vld [vmem:[#allocation177_spill] sm:$0xff] }
 0x5d6   : > { %6190 = vmatpush.msra.mxu0 %v11236_v0  ;;  %6353 = vmatpush.msra.mxu3 %v11237_v18  ;;  %v11296_v0 = vld [vmem:[#allocation257_spill] sm:$0xff]  ;;  %v11297_v18 = vld [vmem:[#allocation239_spill] sm:$0xff] }
 0x5d7   : > { %6265 = vmatpush.msra.mxu1 %v11202_v31  ;;  %6300 = vmatpush.msra.mxu2 %v11238_v22  ;;  %v11260_v31 = vld [vmem:[#allocation181_spill] sm:$0xff] }
 0x5d8   : > { %6194 = vmatpush.msra.mxu0 %v11239_v19  ;;  %6359 = vmatpush.msra.mxu3 %v11240_v4  ;;  %v11299_v19 = vld [vmem:[#allocation243_spill] sm:$0xff]  ;;  %v11300_v4 = vld [vmem:[#allocation264_spill] sm:$0xff] }
 0x5d9   : > { %6267 = vmatpush.msra.mxu1 %v11205_v7  ;;  %6302 = vmatpush.msra.mxu2 %v11241_v35  ;;  %v11263_v7 = vld [vmem:[#allocation187_spill] sm:$0xff] }
 0x5da   : > { %6198 = vmatpush.msra.mxu0 %v11242_v34  ;;  %6365 = vmatpush.msra.mxu3 %v11243_v17  ;;  %v11302_v34 = vld [vmem:[#allocation267_spill] sm:$0xff] }
 0x5db   : > { %6269 = vmatpush.msra.mxu1 %v11208_v11  ;;  %6304 = vmatpush.msra.mxu2 %v11244_v2  ;;  %v11266_v11 = vld [vmem:[#allocation192_spill] sm:$0xff]  ;;  %v11303_v17 = vld [vmem:[#allocation251_spill] sm:$0xff] }
 0x5dc   : > { %6202 = vmatpush.msra.mxu0 %v11245_v3  ;;  %6371 = vmatpush.msra.mxu3 %v11246_v16  ;;  %v11305_v3 = vld [vmem:[#allocation259_spill] sm:$0xff] }
 0x5dd   : > { %6271 = vmatpush.msra.mxu1 %v11211_v59  ;;  %6306 = vmatpush.msra.mxu2 %v11247_v50  ;;  %v11269_v59 = vld [vmem:[#allocation195_spill] sm:$0xff] }
 0x5de   : > { %6206 = vmatpush.msra.mxu0 %v11248_v47  ;;  %6377 = vmatpush.msra.mxu3 %v11249_v55  ;;  %v11306_v16 = vld [vmem:[#allocation263_spill] sm:$0xff] }
 0x5df   : > { %6273 = vmatpush.msra.mxu1 %v11214_v53  ;;  %6308 = vmatpush.msra.mxu2 %v11250_v20  ;;  %v11272_v53 = vld [vmem:[#allocation200_spill] sm:$0xff] }
 0x5e0   : > { %6210 = vmatpush.msra.mxu0 %v11251_v32  ;;  %6383 = vmatpush.msra.mxu3 %v11252_v49 }
 0x5e1   : > { %6275 = vmatpush.msra.mxu1 %v11217_v25  ;;  %6310 = vmatpush.msra.mxu2 %v11253_v48  ;;  %v11275_v25 = vld [vmem:[#allocation205_spill] sm:$0xff] }
 0x5e2   : > { %6214 = vmatpush.msra.mxu0 %v11254_v46  ;;  %6389 = vmatpush.msra.mxu3 %v11255_v57 }
 0x5e3   : > { %6277 = vmatpush.msra.mxu1 %v11220_v51  ;;  %6312 = vmatpush.msra.mxu2 %v11256_v10  ;;  %v11279_v51 = vld [vmem:[#allocation199_spill] sm:$0xff] }
 0x5e4   : > { %6218 = vmatpush.msra.mxu0 %v11257_v23  ;;  %6395 = vmatpush.msra.mxu3 %v11258_v42 }
 0x5e5   : > { %6279 = vmatpush.msra.mxu1 %v11223_v26  ;;  %6314 = vmatpush.msra.mxu2 %v11259_v36  ;;  %v11282_v26 = vld [vmem:[#allocation230_spill] sm:$0xff] }
 0x5e6   : > { %6222 = vmatpush.msra.mxu0 %v11260_v31  ;;  %6401 = vmatpush.msra.mxu3 %v11261_v33 }
 0x5e7   : > { %6281 = vmatpush.msra.mxu1 %v11225_v8  ;;  %6316 = vmatpush.msra.mxu2 %v11262_v39  ;;  %v11285_v8 = vld [vmem:[#allocation212_spill] sm:$0xff] }
 0x5e8   : > { %6226 = vmatpush.msra.mxu0 %v11263_v7  ;;  %6407 = vmatpush.msra.mxu3 %v11264_v56 }
 0x5e9   : > { %6283 = vmatpush.msra.mxu1 %v11227_v1  ;;  %6318 = vmatpush.msra.mxu2 %v11265_v61  ;;  %v11287_v1 = vld [vmem:[#allocation216_spill] sm:$0xff] }
 0x5ea   : > { %6230 = vmatpush.msra.mxu0 %v11266_v11  ;;  %6413 = vmatpush.msra.mxu3 %v11267_v60 }
 0x5eb   : > { %6285 = vmatmul.f32.vlgmr.msra.gmra.mxu1 %v9364_v41  ;;  %6320 = vmatpush.msra.mxu2 %v11268_v45 }
 0x5ec   : > { %6486 = vmatpush.msrb.mxu1 %v11226_v38  ;;  %6234 = vmatpush.msra.mxu0 %v11269_v59 }
 0x5ed   : > { %6419 = vmatpush.msra.mxu3 %v11270_v58  ;;  %6326 = vmatmul.f32.vlgmr.msra.gmra.mxu2 %v9401_v15  ;;  %v11276_v15 = vld [vmem:[#allocation218_spill] sm:$0xff] }
 0x5ee   : > { %6488 = vmatpush.msrb.mxu1 %v11228_v43  ;;  %6527 = vmatpush.msrb.mxu2 %v11271_v44 }
 0x5ef   : > { %6238 = vmatpush.msra.mxu0 %v11272_v53  ;;  %6425 = vmatpush.msra.mxu3 %v11273_v6 }
 0x5f0   : > { %6427 = vmatmul.f32.vlgmr.msra.gmra.mxu3 %v9366_v63  ;;  %6490 = vmatpush.msrb.mxu1 %v11230_v28 }
 0x5f1   : > { %6531 = vmatpush.msrb.mxu2 %v11274_v9  ;;  %6594 = vmatpush.msrb.mxu3 %v11226_v38  ;;  %v11286_v38 = vld [vmem:[#allocation238_spill] sm:$0xff] }
 0x5f2   : > { %6242 = vmatpush.msra.mxu0 %v11275_v25  ;;  %6492 = vmatpush.msrb.mxu1 %v11232_v30 }
 0x5f3   : > { %6535 = vmatpush.msrb.mxu2 %v11276_v15  ;;  %6596 = vmatpush.msrb.mxu3 %v11228_v43  ;;  %v11288_v43 = vld [vmem:[#allocation242_spill] sm:$0xff] }
 0x5f4   : > { %6246 = vmatpush.msra.mxu0 %v11277_v27  ;;  %6494 = vmatpush.msrb.mxu1 %v11235_v14 }
 0x5f5   : > { %6248 = vmatmul.f32.vlgmr.msra.gmra.mxu0 %v9364_v41  ;;  %6539 = vmatpush.msrb.mxu2 %v11278_v13  ;;  %v11284_v41 = vld [vmem:[#allocation234_spill] sm:$0xff] }
 0x5f6   : > { %6433 = vmatpush.msrb.mxu0 %v11279_v51  ;;  %6598 = vmatpush.msrb.mxu3 %v11230_v28  ;;  %v11290_v28 = vld [vmem:[#allocation246_spill] sm:$0xff] }
 0x5f7   : > { %6496 = vmatpush.msrb.mxu1 %v11238_v22  ;;  %6543 = vmatpush.msrb.mxu2 %v11280_v5 }
 0x5f8   : > { %6436 = vmatpush.msrb.mxu0 %v11281_v29  ;;  %6600 = vmatpush.msrb.mxu3 %v11232_v30  ;;  %v11292_v30 = vld [vmem:[#allocation250_spill] sm:$0xff] }
 0x5f9   : > { %6498 = vmatpush.msrb.mxu1 %v11241_v35  ;;  %6547 = vmatpush.msrb.mxu2 %v11282_v26 }
 0x5fa   : > { %6439 = vmatpush.msrb.mxu0 %v11283_v52  ;;  %6602 = vmatpush.msrb.mxu3 %v11235_v14  ;;  %v11295_v14 = vld [vmem:[#allocation235_spill] sm:$0xff] }
 0x5fb   : > { %6500 = vmatpush.msrb.mxu1 %v11244_v2  ;;  %6551 = vmatpush.msrb.mxu2 %v11284_v41 }
 0x5fc   : > { %6442 = vmatpush.msrb.mxu0 %v11285_v8  ;;  %6604 = vmatpush.msrb.mxu3 %v11238_v22  ;;  %v11298_v22 = vld [vmem:[#allocation261_spill] sm:$0xff] }
 0x5fd   : > { %6502 = vmatpush.msrb.mxu1 %v11247_v50  ;;  %6555 = vmatpush.msrb.mxu2 %v11286_v38 }
 0x5fe   : > { %6445 = vmatpush.msrb.mxu0 %v11287_v1  ;;  %6606 = vmatpush.msrb.mxu3 %v11241_v35  ;;  %v11301_v35 = vld [vmem:[#allocation247_spill] sm:$0xff] }
 0x5ff   : > { %6504 = vmatpush.msrb.mxu1 %v11250_v20  ;;  %6559 = vmatpush.msrb.mxu2 %v11288_v43 }
 0x600   : > { %6448 = vmatpush.msrb.mxu0 %v11289_v54  ;;  %6608 = vmatpush.msrb.mxu3 %v11244_v2  ;;  %v11304_v2 = vld [vmem:[#allocation255_spill] sm:$0xff] }
 0x601   : > { %6506 = vmatpush.msrb.mxu1 %v11253_v48  ;;  %6563 = vmatpush.msrb.mxu2 %v11290_v28 }
 0x602   : > { %6451 = vmatpush.msrb.mxu0 %v11291_v62  ;;  %6610 = vmatpush.msrb.mxu3 %v11247_v50  ;;  %v5405_v50 = vpop.f32.mrf.mxu1 }
 0x603   : > { %6508 = vmatpush.msrb.mxu1 %v11256_v10  ;;  %6567 = vmatpush.msrb.mxu2 %v11292_v30 }
 0x604   : > { %6454 = vmatpush.msrb.mxu0 %v11293_v12  ;;  %6612 = vmatpush.msrb.mxu3 %v11250_v20 }
 0x605   : > { %6510 = vmatpush.msrb.mxu1 %v11259_v36  ;;  %6571 = vmatpush.msrb.mxu2 %v11294_v40 }
 0x606   : > { %6457 = vmatpush.msrb.mxu0 %v11295_v14  ;;  %6614 = vmatpush.msrb.mxu3 %v11253_v48 }
 0x607   : > { %6512 = vmatpush.msrb.mxu1 %v11262_v39  ;;  %6575 = vmatpush.msrb.mxu2 %v11296_v0 }
 0x608   : > { %6460 = vmatpush.msrb.mxu0 %v11297_v18  ;;  %6616 = vmatpush.msrb.mxu3 %v11256_v10 }
 0x609   : > { %6514 = vmatpush.msrb.mxu1 %v11265_v61  ;;  %6579 = vmatpush.msrb.mxu2 %v11298_v22  ;;  %v5459_v55 = vpop.f32.mrf.mxu2 }
 0x60a   : > { %6463 = vmatpush.msrb.mxu0 %v11299_v19  ;;  %6618 = vmatpush.msrb.mxu3 %v11259_v36  ;;  %v5604_v48 = vpop.f32.mrf.mxu1  ;;  %v6656_v19 = vld [vmem:[%s9727_s8] sm:$0x3] }
 0x60b   : > { %6516 = vmatpush.msrb.mxu1 %v11268_v45  ;;  %6583 = vmatpush.msrb.mxu2 %v11300_v4  ;;  %v5498_v49 = vpop.f32.mrf.mxu3 }
 0x60c   : > { %6466 = vmatpush.msrb.mxu0 %v11301_v35  ;;  %6620 = vmatpush.msrb.mxu3 %v11262_v39 }
 0x60d   : > { %6520 = vmatmul.f32.vlgmr.msrb.gmra.mxu1 %v9381_v37  ;;  %6587 = vmatpush.msrb.mxu2 %v11302_v34  ;;  %v5304_v37 = vpop.f32.mrf.mxu0  ;;  %v6664_v34 = vld [vmem:[%s9728_s9] sm:$0x3] }
 0x60e   : > { %6469 = vmatpush.msrb.mxu0 %v11303_v17  ;;  %6622 = vmatpush.msrb.mxu3 %v11265_v61  ;;  %v5305_v47 = vadd.f32 1e-05, %v5304_v37  ;;  %v6659_v17 = vperm.slane %v6656_v19, 1 }
 0x60f   : > { %6589 = vmatmul.f32.vlgmr.msrb.gmra.mxu2 %v9366_v63 }
 0x610   : > { %6472 = vmatpush.msrb.mxu0 %v11304_v2  ;;  %6624 = vmatpush.msrb.mxu3 %v11268_v45  ;;  %v5406_v32 = vadd.f32 %v5405_v50, %v5305_v47  ;;  %v6658_v50 = vperm.slane %v6656_v19, 0  ;;  %v6660_v47 = vrot.slane %v6659_v17, 4 }
 0x611   : > { %6626 = vmatmul.f32.vlgmr.msrb.gmra.mxu3 %v9366_v63 }
 0x612   : > { %6475 = vmatpush.msrb.mxu0 %v11305_v3  ;;  %v5460_v46 = vadd.f32 %v5459_v55, %v5406_v32  ;;  %v5645_v10 = vpop.f32.mrf.mxu2  ;;  %v6667_v3 = vperm.slane %v6664_v34, 1  ;;  %v6666_v32 = vperm.slane %v6664_v34, 0 }
 0x614   : > { %6478 = vmatpush.msrb.mxu0 %v11306_v16  ;;  %v5499_v23 = vadd.f32 %v5498_v49, %v5460_v46  ;;  %v6668_v49 = vrot.slane %v6667_v3, 4 }
 0x615   : > { %6481 = vmatmul.f32.vlgmr.msrb.gmra.mxu0 %v9373_v24  ;;  %v5567_v20 = vpop.f32.mrf.mxu0  ;;  %v5746_v42 = vpop.f32.mrf.mxu3 }
 0x616   : > { %v5568_v36 = vadd.f32 %v5567_v20, %v5499_v23  ;;  %v6669_v23 = vsel %vm1844_vm0, %v6666_v32, %v6668_v49 }
 0x618   : > { %v5605_v39 = vadd.f32 %v5604_v48, %v5568_v36 }
 0x61a   : > { %v5646_v61 = vadd.f32 %v5645_v10, %v5605_v39 }
 0x61c   : > { %v5747_v45 = vadd.f32 %v5746_v42, %v5646_v61 }
 0x624   : > { %v5839_v63 = vpop.f32.mrf.mxu1 }
 0x62c   : > { %v5908_v33 = vpop.f32.mrf.mxu2 }
 0x62e   : > { %v5800_v57 = vpop.f32.mrf.mxu0 }
 0x62f   : > { %v5945_v24 = vpop.f32.mrf.mxu3  ;;  %v5801_v58 = vadd.f32 %v5800_v57, %v5747_v45  ;;  %v6661_v57 = vsel %vm1844_vm0, %v6658_v50, %v6660_v47 }
 0x631   : > { %v5840_v9 = vadd.f32 %v5839_v63, %v5801_v58 }
 0x633   : > { %v5909_v27 = vadd.f32 %v5908_v33, %v5840_v9 }
 0x635   : > { %v5946_v5 = vadd.f32 %v5945_v24, %v5909_v27 }
 0x637   : > { %6871 = vrsqrt.f32 %v5946_v5  ;;  %vm6636_vm13 = vweird.f32 %v5946_v5 }
 0x63d   : > { %v6872_v54 = vpop.eup %6871 }
 0x63e   : > { %v6631_v12 = vmul.f32 %v6872_v54, %v5946_v5  ;;  %vm6637_vm10 = vweird.f32 %v6872_v54 }
 0x63f   : > { %vm6638_vm14 = vmor %vm6636_vm13, %vm6637_vm10 }
 0x640   : > { %v6632_v40 = vmul.f32 %v6872_v54, %v6631_v12 }
 0x642   : > { %v6633_v0 = vmul.f32 0.5, %v6632_v40 }
 0x644   : > { %v6634_v4 = vsub.f32 1.5, %v6633_v0 }
 0x646   : > { %v6087_v56 = vpop.f32.mrf.mxu1  ;;  %v6635_v16 = vmul.f32 %v6872_v54, %v6634_v4 }
 0x648   : > { %v6639_v48 = vsel %vm6638_vm14, %v6872_v54, %v6635_v16 }
 0x64e   : > { %v6141_v60 = vpop.f32.mrf.mxu2 }
 0x650   : > { %v5986_v31 = vpop.f32.mrf.mxu0 }
 0x651   : > { %v5987_v7 = vadd.f32 1e-05, %v5986_v31  ;;  %v6180_v44 = vpop.f32.mrf.mxu3 }
 0x653   : > { %v6088_v11 = vadd.f32 %v6087_v56, %v5987_v7 }
 0x655   : > { %v6142_v59 = vadd.f32 %v6141_v60, %v6088_v11 }
 0x657   : > { %v6181_v6 = vadd.f32 %v6180_v44, %v6142_v59 }
 0x668   : > { %v6286_v15 = vpop.f32.mrf.mxu1 }
 0x670   : > { %v6327_v51 = vpop.f32.mrf.mxu2 }
 0x672   : > { %v6249_v53 = vpop.f32.mrf.mxu0 }
 0x673   : > { %v6250_v25 = vadd.f32 %v6249_v53, %v6181_v6  ;;  %v6428_v26 = vpop.f32.mrf.mxu3 }
 0x675   : > { %v6287_v13 = vadd.f32 %v6286_v15, %v6250_v25 }
 0x677   : > { %v6328_v29 = vadd.f32 %v6327_v51, %v6287_v13 }
 0x679   : > { %v6429_v52 = vadd.f32 %v6428_v26, %v6328_v29 }
 0x68a   : > { %v6521_v38 = vpop.f32.mrf.mxu1 }
 0x692   : > { %v6482_v41 = vpop.f32.mrf.mxu0  ;;  %v6590_v43 = vpop.f32.mrf.mxu2 }
 0x693   : > { %v6483_v8 = vadd.f32 %v6482_v41, %v6429_v52 }
 0x694   : > { %v6627_v62 = vpop.f32.mrf.mxu3 }
 0x695   : > { %v6522_v1 = vadd.f32 %v6521_v38, %v6483_v8 }
 0x697   : > { %v6591_v28 = vadd.f32 %v6590_v43, %v6522_v1 }
 0x699   : > { %v6628_v30 = vadd.f32 %v6627_v62, %v6591_v28 }
 0x69b   : > { %6873 = vrsqrt.f32 %v6628_v30  ;;  %vm6646_vm11 = vweird.f32 %v6628_v30 }
 0x6a1   : > { %v6874_v14 = vpop.eup %6873 }
 0x6a2   : > { %v6641_v18 = vmul.f32 %v6874_v14, %v6628_v30  ;;  %vm6647_vm9 = vweird.f32 %v6874_v14 }
 0x6a3   : > { %vm6648_vm12 = vmor %vm6646_vm11, %vm6647_vm9 }
 0x6a4   : > { %v6642_v22 = vmul.f32 %v6874_v14, %v6641_v18 }
 0x6a6   : > { %v6643_v35 = vmul.f32 0.5, %v6642_v22 }
 0x6a8   : > { %v6644_v2 = vsub.f32 1.5, %v6643_v35 }
 0x6aa   : > { %v6645_v37 = vmul.f32 %v6874_v14, %v6644_v2 }
 0x6ac   : > { %v6649_v55 = vsel %vm6648_vm12, %v6874_v14, %v6645_v37 }
 0x6ad   : > { %v6652_v20 = vrot.slane %v6649_v55, 4 }
 0x6af   : > { %v6653_v46 = vsel %vm1844_vm0, %v6639_v48, %v6652_v20 }
 0x6b0   : > { %v6655_v10 = vmul.f32 %v6653_v46, %v9360_v21 }
 0x6b2   : > { %v6663_v42 = vmul.f32 %v6661_v57, %v6655_v10 }
 0x6b4   : > { %v6671_v63 = vadd.f32 %v6669_v23, %v6663_v42 }
 0x6b6   : > { %6672 = vst [vmem:[%s394_s16] sm:$0xff] %v6671_v63 }
 0x6b7   : > { %6932 = shalt.err (!%p6929_p9)
}
 0x6b8   : > { %6801 = dma.vmem_to_hbm [thread:$0]  (%p7088_p4), %s6690_s11, 128, %s6692_s12, %s6674_s20  }
 0x6b9 PF: > { %p6813_p10 = scmp.ge.s32.totalorder %s6987_s18, 2  ;;  %s6703_s22 = sand.u32 1, %s6967_s13  }
 0x6ba   : > { %s6704_s16 = scalar_lea.sflag [#allocation4], %s6703_s22 }
 0x6bb   : > { %p6808_p11 = pnand %p6813_p10, %p7095_p8 }
 0x6bd   : > { %p6809_p12 = pneg %p6808_p11 }
 0x6bf   : > { %6962 = dma.done.wait (%p6809_p12), %s6704_s16, 128  }
 0x6c0   : > { %6964 = vsyncadd (%p6809_p12), %s6704_s16, 4294967168  ;;  %s24_s18 = sadd.s32 1, %s6987_s18   ;;  %s11307_s13 = smov %s6971_s14 }
 0x6c1   : > { %p21_p13 = scmp.ge.s32.totalorder %s24_s18, 4   ;;  %s11308_s14 = smov %s6975_s15 }
 0x6c2   : > { %s11309_s15 = smov %s7101_s26  ;;  %s11310_s16 = smov %s6983_s17 }
 0x6c3   : > { %s11311_s17 = smov %s11313_s21  ;;  %23 = sbr.rel (!%p21_p13) target bundleno = 7 (0x7), region = 100 }
 0x6c8   :  { %6710 = vsyncpa [#allocation3], 1 }
 0x6c9   :  { %6712 = vsyncpa [#allocation3 + $0x1], 1 }
 0x6ca   :  { %6713 = vsyncpa [#allocation4], 1 }
 0x6cb   :  { %6715 = vsyncpa [#allocation4 + $0x1], 1 }

// kernel: tpu_custom_call.1
= control target key start
LH: loop header
LB: loop body
LE: loop exit
PB: predicated region body
PF: predicated region fallthrough
CT: control target
= control target key end

     0   :  { %s9719_s0 = inlined_call_operand.vmem [shape: f32[2,4,256], index: 0, kind: input, shape index: {}]   ;;  %s9720_s1 = inlined_call_operand.hbm [shape: f32[256,256], index: 1, kind: input, shape index: {}]   ;;  %s9721_s2 = inlined_call_operand.vmem [shape: f32[8,4], index: 2, kind: input, shape index: {}]   ;;  %s9722_s3 = inlined_call_operand.vmem [shape: f32[8,1], index: 3, kind: input, shape index: {}]   ;;  %s9723_s4 = inlined_call_operand.vmem [shape: f32[4,8], index: 4, kind: input, shape index: {}]   ;;  %s9724_s5 = inlined_call_operand.vmem [shape: f32[4,1], index: 5, kind: input, shape index: {}]   ;;  %s9725_s6 = inlined_call_operand.vmem [shape: f32[1,256], index: 6, kind: input, shape index: {}]   ;;  %s9726_s7 = inlined_call_operand.vmem [shape: f32[1,256], index: 7, kind: input, shape index: {}]   ;;  %s9727_s8 = inlined_call_operand.vmem [shape: f32[1,256], index: 8, kind: input, shape index: {}]   ;;  %s9728_s9 = inlined_call_operand.vmem [shape: f32[1,256], index: 9, kind: input, shape index: {}]   ;;  %s9729_s10 = inlined_call_operand.hbm [shape: f32[2,4,256], index: 10, kind: output, shape index: {}]  }
   0x1   :  { %10330 = sst [smem:[#allocation271_spill]] %s9719_s0 }
   0x2   :  { %15 = vsyncpa [#allocation3], 0 }
   0x3   :  { %16 = vsyncpa [#allocation4], 0 }
   0x4   :  { %18 = vsyncpa [#allocation4 + $0x1], 0  ;;  %s7048_s13 = smov 0   ;;  %s7050_s14 = smov 0  }
   0x5   :  { %s7052_s15 = smov 0   ;;  %s7054_s16 = smov 0  }
   0x6   :  { %s7056_s17 = smov 0   ;;  %s7058_s18 = smov 0  }
   0x7 LB: > { %s6780_s19 = sadd.s32 4294967295, %s6987_s18   ;;  %s6781_s20 = sadd.s32 4294967294, %s6987_s18   ;;  %s6987_s18 = sphi %s7058_s18, %s24_s18   ;;  %s6983_s17 = sphi %s7056_s17, %s11311_s17   ;;  %s6979_s16 = sphi %s7054_s16, %s11310_s16   ;;  %s6975_s15 = sphi %s7052_s15, %s11309_s15   ;;  %s6971_s14 = sphi %s7050_s14, %s11308_s14   ;;  %s6967_s13 = sphi %s7048_s13, %s11307_s13  }
   0x8   : > { %s36_s21 = sadd.s32 1, %s6983_s17  ;;  %s262_s22 = sadd.s32 1, %s6975_s15 }
   0x9   : > { %p38_p0 = scmp.ge.s32.totalorder %s36_s21, 2  ;;  %p272_p1 = scmp.ne.s32.totalorder %s6975_s15, %s6971_s14 }
   0xa   : > { %p273_p2 = scmp.eq.s32.totalorder %s6780_s19, 1  ;;  %p278_p3 = scmp.ne.s32.totalorder %s6971_s14, %s6967_s13 }
   0xb   : > { %s11313_s21 = smov (%p38_p0, %s36_s21), 0  ;;  %p279_p5 = scmp.eq.s32.totalorder %s6781_s20, 1 }
   0xc   : > { %p7088_p4 = por %p273_p2, %p272_p1  ;;  %s257_s24 = ssub.s32 %s6983_s17, %s11313_s21 }
   0xd   : > { %p6782_p6 = scmp.ge.s32.totalorder %s6987_s18, 1  ;;  %p260_p7 = scmp.eq.s32.totalorder %s257_s24, 0 }
   0xe   : > { %p7095_p8 = por %p279_p5, %p278_p3  ;;  %p286_p9 = scmp.lt.s32.totalorder %s6987_s18, 3 }
   0xf   : > { %s7101_s26 = scalar_select %p260_p7, %s6975_s15, %s262_s22  }
  0x10   : > { %p287_p10 = pnand %p6782_p6, %p286_p9  ;;  %p6811_p11 = scmp.eq.s32.totalorder %s6780_s19, 0 }
  0x11   : > { %s297_s29 = sshll.u32 %s9720_s1, 4  ;;  %s6989_s30 = smov [#allocation2]   ;;  %s298_s29 = int_to_ptr.hbm [resolvable:$true] %s297_s29 }
  0x12   : > { %p6803_p12 = pneg %p287_p10  ;;  %s299_s11 = sshll.u32 %s6989_s30, 4  ;;  %s300_s11 = int_to_ptr.vmem [resolvable:$true] %s299_s11 }
  0x13   : > { %s6990_s12 = smov 256   ;;  %s6991_s20 = smov 16  }
  0x14   : > { %p6804_p13 = pnand %p6811_p11, %p6803_p12  ;;  %352 = sbr.rel (%p287_p10) target bundleno = 1721 (0x6b9), region = 60 }
  0x16   : > { %6806 = dma.hbm_to_vmem [thread:$0]  (!%p6804_p13), %s298_s29, 8192, %s300_s11, [#allocation3], %s6990_s12, %s6990_s12, %s6991_s20  }
  0x19   : > { %6958 = dma.done.wait (%p6811_p11), [#allocation3], 8192  }
  0x1a   : > { %6960 = vsyncadd (%p6811_p11), [#allocation3], 4294959104  ;;  %v437_v0 = vld [vmem:[#allocation2 + $0xf0] sm:$0xff]  ;;  %v435_v1 = vld [vmem:[#allocation2 + $0xe0] sm:$0xff]  ;;  %p396_p0 = scmp.lt.s32.totalorder %s6979_s16, 1  ;;  %s10363_s0 = sld [smem:[#allocation271_spill]] }
  0x1b   : > { %v433_v2 = vld [vmem:[#allocation2 + $0xd0] sm:$0xff]  ;;  %v7107_v3 = vand.u32 4294901760, %v437_v0  ;;  %v7109_v4 = vand.u32 4294901760, %v435_v1  ;;  %v431_v6 = vld [vmem:[#allocation2 + $0xc0] sm:$0xff]  ;;  %vm1844_vm0 = vcmask 1043456   ;;  %vm3272_vm2 = vcmask 31744  }
  0x1c   : > { %v7111_v5 = vand.u32 4294901760, %v433_v2  ;;  %v429_v7 = vld [vmem:[#allocation2 + $0xb0] sm:$0xff]  ;;  %v427_v8 = vld [vmem:[#allocation2 + $0xa0] sm:$0xff]  ;;  %v7113_v9 = vand.u32 4294901760, %v431_v6  ;;  %s7144_s19 = scalar_select %p396_p0, %s6979_s16, 1  ;;  %vm3581_vm8 = vcmask 64512  }
  0x1d   : > { %10333 = vst [vmem:[#allocation8_spill] sm:$0xff] %v7107_v3  ;;  %v7115_v10 = vand.u32 4294901760, %v429_v7  ;;  %v7117_v11 = vand.u32 4294901760, %v427_v8  ;;  %v425_v12 = vld [vmem:[#allocation2 + $0x90] sm:$0xff]  ;;  %v423_v13 = vld [vmem:[#allocation2 + $0x80] sm:$0xff]  ;;  %478 = vmatpush.msra.mxu0 %v7107_v3  ;;  %v7121_v14 = vsub.f32 %v437_v0, %v7107_v3  ;;  %v7124_v15 = vsub.f32 %v435_v1, %v7109_v4  ;;  %674 = vmatpush.msra.mxu3 %v7107_v3  ;;  %s6796_s27 = sshll.u32 %s6979_s16, 3 }
  0x1e   : > { %10334 = vst [vmem:[#allocation9_spill] sm:$0xff] %v7109_v4  ;;  %v7128_v16 = vsub.f32 %v433_v2, %v7111_v5  ;;  %v7130_v17 = vand.u32 4294901760, %v425_v12  ;;  %v421_v18 = vld [vmem:[#allocation2 + $0x70] sm:$0xff]  ;;  %v7133_v19 = vsub.f32 %v431_v6, %v7113_v9  ;;  %v7157_v25 = vand.u32 4294901760, %v423_v13  ;;  %v419_v26 = vld [vmem:[#allocation2 + $0x60] sm:$0xff]  ;;  %s6795_s22 = sshll.u32 %s7144_s19, 3  ;;  %s6687_s30 = scalar_lea.hbm %s9729_s10, %s6796_s27 }
  0x1f   : > { %10335 = vst [vmem:[#allocation10_spill] sm:$0xff] %v7111_v5  ;;  %v7136_v20 = vsub.f32 %v429_v7, %v7115_v10  ;;  %v7139_v21 = vsub.f32 %v427_v8, %v7117_v11  ;;  %480 = vmatpush.msra.mxu0 %v7109_v4  ;;  %621 = vmatpush.msra.mxu2 %v7121_v14  ;;  %v7149_v22 = vand.u32 4294901760, %v7121_v14  ;;  %v7152_v23 = vand.u32 4294901760, %v7124_v15  ;;  %v417_v34 = vld [vmem:[#allocation2 + $0x50] sm:$0xff]  ;;  %v415_v42 = vld [vmem:[#allocation2 + $0x40] sm:$0xff]  ;;  %s6691_s12 = sshll.u32 %s6687_s30, 4  ;;  %s6692_s12 = int_to_ptr.hbm [resolvable:$true] %s6691_s12 }
  0x20   : > { %10336 = vst [vmem:[#allocation11_spill] sm:$0xff] %v7113_v9  ;;  %v7155_v24 = vand.u32 4294901760, %v7128_v16  ;;  %676 = vmatpush.msra.mxu3 %v7109_v4  ;;  %v7161_v27 = vand.u32 4294901760, %v7133_v19  ;;  %v7163_v28 = vand.u32 4294901760, %v421_v18  ;;  %v7166_v29 = vsub.f32 %v425_v12, %v7130_v17  ;;  %s403_s28 = scalar_lea.vmem %s10363_s0, %s6795_s22  ;;  %v413_v48 = vld [vmem:[#allocation2 + $0x30] sm:$0xff]  ;;  %v411_v54 = vld [vmem:[#allocation2 + $0x20] sm:$0xff] }
  0x21   : > { %10337 = vst [vmem:[#allocation12_spill] sm:$0xff] %v7115_v10  ;;  %482 = vmatpush.msra.mxu0 %v7111_v5  ;;  %624 = vmatpush.msra.mxu2 %v7124_v15  ;;  %v521_v30 = vsub.f32 %v7121_v14, %v7149_v22  ;;  %v527_v31 = vsub.f32 %v7124_v15, %v7152_v23  ;;  %v7177_v33 = vand.u32 4294901760, %v7136_v20  ;;  %v7180_v35 = vand.u32 4294901760, %v419_v26  ;;  %v7236_v55 = vld [vmem:[%s403_s28] sm:$0xff]  ;;  %v469_v60 = vld [vmem:[#allocation2 + $0x1f0] sm:$0xff]  ;;  %v407_v6 = vld [vmem:[#allocation2] sm:$0xff] }
  0x22   : > { %10338 = vst [vmem:[#allocation13_spill] sm:$0xff] %v7117_v11  ;;  %v533_v32 = vsub.f32 %v7128_v16, %v7155_v24  ;;  %678 = vmatpush.msra.mxu3 %v7111_v5  ;;  %v7183_v36 = vand.u32 4294901760, %v7139_v21  ;;  %v539_v39 = vsub.f32 %v7133_v19, %v7161_v27  ;;  %v7195_v40 = vsub.f32 %v423_v13, %v7157_v25  ;;  %v409_v62 = vld [vmem:[#allocation2 + $0x10] sm:$0xff]  ;;  %v467_v7 = vld [vmem:[#allocation2 + $0x1e0] sm:$0xff]  ;;  %s392_s22 = sand.u32 1, %s6971_s14   ;;  %s6919_s19 = sshra.s32 %s6692_s12, 4  ;;  %s6920_s19 = int_to_ptr.hbm [resolvable:$true] %s6919_s19 }
  0x23   : > { %10339 = vst [vmem:[#allocation14_spill] sm:$0xff] %v7121_v14  ;;  %484 = vmatpush.msra.mxu0 %v7113_v9  ;;  %v7187_v37 = vand.u32 4294901760, %v521_v30  ;;  %627 = vmatpush.msra.mxu2 %v7128_v16  ;;  %v7190_v38 = vand.u32 4294901760, %v527_v31  ;;  %v7198_v41 = vand.u32 4294901760, %v417_v34  ;;  %v545_v44 = vsub.f32 %v7136_v20, %v7177_v33  ;;  %s6787_s24 = sshll.u32 %s392_s22, 3  ;;  %s6674_s20 = scalar_lea.sflag [#allocation4], %s392_s22 }
  0x24   : > { %10340 = vst [vmem:[#allocation15_spill] sm:$0xff] %v7124_v15  ;;  %680 = vmatpush.msra.mxu3 %v7113_v9  ;;  %v7202_v43 = vand.u32 4294901760, %v533_v32  ;;  %v7207_v45 = vand.u32 4294901760, %v7166_v29  ;;  %v7210_v46 = vsub.f32 %v421_v18, %v7163_v28  ;;  %v551_v47 = vsub.f32 %v7139_v21, %v7183_v36  ;;  %s394_s16 = scalar_lea.vmem [#allocation5], %s6787_s24  ;;  %s6921_s27 = scalar_lea.hbm %s6920_s19, 8 }
  0x25   : > { %10341 = vst [vmem:[#allocation16_spill] sm:$0xff] %v7128_v16  ;;  %486 = vmatpush.msra.mxu0 %v7115_v10  ;;  %523 = vmatpush.msra.mxu1 %v7187_v37  ;;  %v7221_v49 = vand.u32 4294901760, %v539_v39  ;;  %v7223_v50 = vand.u32 4294901760, %v415_v42  ;;  %v7226_v51 = vand.u32 4294901760, %v7195_v40  ;;  %v7229_v52 = vsub.f32 %v419_v26, %v7180_v35  ;;  %s6689_s11 = sshll.u32 %s394_s16, 4  ;;  %p6922_p1 = scmp.ne.s32.totalorder %s6920_s19, %s6921_s27  ;;  %s6690_s11 = int_to_ptr.vmem [resolvable:$true] %s6689_s11 }
  0x26   : > { %10342 = vst [vmem:[#allocation17_spill] sm:$0xff] %v7130_v17  ;;  %630 = vmatpush.msra.mxu2 %v7133_v19  ;;  %682 = vmatpush.msra.mxu3 %v7115_v10  ;;  %v7234_v53 = vsub.f32 %v417_v34, %v7198_v41  ;;  %v7240_v56 = vand.u32 4294901760, %v545_v44  ;;  %v557_v57 = vsub.f32 %v7166_v29, %v7207_v45  ;;  %v7244_v58 = vand.u32 4294901760, %v413_v48  ;;  %v465_v34 = vld [vmem:[#allocation2 + $0x1d0] sm:$0xff]  ;;  %s6925_s24 = scalar_lea.hbm %s9729_s10, 16  ;;  %p6926_p5 = scmp.lt.s32.totalorder %s6920_s19, %s9729_s10 }
  0x27   : > { %10343 = vst [vmem:[#allocation18_spill] sm:$0xff] %v7133_v19  ;;  %488 = vmatpush.msra.mxu0 %v7117_v11  ;;  %529 = vmatpush.msra.mxu1 %v7190_v38  ;;  %v7247_v59 = vand.u32 4294901760, %v7210_v46  ;;  %v7251_v61 = vand.u32 4294901760, %v551_v47  ;;  %v563_v63 = vsub.f32 %v7195_v40, %v7226_v51  ;;  %v7258_v0 = vand.u32 4294901760, %v411_v54  ;;  %v455_v19 = vld [vmem:[#allocation2 + $0x180] sm:$0xff]  ;;  %p6923_p2 = pnand %p6922_p1, %p7088_p4  ;;  %p6927_p6 = scmp.lt.s32.totalorder %s6925_s24, %s6921_s27 }
  0x28   : > { %10344 = vst [vmem:[#allocation19_spill] sm:$0xff] %v7136_v20  ;;  %633 = vmatpush.msra.mxu2 %v7136_v20  ;;  %684 = vmatpush.msra.mxu3 %v7117_v11  ;;  %v7261_v1 = vand.u32 4294901760, %v7229_v52  ;;  %v7264_v2 = vsub.f32 %v415_v42, %v7223_v50  ;;  %v7269_v8 = vand.u32 4294901760, %v7234_v53  ;;  %v7271_v12 = vand.u32 4294901760, %v469_v60 }
  0x29   : > { %10345 = vst [vmem:[#allocation20_spill] sm:$0xff] %v7139_v21  ;;  %490 = vmatpush.msra.mxu0 %v7130_v17  ;;  %535 = vmatpush.msra.mxu1 %v7202_v43  ;;  %v7275_v13 = vand.u32 4294901760, %v557_v57  ;;  %v569_v18 = vsub.f32 %v7210_v46, %v7247_v59  ;;  %v7279_v26 = vand.u32 4294901760, %v409_v62  ;;  %v7282_v30 = vsub.f32 %v413_v48, %v7244_v58  ;;  %p6924_p3 = pneg %p6923_p2  ;;  %p6928_p7 = por %p6927_p6, %p6926_p5 }
  0x2a   : > { %10346 = vst [vmem:[#allocation21_spill] sm:$0xff] %v7149_v22  ;;  %636 = vmatpush.msra.mxu2 %v7139_v21  ;;  %686 = vmatpush.msra.mxu3 %v7130_v17  ;;  %v7286_v31 = vand.u32 4294901760, %v407_v6  ;;  %v7288_v32 = vand.u32 4294901760, %v467_v7  ;;  %v7292_v39 = vand.u32 4294901760, %v563_v63  ;;  %v575_v42 = vsub.f32 %v7229_v52, %v7261_v1  ;;  %v463_v63 = vld [vmem:[#allocation2 + $0x1c0] sm:$0xff]  ;;  %v457_v21 = vld [vmem:[#allocation2 + $0x190] sm:$0xff] }
  0x2b   : > { %10347 = vst [vmem:[#allocation22_spill] sm:$0xff] %v7152_v23  ;;  %492 = vmatpush.msra.mxu0 %v7157_v25  ;;  %541 = vmatpush.msra.mxu1 %v7221_v49  ;;  %v7297_v44 = vand.u32 4294901760, %v7264_v2  ;;  %v7300_v47 = vsub.f32 %v411_v54, %v7258_v0  ;;  %v581_v48 = vsub.f32 %v7234_v53, %v7269_v8  ;;  %v7314_v54 = vand.u32 4294901760, %v7282_v30  ;;  %p6929_p9 = pnand %p6928_p7, %p6924_p3 }
  0x2c   : > { %10348 = vst [vmem:[#allocation23_spill] sm:$0xff] %v7155_v24  ;;  %639 = vmatpush.msra.mxu2 %v7166_v29  ;;  %688 = vmatpush.msra.mxu3 %v7157_v25  ;;  %v7307_v57 = vsub.f32 %v469_v60, %v7271_v12  ;;  %v7324_v60 = vsub.f32 %v407_v6, %v7286_v31  ;;  %v7382_v16 = vand.u32 4294901760, %v457_v21  ;;  %v7400_v15 = vand.u32 4294901760, %v455_v19 }
  0x2d   : > { %10349 = vst [vmem:[#allocation24_spill] sm:$0xff] %v7157_v25  ;;  %494 = vmatpush.msra.mxu0 %v7163_v28  ;;  %547 = vmatpush.msra.mxu1 %v7240_v56  ;;  %v7341_v6 = vand.u32 4294901760, %v581_v48 }
  0x2e   : > { %10350 = vst [vmem:[#allocation25_spill] sm:$0xff] %v7161_v27  ;;  %642 = vmatpush.msra.mxu2 %v7195_v40  ;;  %690 = vmatpush.msra.mxu3 %v7163_v28 }
  0x2f   : > { %10351 = vst [vmem:[#allocation26_spill] sm:$0xff] %v7163_v28  ;;  %496 = vmatpush.msra.mxu0 %v7180_v35  ;;  %553 = vmatpush.msra.mxu1 %v7251_v61 }
  0x30   : > { %10352 = vst [vmem:[#allocation27_spill] sm:$0xff] %v7166_v29  ;;  %645 = vmatpush.msra.mxu2 %v7210_v46  ;;  %692 = vmatpush.msra.mxu3 %v7180_v35  ;;  %v7338_v29 = vand.u32 4294901760, %v463_v63 }
  0x31   : > { %10353 = vst [vmem:[#allocation28_spill] sm:$0xff] %v7177_v33  ;;  %498 = vmatpush.msra.mxu0 %v7198_v41  ;;  %559 = vmatpush.msra.mxu1 %v7275_v13 }
  0x32   : > { %10354 = vst [vmem:[#allocation29_spill] sm:$0xff] %v7180_v35  ;;  %648 = vmatpush.msra.mxu2 %v7229_v52  ;;  %694 = vmatpush.msra.mxu3 %v7198_v41 }
  0x33   : > { %10355 = vst [vmem:[#allocation30_spill] sm:$0xff] %v7183_v36  ;;  %500 = vmatpush.msra.mxu0 %v7223_v50  ;;  %565 = vmatpush.msra.mxu1 %v7292_v39 }
  0x34   : > { %10356 = vst [vmem:[#allocation31_spill] sm:$0xff] %v7187_v37  ;;  %651 = vmatpush.msra.mxu2 %v7234_v53  ;;  %696 = vmatpush.msra.mxu3 %v7223_v50 }
  0x35   : > { %10357 = vst [vmem:[#allocation32_spill] sm:$0xff] %v7190_v38  ;;  %502 = vmatpush.msra.mxu0 %v7244_v58 }
  0x36   : > { %10358 = vst [vmem:[#allocation33_spill] sm:$0xff] %v7195_v40  ;;  %v7319_v40 = vand.u32 4294901760, %v465_v34  ;;  %654 = vmatpush.msra.mxu2 %v7264_v2  ;;  %698 = vmatpush.msra.mxu3 %v7244_v58 }
  0x37   : > { %10359 = vst [vmem:[#allocation34_spill] sm:$0xff] %v7198_v41  ;;  %504 = vmatpush.msra.mxu0 %v7258_v0 }
  0x38   : > { %10360 = vst [vmem:[#allocation35_spill] sm:$0xff] %v7202_v43  ;;  %v7374_v43 = vsub.f32 %v463_v63, %v7338_v29  ;;  %657 = vmatpush.msra.mxu2 %v7282_v30  ;;  %700 = vmatpush.msra.mxu3 %v7258_v0 }
  0x39   : > { %10361 = vst [vmem:[#allocation36_spill] sm:$0xff] %v7207_v45  ;;  %506 = vmatpush.msra.mxu0 %v7279_v26 }
  0x3a   : > { %10362 = vst [vmem:[#allocation37_spill] sm:$0xff] %v7210_v46  ;;  %v7317_v46 = vsub.f32 %v409_v62, %v7279_v26  ;;  %v587_v62 = vsub.f32 %v7264_v2, %v7297_v44  ;;  %660 = vmatpush.msra.mxu2 %v7300_v47  ;;  %702 = vmatpush.msra.mxu3 %v7279_v26  ;;  %v7409_v14 = vand.u32 4294901760, %v7374_v43 }
  0x3b   : > { %10364 = vst [vmem:[#allocation38_spill] sm:$0xff] %v7221_v49  ;;  %v7362_v49 = vand.u32 4294901760, %v7324_v60  ;;  %508 = vmatpush.msra.mxu0 %v7286_v31 }
  0x3c   : > { %10365 = vst [vmem:[#allocation39_spill] sm:$0xff] %v7223_v50  ;;  %v7369_v20 = vand.u32 4294901760, %v587_v62  ;;  %663 = vmatpush.msra.mxu2 %v7317_v46  ;;  %704 = vmatpush.msra.mxu3 %v7286_v31 }
  0x3d   : > { %10366 = vst [vmem:[#allocation40_spill] sm:$0xff] %v7226_v51  ;;  %715 = vmatpush.msrb.mxu0 %v7149_v22 }
  0x3e   : > { %10367 = vst [vmem:[#allocation41_spill] sm:$0xff] %v7229_v52  ;;  %v7336_v52 = vand.u32 4294901760, %v7300_v47  ;;  %666 = vmatpush.msra.mxu2 %v7324_v60 }
  0x3f   : > { %10368 = vst [vmem:[#allocation42_spill] sm:$0xff] %v7234_v53  ;;  %v7355_v53 = vsub.f32 %v465_v34, %v7319_v40  ;;  %719 = vmatpush.msrb.mxu0 %v7152_v23 }
  0x40   : > { %10369 = vst [vmem:[#allocation43_spill] sm:$0xff] %v7236_v55  ;;  %v599_v34 = vsub.f32 %v7300_v47, %v7336_v52  ;;  %819 = vmatpush.msrb.mxu2 %v7271_v12 }
  0x41   : > { %10370 = vst [vmem:[#allocation44_spill] sm:$0xff] %v7240_v56  ;;  %v7352_v56 = vand.u32 4294901760, %v7317_v46  ;;  %723 = vmatpush.msrb.mxu0 %v7155_v24 }
  0x42   : > { %10371 = vst [vmem:[#allocation45_spill] sm:$0xff] %v7244_v58  ;;  %821 = vmatpush.msrb.mxu2 %v7288_v32 }
  0x43   : > { %10372 = vst [vmem:[#allocation46_spill] sm:$0xff] %v7247_v59  ;;  %v605_v63 = vsub.f32 %v7317_v46, %v7352_v56  ;;  %727 = vmatpush.msrb.mxu0 %v7161_v27 }
  0x44   : > { %472 = vst [vmem:[#allocation1] ss:$2 sm:$0xff] %v7236_v55  ;;  %v7311_v55 = vand.u32 4294901760, %v569_v18  ;;  %v461_v18 = vld [vmem:[#allocation2 + $0x1b0] sm:$0xff]  ;;  %823 = vmatpush.msrb.mxu2 %v7319_v40 }
  0x45   : > { %10373 = vst [vmem:[#allocation47_spill] sm:$0xff] %v7251_v61  ;;  %v7327_v61 = vsub.f32 %v467_v7, %v7288_v32  ;;  %v7345_v7 = vand.u32 4294901760, %v7307_v57  ;;  %v7357_v48 = vand.u32 4294901760, %v461_v18  ;;  %731 = vmatpush.msrb.mxu0 %v7177_v33 }
  0x46   : > { %10374 = vst [vmem:[#allocation48_spill] sm:$0xff] %v7258_v0  ;;  %571 = vmatpush.msra.mxu1 %v7311_v55  ;;  %825 = vmatpush.msrb.mxu2 %v7338_v29 }
  0x47   : > { %10375 = vst [vmem:[#allocation49_spill] sm:$0xff] %v7261_v1  ;;  %v862_v38 = vsub.f32 %v7307_v57, %v7345_v7  ;;  %735 = vmatpush.msrb.mxu0 %v7183_v36 }
  0x48   : > { %10376 = vst [vmem:[#allocation50_spill] sm:$0xff] %v7264_v2  ;;  %827 = vmatpush.msrb.mxu2 %v7357_v48 }
  0x49   : > { %10377 = vst [vmem:[#allocation51_spill] sm:$0xff] %v7269_v8  ;;  %739 = vmatpush.msrb.mxu0 %v7207_v45 }
  0x4a   : > { %10378 = vst [vmem:[#allocation52_spill] sm:$0xff] %v7271_v12 }
  0x4b   : > { %10379 = vst [vmem:[#allocation53_spill] sm:$0xff] %v7275_v13  ;;  %v7331_v13 = vand.u32 4294901760, %v575_v42  ;;  %v593_v42 = vsub.f32 %v7282_v30, %v7314_v54  ;;  %743 = vmatpush.msrb.mxu0 %v7226_v51  ;;  %v439_v51 = vld [vmem:[#allocation2 + $0x100] sm:$0xff] }
  0x4c   : > { %10380 = vst [vmem:[#allocation54_spill] sm:$0xff] %v7279_v26  ;;  %v7419_v26 = vsub.f32 %v457_v21, %v7382_v16 }
  0x4d   : > { %10381 = vst [vmem:[#allocation55_spill] sm:$0xff] %v7282_v30  ;;  %577 = vmatpush.msra.mxu1 %v7331_v13  ;;  %v7386_v62 = vand.u32 4294901760, %v593_v42  ;;  %v7394_v30 = vsub.f32 %v461_v18, %v7357_v48  ;;  %v453_v42 = vld [vmem:[#allocation2 + $0x170] sm:$0xff]  ;;  %v611_v18 = vsub.f32 %v7324_v60, %v7362_v49  ;;  %747 = vmatpush.msrb.mxu0 %v7247_v59  ;;  %v7562_v59 = vand.u32 4294901760, %v439_v51 }
  0x4e   : > { %10382 = vst [vmem:[#allocation56_spill] sm:$0xff] %v7286_v31  ;;  %v7430_v22 = vand.u32 4294901760, %v453_v42 }
  0x4f   : > { %10383 = vst [vmem:[#allocation57_spill] sm:$0xff] %v7288_v32  ;;  %583 = vmatpush.msra.mxu1 %v7341_v6  ;;  %751 = vmatpush.msrb.mxu0 %v7261_v1  ;;  %v474_v1 = vld.sshfl [vmem:[#allocation1 + $0x8] sm:$0xff pattern:$0x75316420] }
  0x50   : > { %10384 = vst [vmem:[#allocation58_spill] sm:$0xff] %v7292_v39  ;;  %v459_v39 = vld [vmem:[#allocation2 + $0x1a0] sm:$0xff] }
  0x51   : > { %10385 = vst [vmem:[#allocation59_spill] sm:$0xff] %v7297_v44  ;;  %v7376_v2 = vand.u32 4294901760, %v459_v39  ;;  %589 = vmatpush.msra.mxu1 %v7369_v20  ;;  %755 = vmatpush.msrb.mxu0 %v7269_v8 }
  0x52   : > { %10386 = vst [vmem:[#allocation60_spill] sm:$0xff] %v7300_v47 }
  0x53   : > { %10387 = vst [vmem:[#allocation61_spill] sm:$0xff] %v7307_v57  ;;  %v7412_v47 = vsub.f32 %v459_v39, %v7376_v2  ;;  %595 = vmatpush.msra.mxu1 %v7386_v62  ;;  %829 = vmatpush.msrb.mxu2 %v7376_v2 }
  0x54   : > { %10388 = vst [vmem:[#allocation62_spill] sm:$0xff] %v7311_v55  ;;  %v7365_v55 = vand.u32 4294901760, %v7327_v61  ;;  %759 = vmatpush.msrb.mxu0 %v7297_v44 }
  0x55   : > { %10389 = vst [vmem:[#allocation63_spill] sm:$0xff] %v7314_v54  ;;  %831 = vmatpush.msrb.mxu2 %v7382_v16 }
  0x56   : > { %10390 = vst [vmem:[#allocation64_spill] sm:$0xff] %v7317_v46  ;;  %v868_v37 = vsub.f32 %v7327_v61, %v7365_v55  ;;  %v7441_v46 = vand.u32 4294901760, %v611_v18  ;;  %763 = vmatpush.msrb.mxu0 %v7314_v54 }
  0x57   : > { %10391 = vst [vmem:[#allocation65_spill] sm:$0xff] %v7319_v40  ;;  %833 = vmatpush.msrb.mxu2 %v7400_v15 }
  0x58   : > { %10392 = vst [vmem:[#allocation66_spill] sm:$0xff] %v7324_v60  ;;  %v7434_v21 = vand.u32 4294901760, %v868_v37  ;;  %v447_v37 = vld [vmem:[#allocation2 + $0x140] sm:$0xff]  ;;  %767 = vmatpush.msrb.mxu0 %v7336_v52 }
  0x59   : > { %10393 = vst [vmem:[#allocation67_spill] sm:$0xff] %v7327_v61  ;;  %835 = vmatpush.msrb.mxu2 %v7430_v22 }
  0x5a   : > { %10394 = vst [vmem:[#allocation68_spill] sm:$0xff] %v7331_v13  ;;  %v7391_v13 = vand.u32 4294901760, %v7355_v53  ;;  %771 = vmatpush.msrb.mxu0 %v7352_v56 }
  0x5b   : > { %10395 = vst [vmem:[#allocation69_spill] sm:$0xff] %v7336_v52 }
  0x5c   : > { %10396 = vst [vmem:[#allocation70_spill] sm:$0xff] %v7338_v29  ;;  %v874_v39 = vsub.f32 %v7355_v53, %v7391_v13  ;;  %775 = vmatpush.msrb.mxu0 %v7362_v49 }
  0x5d   : > { %10397 = vst [vmem:[#allocation71_spill] sm:$0xff] %v7341_v6  ;;  %v7404_v6 = vand.u32 4294901760, %v599_v34  ;;  %v451_v34 = vld [vmem:[#allocation2 + $0x160] sm:$0xff] }
  0x5e   : > { %10398 = vst [vmem:[#allocation72_spill] sm:$0xff] %v7345_v7  ;;  %v7428_v7 = vand.u32 4294901760, %v7394_v30  ;;  %v7448_v23 = vand.u32 4294901760, %v451_v34  ;;  %v7457_v18 = vand.u32 4294901760, %v874_v39 }
  0x5f   : > { %10399 = vst [vmem:[#allocation73_spill] sm:$0xff] %v7352_v56  ;;  %601 = vmatpush.msra.mxu1 %v7404_v6 }
  0x60   : > { %10400 = vst [vmem:[#allocation74_spill] sm:$0xff] %v7355_v53  ;;  %v886_v60 = vsub.f32 %v7394_v30, %v7428_v7  ;;  %837 = vmatpush.msrb.mxu2 %v7448_v23 }
  0x61   : > { %10401 = vst [vmem:[#allocation75_spill] sm:$0xff] %v7357_v48 }
  0x62   : > { %10402 = vst [vmem:[#allocation76_spill] sm:$0xff] %v7362_v49  ;;  %v10469_v49 = vld [vmem:[#allocation54_spill] sm:$0xff] }
  0x63   : > { %10403 = vst [vmem:[#allocation77_spill] sm:$0xff] %v7365_v55  ;;  %v7416_v55 = vand.u32 4294901760, %v862_v38  ;;  %v7437_v38 = vsub.f32 %v455_v19, %v7400_v15  ;;  %v7453_v19 = vand.u32 4294901760, %v7419_v26 }
  0x64   : > { %10404 = vst [vmem:[#allocation78_spill] sm:$0xff] %v7369_v20  ;;  %v7422_v20 = vand.u32 4294901760, %v605_v63  ;;  %v449_v63 = vld [vmem:[#allocation2 + $0x150] sm:$0xff] }
  0x65   : > { %10405 = vst [vmem:[#allocation79_spill] sm:$0xff] %v7374_v43  ;;  %864 = vmatpush.msrb.mxu3 %v7416_v55  ;;  %v7469_v24 = vand.u32 4294901760, %v7437_v38  ;;  %v898_v27 = vsub.f32 %v7419_v26, %v7453_v19 }
  0x66   : > { %10406 = vst [vmem:[#allocation80_spill] sm:$0xff] %v7376_v2  ;;  %607 = vmatpush.msra.mxu1 %v7422_v20 }
  0x67   : > { %10407 = vst [vmem:[#allocation81_spill] sm:$0xff] %v7382_v16  ;;  %870 = vmatpush.msrb.mxu3 %v7434_v21  ;;  %v904_v33 = vsub.f32 %v7437_v38, %v7469_v24  ;;  %v7516_v36 = vand.u32 4294901760, %v898_v27 }
  0x68   : > { %10408 = vst [vmem:[#allocation82_spill] sm:$0xff] %v7386_v62  ;;  %v880_v62 = vsub.f32 %v7374_v43, %v7409_v14  ;;  %613 = vmatpush.msra.mxu1 %v7441_v46 }
  0x69   : > { %10409 = vst [vmem:[#allocation83_spill] sm:$0xff] %v7391_v13  ;;  %v7446_v13 = vand.u32 4294901760, %v7412_v47  ;;  %876 = vmatpush.msrb.mxu3 %v7457_v18  ;;  %v7532_v27 = vand.u32 4294901760, %v904_v33 }
  0x6a   : > { %10410 = vst [vmem:[#allocation84_spill] sm:$0xff] %v7394_v30  ;;  %v7473_v39 = vand.u32 4294901760, %v880_v62  ;;  %782 = vmatpush.msrb.mxu1 %v7107_v3  ;;  %v7488_v62 = vand.u32 4294901760, %v886_v60  ;;  %v443_v3 = vld [vmem:[#allocation2 + $0x120] sm:$0xff] }
  0x6b   : > { %10411 = vst [vmem:[#allocation85_spill] sm:$0xff] %v7400_v15 }
  0x6c   : > { %10412 = vst [vmem:[#allocation86_spill] sm:$0xff] %v7404_v6  ;;  %v7462_v6 = vsub.f32 %v453_v42, %v7430_v22  ;;  %v892_v42 = vsub.f32 %v7412_v47, %v7446_v13  ;;  %784 = vmatpush.msrb.mxu1 %v7109_v4  ;;  %882 = vmatpush.msrb.mxu3 %v7473_v39  ;;  %v441_v4 = vld [vmem:[#allocation2 + $0x110] sm:$0xff] }
  0x6d   : > { %10413 = vst [vmem:[#allocation87_spill] sm:$0xff] %v7409_v14  ;;  %v7464_v14 = vand.u32 4294901760, %v449_v63 }
  0x6e   : > { %10414 = vst [vmem:[#allocation88_spill] sm:$0xff] %v7412_v47  ;;  %v7504_v60 = vand.u32 4294901760, %v892_v42  ;;  %786 = vmatpush.msrb.mxu1 %v7111_v5  ;;  %888 = vmatpush.msrb.mxu3 %v7488_v62 }
  0x6f   : > { %10415 = vst [vmem:[#allocation89_spill] sm:$0xff] %v7416_v55  ;;  %v445_v55 = vld [vmem:[#allocation2 + $0x130] sm:$0xff]  ;;  %839 = vmatpush.msrb.mxu2 %v7464_v14 }
  0x70   : > { %10416 = vst [vmem:[#allocation90_spill] sm:$0xff] %v7419_v26  ;;  %788 = vmatpush.msrb.mxu1 %v7113_v9  ;;  %894 = vmatpush.msrb.mxu3 %v7504_v60 }
  0x71   : > { %10417 = vst [vmem:[#allocation91_spill] sm:$0xff] %v7422_v20  ;;  %v7478_v20 = vsub.f32 %v451_v34, %v7448_v23  ;;  %v7494_v34 = vsub.f32 %v449_v63, %v7464_v14 }
  0x72   : > { %10418 = vst [vmem:[#allocation92_spill] sm:$0xff] %v7428_v7  ;;  %v7480_v7 = vand.u32 4294901760, %v447_v37  ;;  %790 = vmatpush.msrb.mxu1 %v7115_v10  ;;  %900 = vmatpush.msrb.mxu3 %v7516_v36 }
  0x73   : > { %10419 = vst [vmem:[#allocation93_spill] sm:$0xff] %v7430_v22 }
  0x74   : > { %10420 = vst [vmem:[#allocation94_spill] sm:$0xff] %v7434_v21  ;;  %v473_v21 = vld.sshfl [vmem:[#allocation1] sm:$0xff pattern:$0x75316420]  ;;  %v7510_v63 = vsub.f32 %v447_v37, %v7480_v7  ;;  %v7525_v37 = vand.u32 4294901760, %v443_v3  ;;  %792 = vmatpush.msrb.mxu1 %v7117_v11  ;;  %906 = vmatpush.msrb.mxu3 %v7532_v27 }
  0x75   : > { %10421 = vst [vmem:[#allocation95_spill] sm:$0xff] %v7437_v38  ;;  %841 = vmatpush.msrb.mxu2 %v7480_v7 }
  0x76   : > { %10422 = vst [vmem:[#allocation96_spill] sm:$0xff] %v7441_v46  ;;  %v7491_v46 = vand.u32 4294901760, %v7462_v6  ;;  %794 = vmatpush.msrb.mxu1 %v7130_v17  ;;  %v7601_v17 = vand.u32 4294901760, %v474_v1 }
  0x77   : > { %10423 = vst [vmem:[#allocation97_spill] sm:$0xff] %v7446_v13  ;;  %v7496_v13 = vand.u32 4294901760, %v445_v55 }
  0x78   : > { %10424 = vst [vmem:[#allocation98_spill] sm:$0xff] %v7448_v23  ;;  %v910_v42 = vsub.f32 %v7462_v6, %v7491_v46  ;;  %796 = vmatpush.msrb.mxu1 %v7157_v25 }
  0x79   : > { %10425 = vst [vmem:[#allocation99_spill] sm:$0xff] %v7453_v19  ;;  %v7512_v19 = vand.u32 4294901760, %v473_v21  ;;  %843 = vmatpush.msrb.mxu2 %v7496_v13 }
  0x7a   : > { %10426 = vst [vmem:[#allocation100_spill] sm:$0xff] %v7457_v18  ;;  %v7507_v18 = vand.u32 4294901760, %v7478_v20  ;;  %v7550_v33 = vand.u32 4294901760, %v910_v42  ;;  %798 = vmatpush.msrb.mxu1 %v7163_v28 }
  0x7b   : > { %10427 = vst [vmem:[#allocation101_spill] sm:$0xff] %v7462_v6  ;;  %v7542_v5 = vsub.f32 %v473_v21, %v7512_v19  ;;  %v7558_v21 = vsub.f32 %v443_v3, %v7525_v37  ;;  %845 = vmatpush.msrb.mxu2 %v7525_v37  ;;  %615 = vmatmul.f32.vlgmr.msra.gmra.mxu1 %v7512_v19 }
  0x7c   : > { %10428 = vst [vmem:[#allocation102_spill] sm:$0xff] %v7464_v14  ;;  %v916_v45 = vsub.f32 %v7478_v20, %v7507_v18  ;;  %912 = vmatpush.msrb.mxu3 %v7550_v33  ;;  %800 = vmatpush.msrb.mxu1 %v7180_v35 }
  0x7d   : > { %10429 = vst [vmem:[#allocation103_spill] sm:$0xff] %v7469_v24  ;;  %v7528_v24 = vsub.f32 %v445_v55, %v7496_v13  ;;  %v7544_v55 = vand.u32 4294901760, %v441_v4  ;;  %v7571_v10 = vand.u32 4294901760, %v7542_v5  ;;  %v7585_v11 = vand.u32 4294901760, %v7558_v21  ;;  %669 = vmatmul.f32.vlgmr.msra.gmra.mxu2 %v7542_v5 }
  0x7e   : > { %10430 = vst [vmem:[#allocation104_spill] sm:$0xff] %v7473_v39  ;;  %v7523_v39 = vand.u32 4294901760, %v7494_v34  ;;  %v7566_v42 = vand.u32 4294901760, %v916_v45  ;;  %802 = vmatpush.msrb.mxu1 %v7198_v41 }
  0x7f   : > { %10431 = vst [vmem:[#allocation105_spill] sm:$0xff] %v7478_v20  ;;  %v7555_v9 = vand.u32 4294901760, %v7528_v24  ;;  %v7574_v3 = vsub.f32 %v441_v4, %v7544_v55  ;;  %v7590_v4 = vsub.f32 %v439_v51, %v7562_v59  ;;  %847 = vmatpush.msrb.mxu2 %v7544_v55  ;;  %708 = vmatmul.f32.vlgmr.msra.gmra.mxu3 %v7571_v10 }
  0x80   : > { %10432 = vst [vmem:[#allocation106_spill] sm:$0xff] %v7480_v7  ;;  %918 = vmatpush.msrb.mxu3 %v7566_v42  ;;  %804 = vmatpush.msrb.mxu1 %v7223_v50 }
  0x81   : > { %10433 = vst [vmem:[#allocation107_spill] sm:$0xff] %v7488_v62  ;;  %v7539_v62 = vand.u32 4294901760, %v7510_v63  ;;  %v7614_v44 = vand.u32 4294901760, %v7590_v4  ;;  %849 = vmatpush.msrb.mxu2 %v7562_v59 }
  0x82   : > { %10434 = vst [vmem:[#allocation108_spill] sm:$0xff] %v7491_v46  ;;  %806 = vmatpush.msrb.mxu1 %v7244_v58 }
  0x83   : > { %10435 = vst [vmem:[#allocation109_spill] sm:$0xff] %v7494_v34 }
  0x84   : > { %10436 = vst [vmem:[#allocation110_spill] sm:$0xff] %v7496_v13  ;;  %808 = vmatpush.msrb.mxu1 %v7258_v0  ;;  %v464_v0 = vld [vmem:[#allocation2 + $0x1c8] sm:$0xff] }
  0x85   : > { %10437 = vst [vmem:[#allocation111_spill] sm:$0xff] %v7504_v60  ;;  %v922_v60 = vsub.f32 %v7494_v34, %v7523_v39 }
  0x86   : > { %10438 = vst [vmem:[#allocation112_spill] sm:$0xff] %v7507_v18  ;;  %810 = vmatpush.msrb.mxu1 %v10469_v49 }
  0x87   : > { %10439 = vst [vmem:[#allocation113_spill] sm:$0xff] %v7510_v63  ;;  %v7580_v45 = vand.u32 4294901760, %v922_v60  ;;  %v512_v60 = vsub.f32 %v7542_v5, %v7571_v10 }
  0x88   : > { %10440 = vst [vmem:[#allocation114_spill] sm:$0xff] %v7512_v19  ;;  %812 = vmatpush.msrb.mxu1 %v7286_v31 }
  0x89   : > { %10441 = vst [vmem:[#allocation115_spill] sm:$0xff] %v7516_v36  ;;  %v928_v36 = vsub.f32 %v7510_v63, %v7539_v62  ;;  %924 = vmatpush.msrb.mxu3 %v7580_v45  ;;  %v7618_v54 = vand.u32 4294901760, %v512_v60  ;;  %v952_v60 = vsub.f32 %v7590_v4, %v7614_v44  ;;  %814 = vmatmul.f32.vlgmr.msrb.gmra.mxu1 %v7512_v19 }
  0x8a   : > { %10442 = vst [vmem:[#allocation116_spill] sm:$0xff] %v7523_v39  ;;  %1015 = vmatpush.msra.mxu1 %v7271_v12 }
  0x8b   : > { %10443 = vst [vmem:[#allocation117_spill] sm:$0xff] %v7525_v37  ;;  %v7594_v8 = vand.u32 4294901760, %v928_v36  ;;  %v940_v36 = vsub.f32 %v7558_v21, %v7585_v11  ;;  %514 = vmatmul.f32.vlgmr.msra.gmra.mxu0 %v7618_v54 }
  0x8c   : > { %10444 = vst [vmem:[#allocation118_spill] sm:$0xff] %v7528_v24  ;;  %962 = vmatpush.msra.mxu0 %v7307_v57  ;;  %v10468_v57 = vld [vmem:[#allocation72_spill] sm:$0xff]  ;;  %1017 = vmatpush.msra.mxu1 %v7288_v32 }
  0x8d   : > { %10445 = vst [vmem:[#allocation119_spill] sm:$0xff] %v7532_v27  ;;  %v934_v27 = vsub.f32 %v7528_v24, %v7555_v9  ;;  %930 = vmatpush.msrb.mxu3 %v7594_v8  ;;  %v7629_v52 = vand.u32 4294901760, %v940_v36  ;;  %v7648_v36 = vand.u32 4294901760, %v952_v60  ;;  %1056 = vmatpush.msra.mxu2 %v10468_v57  ;;  %v10470_v60 = vld [vmem:[#allocation77_spill] sm:$0xff]  ;;  %v420_v57 = vld [vmem:[#allocation2 + $0x68] sm:$0xff] }
  0x8e   : > { %10446 = vst [vmem:[#allocation120_spill] sm:$0xff] %v7539_v62  ;;  %965 = vmatpush.msra.mxu0 %v7327_v61  ;;  %1019 = vmatpush.msra.mxu1 %v7319_v40 }
  0x8f   : > { %10447 = vst [vmem:[#allocation121_spill] sm:$0xff] %v7544_v55  ;;  %v7607_v51 = vand.u32 4294901760, %v934_v27  ;;  %1060 = vmatpush.msra.mxu2 %v10470_v60 }
  0x90   : > { %10448 = vst [vmem:[#allocation122_spill] sm:$0xff] %v7550_v33  ;;  %v7599_v33 = vand.u32 4294901760, %v7574_v3  ;;  %968 = vmatpush.msra.mxu0 %v7355_v53  ;;  %v10472_v53 = vld [vmem:[#allocation83_spill] sm:$0xff]  ;;  %1021 = vmatpush.msra.mxu1 %v7338_v29 }
  0x91   : > { %10449 = vst [vmem:[#allocation123_spill] sm:$0xff] %v7555_v9  ;;  %936 = vmatpush.msrb.mxu3 %v7607_v51  ;;  %1064 = vmatpush.msra.mxu2 %v10472_v53 }
  0x92   : > { %10450 = vst [vmem:[#allocation124_spill] sm:$0xff] %v7558_v21  ;;  %v946_v27 = vsub.f32 %v7574_v3, %v7599_v33  ;;  %971 = vmatpush.msra.mxu0 %v7374_v43  ;;  %1023 = vmatpush.msra.mxu1 %v7357_v48  ;;  %v10477_v43 = vld [vmem:[#allocation103_spill] sm:$0xff] }
  0x93   : > { %10451 = vst [vmem:[#allocation125_spill] sm:$0xff] %v7562_v59  ;;  %942 = vmatpush.msrb.mxu3 %v7629_v52  ;;  %777 = vmatmul.f32.vlgmr.msrb.gmra.mxu0 %v7512_v19 }
  0x94   : > { %10452 = vst [vmem:[#allocation126_spill] sm:$0xff] %v7566_v42  ;;  %974 = vmatpush.msra.mxu0 %v7394_v30  ;;  %v10474_v30 = vld [vmem:[#allocation92_spill] sm:$0xff]  ;;  %1025 = vmatpush.msra.mxu1 %v7376_v2 }
  0x95   : > { %10453 = vst [vmem:[#allocation127_spill] sm:$0xff] %v7571_v10 }
  0x96   : > { %10454 = vst [vmem:[#allocation128_spill] sm:$0xff] %v7574_v3  ;;  %977 = vmatpush.msra.mxu0 %v7412_v47  ;;  %v10475_v47 = vld [vmem:[#allocation97_spill] sm:$0xff]  ;;  %1027 = vmatpush.msra.mxu1 %v7382_v16 }
  0x97   : > { %10455 = vst [vmem:[#allocation129_spill] sm:$0xff] %v7580_v45  ;;  %v7623_v45 = vsub.f32 %v474_v1, %v7601_v17  ;;  %v7637_v1 = vand.u32 4294901760, %v946_v27 }
  0x98   : > { %10456 = vst [vmem:[#allocation130_spill] sm:$0xff] %v7585_v11  ;;  %980 = vmatpush.msra.mxu0 %v7419_v26  ;;  %v10476_v26 = vld [vmem:[#allocation99_spill] sm:$0xff]  ;;  %1029 = vmatpush.msra.mxu1 %v7400_v15 }
  0x99   : > { %10457 = vst [vmem:[#allocation131_spill] sm:$0xff] %v7590_v4  ;;  %v7640_v56 = vand.u32 4294901760, %v7623_v45  ;;  %948 = vmatpush.msrb.mxu3 %v7637_v1 }
  0x9a   : > { %10458 = vst [vmem:[#allocation132_spill] sm:$0xff] %v7594_v8  ;;  %983 = vmatpush.msra.mxu0 %v7437_v38  ;;  %v438_v38 = vld [vmem:[#allocation2 + $0xf8] sm:$0xff]  ;;  %1031 = vmatpush.msra.mxu1 %v7430_v22 }
  0x9b   : > { %10459 = vst [vmem:[#allocation133_spill] sm:$0xff] %v7599_v33  ;;  %v853_v27 = vsub.f32 %v7623_v45, %v7640_v56  ;;  %954 = vmatpush.msrb.mxu3 %v7648_v36 }
  0x9c   : > { %10460 = vst [vmem:[#allocation134_spill] sm:$0xff] %v7601_v17  ;;  %956 = vmatmul.f32.vlgmr.msrb.gmra.mxu3 %v7601_v17  ;;  %986 = vmatpush.msra.mxu0 %v7462_v6  ;;  %v7702_v6 = vand.u32 4294901760, %v438_v38 }
  0x9d   : > { %10461 = vst [vmem:[#allocation135_spill] sm:$0xff] %v7607_v51  ;;  %v7662_v61 = vand.u32 4294901760, %v853_v27  ;;  %1123 = vmatpush.msra.mxu3 %v7271_v12  ;;  %v10473_v27 = vld [vmem:[#allocation87_spill] sm:$0xff]  ;;  %1033 = vmatpush.msra.mxu1 %v7448_v23  ;;  %v418_v51 = vld [vmem:[#allocation2 + $0x58] sm:$0xff] }
  0x9e   : > { %10462 = vst [vmem:[#allocation136_spill] sm:$0xff] %v7614_v44  ;;  %1068 = vmatpush.msra.mxu2 %v10473_v27  ;;  %989 = vmatpush.msra.mxu0 %v7478_v20  ;;  %v436_v20 = vld [vmem:[#allocation2 + $0xe8] sm:$0xff]  ;;  %v422_v27 = vld [vmem:[#allocation2 + $0x78] sm:$0xff] }
  0x9f   : > { %10463 = vst [vmem:[#allocation137_spill] sm:$0xff] %v7623_v45  ;;  %1125 = vmatpush.msra.mxu3 %v7288_v32  ;;  %855 = vmatmul.f32.vlgmr.msrb.gmra.mxu2 %v7662_v61  ;;  %v466_v12 = vld [vmem:[#allocation2 + $0x1d8] sm:$0xff] }
  0xa0   : > { %10464 = vst [vmem:[#allocation138_spill] sm:$0xff] %v7629_v52  ;;  %1072 = vmatpush.msra.mxu2 %v10474_v30  ;;  %992 = vmatpush.msra.mxu0 %v7494_v34  ;;  %v434_v34 = vld [vmem:[#allocation2 + $0xd8] sm:$0xff]  ;;  %v7943_v50 = vand.u32 4294901760, %v466_v12 }
  0xa1   : > { %10465 = vst [vmem:[#allocation139_spill] sm:$0xff] %v7637_v1  ;;  %1127 = vmatpush.msra.mxu3 %v7319_v40  ;;  %1035 = vmatpush.msra.mxu1 %v7464_v14  ;;  %v468_v40 = vld [vmem:[#allocation2 + $0x1e8] sm:$0xff] }
  0xa2   : > { %10466 = vst [vmem:[#allocation140_spill] sm:$0xff] %v7640_v56  ;;  %1076 = vmatpush.msra.mxu2 %v10475_v47  ;;  %995 = vmatpush.msra.mxu0 %v7510_v63  ;;  %v432_v63 = vld [vmem:[#allocation2 + $0xc8] sm:$0xff]  ;;  %v7924_v49 = vand.u32 4294901760, %v468_v40 }
  0xa3   : > { %10467 = vst [vmem:[#allocation141_spill] sm:$0xff] %v7648_v36  ;;  %1129 = vmatpush.msra.mxu3 %v7338_v29  ;;  %1037 = vmatpush.msra.mxu1 %v7480_v7  ;;  %v7782_v36 = vand.u32 4294901760, %v422_v27 }
  0xa4   : > { %10471 = vst [vmem:[#allocation142_spill] sm:$0xff] %v7662_v61  ;;  %1080 = vmatpush.msra.mxu2 %v10476_v26  ;;  %998 = vmatpush.msra.mxu0 %v7528_v24  ;;  %v7717_v24 = vsub.f32 %v438_v38, %v7702_v6  ;;  %v428_v38 = vld [vmem:[#allocation2 + $0xa8] sm:$0xff]  ;;  %v7959_v41 = vsub.f32 %v468_v40, %v7924_v49 }
  0xa5   : > { %1131 = vmatpush.msra.mxu3 %v7357_v48  ;;  %10478 = vst [vmem:[#allocation143_spill] sm:$0xff] %v7702_v6  ;;  %1039 = vmatpush.msra.mxu1 %v7496_v13 }
  0xa6   : > { %1084 = vmatpush.msra.mxu2 %v10477_v43  ;;  %1001 = vmatpush.msra.mxu0 %v7558_v21  ;;  %10481 = vst [vmem:[#allocation146_spill] sm:$0xff] %v7717_v24  ;;  %v7723_v21 = vand.u32 4294901760, %v432_v63 }
  0xa7   : > { %1133 = vmatpush.msra.mxu3 %v7376_v2  ;;  %1041 = vmatpush.msra.mxu1 %v7525_v37  ;;  %10496 = vst [vmem:[#allocation161_spill] sm:$0xff] %v7782_v36  ;;  %v470_v2 = vld [vmem:[#allocation2 + $0x1f8] sm:$0xff] }
  0xa8   : > { %1088 = vmatpush.msra.mxu2 %v7491_v46  ;;  %v7708_v46 = vand.u32 4294901760, %v436_v20  ;;  %1004 = vmatpush.msra.mxu0 %v7574_v3  ;;  %10482 = vst [vmem:[#allocation147_spill] sm:$0xff] %v7723_v21  ;;  %v7750_v26 = vsub.f32 %v432_v63, %v7723_v21 }
  0xa9   : > { %1135 = vmatpush.msra.mxu3 %v7382_v16  ;;  %1043 = vmatpush.msra.mxu1 %v7544_v55  ;;  %10532 = vst [vmem:[#allocation197_spill] sm:$0xff] %v7924_v49 }
  0xaa   : > { %1092 = vmatpush.msra.mxu2 %v7507_v18  ;;  %10479 = vst [vmem:[#allocation144_spill] sm:$0xff] %v7708_v46  ;;  %v7714_v18 = vand.u32 4294901760, %v434_v34  ;;  %1007 = vmatpush.msra.mxu0 %v7590_v4  ;;  %v7744_v4 = vand.u32 4294901760, %v428_v38  ;;  %v7775_v60 = vand.u32 4294901760, %v7750_v26 }
  0xab   : > { %1137 = vmatpush.msra.mxu3 %v7400_v15  ;;  %1010 = vmatmul.f32.vlgmr.msra.gmra.mxu0 %v7623_v45  ;;  %10489 = vst [vmem:[#allocation154_spill] sm:$0xff] %v7750_v26 }
  0xac   : > { %1096 = vmatpush.msra.mxu2 %v7523_v39  ;;  %10480 = vst [vmem:[#allocation145_spill] sm:$0xff] %v7714_v18  ;;  %v430_v39 = vld [vmem:[#allocation2 + $0xb8] sm:$0xff]  ;;  %v7738_v43 = vsub.f32 %v434_v34, %v7714_v18  ;;  %1160 = vmatpush.msrb.mxu0 %v7702_v6  ;;  %v424_v34 = vld [vmem:[#allocation2 + $0x88] sm:$0xff] }
  0xad   : > { %1139 = vmatpush.msra.mxu3 %v7430_v22  ;;  %v7732_v3 = vand.u32 4294901760, %v430_v39  ;;  %10487 = vst [vmem:[#allocation152_spill] sm:$0xff] %v7744_v4  ;;  %v7772_v53 = vand.u32 4294901760, %v424_v34  ;;  %1045 = vmatpush.msra.mxu1 %v7562_v59 }
  0xae   : > { %1100 = vmatpush.msra.mxu2 %v7539_v62  ;;  %v7726_v62 = vsub.f32 %v436_v20, %v7708_v46  ;;  %10486 = vst [vmem:[#allocation151_spill] sm:$0xff] %v7738_v43  ;;  %v426_v20 = vld [vmem:[#allocation2 + $0x98] sm:$0xff]  ;;  %1162 = vmatpush.msrb.mxu0 %v7708_v46  ;;  %v7761_v30 = vand.u32 4294901760, %v7738_v43 }
  0xaf   : > { %1141 = vmatpush.msra.mxu3 %v7448_v23  ;;  %10484 = vst [vmem:[#allocation149_spill] sm:$0xff] %v7732_v3  ;;  %v7758_v47 = vand.u32 4294901760, %v426_v20  ;;  %v7764_v63 = vsub.f32 %v430_v39, %v7732_v3  ;;  %v7778_v39 = vsub.f32 %v428_v38, %v7744_v4  ;;  %1049 = vmatmul.f32.vlgmr.msra.gmra.mxu1 %v7640_v56 }
  0xb0   : > { %1104 = vmatpush.msra.mxu2 %v7555_v9  ;;  %10483 = vst [vmem:[#allocation148_spill] sm:$0xff] %v7726_v62  ;;  %v7735_v9 = vand.u32 4294901760, %v7717_v24  ;;  %1164 = vmatpush.msrb.mxu0 %v7714_v18  ;;  %v1215_v1 = vsub.f32 %v7738_v43, %v7761_v30 }
  0xb1   : > { %1143 = vmatpush.msra.mxu3 %v7464_v14  ;;  %10490 = vst [vmem:[#allocation155_spill] sm:$0xff] %v7758_v47  ;;  %v7791_v52 = vand.u32 4294901760, %v7764_v63  ;;  %v7794_v38 = vsub.f32 %v426_v20, %v7758_v47  ;;  %v7807_v8 = vand.u32 4294901760, %v7778_v39  ;;  %v7810_v20 = vsub.f32 %v424_v34, %v7772_v53 }
  0xb2   : > { %1108 = vmatpush.msra.mxu2 %v7585_v11  ;;  %10485 = vst [vmem:[#allocation150_spill] sm:$0xff] %v7735_v9  ;;  %v7747_v11 = vand.u32 4294901760, %v7726_v62  ;;  %1166 = vmatpush.msrb.mxu0 %v7723_v21 }
  0xb3   : > { %1145 = vmatpush.msra.mxu3 %v7480_v7  ;;  %10491 = vst [vmem:[#allocation156_spill] sm:$0xff] %v7761_v30  ;;  %v7823_v7 = vand.u32 4294901760, %v418_v51  ;;  %v7826_v34 = vand.u32 4294901760, %v7794_v38  ;;  %v7842_v14 = vand.u32 4294901760, %v7810_v20 }
  0xb4   : > { %1112 = vmatpush.msra.mxu2 %v7599_v33  ;;  %10488 = vst [vmem:[#allocation153_spill] sm:$0xff] %v7747_v11  ;;  %v1203_v33 = vsub.f32 %v7717_v24, %v7735_v9  ;;  %1168 = vmatpush.msrb.mxu0 %v7732_v3 }
  0xb5   : > { %1147 = vmatpush.msra.mxu3 %v7496_v13  ;;  %10492 = vst [vmem:[#allocation157_spill] sm:$0xff] %v7764_v63  ;;  %v1227_v13 = vsub.f32 %v7764_v63, %v7791_v52  ;;  %v7858_v22 = vsub.f32 %v418_v51, %v7823_v7  ;;  %v1245_v15 = vsub.f32 %v7810_v20, %v7842_v14 }
  0xb6   : > { %1116 = vmatpush.msra.mxu2 %v7614_v44  ;;  %v1209_v44 = vsub.f32 %v7726_v62, %v7747_v11  ;;  %10493 = vst [vmem:[#allocation158_spill] sm:$0xff] %v7772_v53  ;;  %1170 = vmatpush.msrb.mxu0 %v7744_v4 }
  0xb7   : > { %1149 = vmatpush.msra.mxu3 %v7525_v37  ;;  %1118 = vmatmul.f32.vlgmr.msra.gmra.mxu2 %v7601_v17  ;;  %10494 = vst [vmem:[#allocation159_spill] sm:$0xff] %v7775_v60  ;;  %v1221_v37 = vsub.f32 %v7750_v26, %v7775_v60 }
  0xb8   : > { %1303 = vmatpush.msrb.mxu2 %v7717_v24  ;;  %10495 = vst [vmem:[#allocation160_spill] sm:$0xff] %v7778_v39  ;;  %v7786_v24 = vand.u32 4294901760, %v1203_v33  ;;  %v7802_v33 = vand.u32 4294901760, %v1209_v44  ;;  %v7819_v44 = vand.u32 4294901760, %v1215_v1  ;;  %1172 = vmatpush.msrb.mxu0 %v7758_v47 }
  0xb9   : > { %1151 = vmatpush.msra.mxu3 %v7544_v55  ;;  %10498 = vst [vmem:[#allocation163_spill] sm:$0xff] %v7791_v52  ;;  %v7798_v55 = vand.u32 4294901760, %v420_v57  ;;  %v7835_v1 = vand.u32 4294901760, %v1221_v37  ;;  %v7851_v37 = vand.u32 4294901760, %v1227_v13 }
  0xba   : > { %10497 = vst [vmem:[#allocation162_spill] sm:$0xff] %v7786_v24  ;;  %1306 = vmatpush.msrb.mxu2 %v7726_v62  ;;  %v7815_v62 = vsub.f32 %v422_v27, %v7782_v36  ;;  %1205 = vmatpush.msrb.mxu1 %v7786_v24  ;;  %v1233_v24 = vsub.f32 %v7778_v39, %v7807_v8 }
  0xbb   : > { %1153 = vmatpush.msra.mxu3 %v7562_v59  ;;  %10499 = vst [vmem:[#allocation164_spill] sm:$0xff] %v7794_v38  ;;  %v416_v59 = vld [vmem:[#allocation2 + $0x48] sm:$0xff]  ;;  %v7831_v27 = vsub.f32 %v420_v57, %v7798_v55  ;;  %1174 = vmatpush.msrb.mxu0 %v7772_v53 }
  0xbc   : > { %1155 = vmatmul.f32.vlgmr.msra.gmra.mxu3 %v7601_v17  ;;  %10500 = vst [vmem:[#allocation165_spill] sm:$0xff] %v7798_v55  ;;  %1309 = vmatpush.msrb.mxu2 %v7738_v43  ;;  %v414_v43 = vld [vmem:[#allocation2 + $0x38] sm:$0xff]  ;;  %v7839_v42 = vand.u32 4294901760, %v416_v59  ;;  %v7847_v57 = vand.u32 4294901760, %v7815_v62  ;;  %v7867_v13 = vand.u32 4294901760, %v1233_v24 }
  0xbd   : > { %1356 = vmatpush.msrb.mxu3 %v7702_v6  ;;  %10501 = vst [vmem:[#allocation166_spill] sm:$0xff] %v7802_v33  ;;  %1211 = vmatpush.msrb.mxu1 %v7802_v33  ;;  %v1239_v33 = vsub.f32 %v7794_v38, %v7826_v34  ;;  %v7855_v23 = vand.u32 4294901760, %v414_v43 }
  0xbe   : > { %10502 = vst [vmem:[#allocation167_spill] sm:$0xff] %v7807_v8  ;;  %1312 = vmatpush.msrb.mxu2 %v7750_v26  ;;  %v412_v26 = vld [vmem:[#allocation2 + $0x28] sm:$0xff]  ;;  %v7874_v51 = vsub.f32 %v416_v59, %v7839_v42  ;;  %1176 = vmatpush.msrb.mxu0 %v7782_v36  ;;  %v7887_v59 = vand.u32 4294901760, %v7858_v22 }
  0xbf   : > { %10503 = vst [vmem:[#allocation168_spill] sm:$0xff] %v7810_v20  ;;  %1358 = vmatpush.msrb.mxu3 %v7708_v46  ;;  %1217 = vmatpush.msrb.mxu1 %v7819_v44  ;;  %v7871_v16 = vand.u32 4294901760, %v412_v26  ;;  %v7882_v24 = vand.u32 4294901760, %v1239_v33  ;;  %v7890_v29 = vsub.f32 %v414_v43, %v7855_v23  ;;  %v7900_v33 = vand.u32 4294901760, %v1245_v15 }
  0xc0   : > { %10504 = vst [vmem:[#allocation169_spill] sm:$0xff] %v7815_v62  ;;  %1315 = vmatpush.msrb.mxu2 %v7764_v63  ;;  %v7863_v63 = vand.u32 4294901760, %v7831_v27  ;;  %1178 = vmatpush.msrb.mxu0 %v7798_v55  ;;  %v7905_v43 = vand.u32 4294901760, %v7874_v51  ;;  %v1263_v15 = vsub.f32 %v7858_v22, %v7887_v59 }
  0xc1   : > { %10505 = vst [vmem:[#allocation170_spill] sm:$0xff] %v7819_v44  ;;  %1360 = vmatpush.msrb.mxu3 %v7714_v18  ;;  %v410_v44 = vld [vmem:[#allocation2 + $0x18] sm:$0xff]  ;;  %1223 = vmatpush.msrb.mxu1 %v7835_v1  ;;  %v7908_v31 = vsub.f32 %v412_v26, %v7871_v16 }
  0xc2   : > { %10506 = vst [vmem:[#allocation171_spill] sm:$0xff] %v7823_v7  ;;  %1318 = vmatpush.msrb.mxu2 %v7778_v39  ;;  %v1251_v39 = vsub.f32 %v7815_v62, %v7847_v57  ;;  %v7884_v48 = vand.u32 4294901760, %v410_v44  ;;  %1180 = vmatpush.msrb.mxu0 %v7823_v7 }
  0xc3   : > { %10507 = vst [vmem:[#allocation172_spill] sm:$0xff] %v7826_v34  ;;  %1362 = vmatpush.msrb.mxu3 %v7723_v21  ;;  %1229 = vmatpush.msrb.mxu1 %v7851_v37 }
  0xc4   : > { %10508 = vst [vmem:[#allocation173_spill] sm:$0xff] %v7831_v27  ;;  %1321 = vmatpush.msrb.mxu2 %v7794_v38  ;;  %v1257_v38 = vsub.f32 %v7831_v27, %v7863_v63  ;;  %v7922_v26 = vsub.f32 %v410_v44, %v7884_v48  ;;  %1182 = vmatpush.msrb.mxu0 %v7839_v42 }
  0xc5   : > { %10509 = vst [vmem:[#allocation174_spill] sm:$0xff] %v7835_v1  ;;  %1364 = vmatpush.msrb.mxu3 %v7732_v3  ;;  %v408_v1 = vld [vmem:[#allocation2 + $0x8] sm:$0xff]  ;;  %1235 = vmatpush.msrb.mxu1 %v7867_v13  ;;  %v1269_v44 = vsub.f32 %v7874_v51, %v7905_v43 }
  0xc6   : > { %10510 = vst [vmem:[#allocation175_spill] sm:$0xff] %v7839_v42  ;;  %1324 = vmatpush.msrb.mxu2 %v7810_v20  ;;  %v7902_v32 = vand.u32 4294901760, %v408_v1  ;;  %v7912_v20 = vand.u32 4294901760, %v1251_v39  ;;  %v7928_v39 = vand.u32 4294901760, %v1257_v38  ;;  %v462_v38 = vld [vmem:[#allocation2 + $0x1b8] sm:$0xff]  ;;  %1184 = vmatpush.msrb.mxu0 %v7855_v23 }
  0xc7   : > { %10511 = vst [vmem:[#allocation176_spill] sm:$0xff] %v7842_v14  ;;  %1366 = vmatpush.msrb.mxu3 %v7744_v4  ;;  %1241 = vmatpush.msrb.mxu1 %v7882_v24  ;;  %v7970_v35 = vand.u32 4294901760, %v1269_v44 }
  0xc8   : > { %10512 = vst [vmem:[#allocation177_spill] sm:$0xff] %v7847_v57  ;;  %1327 = vmatpush.msrb.mxu2 %v7815_v62  ;;  %v7941_v58 = vsub.f32 %v408_v1, %v7902_v32  ;;  %v7956_v1 = vand.u32 4294901760, %v7922_v26  ;;  %1186 = vmatpush.msrb.mxu0 %v7871_v16 }
  0xc9   : > { %10513 = vst [vmem:[#allocation178_spill] sm:$0xff] %v7851_v37  ;;  %v7896_v37 = vand.u32 4294901760, %v470_v2  ;;  %1368 = vmatpush.msrb.mxu3 %v7758_v47  ;;  %1247 = vmatpush.msrb.mxu1 %v7900_v33 }
  0xca   : > { %10514 = vst [vmem:[#allocation179_spill] sm:$0xff] %v7855_v23  ;;  %1330 = vmatpush.msrb.mxu2 %v7831_v27  ;;  %v7951_v27 = vand.u32 4294901760, %v1263_v15  ;;  %v460_v15 = vld [vmem:[#allocation2 + $0x1a8] sm:$0xff]  ;;  %v7975_v28 = vand.u32 4294901760, %v7941_v58  ;;  %1188 = vmatpush.msrb.mxu0 %v7884_v48  ;;  %v1287_v56 = vsub.f32 %v7922_v26, %v7956_v1 }
  0xcb   : > { %10515 = vst [vmem:[#allocation180_spill] sm:$0xff] %v7858_v22  ;;  %1370 = vmatpush.msrb.mxu3 %v7772_v53  ;;  %v7931_v62 = vsub.f32 %v470_v2, %v7896_v37  ;;  %v7947_v2 = vand.u32 4294901760, %v464_v0  ;;  %1253 = vmatpush.msrb.mxu1 %v7912_v20  ;;  %v7994_v45 = vand.u32 4294901760, %v460_v15 }
  0xcc   : > { %10516 = vst [vmem:[#allocation181_spill] sm:$0xff] %v7863_v63  ;;  %1333 = vmatpush.msrb.mxu2 %v7858_v22  ;;  %1190 = vmatpush.msrb.mxu0 %v7902_v32  ;;  %v1293_v17 = vsub.f32 %v7941_v58, %v7975_v28 }
  0xcd   : > { %10517 = vst [vmem:[#allocation182_spill] sm:$0xff] %v7867_v13  ;;  %v7919_v13 = vand.u32 4294901760, %v7890_v29  ;;  %1372 = vmatpush.msrb.mxu3 %v7782_v36  ;;  %v7964_v22 = vand.u32 4294901760, %v7931_v62  ;;  %1259 = vmatpush.msrb.mxu1 %v7928_v39  ;;  %v7983_v25 = vsub.f32 %v464_v0, %v7947_v2 }
  0xce   : > { %10518 = vst [vmem:[#allocation183_spill] sm:$0xff] %v7871_v16  ;;  %1336 = vmatpush.msrb.mxu2 %v7874_v51  ;;  %1397 = vmatpush.msra.mxu0 %v7735_v9 }
  0xcf   : > { %10519 = vst [vmem:[#allocation184_spill] sm:$0xff] %v7874_v51  ;;  %1374 = vmatpush.msrb.mxu3 %v7798_v55  ;;  %v7978_v51 = vsub.f32 %v466_v12, %v7943_v50  ;;  %1265 = vmatpush.msrb.mxu1 %v7951_v27  ;;  %v7992_v12 = vand.u32 4294901760, %v7959_v41  ;;  %v1544_v0 = vsub.f32 %v7931_v62, %v7964_v22 }
  0xd0   : > { %10520 = vst [vmem:[#allocation185_spill] sm:$0xff] %v7882_v24  ;;  %v7938_v24 = vand.u32 4294901760, %v7908_v31  ;;  %1339 = vmatpush.msrb.mxu2 %v7890_v29  ;;  %1401 = vmatpush.msra.mxu0 %v7747_v11 }
  0xd1   : > { %10521 = vst [vmem:[#allocation186_spill] sm:$0xff] %v7884_v48  ;;  %1376 = vmatpush.msrb.mxu3 %v7823_v7  ;;  %1271 = vmatpush.msrb.mxu1 %v7970_v35  ;;  %v8010_v61 = vand.u32 4294901760, %v7978_v51  ;;  %v1550_v19 = vsub.f32 %v7959_v41, %v7992_v12  ;;  %v8032_v9 = vand.u32 4294901760, %v1544_v0 }
  0xd2   : > { %10522 = vst [vmem:[#allocation187_spill] sm:$0xff] %v7887_v59  ;;  %v1281_v40 = vsub.f32 %v7908_v31, %v7938_v24  ;;  %1342 = vmatpush.msrb.mxu2 %v7908_v31  ;;  %1405 = vmatpush.msra.mxu0 %v7761_v30 }
  0xd3   : > { %10523 = vst [vmem:[#allocation188_spill] sm:$0xff] %v7890_v29  ;;  %1378 = vmatpush.msrb.mxu3 %v7839_v42  ;;  %1196 = vmatmul.f32.vlgmr.msrb.gmra.mxu0 %v7618_v54  ;;  %v10606_v54 = vld [vmem:[#allocation127_spill] sm:$0xff] }
  0xd4   : > { %10524 = vst [vmem:[#allocation189_spill] sm:$0xff] %v7896_v37  ;;  %1345 = vmatpush.msrb.mxu2 %v7922_v26  ;;  %1409 = vmatpush.msra.mxu0 %v7775_v60 }
  0xd5   : > { %10525 = vst [vmem:[#allocation190_spill] sm:$0xff] %v7900_v33  ;;  %v1275_v33 = vsub.f32 %v7890_v29, %v7919_v13  ;;  %1380 = vmatpush.msrb.mxu3 %v7855_v23 }
  0xd6   : > { %10526 = vst [vmem:[#allocation191_spill] sm:$0xff] %v7902_v32  ;;  %1348 = vmatpush.msrb.mxu2 %v7941_v58  ;;  %1413 = vmatpush.msra.mxu0 %v7791_v52 }
  0xd7   : > { %10527 = vst [vmem:[#allocation192_spill] sm:$0xff] %v7905_v43  ;;  %v7987_v44 = vand.u32 4294901760, %v1275_v33  ;;  %v456_v33 = vld [vmem:[#allocation2 + $0x188] sm:$0xff]  ;;  %1382 = vmatpush.msrb.mxu3 %v7871_v16  ;;  %1351 = vmatmul.f32.vlgmr.msrb.gmra.mxu2 %v7542_v5  ;;  %v10608_v5 = vld [vmem:[#allocation114_spill] sm:$0xff] }
  0xd8   : > { %10528 = vst [vmem:[#allocation193_spill] sm:$0xff] %v7908_v31  ;;  %v8028_v10 = vand.u32 4294901760, %v456_v33  ;;  %1501 = vmatpush.msra.mxu2 %v7896_v37  ;;  %1417 = vmatpush.msra.mxu0 %v7807_v8  ;;  %v444_v8 = vld [vmem:[#allocation2 + $0x128] sm:$0xff] }
  0xd9   : > { %10529 = vst [vmem:[#allocation194_spill] sm:$0xff] %v7912_v20  ;;  %v7966_v20 = vand.u32 4294901760, %v462_v38  ;;  %1277 = vmatpush.msrb.mxu1 %v7987_v44  ;;  %1384 = vmatpush.msrb.mxu3 %v7884_v48 }
  0xda   : > { %10530 = vst [vmem:[#allocation195_spill] sm:$0xff] %v7919_v13  ;;  %1503 = vmatpush.msra.mxu2 %v7924_v49  ;;  %1421 = vmatpush.msra.mxu0 %v7826_v34  ;;  %v8128_v34 = vand.u32 4294901760, %v444_v8 }
  0xdb   : > { %10531 = vst [vmem:[#allocation196_spill] sm:$0xff] %v7922_v26  ;;  %v8001_v29 = vsub.f32 %v462_v38, %v7966_v20  ;;  %v8017_v38 = vand.u32 4294901760, %v7983_v25  ;;  %1386 = vmatpush.msrb.mxu3 %v7902_v32 }
  0xdc   : > { %10533 = vst [vmem:[#allocation198_spill] sm:$0xff] %v7928_v39  ;;  %v458_v39 = vld [vmem:[#allocation2 + $0x198] sm:$0xff]  ;;  %1505 = vmatpush.msra.mxu2 %v7943_v50  ;;  %1425 = vmatpush.msra.mxu0 %v7842_v14 }
  0xdd   : > { %10534 = vst [vmem:[#allocation199_spill] sm:$0xff] %v7931_v62  ;;  %v8012_v31 = vand.u32 4294901760, %v458_v39  ;;  %v8035_v26 = vand.u32 4294901760, %v8001_v29  ;;  %v1562_v0 = vsub.f32 %v7983_v25, %v8017_v38  ;;  %1546 = vmatpush.msra.mxu3 %v8032_v9 }
  0xde   : > { %10535 = vst [vmem:[#allocation200_spill] sm:$0xff] %v7938_v24  ;;  %1507 = vmatpush.msra.mxu2 %v7947_v2  ;;  %1429 = vmatpush.msra.mxu0 %v7847_v57 }
  0xdf   : > { %10536 = vst [vmem:[#allocation201_spill] sm:$0xff] %v7941_v58  ;;  %v450_v58 = vld [vmem:[#allocation2 + $0x158] sm:$0xff]  ;;  %v1568_v30 = vsub.f32 %v8001_v29, %v8035_v26  ;;  %v8082_v60 = vand.u32 4294901760, %v1562_v0  ;;  %1390 = vmatmul.f32.vlgmr.msrb.gmra.mxu3 %v10606_v54 }
  0xe0   : > { %10537 = vst [vmem:[#allocation202_spill] sm:$0xff] %v7943_v50  ;;  %v8078_v32 = vand.u32 4294901760, %v450_v58  ;;  %1509 = vmatpush.msra.mxu2 %v7966_v20  ;;  %1433 = vmatpush.msra.mxu0 %v7863_v63 }
  0xe1   : > { %10538 = vst [vmem:[#allocation203_spill] sm:$0xff] %v7947_v2  ;;  %v8098_v0 = vand.u32 4294901760, %v1568_v30 }
  0xe2   : > { %10539 = vst [vmem:[#allocation204_spill] sm:$0xff] %v7951_v27  ;;  %v8005_v27 = vand.u32 4294901760, %v1281_v40  ;;  %v8021_v40 = vand.u32 4294901760, %v1287_v56  ;;  %v8039_v56 = vand.u32 4294901760, %v1293_v17  ;;  %v8054_v17 = vand.u32 4294901760, %v1550_v19  ;;  %1511 = vmatpush.msra.mxu2 %v7994_v45  ;;  %1437 = vmatpush.msra.mxu0 %v7887_v59 }
  0xe3   : > { %10540 = vst [vmem:[#allocation205_spill] sm:$0xff] %v7956_v1 }
  0xe4   : > { %10541 = vst [vmem:[#allocation206_spill] sm:$0xff] %v7959_v41  ;;  %1283 = vmatpush.msrb.mxu1 %v8005_v27  ;;  %1552 = vmatpush.msra.mxu3 %v8054_v17 }
  0xe5   : > { %10542 = vst [vmem:[#allocation207_spill] sm:$0xff] %v7964_v22  ;;  %v8026_v22 = vsub.f32 %v460_v15, %v7994_v45  ;;  %v1556_v15 = vsub.f32 %v7978_v51, %v8010_v61  ;;  %1513 = vmatpush.msra.mxu2 %v8012_v31  ;;  %1441 = vmatpush.msra.mxu0 %v7905_v43 }
  0xe6   : > { %10543 = vst [vmem:[#allocation208_spill] sm:$0xff] %v7966_v20  ;;  %1289 = vmatpush.msrb.mxu1 %v8021_v40 }
  0xe7   : > { %10544 = vst [vmem:[#allocation209_spill] sm:$0xff] %v7970_v35  ;;  %v454_v35 = vld [vmem:[#allocation2 + $0x178] sm:$0xff]  ;;  %v8070_v19 = vand.u32 4294901760, %v1556_v15  ;;  %1515 = vmatpush.msra.mxu2 %v8028_v10  ;;  %1445 = vmatpush.msra.mxu0 %v7919_v13 }
  0xe8   : > { %10545 = vst [vmem:[#allocation210_spill] sm:$0xff] %v7975_v28  ;;  %v8046_v11 = vand.u32 4294901760, %v454_v35  ;;  %1295 = vmatpush.msrb.mxu1 %v8039_v56 }
  0xe9   : > { %10546 = vst [vmem:[#allocation211_spill] sm:$0xff] %v7978_v51  ;;  %1558 = vmatpush.msra.mxu3 %v8070_v19  ;;  %1449 = vmatpush.msra.mxu0 %v7938_v24 }
  0xea   : > { %10547 = vst [vmem:[#allocation212_spill] sm:$0xff] %v7983_v25  ;;  %1464 = vmatpush.msra.mxu1 %v7702_v6  ;;  %1517 = vmatpush.msra.mxu2 %v8046_v11 }
  0xeb   : > { %10548 = vst [vmem:[#allocation213_spill] sm:$0xff] %v7987_v44  ;;  %v452_v44 = vld [vmem:[#allocation2 + $0x168] sm:$0xff]  ;;  %1564 = vmatpush.msra.mxu3 %v8082_v60  ;;  %1453 = vmatpush.msra.mxu0 %v7956_v1 }
  0xec   : > { %10549 = vst [vmem:[#allocation214_spill] sm:$0xff] %v7992_v12  ;;  %v8044_v12 = vsub.f32 %v458_v39, %v8012_v31  ;;  %v8060_v39 = vsub.f32 %v456_v33, %v8028_v10  ;;  %v8076_v33 = vsub.f32 %v454_v35, %v8046_v11  ;;  %1466 = vmatpush.msra.mxu1 %v7708_v46 }
  0xed   : > { %10550 = vst [vmem:[#allocation215_spill] sm:$0xff] %v7994_v45  ;;  %1570 = vmatpush.msra.mxu3 %v8098_v0  ;;  %1457 = vmatpush.msra.mxu0 %v7975_v28 }
  0xee   : > { %10551 = vst [vmem:[#allocation216_spill] sm:$0xff] %v8001_v29  ;;  %1468 = vmatpush.msra.mxu1 %v7714_v18  ;;  %1459 = vmatmul.f32.vlgmr.msra.gmra.mxu0 %v10608_v5 }
  0xef   : > { %10552 = vst [vmem:[#allocation217_spill] sm:$0xff] %v8005_v27  ;;  %v8057_v27 = vand.u32 4294901760, %v8026_v22  ;;  %1644 = vmatpush.msrb.mxu0 %v7931_v62  ;;  %1297 = vmatmul.f32.vlgmr.msrb.gmra.mxu1 %v10608_v5  ;;  %v10614_v62 = vld [vmem:[#allocation134_spill] sm:$0xff] }
  0xf0   : > { %10553 = vst [vmem:[#allocation218_spill] sm:$0xff] %v8010_v61  ;;  %v8062_v61 = vand.u32 4294901760, %v452_v44  ;;  %1470 = vmatpush.msra.mxu1 %v7723_v21  ;;  %v440_v21 = vld [vmem:[#allocation2 + $0x108] sm:$0xff] }
  0xf1   : > { %10554 = vst [vmem:[#allocation219_spill] sm:$0xff] %v8012_v31  ;;  %v1574_v15 = vsub.f32 %v8026_v22, %v8057_v27  ;;  %1647 = vmatpush.msrb.mxu0 %v7959_v41  ;;  %v10610_v41 = vld [vmem:[#allocation191_spill] sm:$0xff] }
  0xf2   : > { %10555 = vst [vmem:[#allocation220_spill] sm:$0xff] %v8017_v38  ;;  %v8073_v38 = vand.u32 4294901760, %v8044_v12  ;;  %v8092_v35 = vsub.f32 %v452_v44, %v8062_v61  ;;  %v8108_v44 = vsub.f32 %v450_v58, %v8078_v32  ;;  %1472 = vmatpush.msra.mxu1 %v7732_v3  ;;  %v8169_v3 = vand.u32 4294901760, %v440_v21  ;;  %1519 = vmatpush.msra.mxu2 %v8062_v61 }
  0xf3   : > { %10556 = vst [vmem:[#allocation221_spill] sm:$0xff] %v8021_v40  ;;  %v448_v40 = vld [vmem:[#allocation2 + $0x148] sm:$0xff]  ;;  %v8116_v30 = vand.u32 4294901760, %v1574_v15  ;;  %1650 = vmatpush.msrb.mxu0 %v7978_v51  ;;  %v10612_v51 = vld [vmem:[#allocation142_spill] sm:$0xff] }
  0xf4   : > { %10557 = vst [vmem:[#allocation222_spill] sm:$0xff] %v8026_v22  ;;  %v1580_v52 = vsub.f32 %v8044_v12, %v8073_v38  ;;  %v8121_v46 = vand.u32 4294901760, %v8092_v35  ;;  %v8137_v18 = vand.u32 4294901760, %v8108_v44  ;;  %1474 = vmatpush.msra.mxu1 %v7744_v4  ;;  %1521 = vmatpush.msra.mxu2 %v8078_v32 }
  0xf5   : > { %10558 = vst [vmem:[#allocation223_spill] sm:$0xff] %v8028_v10  ;;  %1576 = vmatpush.msra.mxu3 %v8116_v30  ;;  %1653 = vmatpush.msrb.mxu0 %v7983_v25 }
  0xf6   : > { %10559 = vst [vmem:[#allocation224_spill] sm:$0xff] %v8032_v9  ;;  %v8089_v9 = vand.u32 4294901760, %v8060_v39  ;;  %v8132_v15 = vand.u32 4294901760, %v1580_v52  ;;  %1476 = vmatpush.msra.mxu1 %v7758_v47 }
  0xf7   : > { %10560 = vst [vmem:[#allocation225_spill] sm:$0xff] %v8035_v26  ;;  %v446_v26 = vld [vmem:[#allocation2 + $0x138] sm:$0xff]  ;;  %1656 = vmatpush.msrb.mxu0 %v8001_v29  ;;  %v10611_v54 = vld [vmem:[#allocation218_spill] sm:$0xff] }
  0xf8   : > { %10561 = vst [vmem:[#allocation226_spill] sm:$0xff] %v8039_v56  ;;  %v8094_v56 = vand.u32 4294901760, %v448_v40  ;;  %v8110_v6 = vand.u32 4294901760, %v446_v26  ;;  %1582 = vmatpush.msra.mxu3 %v8132_v15  ;;  %1478 = vmatpush.msra.mxu1 %v7772_v53 }
  0xf9   : > { %10562 = vst [vmem:[#allocation227_spill] sm:$0xff] %v8044_v12  ;;  %1659 = vmatpush.msrb.mxu0 %v8026_v22  ;;  %v10613_v25 = vld [vmem:[#allocation220_spill] sm:$0xff]  ;;  %v10659_v22 = vld [vmem:[#allocation82_spill] sm:$0xff] }
  0xfa   : > { %10563 = vst [vmem:[#allocation228_spill] sm:$0xff] %v8046_v11  ;;  %v8124_v58 = vsub.f32 %v448_v40, %v8094_v56  ;;  %v8140_v40 = vsub.f32 %v446_v26, %v8110_v6  ;;  %v8158_v26 = vsub.f32 %v444_v8, %v8128_v34  ;;  %1480 = vmatpush.msra.mxu1 %v7782_v36 }
  0xfb   : > { %10564 = vst [vmem:[#allocation229_spill] sm:$0xff] %v8054_v17  ;;  %v8105_v17 = vand.u32 4294901760, %v8076_v33  ;;  %1523 = vmatpush.msra.mxu2 %v8094_v56  ;;  %1662 = vmatpush.msrb.mxu0 %v8044_v12  ;;  %v10653_v12 = vld [vmem:[#allocation71_spill] sm:$0xff] }
  0xfc   : > { %10565 = vst [vmem:[#allocation230_spill] sm:$0xff] %v8057_v27  ;;  %v8185_v59 = vand.u32 4294901760, %v8158_v26  ;;  %1482 = vmatpush.msra.mxu1 %v7798_v55 }
  0xfd   : > { %10566 = vst [vmem:[#allocation231_spill] sm:$0xff] %v8060_v39  ;;  %1525 = vmatpush.msra.mxu2 %v8110_v6  ;;  %1665 = vmatpush.msrb.mxu0 %v8060_v39 }
  0xfe   : > { %10567 = vst [vmem:[#allocation232_spill] sm:$0xff] %v8062_v61  ;;  %1484 = vmatpush.msra.mxu1 %v7823_v7  ;;  %v10615_v29 = vld [vmem:[#allocation225_spill] sm:$0xff] }
  0xff   : > { %10568 = vst [vmem:[#allocation233_spill] sm:$0xff] %v8070_v19  ;;  %v1586_v19 = vsub.f32 %v8060_v39, %v8089_v9  ;;  %1527 = vmatpush.msra.mxu2 %v8128_v34  ;;  %1668 = vmatpush.msrb.mxu0 %v8076_v33  ;;  %v10647_v39 = vld [vmem:[#allocation62_spill] sm:$0xff] }
 0x100   : > { %10569 = vst [vmem:[#allocation234_spill] sm:$0xff] %v8073_v38  ;;  %v442_v38 = vld [vmem:[#allocation2 + $0x118] sm:$0xff]  ;;  %1486 = vmatpush.msra.mxu1 %v7839_v42 }
 0x101   : > { %10570 = vst [vmem:[#allocation235_spill] sm:$0xff] %v8076_v33  ;;  %v8144_v14 = vand.u32 4294901760, %v442_v38  ;;  %v8148_v52 = vand.u32 4294901760, %v1586_v19  ;;  %v1604_v19 = vsub.f32 %v8108_v44, %v8137_v18  ;;  %1671 = vmatpush.msrb.mxu0 %v8092_v35 }
 0x102   : > { %10571 = vst [vmem:[#allocation236_spill] sm:$0xff] %v8078_v32  ;;  %1488 = vmatpush.msra.mxu1 %v7855_v23 }
 0x103   : > { %10572 = vst [vmem:[#allocation237_spill] sm:$0xff] %v8082_v60  ;;  %v1592_v60 = vsub.f32 %v8076_v33, %v8105_v17  ;;  %v8174_v8 = vsub.f32 %v442_v38, %v8144_v14  ;;  %1588 = vmatpush.msra.mxu3 %v8148_v52  ;;  %v8189_v38 = vand.u32 4294901760, %v1604_v19  ;;  %1529 = vmatpush.msra.mxu2 %v8144_v14  ;;  %v10641_v33 = vld [vmem:[#allocation53_spill] sm:$0xff] }
 0x104   : > { %10573 = vst [vmem:[#allocation238_spill] sm:$0xff] %v8089_v9  ;;  %1490 = vmatpush.msra.mxu1 %v7871_v16  ;;  %1674 = vmatpush.msrb.mxu0 %v8108_v44 }
 0x105   : > { %10574 = vst [vmem:[#allocation239_spill] sm:$0xff] %v8092_v35  ;;  %v8162_v57 = vand.u32 4294901760, %v1592_v60  ;;  %v8199_v43 = vand.u32 4294901760, %v8174_v8  ;;  %1531 = vmatpush.msra.mxu2 %v8169_v3 }
 0x106   : > { %10575 = vst [vmem:[#allocation240_spill] sm:$0xff] %v8094_v56  ;;  %1492 = vmatpush.msra.mxu1 %v7884_v48  ;;  %1537 = vmatmul.f32.vlgmr.msra.gmra.mxu2 %v10612_v51 }
 0x107   : > { %10576 = vst [vmem:[#allocation241_spill] sm:$0xff] %v8098_v0  ;;  %v1598_v0 = vsub.f32 %v8092_v35, %v8121_v46  ;;  %1594 = vmatpush.msra.mxu3 %v8162_v57  ;;  %v10616_v51 = vld [vmem:[#allocation234_spill] sm:$0xff]  ;;  %1677 = vmatpush.msrb.mxu0 %v8124_v58  ;;  %v10635_v35 = vld [vmem:[#allocation44_spill] sm:$0xff] }
 0x108   : > { %10577 = vst [vmem:[#allocation242_spill] sm:$0xff] %v8105_v17  ;;  %v8153_v17 = vand.u32 4294901760, %v8124_v58  ;;  %1494 = vmatpush.msra.mxu1 %v10610_v41  ;;  %v515_v28 = vpop.f32.mrf.mxu0 }
 0x109   : > { %10578 = vst [vmem:[#allocation243_spill] sm:$0xff] %v8108_v44  ;;  %v8178_v60 = vand.u32 4294901760, %v1598_v0  ;;  %1496 = vmatmul.f32.vlgmr.msra.gmra.mxu1 %v10608_v5  ;;  %1680 = vmatpush.msrb.mxu0 %v8140_v40  ;;  %v10626_v44 = vld [vmem:[#allocation32_spill] sm:$0xff] }
 0x10a   : > { %10579 = vst [vmem:[#allocation244_spill] sm:$0xff] %v8110_v6  ;;  %v1610_v63 = vsub.f32 %v8124_v58, %v8153_v17  ;;  %1697 = vmatpush.msrb.mxu1 %v7896_v37 }
 0x10b   : > { %10580 = vst [vmem:[#allocation245_spill] sm:$0xff] %v8116_v30  ;;  %v8167_v30 = vand.u32 4294901760, %v8140_v40  ;;  %1600 = vmatpush.msra.mxu3 %v8178_v60  ;;  %1683 = vmatpush.msrb.mxu0 %v8158_v26 }
 0x10c   : > { %10581 = vst [vmem:[#allocation246_spill] sm:$0xff] %v8121_v46  ;;  %1699 = vmatpush.msrb.mxu1 %v7924_v49 }
 0x10d   : > { %10582 = vst [vmem:[#allocation247_spill] sm:$0xff] %v8124_v58  ;;  %v1616_v0 = vsub.f32 %v8140_v40, %v8167_v30  ;;  %1606 = vmatpush.msra.mxu3 %v8189_v38  ;;  %1686 = vmatpush.msrb.mxu0 %v8174_v8  ;;  %v10623_v58 = vld [vmem:[#allocation31_spill] sm:$0xff] }
 0x10e   : > { %10583 = vst [vmem:[#allocation248_spill] sm:$0xff] %v8128_v34  ;;  %1701 = vmatpush.msrb.mxu1 %v7943_v50 }
 0x10f   : > { %10584 = vst [vmem:[#allocation249_spill] sm:$0xff] %v8132_v15  ;;  %v8211_v19 = vand.u32 4294901760, %v1616_v0  ;;  %v10617_v5 = vld [vmem:[#allocation242_spill] sm:$0xff] }
 0x110   : > { %10585 = vst [vmem:[#allocation250_spill] sm:$0xff] %v8137_v18  ;;  %1703 = vmatpush.msrb.mxu1 %v7947_v2 }
 0x111   : > { %10586 = vst [vmem:[#allocation251_spill] sm:$0xff] %v8140_v40  ;;  %v10622_v40 = vld [vmem:[#allocation15_spill] sm:$0xff] }
 0x112   : > { %10587 = vst [vmem:[#allocation252_spill] sm:$0xff] %v8144_v14  ;;  %1705 = vmatpush.msrb.mxu1 %v7966_v20 }
 0x113   : > { %10588 = vst [vmem:[#allocation253_spill] sm:$0xff] %v8148_v52  ;;  %v8194_v52 = vsub.f32 %v440_v21, %v8169_v3  ;;  %v1622_v21 = vsub.f32 %v8158_v26, %v8185_v59 }
 0x114   : > { %10589 = vst [vmem:[#allocation254_spill] sm:$0xff] %v8153_v17  ;;  %1707 = vmatpush.msrb.mxu1 %v7994_v45 }
 0x115   : > { %10590 = vst [vmem:[#allocation255_spill] sm:$0xff] %v8158_v26  ;;  %v8214_v13 = vand.u32 4294901760, %v8194_v52  ;;  %v8224_v0 = vand.u32 4294901760, %v1622_v21  ;;  %1689 = vmatpush.msrb.mxu0 %v8194_v52  ;;  %v10618_v26 = vld [vmem:[#allocation137_spill] sm:$0xff] }
 0x116   : > { %10591 = vst [vmem:[#allocation256_spill] sm:$0xff] %v8162_v57  ;;  %v8203_v57 = vand.u32 4294901760, %v1610_v63  ;;  %v1628_v63 = vsub.f32 %v8174_v8, %v8199_v43  ;;  %1709 = vmatpush.msrb.mxu1 %v8012_v31  ;;  %1692 = vmatmul.f32.vlgmr.msrb.gmra.mxu0 %v10618_v26  ;;  %v10620_v26 = vld [vmem:[#allocation14_spill] sm:$0xff] }
 0x117   : > { %10592 = vst [vmem:[#allocation257_spill] sm:$0xff] %v8167_v30  ;;  %v1634_v1 = vsub.f32 %v8194_v52, %v8214_v13 }
 0x118   : > { %10593 = vst [vmem:[#allocation258_spill] sm:$0xff] %v8169_v3  ;;  %1612 = vmatpush.msra.mxu3 %v8203_v57  ;;  %v8232_v24 = vand.u32 4294901760, %v1628_v63  ;;  %v10607_v63 = vld [vmem:[#allocation207_spill] sm:$0xff]  ;;  %1711 = vmatpush.msrb.mxu1 %v8028_v10 }
 0x119   : > { %10594 = vst [vmem:[#allocation259_spill] sm:$0xff] %v8174_v8  ;;  %v8240_v21 = vand.u32 4294901760, %v1634_v1  ;;  %1738 = vmatpush.msrb.mxu2 %v10607_v63  ;;  %v10609_v1 = vld [vmem:[#allocation214_spill] sm:$0xff]  ;;  %v10619_v8 = vld [vmem:[#allocation8_spill] sm:$0xff] }
 0x11a   : > { %10595 = vst [vmem:[#allocation260_spill] sm:$0xff] %v8178_v60  ;;  %1618 = vmatpush.msra.mxu3 %v8211_v19  ;;  %1713 = vmatpush.msrb.mxu1 %v8046_v11 }
 0x11b   : > { %10596 = vst [vmem:[#allocation261_spill] sm:$0xff] %v8185_v59  ;;  %1742 = vmatpush.msrb.mxu2 %v10609_v1  ;;  %1856 = vmatpush.msra.mxu0 %v10619_v8 }
 0x11c   : > { %10597 = vst [vmem:[#allocation262_spill] sm:$0xff] %v8189_v38  ;;  %1624 = vmatpush.msra.mxu3 %v8224_v0  ;;  %1715 = vmatpush.msrb.mxu1 %v8062_v61 }
 0x11d   : > { %10598 = vst [vmem:[#allocation263_spill] sm:$0xff] %v8194_v52  ;;  %1746 = vmatpush.msrb.mxu2 %v10611_v54  ;;  %v10621_v52 = vld [vmem:[#allocation140_spill] sm:$0xff]  ;;  %v670_v54 = vpop.f32.mrf.mxu2 }
 0x11e   : > { %10599 = vst [vmem:[#allocation264_spill] sm:$0xff] %v8199_v43  ;;  %1630 = vmatpush.msra.mxu3 %v8232_v24  ;;  %1717 = vmatpush.msrb.mxu1 %v8078_v32 }
 0x11f   : > { %10600 = vst [vmem:[#allocation265_spill] sm:$0xff] %v8203_v57  ;;  %1750 = vmatpush.msrb.mxu2 %v10613_v25  ;;  %v10676_v25 = vld [vmem:[#allocation100_spill] sm:$0xff] }
 0x120   : > { %10601 = vst [vmem:[#allocation266_spill] sm:$0xff] %v8211_v19  ;;  %1636 = vmatpush.msra.mxu3 %v8240_v21  ;;  %1719 = vmatpush.msrb.mxu1 %v8094_v56 }
 0x121   : > { %10602 = vst [vmem:[#allocation267_spill] sm:$0xff] %v8214_v13  ;;  %1638 = vmatmul.f32.vlgmr.msra.gmra.mxu3 %v10614_v62  ;;  %1754 = vmatpush.msrb.mxu2 %v10615_v29  ;;  %v10674_v29 = vld [vmem:[#allocation22_spill] sm:$0xff] }
 0x122   : > { %10603 = vst [vmem:[#allocation268_spill] sm:$0xff] %v8224_v0  ;;  %1805 = vmatpush.msrb.mxu3 %v7896_v37  ;;  %1721 = vmatpush.msrb.mxu1 %v8110_v6 }
 0x123   : > { %10604 = vst [vmem:[#allocation269_spill] sm:$0xff] %v8232_v24  ;;  %1758 = vmatpush.msrb.mxu2 %v8057_v27  ;;  %v10673_v27 = vld [vmem:[#allocation94_spill] sm:$0xff] }
 0x124   : > { %10605 = vst [vmem:[#allocation270_spill] sm:$0xff] %v8240_v21  ;;  %1807 = vmatpush.msrb.mxu3 %v7924_v49  ;;  %1723 = vmatpush.msrb.mxu1 %v8128_v34 }
 0x125   : > { %1762 = vmatpush.msrb.mxu2 %v10616_v51  ;;  %v10668_v51 = vld [vmem:[#allocation96_spill] sm:$0xff]  ;;  %v856_v21 = vpop.f32.mrf.mxu2 }
 0x126   : > { %1809 = vmatpush.msrb.mxu3 %v7943_v50  ;;  %1725 = vmatpush.msrb.mxu1 %v8144_v14 }
 0x127   : > { %1766 = vmatpush.msrb.mxu2 %v8089_v9  ;;  %v10665_v9 = vld [vmem:[#allocation91_spill] sm:$0xff] }
 0x128   : > { %1811 = vmatpush.msrb.mxu3 %v7947_v2  ;;  %1727 = vmatpush.msrb.mxu1 %v8169_v3 }
 0x129   : > { %1770 = vmatpush.msrb.mxu2 %v10617_v5  ;;  %1731 = vmatmul.f32.vlgmr.msrb.gmra.mxu1 %v10621_v52  ;;  %v10630_v52 = vld [vmem:[#allocation19_spill] sm:$0xff]  ;;  %v10662_v5 = vld [vmem:[#allocation86_spill] sm:$0xff] }
 0x12a   : > { %1813 = vmatpush.msrb.mxu3 %v7966_v20  ;;  %1901 = vmatpush.msra.mxu1 %v10623_v58  ;;  %v10632_v58 = vld [vmem:[#allocation38_spill] sm:$0xff] }
 0x12b   : > { %1774 = vmatpush.msrb.mxu2 %v8121_v46  ;;  %v10656_v46 = vld [vmem:[#allocation78_spill] sm:$0xff] }
 0x12c   : > { %1815 = vmatpush.msrb.mxu3 %v7994_v45  ;;  %1907 = vmatpush.msra.mxu1 %v10626_v44  ;;  %v10634_v44 = vld [vmem:[#allocation12_spill] sm:$0xff] }
 0x12d   : > { %1778 = vmatpush.msrb.mxu2 %v8137_v18  ;;  %v10650_v18 = vld [vmem:[#allocation68_spill] sm:$0xff] }
 0x12e   : > { %1817 = vmatpush.msrb.mxu3 %v8012_v31 }
 0x12f   : > { %1782 = vmatpush.msrb.mxu2 %v8153_v17  ;;  %v10644_v17 = vld [vmem:[#allocation58_spill] sm:$0xff] }
 0x130   : > { %1819 = vmatpush.msrb.mxu3 %v8028_v10 }
 0x131   : > { %1786 = vmatpush.msrb.mxu2 %v8167_v30  ;;  %v10638_v30 = vld [vmem:[#allocation47_spill] sm:$0xff] }
 0x132   : > { %1821 = vmatpush.msrb.mxu3 %v8046_v11 }
 0x133   : > { %1790 = vmatpush.msrb.mxu2 %v8185_v59  ;;  %v10629_v59 = vld [vmem:[#allocation35_spill] sm:$0xff] }
 0x134   : > { %1823 = vmatpush.msrb.mxu3 %v8062_v61  ;;  %1913 = vmatpush.msra.mxu1 %v10629_v59  ;;  %v10637_v59 = vld [vmem:[#allocation13_spill] sm:$0xff] }
 0x135   : > { %1794 = vmatpush.msrb.mxu2 %v8199_v43  ;;  %v10625_v43 = vld [vmem:[#allocation9_spill] sm:$0xff] }
 0x136   : > { %1825 = vmatpush.msrb.mxu3 %v8078_v32  ;;  %1858 = vmatpush.msra.mxu0 %v10625_v43 }
 0x137   : > { %1798 = vmatpush.msrb.mxu2 %v8214_v13  ;;  %v10624_v13 = vld [vmem:[#allocation16_spill] sm:$0xff]  ;;  %1919 = vmatpush.msra.mxu1 %v10632_v58  ;;  %v10640_v58 = vld [vmem:[#allocation17_spill] sm:$0xff] }
 0x138   : > { %1827 = vmatpush.msrb.mxu3 %v8094_v56  ;;  %1800 = vmatmul.f32.vlgmr.msrb.gmra.mxu2 %v10614_v62 }
 0x139   : > { %1999 = vmatpush.msra.mxu2 %v10620_v26  ;;  %v10627_v26 = vld [vmem:[#allocation18_spill] sm:$0xff]  ;;  %1925 = vmatpush.msra.mxu1 %v10635_v35  ;;  %v10643_v35 = vld [vmem:[#allocation24_spill] sm:$0xff] }
 0x13a   : > { %1829 = vmatpush.msrb.mxu3 %v8110_v6 }
 0x13b   : > { %2002 = vmatpush.msra.mxu2 %v10622_v40  ;;  %v10631_v40 = vld [vmem:[#allocation11_spill] sm:$0xff]  ;;  %1931 = vmatpush.msra.mxu1 %v10638_v30  ;;  %v10646_v30 = vld [vmem:[#allocation26_spill] sm:$0xff] }
 0x13c   : > { %1831 = vmatpush.msrb.mxu3 %v8128_v34 }
 0x13d   : > { %2005 = vmatpush.msra.mxu2 %v10624_v13  ;;  %v10633_v13 = vld [vmem:[#allocation20_spill] sm:$0xff]  ;;  %1937 = vmatpush.msra.mxu1 %v10641_v33  ;;  %v10649_v33 = vld [vmem:[#allocation29_spill] sm:$0xff] }
 0x13e   : > { %1833 = vmatpush.msrb.mxu3 %v8144_v14 }
 0x13f   : > { %2008 = vmatpush.msra.mxu2 %v10627_v26  ;;  %v10636_v26 = vld [vmem:[#allocation27_spill] sm:$0xff]  ;;  %1943 = vmatpush.msra.mxu1 %v10644_v17  ;;  %v10652_v17 = vld [vmem:[#allocation34_spill] sm:$0xff] }
 0x140   : > { %1835 = vmatpush.msrb.mxu3 %v8169_v3  ;;  %v1119_v3 = vpop.f32.mrf.mxu2 }
 0x141   : > { %1837 = vmatmul.f32.vlgmr.msrb.gmra.mxu3 %v10614_v62  ;;  %v10628_v62 = vld [vmem:[#allocation10_spill] sm:$0xff]  ;;  %2011 = vmatpush.msra.mxu2 %v10630_v52  ;;  %v10639_v52 = vld [vmem:[#allocation33_spill] sm:$0xff] }
 0x142   : > { %2052 = vmatpush.msra.mxu3 %v10619_v8  ;;  %1860 = vmatpush.msra.mxu0 %v10628_v62 }
 0x143   : > { %2014 = vmatpush.msra.mxu2 %v10633_v13  ;;  %v10642_v13 = vld [vmem:[#allocation37_spill] sm:$0xff]  ;;  %1949 = vmatpush.msra.mxu1 %v10647_v39  ;;  %v10655_v39 = vld [vmem:[#allocation39_spill] sm:$0xff] }
 0x144   : > { %2054 = vmatpush.msra.mxu3 %v10625_v43  ;;  %1862 = vmatpush.msra.mxu0 %v10631_v40 }
 0x145   : > { %2017 = vmatpush.msra.mxu2 %v10636_v26  ;;  %v10645_v26 = vld [vmem:[#allocation41_spill] sm:$0xff]  ;;  %1955 = vmatpush.msra.mxu1 %v10650_v18 }
 0x146   : > { %2056 = vmatpush.msra.mxu3 %v10628_v62  ;;  %1864 = vmatpush.msra.mxu0 %v10634_v44  ;;  %v10658_v18 = vld [vmem:[#allocation45_spill] sm:$0xff] }
 0x147   : > { %2020 = vmatpush.msra.mxu2 %v10639_v52  ;;  %v10648_v52 = vld [vmem:[#allocation42_spill] sm:$0xff]  ;;  %1961 = vmatpush.msra.mxu1 %v10653_v12  ;;  %v10661_v12 = vld [vmem:[#allocation48_spill] sm:$0xff] }
 0x148   : > { %2058 = vmatpush.msra.mxu3 %v10631_v40  ;;  %1866 = vmatpush.msra.mxu0 %v10637_v59 }
 0x149   : > { %2023 = vmatpush.msra.mxu2 %v10642_v13  ;;  %v10651_v13 = vld [vmem:[#allocation50_spill] sm:$0xff]  ;;  %1967 = vmatpush.msra.mxu1 %v10656_v46 }
 0x14a   : > { %2060 = vmatpush.msra.mxu3 %v10634_v44  ;;  %1868 = vmatpush.msra.mxu0 %v10640_v58  ;;  %v10664_v46 = vld [vmem:[#allocation54_spill] sm:$0xff] }
 0x14b   : > { %2026 = vmatpush.msra.mxu2 %v10645_v26  ;;  %v10654_v26 = vld [vmem:[#allocation55_spill] sm:$0xff]  ;;  %1973 = vmatpush.msra.mxu1 %v10659_v22  ;;  %v10667_v22 = vld [vmem:[#allocation56_spill] sm:$0xff] }
 0x14c   : > { %2062 = vmatpush.msra.mxu3 %v10637_v59  ;;  %1870 = vmatpush.msra.mxu0 %v10643_v35 }
 0x14d   : > { %2029 = vmatpush.msra.mxu2 %v10648_v52  ;;  %v10657_v52 = vld [vmem:[#allocation60_spill] sm:$0xff]  ;;  %1979 = vmatpush.msra.mxu1 %v10662_v5  ;;  %v10670_v5 = vld [vmem:[#allocation89_spill] sm:$0xff] }
 0x14e   : > { %2064 = vmatpush.msra.mxu3 %v10640_v58  ;;  %1872 = vmatpush.msra.mxu0 %v10646_v30 }
 0x14f   : > { %2032 = vmatpush.msra.mxu2 %v10651_v13  ;;  %v10660_v13 = vld [vmem:[#allocation64_spill] sm:$0xff]  ;;  %1985 = vmatpush.msra.mxu1 %v10665_v9  ;;  %v10672_v9 = vld [vmem:[#allocation65_spill] sm:$0xff] }
 0x150   : > { %2066 = vmatpush.msra.mxu3 %v10643_v35  ;;  %1874 = vmatpush.msra.mxu0 %v10649_v33 }
 0x151   : > { %2035 = vmatpush.msra.mxu2 %v10654_v26  ;;  %v10663_v26 = vld [vmem:[#allocation66_spill] sm:$0xff]  ;;  %1991 = vmatpush.msra.mxu1 %v10668_v51 }
 0x152   : > { %2068 = vmatpush.msra.mxu3 %v10646_v30  ;;  %1876 = vmatpush.msra.mxu0 %v10652_v17  ;;  %v10675_v51 = vld [vmem:[#allocation70_spill] sm:$0xff] }
 0x153   : > { %2038 = vmatpush.msra.mxu2 %v10657_v52  ;;  %v10666_v52 = vld [vmem:[#allocation52_spill] sm:$0xff]  ;;  %2160 = vmatpush.msrb.mxu1 %v10619_v8  ;;  %v10677_v8 = vld [vmem:[#allocation23_spill] sm:$0xff] }
 0x154   : > { %2070 = vmatpush.msra.mxu3 %v10649_v33  ;;  %1878 = vmatpush.msra.mxu0 %v10655_v39 }
 0x155   : > { %2041 = vmatpush.msra.mxu2 %v10660_v13  ;;  %v10669_v13 = vld [vmem:[#allocation57_spill] sm:$0xff]  ;;  %2162 = vmatpush.msrb.mxu1 %v10625_v43 }
 0x156   : > { %2072 = vmatpush.msra.mxu3 %v10652_v17  ;;  %1880 = vmatpush.msra.mxu0 %v10658_v18  ;;  %v10680_v43 = vld [vmem:[#allocation25_spill] sm:$0xff] }
 0x157   : > { %2044 = vmatpush.msra.mxu2 %v10663_v26  ;;  %v10671_v26 = vld [vmem:[#allocation21_spill] sm:$0xff]  ;;  %2164 = vmatpush.msrb.mxu1 %v10628_v62  ;;  %v10683_v62 = vld [vmem:[#allocation28_spill] sm:$0xff] }
 0x158   : > { %2074 = vmatpush.msra.mxu3 %v10655_v39  ;;  %1882 = vmatpush.msra.mxu0 %v10661_v12 }
 0x159   : > { %2197 = vmatpush.msrb.mxu2 %v10666_v52  ;;  %2166 = vmatpush.msrb.mxu1 %v10631_v40  ;;  %v10686_v40 = vld [vmem:[#allocation30_spill] sm:$0xff] }
 0x15a   : > { %2076 = vmatpush.msra.mxu3 %v10658_v18  ;;  %1884 = vmatpush.msra.mxu0 %v10664_v46  ;;  %v1352_v19 = vpop.f32.mrf.mxu2 }
 0x15b   : > { %2199 = vmatpush.msrb.mxu2 %v10669_v13  ;;  %2168 = vmatpush.msrb.mxu1 %v10634_v44  ;;  %v10689_v44 = vld [vmem:[#allocation36_spill] sm:$0xff] }
 0x15c   : > { %2078 = vmatpush.msra.mxu3 %v10661_v12  ;;  %1886 = vmatpush.msra.mxu0 %v10667_v22 }
 0x15d   : > { %2201 = vmatpush.msrb.mxu2 %v10672_v9  ;;  %2170 = vmatpush.msrb.mxu1 %v10637_v59  ;;  %v10692_v59 = vld [vmem:[#allocation40_spill] sm:$0xff] }
 0x15e   : > { %2080 = vmatpush.msra.mxu3 %v10664_v46  ;;  %2093 = vmatpush.msrb.mxu0 %v10671_v26  ;;  %v10679_v26 = vld [vmem:[#allocation104_spill] sm:$0xff] }
 0x15f   : > { %2203 = vmatpush.msrb.mxu2 %v10675_v51  ;;  %2172 = vmatpush.msrb.mxu1 %v10640_v58  ;;  %v10695_v58 = vld [vmem:[#allocation46_spill] sm:$0xff] }
 0x160   : > { %2082 = vmatpush.msra.mxu3 %v10667_v22  ;;  %2097 = vmatpush.msrb.mxu0 %v10674_v29  ;;  %v10682_v29 = vld [vmem:[#allocation107_spill] sm:$0xff] }
 0x161   : > { %2174 = vmatpush.msrb.mxu1 %v10643_v35  ;;  %v10698_v35 = vld [vmem:[#allocation49_spill] sm:$0xff] }
 0x162   : > { %2242 = vmatpush.msrb.mxu3 %v10670_v5  ;;  %2101 = vmatpush.msrb.mxu0 %v10677_v8  ;;  %v10678_v5 = vld [vmem:[#allocation75_spill] sm:$0xff] }
 0x163   : > { %2205 = vmatpush.msrb.mxu2 %v10678_v5  ;;  %v10685_v8 = vld [vmem:[#allocation111_spill] sm:$0xff]  ;;  %2176 = vmatpush.msrb.mxu1 %v10646_v30 }
 0x164   : > { %2248 = vmatpush.msrb.mxu3 %v10673_v27  ;;  %2105 = vmatpush.msrb.mxu0 %v10680_v43  ;;  %v10681_v27 = vld [vmem:[#allocation80_spill] sm:$0xff]  ;;  %v10688_v43 = vld [vmem:[#allocation115_spill] sm:$0xff] }
 0x165   : > { %2207 = vmatpush.msrb.mxu2 %v10681_v27  ;;  %2178 = vmatpush.msrb.mxu1 %v10649_v33  ;;  %v10701_v30 = vld [vmem:[#allocation51_spill] sm:$0xff] }
 0x166   : > { %2254 = vmatpush.msrb.mxu3 %v10676_v25  ;;  %2109 = vmatpush.msrb.mxu0 %v10683_v62  ;;  %v10684_v25 = vld [vmem:[#allocation81_spill] sm:$0xff]  ;;  %v10691_v62 = vld [vmem:[#allocation119_spill] sm:$0xff] }
 0x167   : > { %2209 = vmatpush.msrb.mxu2 %v10684_v25  ;;  %2180 = vmatpush.msrb.mxu1 %v10652_v17  ;;  %v10704_v33 = vld [vmem:[#allocation59_spill] sm:$0xff] }
 0x168   : > { %2260 = vmatpush.msrb.mxu3 %v10679_v26  ;;  %2113 = vmatpush.msrb.mxu0 %v10686_v40  ;;  %v10687_v26 = vld [vmem:[#allocation85_spill] sm:$0xff]  ;;  %v10694_v40 = vld [vmem:[#allocation122_spill] sm:$0xff]  ;;  %v10707_v17 = vld [vmem:[#allocation63_spill] sm:$0xff] }
 0x169   : > { %2211 = vmatpush.msrb.mxu2 %v10687_v26  ;;  %2182 = vmatpush.msrb.mxu1 %v10655_v39  ;;  %v10710_v39 = vld [vmem:[#allocation69_spill] sm:$0xff] }
 0x16a   : > { %2266 = vmatpush.msrb.mxu3 %v10682_v29  ;;  %2117 = vmatpush.msrb.mxu0 %v10689_v44  ;;  %v10690_v29 = vld [vmem:[#allocation93_spill] sm:$0xff]  ;;  %v10697_v44 = vld [vmem:[#allocation126_spill] sm:$0xff] }
 0x16b   : > { %2213 = vmatpush.msrb.mxu2 %v10690_v29  ;;  %2184 = vmatpush.msrb.mxu1 %v10658_v18  ;;  %v10713_v18 = vld [vmem:[#allocation73_spill] sm:$0xff] }
 0x16c   : > { %2272 = vmatpush.msrb.mxu3 %v10685_v8  ;;  %2121 = vmatpush.msrb.mxu0 %v10692_v59  ;;  %v10693_v8 = vld [vmem:[#allocation98_spill] sm:$0xff]  ;;  %v10700_v59 = vld [vmem:[#allocation129_spill] sm:$0xff] }
 0x16d   : > { %2215 = vmatpush.msrb.mxu2 %v10693_v8  ;;  %2186 = vmatpush.msrb.mxu1 %v10661_v12  ;;  %v616_v12 = vpop.f32.mrf.mxu1 }
 0x16e   : > { %2278 = vmatpush.msrb.mxu3 %v10688_v43  ;;  %2125 = vmatpush.msrb.mxu0 %v10695_v58  ;;  %v10696_v43 = vld [vmem:[#allocation102_spill] sm:$0xff]  ;;  %v10703_v58 = vld [vmem:[#allocation132_spill] sm:$0xff] }
 0x16f   : > { %2217 = vmatpush.msrb.mxu2 %v10696_v43  ;;  %2188 = vmatpush.msrb.mxu1 %v10664_v46 }
 0x170   : > { %2284 = vmatpush.msrb.mxu3 %v10691_v62  ;;  %2129 = vmatpush.msrb.mxu0 %v10698_v35  ;;  %v10699_v62 = vld [vmem:[#allocation106_spill] sm:$0xff]  ;;  %v10706_v35 = vld [vmem:[#allocation135_spill] sm:$0xff] }
 0x171   : > { %2219 = vmatpush.msrb.mxu2 %v10699_v62  ;;  %2190 = vmatpush.msrb.mxu1 %v10667_v22 }
 0x172   : > { %2290 = vmatpush.msrb.mxu3 %v10694_v40  ;;  %2133 = vmatpush.msrb.mxu0 %v10701_v30  ;;  %v10702_v40 = vld [vmem:[#allocation110_spill] sm:$0xff] }
 0x173   : > { %2221 = vmatpush.msrb.mxu2 %v10702_v40  ;;  %v10709_v30 = vld [vmem:[#allocation138_spill] sm:$0xff] }
 0x174   : > { %2296 = vmatpush.msrb.mxu3 %v10697_v44  ;;  %2137 = vmatpush.msrb.mxu0 %v10704_v33  ;;  %v10705_v44 = vld [vmem:[#allocation117_spill] sm:$0xff]  ;;  %v10712_v33 = vld [vmem:[#allocation139_spill] sm:$0xff] }
 0x175   : > { %2223 = vmatpush.msrb.mxu2 %v10705_v44  ;;  %v815_v1 = vpop.f32.mrf.mxu1 }
 0x176   : > { %2302 = vmatpush.msrb.mxu3 %v10700_v59  ;;  %2141 = vmatpush.msrb.mxu0 %v10707_v17  ;;  %v10708_v59 = vld [vmem:[#allocation121_spill] sm:$0xff]  ;;  %v10715_v17 = vld [vmem:[#allocation76_spill] sm:$0xff] }
 0x177   : > { %2225 = vmatpush.msrb.mxu2 %v10708_v59 }
 0x178   : > { %2308 = vmatpush.msrb.mxu3 %v10703_v58  ;;  %2145 = vmatpush.msrb.mxu0 %v10710_v39  ;;  %v10711_v58 = vld [vmem:[#allocation125_spill] sm:$0xff]  ;;  %v778_v39 = vpop.f32.mrf.mxu0 }
 0x179   : > { %2227 = vmatpush.msrb.mxu2 %v10711_v58 }
 0x17a   : > { %2314 = vmatpush.msrb.mxu3 %v10706_v35  ;;  %2149 = vmatpush.msrb.mxu0 %v10713_v18  ;;  %v10714_v35 = vld [vmem:[#allocation141_spill] sm:$0xff]  ;;  %v617_v18 = vadd.f32 %v616_v12, %v515_v28 }
 0x17c   : > { %2320 = vmatpush.msrb.mxu3 %v10709_v30  ;;  %2153 = vmatpush.msrb.mxu0 %v10715_v17  ;;  %v709_v30 = vpop.f32.mrf.mxu3 }
 0x17d   : > { %v1050_v63 = vpop.f32.mrf.mxu1 }
 0x17e   : > { %2326 = vmatpush.msrb.mxu3 %v10712_v33 }
 0x180   : > { %2332 = vmatpush.msrb.mxu3 %v10714_v35  ;;  %v1011_v24 = vpop.f32.mrf.mxu0  ;;  %v671_v35 = vadd.f32 %v670_v54, %v617_v18  ;;  %v10720_v54 = vld [vmem:[#allocation61_spill] sm:$0xff] }
 0x182   : > { %v710_v57 = vadd.f32 %v709_v30, %v671_v35 }
 0x184   : > { %v957_v46 = vpop.f32.mrf.mxu3  ;;  %v779_v56 = vadd.f32 %v778_v39, %v710_v57 }
 0x185   : > { %v1298_v0 = vpop.f32.mrf.mxu1 }
 0x186   : > { %v816_v61 = vadd.f32 %v815_v1, %v779_v56  ;;  %v10719_v1 = vld [vmem:[#allocation83_spill] sm:$0xff] }
 0x188   : > { %v1197_v14 = vpop.f32.mrf.mxu0  ;;  %v857_v10 = vadd.f32 %v856_v21, %v816_v61 }
 0x189   : > { %v1299_v22 = vadd.f32 %v1298_v0, %v1197_v14  ;;  %v1538_v15 = vpop.f32.mrf.mxu2 }
 0x18a   : > { %v958_v20 = vadd.f32 %v957_v46, %v857_v10 }
 0x18b   : > { %v1353_v34 = vadd.f32 %v1352_v19, %v1299_v22 }
 0x18c   : > { %v1156_v33 = vpop.f32.mrf.mxu3  ;;  %v1012_v14 = vadd.f32 %v1011_v24, %v958_v20 }
 0x18d   : > { %v1497_v32 = vpop.f32.mrf.mxu1 }
 0x18e   : > { %v1051_v18 = vadd.f32 %v1050_v63, %v1012_v14  ;;  %v10722_v14 = vld [vmem:[#allocation67_spill] sm:$0xff] }
 0x190   : > { %v1460_v38 = vpop.f32.mrf.mxu0 }
 0x194   : > { %v1391_v17 = vpop.f32.mrf.mxu3 }
 0x195   : > { %v1392_v6 = vadd.f32 %v1391_v17, %v1353_v34  ;;  %v1120_v34 = vadd.f32 %v1119_v3, %v1051_v18  ;;  %v10724_v18 = vld [vmem:[#allocation74_spill] sm:$0xff] }
 0x197   : > { %v1461_v60 = vadd.f32 %v1460_v38, %v1392_v6  ;;  %v1157_v56 = vadd.f32 %v1156_v33, %v1120_v34  ;;  %v10718_v38 = vld [vmem:[#allocation77_spill] sm:$0xff]  ;;  %v10728_v34 = vld [vmem:[#allocation84_spill] sm:$0xff] }
 0x198   : > { %v1693_v28 = vpop.f32.mrf.mxu0 }
 0x199   : > { %v1498_v11 = vadd.f32 %v1497_v32, %v1461_v60 }
 0x19b   : > { %v1539_v31 = vadd.f32 %v1538_v15, %v1498_v11  ;;  %v10716_v11 = vld [vmem:[#allocation43_spill] sm:$0xff]  ;;  %v10717_v15 = vld [vmem:[#allocation72_spill] sm:$0xff] }
 0x1a4   : > { %v1639_v45 = vpop.f32.mrf.mxu3 }
 0x1a5   : > { %v1640_v12 = vadd.f32 %v1639_v45, %v1539_v31 }
 0x1a6   : > { %v1732_v22 = vpop.f32.mrf.mxu1 }
 0x1a7   : > { %v1694_v0 = vadd.f32 %v1693_v28, %v1640_v12  ;;  %v10721_v12 = vld [vmem:[#allocation87_spill] sm:$0xff] }
 0x1a9   : > { %v1733_v19 = vadd.f32 %v1732_v22, %v1694_v0  ;;  %v10723_v0 = vld [vmem:[#allocation92_spill] sm:$0xff]  ;;  %v10725_v22 = vld [vmem:[#allocation97_spill] sm:$0xff] }
 0x1bb   : > { %v1801_v35 = vpop.f32.mrf.mxu2 }
 0x1bc   : > { %v1802_v17 = vadd.f32 %v1801_v35, %v1733_v19  ;;  %v10726_v19 = vld [vmem:[#allocation79_spill] sm:$0xff] }
 0x1bd   : > { %v10727_v35 = vld [vmem:[#allocation99_spill] sm:$0xff] }
 0x1c4   : > { %v1838_v57 = vpop.f32.mrf.mxu3 }
 0x1c5   : > { %v1839_v6 = vadd.f32 %v1838_v57, %v1802_v17  ;;  %v10729_v17 = vld [vmem:[#allocation103_spill] sm:$0xff]  ;;  %v10730_v57 = vld [vmem:[#allocation88_spill] sm:$0xff] }
 0x1c7   : > { %v1843_v32 = vrot.slane %v1839_v6, 4  ;;  %v10731_v6 = vld [vmem:[#allocation108_spill] sm:$0xff] }
 0x1c9   : > { %v1845_v61 = vsel %vm1844_vm0, %v1157_v56, %v1843_v32  ;;  %v10732_v56 = vld [vmem:[#allocation90_spill] sm:$0xff]  ;;  %v10733_v32 = vld [vmem:[#allocation112_spill] sm:$0xff] }
 0x1ca   : > { %v8449_v39 = vsub.f32 %v10716_v11, %v1845_v61  ;;  %v10734_v61 = vld [vmem:[#allocation95_spill] sm:$0xff]  ;;  %v10735_v11 = vld [vmem:[#allocation116_spill] sm:$0xff] }
 0x1cc   : > { %v1848_v10 = vmul.f32 %v8449_v39, %v8449_v39 }
 0x1ce   : > { %1850 = vst [vmem:[#allocation1] ss:$2 sm:$0xff] %v1848_v10  ;;  %v10736_v10 = vld [vmem:[#allocation101_spill] sm:$0xff] }
 0x1d5   : > { %v1851_v46 = vld.sshfl [vmem:[#allocation1] sm:$0xff pattern:$0x75316420]  ;;  %v1852_v31 = vld.sshfl [vmem:[#allocation1 + $0x8] sm:$0xff pattern:$0x75316420] }
 0x1d6   : > { %v8453_v45 = vand.u32 4294901760, %v1851_v46  ;;  %v8455_v3 = vand.u32 4294901760, %v1852_v31 }
 0x1d8   : > { %1993 = vmatmul.f32.vlgmr.msra.gmra.mxu1 %v8453_v45  ;;  %v8459_v20 = vsub.f32 %v1851_v46, %v8453_v45  ;;  %v8462_v24 = vsub.f32 %v1852_v31, %v8455_v3  ;;  %v10737_v46 = vld [vmem:[#allocation120_spill] sm:$0xff]  ;;  %v10738_v31 = vld [vmem:[#allocation105_spill] sm:$0xff] }
 0x1d9   : > { %2393 = vmatpush.msra.mxu1 %v10666_v52 }
 0x1da   : > { %2047 = vmatmul.f32.vlgmr.msra.gmra.mxu2 %v8459_v20  ;;  %v8467_v33 = vand.u32 4294901760, %v8459_v20  ;;  %v8470_v30 = vand.u32 4294901760, %v8462_v24 }
 0x1db   : > { %2395 = vmatpush.msra.mxu1 %v10669_v13  ;;  %2434 = vmatpush.msra.mxu2 %v10717_v15 }
 0x1dc   : > { %2086 = vmatmul.f32.vlgmr.msra.gmra.mxu3 %v8467_v33  ;;  %v1890_v60 = vsub.f32 %v8459_v20, %v8467_v33  ;;  %v2231_v21 = vsub.f32 %v8462_v24, %v8470_v30 }
 0x1dd   : > { %2397 = vmatpush.msra.mxu1 %v10672_v9  ;;  %2438 = vmatpush.msra.mxu2 %v10718_v38 }
 0x1de   : > { %2501 = vmatpush.msra.mxu3 %v10666_v52  ;;  %v8482_v63 = vand.u32 4294901760, %v1890_v60  ;;  %v8490_v28 = vand.u32 4294901760, %v2231_v21  ;;  %v10739_v60 = vld [vmem:[#allocation123_spill] sm:$0xff]  ;;  %v10740_v21 = vld [vmem:[#allocation109_spill] sm:$0xff] }
 0x1df   : > { %2399 = vmatpush.msra.mxu1 %v10675_v51  ;;  %2442 = vmatpush.msra.mxu2 %v10719_v1 }
 0x1e0   : > { %2503 = vmatpush.msra.mxu3 %v10669_v13  ;;  %1892 = vmatmul.f32.vlgmr.msra.gmra.mxu0 %v8482_v63 }
 0x1e1   : > { %2192 = vmatmul.f32.vlgmr.msrb.gmra.mxu1 %v8453_v45  ;;  %2340 = vmatpush.msra.mxu0 %v10720_v54 }
 0x1e2   : > { %2401 = vmatpush.msra.mxu1 %v10678_v5  ;;  %2446 = vmatpush.msra.mxu2 %v10721_v12 }
 0x1e3   : > { %2505 = vmatpush.msra.mxu3 %v10672_v9  ;;  %2233 = vmatmul.f32.vlgmr.msrb.gmra.mxu2 %v8490_v28 }
 0x1e4   : > { %2343 = vmatpush.msra.mxu0 %v10722_v14  ;;  %2403 = vmatpush.msra.mxu1 %v10681_v27 }
 0x1e5   : > { %2450 = vmatpush.msra.mxu2 %v10723_v0  ;;  %2507 = vmatpush.msra.mxu3 %v10675_v51 }
 0x1e6   : > { %2334 = vmatmul.f32.vlgmr.msrb.gmra.mxu3 %v8455_v3  ;;  %2346 = vmatpush.msra.mxu0 %v10724_v18 }
 0x1e7   : > { %2405 = vmatpush.msra.mxu1 %v10684_v25  ;;  %2454 = vmatpush.msra.mxu2 %v10725_v22 }
 0x1e8   : > { %2509 = vmatpush.msra.mxu3 %v10678_v5  ;;  %2349 = vmatpush.msra.mxu0 %v10726_v19 }
 0x1e9   : > { %2407 = vmatpush.msra.mxu1 %v10687_v26  ;;  %2458 = vmatpush.msra.mxu2 %v10727_v35 }
 0x1ea   : > { %2511 = vmatpush.msra.mxu3 %v10681_v27  ;;  %2155 = vmatmul.f32.vlgmr.msrb.gmra.mxu0 %v8453_v45 }
 0x1eb   : > { %2352 = vmatpush.msra.mxu0 %v10728_v34  ;;  %2409 = vmatpush.msra.mxu1 %v10690_v29 }
 0x1ec   : > { %2462 = vmatpush.msra.mxu2 %v10729_v17  ;;  %2513 = vmatpush.msra.mxu3 %v10684_v25 }
 0x1ed   : > { %2355 = vmatpush.msra.mxu0 %v10730_v57  ;;  %2411 = vmatpush.msra.mxu1 %v10693_v8  ;;  %v10768_v57 = vld [vmem:[#allocation164_spill] sm:$0xff] }
 0x1ee   : > { %2466 = vmatpush.msra.mxu2 %v10731_v6  ;;  %2515 = vmatpush.msra.mxu3 %v10687_v26  ;;  %v10759_v6 = vld [vmem:[#allocation154_spill] sm:$0xff] }
 0x1ef   : > { %2358 = vmatpush.msra.mxu0 %v10732_v56  ;;  %2413 = vmatpush.msra.mxu1 %v10696_v43  ;;  %v10755_v56 = vld [vmem:[#allocation151_spill] sm:$0xff] }
 0x1f0   : > { %2470 = vmatpush.msra.mxu2 %v10733_v32  ;;  %2517 = vmatpush.msra.mxu3 %v10690_v29  ;;  %v10754_v32 = vld [vmem:[#allocation174_spill] sm:$0xff] }
 0x1f1   : > { %2361 = vmatpush.msra.mxu0 %v10734_v61  ;;  %2415 = vmatpush.msra.mxu1 %v10699_v62  ;;  %v10749_v61 = vld [vmem:[#allocation124_spill] sm:$0xff] }
 0x1f2   : > { %2474 = vmatpush.msra.mxu2 %v10735_v11  ;;  %2519 = vmatpush.msra.mxu3 %v10693_v8  ;;  %v10741_v11 = vld [vmem:[#allocation130_spill] sm:$0xff] }
 0x1f3   : > { %2364 = vmatpush.msra.mxu0 %v10736_v10  ;;  %2417 = vmatpush.msra.mxu1 %v10702_v40  ;;  %v10742_v10 = vld [vmem:[#allocation113_spill] sm:$0xff] }
 0x1f4   : > { %2478 = vmatpush.msra.mxu2 %v10737_v46  ;;  %2521 = vmatpush.msra.mxu3 %v10696_v43  ;;  %v10743_v46 = vld [vmem:[#allocation133_spill] sm:$0xff] }
 0x1f5   : > { %2367 = vmatpush.msra.mxu0 %v10738_v31  ;;  %2419 = vmatpush.msra.mxu1 %v10705_v44  ;;  %v10745_v31 = vld [vmem:[#allocation162_spill] sm:$0xff] }
 0x1f6   : > { %2482 = vmatpush.msra.mxu2 %v10739_v60  ;;  %2523 = vmatpush.msra.mxu3 %v10699_v62  ;;  %v10744_v60 = vld [vmem:[#allocation118_spill] sm:$0xff] }
 0x1f7   : > { %2370 = vmatpush.msra.mxu0 %v10740_v21  ;;  %2421 = vmatpush.msra.mxu1 %v10708_v59  ;;  %v10746_v21 = vld [vmem:[#allocation136_spill] sm:$0xff] }
 0x1f8   : > { %2486 = vmatpush.msra.mxu2 %v10741_v11  ;;  %2525 = vmatpush.msra.mxu3 %v10702_v40  ;;  %v10747_v11 = vld [vmem:[#allocation166_spill] sm:$0xff] }
 0x1f9   : > { %2373 = vmatpush.msra.mxu0 %v10742_v10  ;;  %2423 = vmatpush.msra.mxu1 %v10711_v58  ;;  %v10748_v10 = vld [vmem:[#allocation146_spill] sm:$0xff] }
 0x1fa   : > { %2490 = vmatpush.msra.mxu2 %v10743_v46  ;;  %2527 = vmatpush.msra.mxu3 %v10705_v44  ;;  %v10750_v46 = vld [vmem:[#allocation170_spill] sm:$0xff] }
 0x1fb   : > { %2427 = vmatmul.f32.vlgmr.msra.gmra.mxu1 %v8470_v30  ;;  %2376 = vmatpush.msra.mxu0 %v10744_v60  ;;  %v10751_v60 = vld [vmem:[#allocation148_spill] sm:$0xff] }
 0x1fc   : > { %2583 = vmatpush.msrb.mxu1 %v10745_v31  ;;  %2494 = vmatpush.msra.mxu2 %v10746_v21  ;;  %v10752_v31 = vld [vmem:[#allocation143_spill] sm:$0xff]  ;;  %v10753_v21 = vld [vmem:[#allocation128_spill] sm:$0xff] }
 0x1fd   : > { %2529 = vmatpush.msra.mxu3 %v10708_v59  ;;  %2496 = vmatmul.f32.vlgmr.msra.gmra.mxu2 %v8455_v3 }
 0x1fe   : > { %2589 = vmatpush.msrb.mxu1 %v10747_v11  ;;  %2681 = vmatpush.msrb.mxu2 %v10748_v10  ;;  %v10756_v11 = vld [vmem:[#allocation144_spill] sm:$0xff]  ;;  %v10757_v10 = vld [vmem:[#allocation131_spill] sm:$0xff] }
 0x1ff   : > { %2379 = vmatpush.msra.mxu0 %v10749_v61  ;;  %2531 = vmatpush.msra.mxu3 %v10711_v58  ;;  %v10758_v61 = vld [vmem:[#allocation178_spill] sm:$0xff] }
 0x200   : > { %2533 = vmatmul.f32.vlgmr.msra.gmra.mxu3 %v8455_v3  ;;  %2595 = vmatpush.msrb.mxu1 %v10750_v46  ;;  %v10761_v46 = vld [vmem:[#allocation182_spill] sm:$0xff] }
 0x201   : > { %2684 = vmatpush.msrb.mxu2 %v10751_v60  ;;  %2734 = vmatpush.msrb.mxu3 %v10752_v31  ;;  %v10760_v60 = vld [vmem:[#allocation145_spill] sm:$0xff] }
 0x202   : > { %2382 = vmatpush.msra.mxu0 %v10753_v21  ;;  %2601 = vmatpush.msrb.mxu1 %v10754_v32  ;;  %v10762_v21 = vld [vmem:[#allocation157_spill] sm:$0xff] }
 0x203   : > { %2687 = vmatpush.msrb.mxu2 %v10755_v56  ;;  %2736 = vmatpush.msrb.mxu3 %v10756_v11  ;;  %v10763_v56 = vld [vmem:[#allocation147_spill] sm:$0xff]  ;;  %v10764_v32 = vld [vmem:[#allocation185_spill] sm:$0xff] }
 0x204   : > { %2385 = vmatpush.msra.mxu0 %v10757_v10  ;;  %2607 = vmatpush.msrb.mxu1 %v10758_v61  ;;  %v10765_v10 = vld [vmem:[#allocation160_spill] sm:$0xff]  ;;  %v10766_v61 = vld [vmem:[#allocation149_spill] sm:$0xff] }
 0x205   : > { %2388 = vmatmul.f32.vlgmr.msra.gmra.mxu0 %v8462_v24  ;;  %2690 = vmatpush.msrb.mxu2 %v10759_v6  ;;  %v10767_v6 = vld [vmem:[#allocation190_spill] sm:$0xff] }
 0x206   : > { %2538 = vmatpush.msrb.mxu0 %v10752_v31  ;;  %2738 = vmatpush.msrb.mxu3 %v10760_v60 }
 0x207   : > { %2613 = vmatpush.msrb.mxu1 %v10761_v46  ;;  %2693 = vmatpush.msrb.mxu2 %v10762_v21  ;;  %v10769_v21 = vld [vmem:[#allocation194_spill] sm:$0xff]  ;;  %v10770_v46 = vld [vmem:[#allocation168_spill] sm:$0xff] }
 0x208   : > { %2540 = vmatpush.msrb.mxu0 %v10756_v11  ;;  %2740 = vmatpush.msrb.mxu3 %v10763_v56 }
 0x209   : > { %2619 = vmatpush.msrb.mxu1 %v10764_v32  ;;  %2696 = vmatpush.msrb.mxu2 %v10765_v10  ;;  %v10771_v10 = vld [vmem:[#allocation198_spill] sm:$0xff]  ;;  %v10772_v32 = vld [vmem:[#allocation169_spill] sm:$0xff] }
 0x20a   : > { %2542 = vmatpush.msrb.mxu0 %v10760_v60  ;;  %2742 = vmatpush.msrb.mxu3 %v10766_v61 }
 0x20b   : > { %2625 = vmatpush.msrb.mxu1 %v10767_v6  ;;  %2699 = vmatpush.msrb.mxu2 %v10768_v57  ;;  %v10773_v57 = vld [vmem:[#allocation204_spill] sm:$0xff]  ;;  %v10774_v6 = vld [vmem:[#allocation173_spill] sm:$0xff] }
 0x20c   : > { %2544 = vmatpush.msrb.mxu0 %v10763_v56  ;;  %2744 = vmatpush.msrb.mxu3 %v7744_v4 }
 0x20d   : > { %2631 = vmatpush.msrb.mxu1 %v10769_v21  ;;  %2702 = vmatpush.msrb.mxu2 %v10770_v46  ;;  %v10775_v46 = vld [vmem:[#allocation209_spill] sm:$0xff]  ;;  %v10776_v21 = vld [vmem:[#allocation180_spill] sm:$0xff] }
 0x20e   : > { %2546 = vmatpush.msrb.mxu0 %v10766_v61  ;;  %2746 = vmatpush.msrb.mxu3 %v7758_v47 }
 0x20f   : > { %2637 = vmatpush.msrb.mxu1 %v10771_v10  ;;  %2705 = vmatpush.msrb.mxu2 %v10772_v32  ;;  %v10777_v32 = vld [vmem:[#allocation213_spill] sm:$0xff]  ;;  %v10778_v10 = vld [vmem:[#allocation184_spill] sm:$0xff] }
 0x210   : > { %2548 = vmatpush.msrb.mxu0 %v7744_v4  ;;  %2748 = vmatpush.msrb.mxu3 %v7772_v53 }
 0x211   : > { %2643 = vmatpush.msrb.mxu1 %v10773_v57  ;;  %2708 = vmatpush.msrb.mxu2 %v10774_v6  ;;  %v10779_v6 = vld [vmem:[#allocation217_spill] sm:$0xff]  ;;  %v10780_v57 = vld [vmem:[#allocation188_spill] sm:$0xff] }
 0x212   : > { %2550 = vmatpush.msrb.mxu0 %v7758_v47  ;;  %2750 = vmatpush.msrb.mxu3 %v7782_v36 }
 0x213   : > { %2649 = vmatpush.msrb.mxu1 %v10775_v46  ;;  %2711 = vmatpush.msrb.mxu2 %v10776_v21  ;;  %v10781_v21 = vld [vmem:[#allocation221_spill] sm:$0xff] }
 0x214   : > { %2552 = vmatpush.msrb.mxu0 %v7772_v53  ;;  %2752 = vmatpush.msrb.mxu3 %v7798_v55  ;;  %v10782_v46 = vld [vmem:[#allocation193_spill] sm:$0xff] }
 0x215   : > { %2655 = vmatpush.msrb.mxu1 %v10777_v32  ;;  %2714 = vmatpush.msrb.mxu2 %v10778_v10  ;;  %v10783_v10 = vld [vmem:[#allocation226_spill] sm:$0xff]  ;;  %v10784_v32 = vld [vmem:[#allocation196_spill] sm:$0xff] }
 0x216   : > { %2554 = vmatpush.msrb.mxu0 %v7782_v36  ;;  %2754 = vmatpush.msrb.mxu3 %v7823_v7 }
 0x217   : > { %2661 = vmatpush.msrb.mxu1 %v10779_v6  ;;  %2717 = vmatpush.msrb.mxu2 %v10780_v57  ;;  %v10785_v57 = vld [vmem:[#allocation201_spill] sm:$0xff] }
 0x218   : > { %2556 = vmatpush.msrb.mxu0 %v7798_v55  ;;  %2756 = vmatpush.msrb.mxu3 %v7839_v42  ;;  %v10798_v6 = vld [vmem:[#allocation245_spill] sm:$0xff] }
 0x219   : > { %2667 = vmatpush.msrb.mxu1 %v10781_v21  ;;  %2720 = vmatpush.msrb.mxu2 %v10782_v46  ;;  %v10792_v46 = vld [vmem:[#allocation237_spill] sm:$0xff]  ;;  %v10794_v21 = vld [vmem:[#allocation156_spill] sm:$0xff] }
 0x21a   : > { %2558 = vmatpush.msrb.mxu0 %v7823_v7  ;;  %2758 = vmatpush.msrb.mxu3 %v7855_v23 }
 0x21b   : > { %2673 = vmatpush.msrb.mxu1 %v10783_v10  ;;  %2723 = vmatpush.msrb.mxu2 %v10784_v32  ;;  %v10789_v32 = vld [vmem:[#allocation233_spill] sm:$0xff] }
 0x21c   : > { %2560 = vmatpush.msrb.mxu0 %v7839_v42  ;;  %2760 = vmatpush.msrb.mxu3 %v7871_v16  ;;  %v10791_v10 = vld [vmem:[#allocation153_spill] sm:$0xff] }
 0x21d   : > { %2675 = vmatmul.f32.vlgmr.msrb.gmra.mxu1 %v8453_v45  ;;  %2726 = vmatpush.msrb.mxu2 %v10785_v57  ;;  %v10786_v57 = vld [vmem:[#allocation224_spill] sm:$0xff] }
 0x21e   : > { %2842 = vmatpush.msra.mxu1 %v10752_v31  ;;  %2562 = vmatpush.msrb.mxu0 %v7855_v23 }
 0x21f   : > { %2762 = vmatpush.msrb.mxu3 %v7884_v48  ;;  %2729 = vmatmul.f32.vlgmr.msrb.gmra.mxu2 %v8459_v20  ;;  %v10787_v20 = vld [vmem:[#allocation229_spill] sm:$0xff] }
 0x220   : > { %2844 = vmatpush.msra.mxu1 %v10756_v11  ;;  %2879 = vmatpush.msra.mxu2 %v7896_v37 }
 0x221   : > { %2564 = vmatpush.msrb.mxu0 %v7871_v16  ;;  %2764 = vmatpush.msrb.mxu3 %v10610_v41 }
 0x222   : > { %2768 = vmatmul.f32.vlgmr.msrb.gmra.mxu3 %v8467_v33  ;;  %2846 = vmatpush.msra.mxu1 %v10760_v60  ;;  %v10788_v33 = vld [vmem:[#allocation150_spill] sm:$0xff] }
 0x223   : > { %2881 = vmatpush.msra.mxu2 %v7924_v49  ;;  %2924 = vmatpush.msra.mxu3 %v10786_v57  ;;  %v10790_v57 = vld [vmem:[#allocation208_spill] sm:$0xff] }
 0x224   : > { %2566 = vmatpush.msrb.mxu0 %v7884_v48  ;;  %2848 = vmatpush.msra.mxu1 %v10763_v56 }
 0x225   : > { %2883 = vmatpush.msra.mxu2 %v7943_v50  ;;  %2930 = vmatpush.msra.mxu3 %v10787_v20  ;;  %v10793_v20 = vld [vmem:[#allocation215_spill] sm:$0xff] }
 0x226   : > { %2568 = vmatpush.msrb.mxu0 %v10610_v41  ;;  %2850 = vmatpush.msra.mxu1 %v10766_v61 }
 0x227   : > { %2574 = vmatmul.f32.vlgmr.msrb.gmra.mxu0 %v8482_v63  ;;  %2885 = vmatpush.msra.mxu2 %v7947_v2  ;;  %v10795_v63 = vld [vmem:[#allocation241_spill] sm:$0xff] }
 0x228   : > { %2775 = vmatpush.msra.mxu0 %v10788_v33  ;;  %2936 = vmatpush.msra.mxu3 %v10789_v32  ;;  %v10796_v33 = vld [vmem:[#allocation219_spill] sm:$0xff] }
 0x229   : > { %2852 = vmatpush.msra.mxu1 %v7744_v4  ;;  %2887 = vmatpush.msra.mxu2 %v10790_v57  ;;  %v10797_v32 = vld [vmem:[#allocation159_spill] sm:$0xff] }
 0x22a   : > { %2779 = vmatpush.msra.mxu0 %v10791_v10  ;;  %2942 = vmatpush.msra.mxu3 %v10792_v46  ;;  %v10799_v10 = vld [vmem:[#allocation223_spill] sm:$0xff] }
 0x22b   : > { %2854 = vmatpush.msra.mxu1 %v7758_v47  ;;  %2889 = vmatpush.msra.mxu2 %v10793_v20  ;;  %v10800_v46 = vld [vmem:[#allocation163_spill] sm:$0xff]  ;;  %v10801_v47 = vld [vmem:[#allocation249_spill] sm:$0xff] }
 0x22c   : > { %2783 = vmatpush.msra.mxu0 %v10794_v21  ;;  %2948 = vmatpush.msra.mxu3 %v10795_v63  ;;  %v10802_v21 = vld [vmem:[#allocation228_spill] sm:$0xff]  ;;  %v10803_v63 = vld [vmem:[#allocation167_spill] sm:$0xff] }
 0x22d   : > { %2856 = vmatpush.msra.mxu1 %v7772_v53  ;;  %2891 = vmatpush.msra.mxu2 %v10796_v33  ;;  %v10804_v53 = vld [vmem:[#allocation253_spill] sm:$0xff] }
 0x22e   : > { %2787 = vmatpush.msra.mxu0 %v10797_v32  ;;  %2954 = vmatpush.msra.mxu3 %v10798_v6  ;;  %v10805_v32 = vld [vmem:[#allocation232_spill] sm:$0xff] }
 0x22f   : > { %2858 = vmatpush.msra.mxu1 %v7782_v36  ;;  %2893 = vmatpush.msra.mxu2 %v10799_v10  ;;  %v10806_v6 = vld [vmem:[#allocation172_spill] sm:$0xff] }
 0x230   : > { %2791 = vmatpush.msra.mxu0 %v10800_v46  ;;  %2960 = vmatpush.msra.mxu3 %v10801_v47  ;;  %v10807_v36 = vld [vmem:[#allocation256_spill] sm:$0xff] }
 0x231   : > { %2860 = vmatpush.msra.mxu1 %v7798_v55  ;;  %2895 = vmatpush.msra.mxu2 %v10802_v21  ;;  %v10808_v46 = vld [vmem:[#allocation236_spill] sm:$0xff] }
 0x232   : > { %2795 = vmatpush.msra.mxu0 %v10803_v63  ;;  %2966 = vmatpush.msra.mxu3 %v10804_v53  ;;  %v10809_v47 = vld [vmem:[#allocation176_spill] sm:$0xff]  ;;  %v10812_v53 = vld [vmem:[#allocation177_spill] sm:$0xff] }
 0x233   : > { %2862 = vmatpush.msra.mxu1 %v7823_v7  ;;  %2897 = vmatpush.msra.mxu2 %v10805_v32  ;;  %v10810_v55 = vld [vmem:[#allocation260_spill] sm:$0xff]  ;;  %v10813_v7 = vld [vmem:[#allocation262_spill] sm:$0xff] }
 0x234   : > { %2799 = vmatpush.msra.mxu0 %v10806_v6  ;;  %2972 = vmatpush.msra.mxu3 %v10807_v36  ;;  %v10811_v63 = vld [vmem:[#allocation240_spill] sm:$0xff]  ;;  %v10815_v36 = vld [vmem:[#allocation181_spill] sm:$0xff] }
 0x235   : > { %2864 = vmatpush.msra.mxu1 %v7839_v42  ;;  %2899 = vmatpush.msra.mxu2 %v10808_v46  ;;  %v10814_v6 = vld [vmem:[#allocation244_spill] sm:$0xff]  ;;  %v10816_v42 = vld [vmem:[#allocation265_spill] sm:$0xff] }
 0x236   : > { %2803 = vmatpush.msra.mxu0 %v10809_v47  ;;  %2978 = vmatpush.msra.mxu3 %v10810_v55  ;;  %v10817_v47 = vld [vmem:[#allocation248_spill] sm:$0xff]  ;;  %v10818_v55 = vld [vmem:[#allocation187_spill] sm:$0xff] }
 0x237   : > { %2866 = vmatpush.msra.mxu1 %v7855_v23  ;;  %2901 = vmatpush.msra.mxu2 %v10811_v63  ;;  %v10819_v23 = vld [vmem:[#allocation266_spill] sm:$0xff] }
 0x238   : > { %2807 = vmatpush.msra.mxu0 %v10812_v53  ;;  %2984 = vmatpush.msra.mxu3 %v10813_v7  ;;  %v10820_v53 = vld [vmem:[#allocation252_spill] sm:$0xff] }
 0x239   : > { %2868 = vmatpush.msra.mxu1 %v7871_v16  ;;  %2903 = vmatpush.msra.mxu2 %v10814_v6  ;;  %v10821_v7 = vld [vmem:[#allocation192_spill] sm:$0xff] }
 0x23a   : > { %2811 = vmatpush.msra.mxu0 %v10815_v36  ;;  %2990 = vmatpush.msra.mxu3 %v10816_v42  ;;  %v10822_v16 = vld [vmem:[#allocation268_spill] sm:$0xff]  ;;  %v10823_v36 = vld [vmem:[#allocation258_spill] sm:$0xff]  ;;  %v10824_v42 = vld [vmem:[#allocation195_spill] sm:$0xff] }
 0x23b   : > { %2870 = vmatpush.msra.mxu1 %v7884_v48  ;;  %2905 = vmatpush.msra.mxu2 %v10817_v47  ;;  %v10825_v48 = vld [vmem:[#allocation269_spill] sm:$0xff] }
 0x23c   : > { %2815 = vmatpush.msra.mxu0 %v10818_v55  ;;  %2996 = vmatpush.msra.mxu3 %v10819_v23  ;;  %v10826_v23 = vld [vmem:[#allocation207_spill] sm:$0xff]  ;;  %v10827_v55 = vld [vmem:[#allocation200_spill] sm:$0xff] }
 0x23d   : > { %2872 = vmatpush.msra.mxu1 %v10610_v41  ;;  %2907 = vmatpush.msra.mxu2 %v10820_v53 }
 0x23e   : > { %2819 = vmatpush.msra.mxu0 %v10821_v7  ;;  %3002 = vmatpush.msra.mxu3 %v10822_v16  ;;  %v10828_v7 = vld [vmem:[#allocation270_spill] sm:$0xff] }
 0x23f   : > { %2874 = vmatmul.f32.vlgmr.msra.gmra.mxu1 %v8453_v45  ;;  %2909 = vmatpush.msra.mxu2 %v10823_v36  ;;  %v10829_v16 = vld [vmem:[#allocation214_spill] sm:$0xff] }
 0x240   : > { %3075 = vmatpush.msrb.mxu1 %v7896_v37  ;;  %2823 = vmatpush.msra.mxu0 %v10824_v42  ;;  %v10830_v42 = vld [vmem:[#allocation205_spill] sm:$0xff] }
 0x241   : > { %3008 = vmatpush.msra.mxu3 %v10825_v48  ;;  %2915 = vmatmul.f32.vlgmr.msra.gmra.mxu2 %v8490_v28  ;;  %v10831_v28 = vld [vmem:[#allocation218_spill] sm:$0xff] }
 0x242   : > { %3077 = vmatpush.msrb.mxu1 %v7924_v49  ;;  %3116 = vmatpush.msrb.mxu2 %v10826_v23  ;;  %v10832_v23 = vld [vmem:[#allocation210_spill] sm:$0xff] }
 0x243   : > { %2827 = vmatpush.msra.mxu0 %v10827_v55  ;;  %3014 = vmatpush.msra.mxu3 %v10828_v7  ;;  %v10833_v7 = vld [vmem:[#allocation220_spill] sm:$0xff]  ;;  %v10834_v55 = vld [vmem:[#allocation199_spill] sm:$0xff] }
 0x244   : > { %3016 = vmatmul.f32.vlgmr.msra.gmra.mxu3 %v8455_v3  ;;  %3079 = vmatpush.msrb.mxu1 %v7943_v50 }
 0x245   : > { %3120 = vmatpush.msrb.mxu2 %v10829_v16  ;;  %3183 = vmatpush.msrb.mxu3 %v7896_v37  ;;  %v10836_v16 = vld [vmem:[#allocation206_spill] sm:$0xff] }
 0x246   : > { %2831 = vmatpush.msra.mxu0 %v10830_v42  ;;  %3081 = vmatpush.msrb.mxu1 %v7947_v2  ;;  %v10835_v42 = vld [vmem:[#allocation225_spill] sm:$0xff] }
 0x247   : > { %3124 = vmatpush.msrb.mxu2 %v10831_v28  ;;  %3185 = vmatpush.msrb.mxu3 %v7924_v49  ;;  %v10838_v28 = vld [vmem:[#allocation211_spill] sm:$0xff] }
 0x248   : > { %2835 = vmatpush.msra.mxu0 %v10832_v23  ;;  %3083 = vmatpush.msrb.mxu1 %v10790_v57  ;;  %v10837_v23 = vld [vmem:[#allocation230_spill] sm:$0xff] }
 0x249   : > { %2837 = vmatmul.f32.vlgmr.msra.gmra.mxu0 %v8453_v45  ;;  %3128 = vmatpush.msrb.mxu2 %v10833_v7  ;;  %v10839_v45 = vld [vmem:[#allocation234_spill] sm:$0xff] }
 0x24a   : > { %3022 = vmatpush.msrb.mxu0 %v10834_v55  ;;  %3187 = vmatpush.msrb.mxu3 %v7943_v50  ;;  %v10840_v55 = vld [vmem:[#allocation212_spill] sm:$0xff] }
 0x24b   : > { %3085 = vmatpush.msrb.mxu1 %v10793_v20  ;;  %3132 = vmatpush.msrb.mxu2 %v10835_v42  ;;  %v10842_v42 = vld [vmem:[#allocation216_spill] sm:$0xff] }
 0x24c   : > { %3025 = vmatpush.msrb.mxu0 %v10836_v16  ;;  %3189 = vmatpush.msrb.mxu3 %v7947_v2  ;;  %v10841_v16 = vld [vmem:[#allocation238_spill] sm:$0xff] }
 0x24d   : > { %3087 = vmatpush.msrb.mxu1 %v10796_v33  ;;  %3136 = vmatpush.msrb.mxu2 %v10837_v23  ;;  %v10844_v23 = vld [vmem:[#allocation222_spill] sm:$0xff] }
 0x24e   : > { %3028 = vmatpush.msrb.mxu0 %v10838_v28  ;;  %3191 = vmatpush.msrb.mxu3 %v10790_v57  ;;  %v10843_v28 = vld [vmem:[#allocation242_spill] sm:$0xff] }
 0x24f   : > { %3089 = vmatpush.msrb.mxu1 %v10799_v10  ;;  %3140 = vmatpush.msrb.mxu2 %v10839_v45  ;;  %v10846_v45 = vld [vmem:[#allocation227_spill] sm:$0xff] }
 0x250   : > { %3031 = vmatpush.msrb.mxu0 %v10840_v55  ;;  %3193 = vmatpush.msrb.mxu3 %v10793_v20  ;;  %v10845_v55 = vld [vmem:[#allocation246_spill] sm:$0xff] }
 0x251   : > { %3091 = vmatpush.msrb.mxu1 %v10802_v21  ;;  %3144 = vmatpush.msrb.mxu2 %v10841_v16  ;;  %v10848_v16 = vld [vmem:[#allocation231_spill] sm:$0xff] }
 0x252   : > { %3034 = vmatpush.msrb.mxu0 %v10842_v42  ;;  %3195 = vmatpush.msrb.mxu3 %v10796_v33  ;;  %v10847_v42 = vld [vmem:[#allocation250_spill] sm:$0xff] }
 0x253   : > { %3093 = vmatpush.msrb.mxu1 %v10805_v32  ;;  %3148 = vmatpush.msrb.mxu2 %v10843_v28  ;;  %v10850_v28 = vld [vmem:[#allocation235_spill] sm:$0xff] }
 0x254   : > { %3037 = vmatpush.msrb.mxu0 %v10844_v23  ;;  %3197 = vmatpush.msrb.mxu3 %v10799_v10  ;;  %v10849_v23 = vld [vmem:[#allocation254_spill] sm:$0xff] }
 0x255   : > { %3095 = vmatpush.msrb.mxu1 %v10808_v46  ;;  %3152 = vmatpush.msrb.mxu2 %v10845_v55  ;;  %v10852_v55 = vld [vmem:[#allocation239_spill] sm:$0xff] }
 0x256   : > { %3040 = vmatpush.msrb.mxu0 %v10846_v45  ;;  %3199 = vmatpush.msrb.mxu3 %v10802_v21  ;;  %v10851_v45 = vld [vmem:[#allocation257_spill] sm:$0xff] }
 0x257   : > { %3097 = vmatpush.msrb.mxu1 %v10811_v63  ;;  %3156 = vmatpush.msrb.mxu2 %v10847_v42  ;;  %v10854_v42 = vld [vmem:[#allocation243_spill] sm:$0xff] }
 0x258   : > { %3043 = vmatpush.msrb.mxu0 %v10848_v16  ;;  %3201 = vmatpush.msrb.mxu3 %v10805_v32  ;;  %v10853_v16 = vld [vmem:[#allocation261_spill] sm:$0xff] }
 0x259   : > { %3099 = vmatpush.msrb.mxu1 %v10814_v6  ;;  %3160 = vmatpush.msrb.mxu2 %v10849_v23  ;;  %v10856_v23 = vld [vmem:[#allocation247_spill] sm:$0xff] }
 0x25a   : > { %3046 = vmatpush.msrb.mxu0 %v10850_v28  ;;  %3203 = vmatpush.msrb.mxu3 %v10808_v46  ;;  %v10855_v28 = vld [vmem:[#allocation264_spill] sm:$0xff] }
 0x25b   : > { %3101 = vmatpush.msrb.mxu1 %v10817_v47  ;;  %3164 = vmatpush.msrb.mxu2 %v10851_v45  ;;  %v10858_v45 = vld [vmem:[#allocation251_spill] sm:$0xff] }
 0x25c   : > { %3049 = vmatpush.msrb.mxu0 %v10852_v55  ;;  %3205 = vmatpush.msrb.mxu3 %v10811_v63  ;;  %v10857_v55 = vld [vmem:[#allocation267_spill] sm:$0xff] }
 0x25d   : > { %3103 = vmatpush.msrb.mxu1 %v10820_v53  ;;  %3168 = vmatpush.msrb.mxu2 %v10853_v16 }
 0x25e   : > { %3052 = vmatpush.msrb.mxu0 %v10854_v42  ;;  %3207 = vmatpush.msrb.mxu3 %v10814_v6  ;;  %v10859_v42 = vld [vmem:[#allocation255_spill] sm:$0xff] }
 0x25f   : > { %3105 = vmatpush.msrb.mxu1 %v10823_v36  ;;  %3172 = vmatpush.msrb.mxu2 %v10855_v28  ;;  %v10860_v28 = vld [vmem:[#allocation259_spill] sm:$0xff] }
 0x260   : > { %3055 = vmatpush.msrb.mxu0 %v10856_v23  ;;  %3209 = vmatpush.msrb.mxu3 %v10817_v47  ;;  %v10861_v23 = vld [vmem:[#allocation263_spill] sm:$0xff] }
 0x261   : > { %3109 = vmatmul.f32.vlgmr.msrb.gmra.mxu1 %v8470_v30  ;;  %3176 = vmatpush.msrb.mxu2 %v10857_v55  ;;  %v1893_v30 = vpop.f32.mrf.mxu0  ;;  %v1994_v55 = vpop.f32.mrf.mxu1 }
 0x262   : > { %3058 = vmatpush.msrb.mxu0 %v10858_v45  ;;  %3211 = vmatpush.msrb.mxu3 %v10820_v53  ;;  %v1894_v16 = vadd.f32 1e-05, %v1893_v30  ;;  %v2048_v45 = vpop.f32.mrf.mxu2  ;;  %v2087_v53 = vpop.f32.mrf.mxu3 }
 0x263   : > { %3178 = vmatmul.f32.vlgmr.msrb.gmra.mxu2 %v8455_v3 }
 0x264   : > { %3061 = vmatpush.msrb.mxu0 %v10859_v42  ;;  %3213 = vmatpush.msrb.mxu3 %v10823_v36  ;;  %v1995_v48 = vadd.f32 %v1994_v55, %v1894_v16 }
 0x265   : > { %3215 = vmatmul.f32.vlgmr.msrb.gmra.mxu3 %v8455_v3 }
 0x266   : > { %3064 = vmatpush.msrb.mxu0 %v10860_v28  ;;  %v2049_v6 = vadd.f32 %v2048_v45, %v1995_v48 }
 0x268   : > { %3067 = vmatpush.msrb.mxu0 %v10861_v23  ;;  %v2088_v36 = vadd.f32 %v2087_v53, %v2049_v6 }
 0x269   : > { %3070 = vmatmul.f32.vlgmr.msrb.gmra.mxu0 %v8462_v24  ;;  %v2156_v7 = vpop.f32.mrf.mxu0  ;;  %v2193_v47 = vpop.f32.mrf.mxu1 }
 0x26a   : > { %v2234_v63 = vpop.f32.mrf.mxu2  ;;  %v2335_v46 = vpop.f32.mrf.mxu3  ;;  %v2157_v32 = vadd.f32 %v2156_v7, %v2088_v36 }
 0x26c   : > { %v2194_v23 = vadd.f32 %v2193_v47, %v2157_v32 }
 0x26e   : > { %v2235_v20 = vadd.f32 %v2234_v63, %v2194_v23 }
 0x270   : > { %v2336_v2 = vadd.f32 %v2335_v46, %v2235_v20 }
 0x278   : > { %v2428_v3 = vpop.f32.mrf.mxu1 }
 0x280   : > { %v2497_v21 = vpop.f32.mrf.mxu2 }
 0x282   : > { %v2389_v42 = vpop.f32.mrf.mxu0 }
 0x283   : > { %v2534_v24 = vpop.f32.mrf.mxu3  ;;  %v2390_v55 = vadd.f32 %v2389_v42, %v2336_v2 }
 0x285   : > { %v2429_v49 = vadd.f32 %v2428_v3, %v2390_v55 }
 0x287   : > { %v2498_v41 = vadd.f32 %v2497_v21, %v2429_v49 }
 0x289   : > { %v2535_v37 = vadd.f32 %v2534_v24, %v2498_v41  ;;  %v3245_v24 = vld [vmem:[%s9725_s6] sm:$0x3] }
 0x28b   : > { %6867 = vrsqrt.f32 %v2535_v37  ;;  %vm3225_vm6 = vweird.f32 %v2535_v37 }
 0x291   : > { %v6868_v42 = vpop.eup %6867 }
 0x292   : > { %v3220_v63 = vmul.f32 %v6868_v42, %v2535_v37  ;;  %vm3226_vm3 = vweird.f32 %v6868_v42 }
 0x293   : > { %vm3227_vm7 = vmor %vm3225_vm6, %vm3226_vm3 }
 0x294   : > { %v3221_v3 = vmul.f32 %v6868_v42, %v3220_v63 }
 0x296   : > { %v3222_v21 = vmul.f32 0.5, %v3221_v3  ;;  %v6992_v3 = vmov 0  }
 0x297   : > { %6866 = vset.pattern.permute.xlu0 %v6992_v3 }
 0x29a   : > { %v2676_v33 = vpop.f32.mrf.mxu1 }
 0x2a2   : > { %v2730_v57 = vpop.f32.mrf.mxu2 }
 0x2a4   : > { %v2575_v28 = vpop.f32.mrf.mxu0 }
 0x2a5   : > { %v2576_v10 = vadd.f32 1e-05, %v2575_v28  ;;  %v2769_v50 = vpop.f32.mrf.mxu3 }
 0x2a7   : > { %v2677_v30 = vadd.f32 %v2676_v33, %v2576_v10 }
 0x2a9   : > { %v2731_v16 = vadd.f32 %v2730_v57, %v2677_v30 }
 0x2ab   : > { %v2770_v45 = vadd.f32 %v2769_v50, %v2731_v16  ;;  %v3223_v16 = vsub.f32 1.5, %v3222_v21 }
 0x2bc   : > { %v2875_v6 = vpop.f32.mrf.mxu1 }
 0x2c4   : > { %v2916_v36 = vpop.f32.mrf.mxu2 }
 0x2c6   : > { %v2838_v48 = vpop.f32.mrf.mxu0 }
 0x2c7   : > { %v2839_v53 = vadd.f32 %v2838_v48, %v2770_v45  ;;  %v3017_v32 = vpop.f32.mrf.mxu3  ;;  %v3253_v48 = vld [vmem:[%s9726_s7] sm:$0x3]  ;;  %v3248_v45 = vperm.slane %v3245_v24, 1 }
 0x2c9   : > { %v2876_v7 = vadd.f32 %v2875_v6, %v2839_v53  ;;  %v3261_v6 = vld [vmem:[%s9721_s2] sm:$0xff] }
 0x2cb   : > { %v2917_v47 = vadd.f32 %v2916_v36, %v2876_v7  ;;  %v3256_v7 = vperm.slane %v3253_v48, 1  ;;  %v3224_v36 = vmul.f32 %v6868_v42, %v3223_v16 }
 0x2cd   : > { %v3018_v28 = vadd.f32 %v3017_v32, %v2917_v47  ;;  %v3247_v32 = vperm.slane %v3245_v24, 0 }
 0x2de   : > { %v3110_v33 = vpop.f32.mrf.mxu1 }
 0x2e6   : > { %v3071_v23 = vpop.f32.mrf.mxu0  ;;  %v3179_v57 = vpop.f32.mrf.mxu2 }
 0x2e7   : > { %v3072_v10 = vadd.f32 %v3071_v23, %v3018_v28  ;;  %v3249_v28 = vrot.slane %v3248_v45, 4  ;;  %v3274_v23 = vsel %vm3272_vm2, %v3261_v6, 0 }
 0x2e8   : > { %v3216_v20 = vpop.f32.mrf.mxu3  ;;  %v3297_v63 = vand.u32 4294901760, %v3274_v23 }
 0x2e9   : > { %v3111_v46 = vadd.f32 %v3110_v33, %v3072_v10  ;;  %v3250_v21 = vsel %vm1844_vm0, %v3247_v32, %v3249_v28 }
 0x2eb   : > { %v3180_v2 = vadd.f32 %v3179_v57, %v3111_v46  ;;  %v3255_v46 = vperm.slane %v3253_v48, 0  ;;  %v3257_v57 = vrot.slane %v3256_v7, 4 }
 0x2ed   : > { %v3217_v50 = vadd.f32 %v3216_v20, %v3180_v2  ;;  %v3262_v2 = vld [vmem:[%s9722_s3] sm:$0xff]  ;;  %v3228_v20 = vsel %vm3227_vm7, %v6868_v42, %v3224_v36 }
 0x2ee   : > { %3265 = vperm.xlu0 %6866, %v3262_v2   ;;  %v3575_v42 = vld [vmem:[%s9724_s5] sm:$0xf] }
 0x2ef   : > { %6869 = vrsqrt.f32 %v3217_v50  ;;  %vm3235_vm4 = vweird.f32 %v3217_v50  ;;  %v3574_v2 = vld [vmem:[%s9723_s4] sm:$0xf] }
 0x2f0   : > { %v3583_v3 = vsel %vm3581_vm8, %v3574_v2, 0 }
 0x2f5   : > { %v6870_v49 = vpop.eup %6869 }
 0x2f6   : > { %v3230_v30 = vmul.f32 %v6870_v49, %v3217_v50  ;;  %vm3236_vm1 = vweird.f32 %v6870_v49  ;;  %3578 = vperm.xlu0 %6866, %v3575_v42  }
 0x2f7   : > { %vm3237_vm5 = vmor %vm3235_vm4, %vm3236_vm1 }
 0x2f8   : > { %v3231_v41 = vmul.f32 %v6870_v49, %v3230_v30 }
 0x2fa   : > { %v3232_v55 = vmul.f32 0.5, %v3231_v41  ;;  %v3298_v41 = vsub.f32 %v3274_v23, %v3297_v63 }
 0x2fc   : > { %v3233_v53 = vsub.f32 1.5, %v3232_v55  ;;  %v3299_v16 = vand.u32 4294901760, %v3298_v41 }
 0x2fe   : > { %v3234_v47 = vmul.f32 %v6870_v49, %v3233_v53  ;;  %v3300_v55 = vsub.f32 %v3298_v41, %v3299_v16 }
 0x300   : > { %v3238_v10 = vsel %vm3237_vm5, %v6870_v49, %v3234_v47  ;;  %v3258_v49 = vsel %vm1844_vm0, %v3255_v46, %v3257_v57  ;;  %v3301_v6 = vand.u32 4294901760, %v3300_v55 }
 0x301   : > { %v3241_v33 = vrot.slane %v3238_v10, 4 }
 0x303   : > { %v3242_v50 = vsel %vm1844_vm0, %v3228_v20, %v3241_v33 }
 0x304   : > { %v3244_v37 = vmul.f32 %v3242_v50, %v8449_v39 }
 0x306   : > { %v3252_v30 = vmul.f32 %v3250_v21, %v3244_v37  ;;  %v8784_v21 = vand.u32 4294901760, %v3583_v3 }
 0x308   : > { %v8773_v24 = vadd.f32 %v3258_v49, %v3252_v30  ;;  %v3603_v55 = vsub.f32 %v3583_v3, %v8784_v21 }
 0x30a   : > { %3269 = vst [vmem:[#allocation1] ss:$2 sm:$0xff] %v8773_v24 }
 0x311   : > { %v3270_v48 = vld.sshfl [vmem:[#allocation1] sm:$0xff pattern:$0x75316420]  ;;  %v3271_v45 = vld.sshfl [vmem:[#allocation1 + $0x8] sm:$0xff pattern:$0x75316420] }
 0x312   : > { %v3276_v53 = vsel %vm1844_vm0, %v3270_v48, 0  ;;  %v3278_v39 = vsel %vm1844_vm0, %v3271_v45, 0 }
 0x313   : > { %v3295_v7 = vand.u32 4294901760, %v3276_v53  ;;  %v3441_v36 = vand.u32 4294901760, %v3278_v39 }
 0x315   : > { %3296 = vmatpush.msra.mxu0 %v3295_v7  ;;  %3372 = vmatpush.msra.mxu3 %v3295_v7  ;;  %v3322_v47 = vsub.f32 %v3276_v53, %v3295_v7  ;;  %v3468_v32 = vsub.f32 %v3278_v39, %v3441_v36 }
 0x316   : > { %3302 = vmatmul.f32.vlgmr.msra.gmra.mxu0 %v3301_v6  ;;  %3376 = vmatmul.f32.vlgmr.msra.gmra.mxu3 %v3299_v16 }
 0x317   : > { %3349 = vmatpush.msra.mxu2 %v3322_v47  ;;  %v3323_v28 = vand.u32 4294901760, %v3322_v47  ;;  %v3469_v23 = vand.u32 4294901760, %v3468_v32 }
 0x318   : > { %3352 = vmatmul.f32.vlgmr.msra.gmra.mxu2 %v3298_v41 }
 0x319   : > { %3442 = vmatpush.msrb.mxu2 %v3441_v36  ;;  %3398 = vmatpush.msrb.mxu0 %v3323_v28  ;;  %v3324_v10 = vsub.f32 %v3322_v47, %v3323_v28  ;;  %v3470_v33 = vsub.f32 %v3468_v32, %v3469_v23 }
 0x31b   : > { %3544 = vmatpush.msra.mxu2 %v3469_v23  ;;  %3495 = vmatpush.msra.mxu0 %v3468_v32  ;;  %v3325_v46 = vand.u32 4294901760, %v3324_v10  ;;  %v3471_v57 = vand.u32 4294901760, %v3470_v33 }
 0x31d   : > { %3326 = vmatpush.msra.mxu1 %v3325_v46  ;;  %3472 = vmatpush.msrb.mxu3 %v3471_v57 }
 0x31e   : > { %3328 = vmatmul.f32.vlgmr.msra.gmra.mxu1 %v3297_v63  ;;  %3400 = vmatmul.f32.vlgmr.msrb.gmra.mxu0 %v3297_v63 }
 0x31f   : > { %3566 = vmatpush.msra.mxu3 %v3441_v36  ;;  %3420 = vmatpush.msrb.mxu1 %v3295_v7 }
 0x320   : > { %3448 = vmatmul.f32.vlgmr.msrb.gmra.mxu2 %v3301_v6  ;;  %3474 = vmatmul.f32.vlgmr.msrb.gmra.mxu3 %v3297_v63 }
 0x321   : > { %3518 = vmatpush.msra.mxu1 %v3441_v36 }
 0x326   : > { %3422 = vmatmul.f32.vlgmr.msrb.gmra.mxu1 %v3297_v63  ;;  %3498 = vmatmul.f32.vlgmr.msra.gmra.mxu0 %v3298_v41 }
 0x328   : > { %3546 = vmatmul.f32.vlgmr.msra.gmra.mxu2 %v3297_v63  ;;  %3568 = vmatmul.f32.vlgmr.msra.gmra.mxu3 %v3297_v63 }
 0x32e   : > { %3522 = vmatmul.f32.vlgmr.msra.gmra.mxu1 %v3299_v16  ;;  %v3604_v16 = vand.u32 4294901760, %v3603_v55 }
 0x330   : > { %v3605_v7 = vsub.f32 %v3603_v55, %v3604_v16 }
 0x332   : > { %v3606_v33 = vand.u32 4294901760, %v3605_v7 }
 0x360   : > { %v3266_v50 = vpop.permute.xlu0 %3265 }
 0x393   : > { %v3303_v20 = vpop.f32.mrf.mxu0 }
 0x394   : > { %v3304_v37 = vadd.f32 %v3303_v20, %v3266_v50 }
 0x399   : > { %v3377_v49 = vpop.f32.mrf.mxu3 }
 0x39b   : > { %v3329_v30 = vpop.f32.mrf.mxu1  ;;  %v3353_v42 = vpop.f32.mrf.mxu2 }
 0x39c   : > { %v3330_v41 = vadd.f32 %v3329_v30, %v3304_v37  ;;  %v3401_v48 = vpop.f32.mrf.mxu0 }
 0x39e   : > { %v3354_v63 = vadd.f32 %v3353_v42, %v3330_v41 }
 0x3a0   : > { %v3378_v45 = vadd.f32 %v3377_v49, %v3354_v63 }
 0x3a2   : > { %v3402_v53 = vadd.f32 %v3401_v48, %v3378_v45 }
 0x3a3   : > { %v3423_v39 = vpop.f32.mrf.mxu1  ;;  %v3449_v6 = vpop.f32.mrf.mxu2 }
 0x3a4   : > { %v3424_v36 = vadd.f32 %v3423_v39, %v3402_v53  ;;  %v3450_v47 = vadd.f32 %v3449_v6, %v3266_v50  ;;  %v3475_v32 = vpop.f32.mrf.mxu3  ;;  %v3499_v10 = vpop.f32.mrf.mxu0  ;;  %v10862_v6 = vld [vmem:[#allocation8_spill] sm:$0xff] }
 0x3a6   : > { %v3572_v28 = vmax.f32 %v3424_v36, 0.0  ;;  %v3476_v23 = vadd.f32 %v3475_v32, %v3450_v47  ;;  %v10863_v47 = vld [vmem:[#allocation31_spill] sm:$0xff]  ;;  %v10864_v32 = vld [vmem:[#allocation14_spill] sm:$0xff] }
 0x3a8   : > { %v3600_v46 = vand.u32 4294901760, %v3572_v28  ;;  %v3500_v2 = vadd.f32 %v3499_v10, %v3476_v23  ;;  %v10866_v23 = vld [vmem:[#allocation32_spill] sm:$0xff]  ;;  %v10867_v10 = vld [vmem:[#allocation35_spill] sm:$0xff] }
 0x3aa   : > { %v3627_v57 = vsub.f32 %v3572_v28, %v3600_v46  ;;  %3601 = vmatpush.msrb.mxu0 %v3600_v46  ;;  %3677 = vmatpush.msrb.mxu3 %v3600_v46  ;;  %v10865_v28 = vld [vmem:[#allocation9_spill] sm:$0xff] }
 0x3ab   : > { %v3523_v20 = vpop.f32.mrf.mxu1  ;;  %3607 = vmatmul.f32.vlgmr.msrb.gmra.mxu0 %v3606_v33  ;;  %v3547_v3 = vpop.f32.mrf.mxu2  ;;  %3681 = vmatmul.f32.vlgmr.msrb.gmra.mxu3 %v3604_v16 }
 0x3ac   : > { %v3628_v37 = vand.u32 4294901760, %v3627_v57  ;;  %v3524_v49 = vadd.f32 %v3523_v20, %v3500_v2  ;;  %3654 = vmatpush.msrb.mxu2 %v3627_v57  ;;  %v3569_v30 = vpop.f32.mrf.mxu3  ;;  %v10872_v2 = vld [vmem:[#allocation44_spill] sm:$0xff]  ;;  %v10873_v20 = vld [vmem:[#allocation18_spill] sm:$0xff] }
 0x3ad   : > { %3657 = vmatmul.f32.vlgmr.msrb.gmra.mxu2 %v3603_v55 }
 0x3ae   : > { %v3629_v50 = vsub.f32 %v3627_v57, %v3628_v37  ;;  %v3548_v42 = vadd.f32 %v3547_v3, %v3524_v49  ;;  %3703 = vmatpush.msra.mxu0 %v3628_v37  ;;  %v10871_v57 = vld [vmem:[#allocation16_spill] sm:$0xff]  ;;  %v10874_v3 = vld [vmem:[#allocation11_spill] sm:$0xff] }
 0x3af   : > { %v10875_v37 = vld [vmem:[#allocation47_spill] sm:$0xff] }
 0x3b0   : > { %v3570_v41 = vadd.f32 %v3569_v30, %v3548_v42  ;;  %v3630_v48 = vand.u32 4294901760, %v3629_v50  ;;  %v10876_v49 = vld [vmem:[#allocation19_spill] sm:$0xff]  ;;  %v10878_v30 = vld [vmem:[#allocation20_spill] sm:$0xff]  ;;  %v10880_v42 = vld [vmem:[#allocation58_spill] sm:$0xff] }
 0x3b1   : > { %v10879_v50 = vld [vmem:[#allocation12_spill] sm:$0xff] }
 0x3b2   : > { %v3573_v63 = vmax.f32 %v3570_v41, 0.0  ;;  %3631 = vmatpush.msrb.mxu1 %v3630_v48  ;;  %v10881_v41 = vld [vmem:[#allocation27_spill] sm:$0xff]  ;;  %v10882_v48 = vld [vmem:[#allocation13_spill] sm:$0xff] }
 0x3b3   : > { %3633 = vmatmul.f32.vlgmr.msrb.gmra.mxu1 %v8784_v21  ;;  %3705 = vmatmul.f32.vlgmr.msra.gmra.mxu0 %v8784_v21 }
 0x3b4   : > { %v3746_v45 = vand.u32 4294901760, %v3573_v63  ;;  %3725 = vmatpush.msra.mxu1 %v3600_v46  ;;  %v10870_v46 = vld [vmem:[#allocation10_spill] sm:$0xff] }
 0x3b6   : > { %v3773_v53 = vsub.f32 %v3573_v63, %v3746_v45  ;;  %3747 = vmatpush.msra.mxu2 %v3746_v45  ;;  %3823 = vmatpush.msrb.mxu1 %v3746_v45  ;;  %v10884_v63 = vld [vmem:[#allocation33_spill] sm:$0xff] }
 0x3b7   : > { %3753 = vmatmul.f32.vlgmr.msra.gmra.mxu2 %v3606_v33  ;;  %v10868_v33 = vld [vmem:[#allocation15_spill] sm:$0xff] }
 0x3b8   : > { %v3774_v39 = vand.u32 4294901760, %v3773_v53  ;;  %3800 = vmatpush.msrb.mxu0 %v3773_v53 }
 0x3ba   : > { %3890 = vmatpush.msra.mxu0 %v10862_v6  ;;  %v3775_v7 = vsub.f32 %v3773_v53, %v3774_v39  ;;  %3849 = vmatpush.msrb.mxu2 %v3774_v39  ;;  %v10886_v53 = vld [vmem:[#allocation68_spill] sm:$0xff]  ;;  %v10887_v39 = vld [vmem:[#allocation37_spill] sm:$0xff] }
 0x3bb   : > { %3727 = vmatmul.f32.vlgmr.msra.gmra.mxu1 %v8784_v21  ;;  %3803 = vmatmul.f32.vlgmr.msrb.gmra.mxu0 %v3603_v55  ;;  %v10869_v55 = vld [vmem:[#allocation38_spill] sm:$0xff] }
 0x3bc   : > { %v3776_v36 = vand.u32 4294901760, %v3775_v7  ;;  %3935 = vmatpush.msra.mxu1 %v10863_v47  ;;  %4033 = vmatpush.msra.mxu2 %v10864_v32  ;;  %v10888_v7 = vld [vmem:[#allocation24_spill] sm:$0xff] }
 0x3bd   : > { %3892 = vmatpush.msra.mxu0 %v10865_v28 }
 0x3be   : > { %3777 = vmatpush.msra.mxu3 %v3776_v36  ;;  %3941 = vmatpush.msra.mxu1 %v10866_v23  ;;  %v10889_v36 = vld [vmem:[#allocation71_spill] sm:$0xff] }
 0x3bf   : > { %3779 = vmatmul.f32.vlgmr.msra.gmra.mxu3 %v8784_v21  ;;  %3851 = vmatmul.f32.vlgmr.msrb.gmra.mxu2 %v8784_v21 }
 0x3c0   : > { %3871 = vmatpush.msrb.mxu3 %v3746_v45  ;;  %3947 = vmatpush.msra.mxu1 %v10867_v10  ;;  %v10885_v45 = vld [vmem:[#allocation17_spill] sm:$0xff] }
 0x3c1   : > { %4036 = vmatpush.msra.mxu2 %v10868_v33  ;;  %3894 = vmatpush.msra.mxu0 %v10870_v46 }
 0x3c2   : > { %4086 = vmatpush.msra.mxu3 %v10862_v6  ;;  %3953 = vmatpush.msra.mxu1 %v10869_v55 }
 0x3c3   : > { %3827 = vmatmul.f32.vlgmr.msrb.gmra.mxu1 %v3604_v16  ;;  %4039 = vmatpush.msra.mxu2 %v10871_v57  ;;  %v10877_v16 = vld [vmem:[#allocation53_spill] sm:$0xff] }
 0x3c4   : > { %4088 = vmatpush.msra.mxu3 %v10865_v28  ;;  %3959 = vmatpush.msra.mxu1 %v10872_v2 }
 0x3c5   : > { %4042 = vmatpush.msra.mxu2 %v10873_v20  ;;  %3896 = vmatpush.msra.mxu0 %v10874_v3  ;;  %v10914_v20 = vld [vmem:[#allocation22_spill] sm:$0xff] }
 0x3c6   : > { %4090 = vmatpush.msra.mxu3 %v10870_v46  ;;  %3965 = vmatpush.msra.mxu1 %v10875_v37  ;;  %v10903_v37 = vld [vmem:[#allocation45_spill] sm:$0xff] }
 0x3c7   : > { %3873 = vmatmul.f32.vlgmr.msrb.gmra.mxu3 %v8784_v21  ;;  %4045 = vmatpush.msra.mxu2 %v10876_v49  ;;  %v10883_v21 = vld [vmem:[#allocation62_spill] sm:$0xff]  ;;  %v10900_v49 = vld [vmem:[#allocation39_spill] sm:$0xff] }
 0x3c8   : > { %4092 = vmatpush.msra.mxu3 %v10874_v3  ;;  %3971 = vmatpush.msra.mxu1 %v10877_v16  ;;  %v10897_v16 = vld [vmem:[#allocation34_spill] sm:$0xff] }
 0x3c9   : > { %4048 = vmatpush.msra.mxu2 %v10878_v30  ;;  %3898 = vmatpush.msra.mxu0 %v10879_v50  ;;  %v10894_v30 = vld [vmem:[#allocation29_spill] sm:$0xff] }
 0x3ca   : > { %4094 = vmatpush.msra.mxu3 %v10879_v50  ;;  %3977 = vmatpush.msra.mxu1 %v10880_v42  ;;  %v10891_v42 = vld [vmem:[#allocation26_spill] sm:$0xff] }
 0x3cb   : > { %4051 = vmatpush.msra.mxu2 %v10881_v41  ;;  %3900 = vmatpush.msra.mxu0 %v10882_v48  ;;  %v10890_v41 = vld [vmem:[#allocation41_spill] sm:$0xff] }
 0x3cc   : > { %4096 = vmatpush.msra.mxu3 %v10882_v48  ;;  %3983 = vmatpush.msra.mxu1 %v10883_v21  ;;  %v10893_v21 = vld [vmem:[#allocation42_spill] sm:$0xff] }
 0x3cd   : > { %4054 = vmatpush.msra.mxu2 %v10884_v63  ;;  %3902 = vmatpush.msra.mxu0 %v10885_v45  ;;  %v10892_v63 = vld [vmem:[#allocation78_spill] sm:$0xff] }
 0x3ce   : > { %4098 = vmatpush.msra.mxu3 %v10885_v45  ;;  %3989 = vmatpush.msra.mxu1 %v10886_v53  ;;  %v10896_v53 = vld [vmem:[#allocation50_spill] sm:$0xff] }
 0x3cf   : > { %4057 = vmatpush.msra.mxu2 %v10887_v39  ;;  %3904 = vmatpush.msra.mxu0 %v10888_v7  ;;  %v10895_v39 = vld [vmem:[#allocation82_spill] sm:$0xff] }
 0x3d0   : > { %4100 = vmatpush.msra.mxu3 %v10888_v7  ;;  %3995 = vmatpush.msra.mxu1 %v10889_v36  ;;  %v10899_v36 = vld [vmem:[#allocation55_spill] sm:$0xff] }
 0x3d1   : > { %4060 = vmatpush.msra.mxu2 %v10890_v41  ;;  %3906 = vmatpush.msra.mxu0 %v10891_v42  ;;  %v10898_v41 = vld [vmem:[#allocation86_spill] sm:$0xff] }
 0x3d2   : > { %4102 = vmatpush.msra.mxu3 %v10891_v42  ;;  %4001 = vmatpush.msra.mxu1 %v10892_v63  ;;  %v10902_v63 = vld [vmem:[#allocation60_spill] sm:$0xff] }
 0x3d3   : > { %4063 = vmatpush.msra.mxu2 %v10893_v21  ;;  %3908 = vmatpush.msra.mxu0 %v10894_v30  ;;  %v10901_v21 = vld [vmem:[#allocation91_spill] sm:$0xff] }
 0x3d4   : > { %4104 = vmatpush.msra.mxu3 %v10894_v30  ;;  %4007 = vmatpush.msra.mxu1 %v10895_v39  ;;  %v10905_v39 = vld [vmem:[#allocation64_spill] sm:$0xff] }
 0x3d5   : > { %4066 = vmatpush.msra.mxu2 %v10896_v53  ;;  %3910 = vmatpush.msra.mxu0 %v10897_v16  ;;  %v10904_v53 = vld [vmem:[#allocation96_spill] sm:$0xff] }
 0x3d6   : > { %4106 = vmatpush.msra.mxu3 %v10897_v16  ;;  %4013 = vmatpush.msra.mxu1 %v10898_v41  ;;  %v10906_v41 = vld [vmem:[#allocation48_spill] sm:$0xff] }
 0x3d7   : > { %4069 = vmatpush.msra.mxu2 %v10899_v36  ;;  %3912 = vmatpush.msra.mxu0 %v10900_v49  ;;  %v10907_v36 = vld [vmem:[#allocation66_spill] sm:$0xff] }
 0x3d8   : > { %4108 = vmatpush.msra.mxu3 %v10900_v49  ;;  %4019 = vmatpush.msra.mxu1 %v10901_v21  ;;  %v10908_v21 = vld [vmem:[#allocation54_spill] sm:$0xff] }
 0x3d9   : > { %4072 = vmatpush.msra.mxu2 %v10902_v63  ;;  %3914 = vmatpush.msra.mxu0 %v10903_v37  ;;  %v10912_v63 = vld [vmem:[#allocation21_spill] sm:$0xff] }
 0x3da   : > { %4110 = vmatpush.msra.mxu3 %v10903_v37  ;;  %4025 = vmatpush.msra.mxu1 %v10904_v53  ;;  %v10909_v53 = vld [vmem:[#allocation56_spill] sm:$0xff] }
 0x3db   : > { %4075 = vmatpush.msra.mxu2 %v10905_v39  ;;  %3916 = vmatpush.msra.mxu0 %v10906_v41  ;;  %v10910_v39 = vld [vmem:[#allocation89_spill] sm:$0xff] }
 0x3dc   : > { %4194 = vmatpush.msrb.mxu1 %v10862_v6  ;;  %4112 = vmatpush.msra.mxu3 %v10906_v41 }
 0x3dd   : > { %4078 = vmatpush.msra.mxu2 %v10907_v36  ;;  %3918 = vmatpush.msra.mxu0 %v10908_v21  ;;  %v10911_v36 = vld [vmem:[#allocation94_spill] sm:$0xff] }
 0x3de   : > { %4196 = vmatpush.msrb.mxu1 %v10865_v28  ;;  %4114 = vmatpush.msra.mxu3 %v10908_v21 }
 0x3df   : > { %4231 = vmatpush.msrb.mxu2 %v10666_v52  ;;  %3920 = vmatpush.msra.mxu0 %v10909_v53 }
 0x3e0   : > { %4198 = vmatpush.msrb.mxu1 %v10870_v46  ;;  %4116 = vmatpush.msra.mxu3 %v10909_v53  ;;  %v10913_v46 = vld [vmem:[#allocation100_spill] sm:$0xff] }
 0x3e1   : > { %4233 = vmatpush.msrb.mxu2 %v10669_v13  ;;  %4127 = vmatpush.msrb.mxu0 %v10912_v63  ;;  %v10917_v63 = vld [vmem:[#allocation107_spill] sm:$0xff] }
 0x3e2   : > { %4276 = vmatpush.msrb.mxu3 %v10910_v39  ;;  %4200 = vmatpush.msrb.mxu1 %v10874_v3  ;;  %v10915_v39 = vld [vmem:[#allocation104_spill] sm:$0xff]  ;;  %v10916_v3 = vld [vmem:[#allocation23_spill] sm:$0xff] }
 0x3e3   : > { %4235 = vmatpush.msrb.mxu2 %v10672_v9  ;;  %4131 = vmatpush.msrb.mxu0 %v10914_v20  ;;  %v10919_v20 = vld [vmem:[#allocation111_spill] sm:$0xff] }
 0x3e4   : > { %4282 = vmatpush.msrb.mxu3 %v10911_v36  ;;  %4202 = vmatpush.msrb.mxu1 %v10879_v50  ;;  %v10918_v36 = vld [vmem:[#allocation25_spill] sm:$0xff] }
 0x3e5   : > { %4237 = vmatpush.msrb.mxu2 %v10675_v51  ;;  %4135 = vmatpush.msrb.mxu0 %v10916_v3  ;;  %v10921_v3 = vld [vmem:[#allocation115_spill] sm:$0xff] }
 0x3e6   : > { %4288 = vmatpush.msrb.mxu3 %v10913_v46  ;;  %4204 = vmatpush.msrb.mxu1 %v10882_v48  ;;  %v10920_v46 = vld [vmem:[#allocation28_spill] sm:$0xff] }
 0x3e7   : > { %4239 = vmatpush.msrb.mxu2 %v10678_v5  ;;  %4139 = vmatpush.msrb.mxu0 %v10918_v36  ;;  %v10923_v36 = vld [vmem:[#allocation119_spill] sm:$0xff] }
 0x3e8   : > { %4294 = vmatpush.msrb.mxu3 %v10915_v39  ;;  %4206 = vmatpush.msrb.mxu1 %v10885_v45  ;;  %v10922_v39 = vld [vmem:[#allocation30_spill] sm:$0xff] }
 0x3e9   : > { %4241 = vmatpush.msrb.mxu2 %v10681_v27  ;;  %4143 = vmatpush.msrb.mxu0 %v10920_v46  ;;  %v10925_v46 = vld [vmem:[#allocation122_spill] sm:$0xff] }
 0x3ea   : > { %4300 = vmatpush.msrb.mxu3 %v10917_v63  ;;  %4208 = vmatpush.msrb.mxu1 %v10888_v7  ;;  %v10924_v63 = vld [vmem:[#allocation36_spill] sm:$0xff] }
 0x3eb   : > { %4243 = vmatpush.msrb.mxu2 %v10684_v25  ;;  %4147 = vmatpush.msrb.mxu0 %v10922_v39  ;;  %v10927_v39 = vld [vmem:[#allocation126_spill] sm:$0xff] }
 0x3ec   : > { %4306 = vmatpush.msrb.mxu3 %v10919_v20  ;;  %4210 = vmatpush.msrb.mxu1 %v10891_v42  ;;  %v10926_v20 = vld [vmem:[#allocation40_spill] sm:$0xff] }
 0x3ed   : > { %4245 = vmatpush.msrb.mxu2 %v10687_v26  ;;  %4151 = vmatpush.msrb.mxu0 %v10924_v63  ;;  %v10929_v63 = vld [vmem:[#allocation129_spill] sm:$0xff] }
 0x3ee   : > { %4312 = vmatpush.msrb.mxu3 %v10921_v3  ;;  %4212 = vmatpush.msrb.mxu1 %v10894_v30  ;;  %v10928_v3 = vld [vmem:[#allocation46_spill] sm:$0xff] }
 0x3ef   : > { %4247 = vmatpush.msrb.mxu2 %v10690_v29  ;;  %4155 = vmatpush.msrb.mxu0 %v10926_v20  ;;  %v10931_v20 = vld [vmem:[#allocation132_spill] sm:$0xff] }
 0x3f0   : > { %4318 = vmatpush.msrb.mxu3 %v10923_v36  ;;  %4214 = vmatpush.msrb.mxu1 %v10897_v16  ;;  %v10930_v36 = vld [vmem:[#allocation49_spill] sm:$0xff] }
 0x3f1   : > { %4249 = vmatpush.msrb.mxu2 %v10693_v8  ;;  %4159 = vmatpush.msrb.mxu0 %v10928_v3  ;;  %v10933_v3 = vld [vmem:[#allocation135_spill] sm:$0xff] }
 0x3f2   : > { %4324 = vmatpush.msrb.mxu3 %v10925_v46  ;;  %4216 = vmatpush.msrb.mxu1 %v10900_v49  ;;  %v10932_v46 = vld [vmem:[#allocation51_spill] sm:$0xff]  ;;  %v3579_v49 = vpop.permute.xlu0 %3578 }
 0x3f3   : > { %4251 = vmatpush.msrb.mxu2 %v10696_v43  ;;  %4163 = vmatpush.msrb.mxu0 %v10930_v36  ;;  %v10935_v36 = vld [vmem:[#allocation138_spill] sm:$0xff] }
 0x3f4   : > { %4330 = vmatpush.msrb.mxu3 %v10927_v39  ;;  %4218 = vmatpush.msrb.mxu1 %v10903_v37  ;;  %v10934_v39 = vld [vmem:[#allocation59_spill] sm:$0xff] }
 0x3f5   : > { %4253 = vmatpush.msrb.mxu2 %v10699_v62  ;;  %4167 = vmatpush.msrb.mxu0 %v10932_v46  ;;  %v10938_v46 = vld [vmem:[#allocation69_spill] sm:$0xff] }
 0x3f6   : > { %4336 = vmatpush.msrb.mxu3 %v10929_v63  ;;  %4220 = vmatpush.msrb.mxu1 %v10906_v41  ;;  %v10936_v63 = vld [vmem:[#allocation63_spill] sm:$0xff]  ;;  %v10940_v41 = vld [vmem:[#allocation73_spill] sm:$0xff] }
 0x3f7   : > { %4255 = vmatpush.msrb.mxu2 %v10702_v40  ;;  %4171 = vmatpush.msrb.mxu0 %v10934_v39 }
 0x3f8   : > { %4342 = vmatpush.msrb.mxu3 %v10931_v20  ;;  %4222 = vmatpush.msrb.mxu1 %v10908_v21  ;;  %v10937_v20 = vld [vmem:[#allocation139_spill] sm:$0xff]  ;;  %v10939_v21 = vld [vmem:[#allocation141_spill] sm:$0xff] }
 0x3f9   : > { %4257 = vmatpush.msrb.mxu2 %v10705_v44  ;;  %4175 = vmatpush.msrb.mxu0 %v10936_v63 }
 0x3fa   : > { %4348 = vmatpush.msrb.mxu3 %v10933_v3  ;;  %4224 = vmatpush.msrb.mxu1 %v10909_v53  ;;  %v10941_v3 = vld [vmem:[#allocation76_spill] sm:$0xff] }
 0x3fb   : > { %4259 = vmatpush.msrb.mxu2 %v10708_v59  ;;  %4179 = vmatpush.msrb.mxu0 %v10938_v46 }
 0x3fc   : > { %4354 = vmatpush.msrb.mxu3 %v10935_v36 }
 0x3fd   : > { %4261 = vmatpush.msrb.mxu2 %v10711_v58  ;;  %4183 = vmatpush.msrb.mxu0 %v10940_v41 }
 0x3fe   : > { %4360 = vmatpush.msrb.mxu3 %v10937_v20 }
 0x3ff   : > { %4187 = vmatpush.msrb.mxu0 %v10941_v3 }
 0x400   : > { %4366 = vmatpush.msrb.mxu3 %v10939_v21 }
 0x428   : > { %v3608_v39 = vpop.f32.mrf.mxu0 }
 0x429   : > { %v3609_v30 = vadd.f32 %v3608_v39, %v3579_v49 }
 0x42e   : > { %v3682_v16 = vpop.f32.mrf.mxu3 }
 0x430   : > { %v3634_v53 = vpop.f32.mrf.mxu1  ;;  %v3658_v37 = vpop.f32.mrf.mxu2 }
 0x431   : > { %v3706_v36 = vpop.f32.mrf.mxu0  ;;  %v3635_v42 = vadd.f32 %v3634_v53, %v3609_v30  ;;  %v10952_v53 = vld [vmem:[#allocation109_spill] sm:$0xff] }
 0x433   : > { %v3659_v45 = vadd.f32 %v3658_v37, %v3635_v42  ;;  %v10946_v42 = vld [vmem:[#allocation95_spill] sm:$0xff] }
 0x435   : > { %v3683_v2 = vadd.f32 %v3682_v16, %v3659_v45  ;;  %v10944_v16 = vld [vmem:[#allocation90_spill] sm:$0xff]  ;;  %v10951_v45 = vld [vmem:[#allocation123_spill] sm:$0xff] }
 0x437   : > { %v3707_v57 = vadd.f32 %v3706_v36, %v3683_v2  ;;  %v10942_v2 = vld [vmem:[#allocation88_spill] sm:$0xff]  ;;  %v10954_v36 = vld [vmem:[#allocation113_spill] sm:$0xff] }
 0x438   : > { %v3728_v63 = vpop.f32.mrf.mxu1 }
 0x439   : > { %v3804_v46 = vpop.f32.mrf.mxu0  ;;  %v3729_v10 = vadd.f32 %v3728_v63, %v3707_v57  ;;  %v10950_v63 = vld [vmem:[#allocation105_spill] sm:$0xff] }
 0x43a   : > { %v3754_v7 = vpop.f32.mrf.mxu2 }
 0x43b   : > { %v3755_v20 = vadd.f32 %v3754_v7, %v3579_v49  ;;  %v10953_v7 = vld [vmem:[#allocation130_spill] sm:$0xff] }
 0x440   : > { %v3828_v21 = vpop.f32.mrf.mxu1 }
 0x442   : > { %v3780_v48 = vpop.f32.mrf.mxu3  ;;  %v3852_v28 = vpop.f32.mrf.mxu2 }
 0x443   : > { %v3781_v50 = vadd.f32 %v3780_v48, %v3755_v20  ;;  %v10948_v48 = vld [vmem:[#allocation101_spill] sm:$0xff] }
 0x445   : > { %v3805_v41 = vadd.f32 %v3804_v46, %v3781_v50  ;;  %v10945_v50 = vld [vmem:[#allocation112_spill] sm:$0xff] }
 0x447   : > { %v3829_v3 = vadd.f32 %v3828_v21, %v3805_v41  ;;  %v10947_v41 = vld [vmem:[#allocation116_spill] sm:$0xff] }
 0x448   : > { %v10949_v21 = vld [vmem:[#allocation120_spill] sm:$0xff] }
 0x449   : > { %v3853_v55 = vadd.f32 %v3852_v28, %v3829_v3  ;;  %v10943_v3 = vld [vmem:[#allocation108_spill] sm:$0xff] }
 0x44a   : > { %v3874_v33 = vpop.f32.mrf.mxu3 }
 0x44b   : > { %v3875_v6 = vadd.f32 %v3874_v33, %v3853_v55 }
 0x44d   : > { %v3879_v32 = vrot.slane %v3875_v6, 4 }
 0x44f   : > { %v3880_v39 = vsel %vm1844_vm0, %v3729_v10, %v3879_v32 }
 0x450   : > { %v8923_v30 = vadd.f32 %v3880_v39, %v8773_v24  ;;  %v10955_v39 = vld [vmem:[#allocation133_spill] sm:$0xff] }
 0x452   : > { %3884 = vst [vmem:[#allocation1] ss:$2 sm:$0xff] %v8923_v30 }
 0x459   : > { %v3885_v37 = vld.sshfl [vmem:[#allocation1] sm:$0xff pattern:$0x75316420]  ;;  %v3886_v20 = vld.sshfl [vmem:[#allocation1 + $0x8] sm:$0xff pattern:$0x75316420] }
 0x45a   : > { %v8926_v49 = vand.u32 4294901760, %v3885_v37  ;;  %v8928_v46 = vand.u32 4294901760, %v3886_v20 }
 0x45c   : > { %4027 = vmatmul.f32.vlgmr.msra.gmra.mxu1 %v8926_v49  ;;  %v8932_v28 = vsub.f32 %v3885_v37, %v8926_v49  ;;  %v8935_v6 = vsub.f32 %v3886_v20, %v8928_v46  ;;  %v10956_v37 = vld [vmem:[#allocation118_spill] sm:$0xff] }
 0x45d   : > { %4427 = vmatpush.msra.mxu1 %v10666_v52  ;;  %v10957_v20 = vld [vmem:[#allocation162_spill] sm:$0xff] }
 0x45e   : > { %4081 = vmatmul.f32.vlgmr.msra.gmra.mxu2 %v8932_v28  ;;  %v8940_v24 = vand.u32 4294901760, %v8932_v28  ;;  %v8943_v32 = vand.u32 4294901760, %v8935_v6 }
 0x45f   : > { %4429 = vmatpush.msra.mxu1 %v10669_v13  ;;  %4468 = vmatpush.msra.mxu2 %v10717_v15 }
 0x460   : > { %4120 = vmatmul.f32.vlgmr.msra.gmra.mxu3 %v8940_v24  ;;  %v3924_v10 = vsub.f32 %v8932_v28, %v8940_v24  ;;  %v4265_v33 = vsub.f32 %v8935_v6, %v8943_v32 }
 0x461   : > { %4431 = vmatpush.msra.mxu1 %v10672_v9  ;;  %4472 = vmatpush.msra.mxu2 %v10718_v38 }
 0x462   : > { %4535 = vmatpush.msra.mxu3 %v10666_v52  ;;  %v8955_v55 = vand.u32 4294901760, %v3924_v10  ;;  %v8963_v57 = vand.u32 4294901760, %v4265_v33  ;;  %v10958_v10 = vld [vmem:[#allocation136_spill] sm:$0xff]  ;;  %v10959_v33 = vld [vmem:[#allocation166_spill] sm:$0xff] }
 0x463   : > { %4433 = vmatpush.msra.mxu1 %v10675_v51  ;;  %4476 = vmatpush.msra.mxu2 %v10719_v1 }
 0x464   : > { %4537 = vmatpush.msra.mxu3 %v10669_v13  ;;  %3926 = vmatmul.f32.vlgmr.msra.gmra.mxu0 %v8955_v55 }
 0x465   : > { %4226 = vmatmul.f32.vlgmr.msrb.gmra.mxu1 %v8926_v49  ;;  %4374 = vmatpush.msra.mxu0 %v10720_v54 }
 0x466   : > { %4435 = vmatpush.msra.mxu1 %v10678_v5  ;;  %4480 = vmatpush.msra.mxu2 %v10721_v12 }
 0x467   : > { %4539 = vmatpush.msra.mxu3 %v10672_v9  ;;  %4267 = vmatmul.f32.vlgmr.msrb.gmra.mxu2 %v8963_v57 }
 0x468   : > { %4377 = vmatpush.msra.mxu0 %v10722_v14  ;;  %4437 = vmatpush.msra.mxu1 %v10681_v27 }
 0x469   : > { %4484 = vmatpush.msra.mxu2 %v10723_v0  ;;  %4541 = vmatpush.msra.mxu3 %v10675_v51 }
 0x46a   : > { %4368 = vmatmul.f32.vlgmr.msrb.gmra.mxu3 %v8928_v46  ;;  %4380 = vmatpush.msra.mxu0 %v10724_v18 }
 0x46b   : > { %4439 = vmatpush.msra.mxu1 %v10684_v25  ;;  %4488 = vmatpush.msra.mxu2 %v10725_v22 }
 0x46c   : > { %4543 = vmatpush.msra.mxu3 %v10678_v5  ;;  %4383 = vmatpush.msra.mxu0 %v10726_v19 }
 0x46d   : > { %4441 = vmatpush.msra.mxu1 %v10687_v26  ;;  %4492 = vmatpush.msra.mxu2 %v10727_v35 }
 0x46e   : > { %4545 = vmatpush.msra.mxu3 %v10681_v27  ;;  %4189 = vmatmul.f32.vlgmr.msrb.gmra.mxu0 %v8926_v49 }
 0x46f   : > { %4386 = vmatpush.msra.mxu0 %v10728_v34  ;;  %4443 = vmatpush.msra.mxu1 %v10690_v29 }
 0x470   : > { %4496 = vmatpush.msra.mxu2 %v10729_v17  ;;  %4547 = vmatpush.msra.mxu3 %v10684_v25 }
 0x471   : > { %4389 = vmatpush.msra.mxu0 %v10942_v2  ;;  %4445 = vmatpush.msra.mxu1 %v10693_v8 }
 0x472   : > { %4500 = vmatpush.msra.mxu2 %v10943_v3  ;;  %4549 = vmatpush.msra.mxu3 %v10687_v26 }
 0x473   : > { %4392 = vmatpush.msra.mxu0 %v10944_v16  ;;  %4447 = vmatpush.msra.mxu1 %v10696_v43 }
 0x474   : > { %4504 = vmatpush.msra.mxu2 %v10945_v50  ;;  %4551 = vmatpush.msra.mxu3 %v10690_v29 }
 0x475   : > { %4395 = vmatpush.msra.mxu0 %v10946_v42  ;;  %4449 = vmatpush.msra.mxu1 %v10699_v62  ;;  %v11013_v42 = vld [vmem:[#allocation237_spill] sm:$0xff] }
 0x476   : > { %4508 = vmatpush.msra.mxu2 %v10947_v41  ;;  %4553 = vmatpush.msra.mxu3 %v10693_v8  ;;  %v10998_v41 = vld [vmem:[#allocation196_spill] sm:$0xff] }
 0x477   : > { %4398 = vmatpush.msra.mxu0 %v10948_v48  ;;  %4451 = vmatpush.msra.mxu1 %v10702_v40  ;;  %v10995_v48 = vld [vmem:[#allocation193_spill] sm:$0xff] }
 0x478   : > { %4512 = vmatpush.msra.mxu2 %v10949_v21  ;;  %4555 = vmatpush.msra.mxu3 %v10696_v43  ;;  %v10992_v21 = vld [vmem:[#allocation188_spill] sm:$0xff] }
 0x479   : > { %4401 = vmatpush.msra.mxu0 %v10950_v63  ;;  %4453 = vmatpush.msra.mxu1 %v10705_v44  ;;  %v10989_v63 = vld [vmem:[#allocation184_spill] sm:$0xff] }
 0x47a   : > { %4516 = vmatpush.msra.mxu2 %v10951_v45  ;;  %4557 = vmatpush.msra.mxu3 %v10699_v62  ;;  %v10986_v45 = vld [vmem:[#allocation180_spill] sm:$0xff] }
 0x47b   : > { %4404 = vmatpush.msra.mxu0 %v10952_v53  ;;  %4455 = vmatpush.msra.mxu1 %v10708_v59  ;;  %v10966_v53 = vld [vmem:[#allocation151_spill] sm:$0xff] }
 0x47c   : > { %4520 = vmatpush.msra.mxu2 %v10953_v7  ;;  %4559 = vmatpush.msra.mxu3 %v10702_v40  ;;  %v10961_v7 = vld [vmem:[#allocation124_spill] sm:$0xff] }
 0x47d   : > { %4407 = vmatpush.msra.mxu0 %v10954_v36  ;;  %4457 = vmatpush.msra.mxu1 %v10711_v58  ;;  %v10960_v36 = vld [vmem:[#allocation146_spill] sm:$0xff] }
 0x47e   : > { %4524 = vmatpush.msra.mxu2 %v10955_v39  ;;  %4561 = vmatpush.msra.mxu3 %v10705_v44  ;;  %v10962_v39 = vld [vmem:[#allocation170_spill] sm:$0xff] }
 0x47f   : > { %4461 = vmatmul.f32.vlgmr.msra.gmra.mxu1 %v8943_v32  ;;  %4410 = vmatpush.msra.mxu0 %v10956_v37  ;;  %v10963_v37 = vld [vmem:[#allocation148_spill] sm:$0xff] }
 0x480   : > { %4617 = vmatpush.msrb.mxu1 %v10957_v20  ;;  %4528 = vmatpush.msra.mxu2 %v10958_v10  ;;  %v10964_v10 = vld [vmem:[#allocation128_spill] sm:$0xff]  ;;  %v10965_v20 = vld [vmem:[#allocation174_spill] sm:$0xff] }
 0x481   : > { %4563 = vmatpush.msra.mxu3 %v10708_v59  ;;  %4530 = vmatmul.f32.vlgmr.msra.gmra.mxu2 %v8928_v46 }
 0x482   : > { %4623 = vmatpush.msrb.mxu1 %v10959_v33  ;;  %4715 = vmatpush.msrb.mxu2 %v10960_v36  ;;  %v10967_v36 = vld [vmem:[#allocation131_spill] sm:$0xff]  ;;  %v10969_v33 = vld [vmem:[#allocation154_spill] sm:$0xff] }
 0x483   : > { %4413 = vmatpush.msra.mxu0 %v10961_v7  ;;  %4565 = vmatpush.msra.mxu3 %v10711_v58  ;;  %v10968_v7 = vld [vmem:[#allocation178_spill] sm:$0xff] }
 0x484   : > { %4567 = vmatmul.f32.vlgmr.msra.gmra.mxu3 %v8928_v46  ;;  %4629 = vmatpush.msrb.mxu1 %v10962_v39  ;;  %v10983_v39 = vld [vmem:[#allocation173_spill] sm:$0xff] }
 0x485   : > { %4718 = vmatpush.msrb.mxu2 %v10963_v37  ;;  %4768 = vmatpush.msrb.mxu3 %v10752_v31  ;;  %v10970_v37 = vld [vmem:[#allocation182_spill] sm:$0xff] }
 0x486   : > { %4416 = vmatpush.msra.mxu0 %v10964_v10  ;;  %4635 = vmatpush.msrb.mxu1 %v10965_v20  ;;  %v10971_v10 = vld [vmem:[#allocation157_spill] sm:$0xff] }
 0x487   : > { %4721 = vmatpush.msrb.mxu2 %v10966_v53  ;;  %4770 = vmatpush.msrb.mxu3 %v10756_v11  ;;  %v10972_v53 = vld [vmem:[#allocation185_spill] sm:$0xff] }
 0x488   : > { %4419 = vmatpush.msra.mxu0 %v10967_v36  ;;  %4641 = vmatpush.msrb.mxu1 %v10968_v7  ;;  %v10973_v36 = vld [vmem:[#allocation160_spill] sm:$0xff]  ;;  %v10980_v20 = vld [vmem:[#allocation169_spill] sm:$0xff] }
 0x489   : > { %4422 = vmatmul.f32.vlgmr.msra.gmra.mxu0 %v8935_v6  ;;  %4724 = vmatpush.msrb.mxu2 %v10969_v33  ;;  %v10974_v33 = vld [vmem:[#allocation190_spill] sm:$0xff]  ;;  %v10975_v7 = vld [vmem:[#allocation164_spill] sm:$0xff] }
 0x48a   : > { %4572 = vmatpush.msrb.mxu0 %v10752_v31  ;;  %4772 = vmatpush.msrb.mxu3 %v10760_v60 }
 0x48b   : > { %4647 = vmatpush.msrb.mxu1 %v10970_v37  ;;  %4727 = vmatpush.msrb.mxu2 %v10971_v10  ;;  %v10976_v10 = vld [vmem:[#allocation194_spill] sm:$0xff]  ;;  %v10977_v37 = vld [vmem:[#allocation168_spill] sm:$0xff] }
 0x48c   : > { %4574 = vmatpush.msrb.mxu0 %v10756_v11  ;;  %4774 = vmatpush.msrb.mxu3 %v10763_v56 }
 0x48d   : > { %4653 = vmatpush.msrb.mxu1 %v10972_v53  ;;  %4730 = vmatpush.msrb.mxu2 %v10973_v36  ;;  %v10978_v53 = vld [vmem:[#allocation155_spill] sm:$0xff]  ;;  %v10979_v36 = vld [vmem:[#allocation198_spill] sm:$0xff] }
 0x48e   : > { %4576 = vmatpush.msrb.mxu0 %v10760_v60  ;;  %4776 = vmatpush.msrb.mxu3 %v10766_v61 }
 0x48f   : > { %4659 = vmatpush.msrb.mxu1 %v10974_v33  ;;  %4733 = vmatpush.msrb.mxu2 %v10975_v7  ;;  %v10981_v33 = vld [vmem:[#allocation158_spill] sm:$0xff]  ;;  %v10982_v7 = vld [vmem:[#allocation204_spill] sm:$0xff] }
 0x490   : > { %4578 = vmatpush.msrb.mxu0 %v10763_v56  ;;  %4778 = vmatpush.msrb.mxu3 %v7744_v4 }
 0x491   : > { %4665 = vmatpush.msrb.mxu1 %v10976_v10  ;;  %4736 = vmatpush.msrb.mxu2 %v10977_v37  ;;  %v10984_v10 = vld [vmem:[#allocation161_spill] sm:$0xff] }
 0x492   : > { %4580 = vmatpush.msrb.mxu0 %v10766_v61  ;;  %4780 = vmatpush.msrb.mxu3 %v10978_v53  ;;  %v10985_v37 = vld [vmem:[#allocation209_spill] sm:$0xff] }
 0x493   : > { %4671 = vmatpush.msrb.mxu1 %v10979_v36  ;;  %4739 = vmatpush.msrb.mxu2 %v10980_v20  ;;  %v10987_v36 = vld [vmem:[#allocation165_spill] sm:$0xff] }
 0x494   : > { %4582 = vmatpush.msrb.mxu0 %v7744_v4  ;;  %4782 = vmatpush.msrb.mxu3 %v10981_v33  ;;  %v10988_v20 = vld [vmem:[#allocation213_spill] sm:$0xff] }
 0x495   : > { %4677 = vmatpush.msrb.mxu1 %v10982_v7  ;;  %4742 = vmatpush.msrb.mxu2 %v10983_v39  ;;  %v10990_v7 = vld [vmem:[#allocation171_spill] sm:$0xff]  ;;  %v10991_v39 = vld [vmem:[#allocation217_spill] sm:$0xff] }
 0x496   : > { %4584 = vmatpush.msrb.mxu0 %v10978_v53  ;;  %4784 = vmatpush.msrb.mxu3 %v10984_v10 }
 0x497   : > { %4683 = vmatpush.msrb.mxu1 %v10985_v37  ;;  %4745 = vmatpush.msrb.mxu2 %v10986_v45  ;;  %v10993_v37 = vld [vmem:[#allocation175_spill] sm:$0xff]  ;;  %v10994_v45 = vld [vmem:[#allocation221_spill] sm:$0xff] }
 0x498   : > { %4586 = vmatpush.msrb.mxu0 %v10981_v33  ;;  %4786 = vmatpush.msrb.mxu3 %v10987_v36 }
 0x499   : > { %4689 = vmatpush.msrb.mxu1 %v10988_v20  ;;  %4748 = vmatpush.msrb.mxu2 %v10989_v63  ;;  %v10996_v20 = vld [vmem:[#allocation179_spill] sm:$0xff]  ;;  %v10997_v63 = vld [vmem:[#allocation226_spill] sm:$0xff] }
 0x49a   : > { %4588 = vmatpush.msrb.mxu0 %v10984_v10  ;;  %4788 = vmatpush.msrb.mxu3 %v10990_v7 }
 0x49b   : > { %4695 = vmatpush.msrb.mxu1 %v10991_v39  ;;  %4751 = vmatpush.msrb.mxu2 %v10992_v21  ;;  %v10999_v39 = vld [vmem:[#allocation183_spill] sm:$0xff]  ;;  %v11000_v21 = vld [vmem:[#allocation201_spill] sm:$0xff] }
 0x49c   : > { %4590 = vmatpush.msrb.mxu0 %v10987_v36  ;;  %4790 = vmatpush.msrb.mxu3 %v10993_v37 }
 0x49d   : > { %4701 = vmatpush.msrb.mxu1 %v10994_v45  ;;  %4754 = vmatpush.msrb.mxu2 %v10995_v48  ;;  %v11001_v48 = vld [vmem:[#allocation186_spill] sm:$0xff]  ;;  %v11005_v45 = vld [vmem:[#allocation224_spill] sm:$0xff] }
 0x49e   : > { %4592 = vmatpush.msrb.mxu0 %v10990_v7  ;;  %4792 = vmatpush.msrb.mxu3 %v10996_v20 }
 0x49f   : > { %4707 = vmatpush.msrb.mxu1 %v10997_v63  ;;  %4757 = vmatpush.msrb.mxu2 %v10998_v41  ;;  %v11002_v63 = vld [vmem:[#allocation189_spill] sm:$0xff]  ;;  %v11003_v41 = vld [vmem:[#allocation191_spill] sm:$0xff] }
 0x4a0   : > { %4594 = vmatpush.msrb.mxu0 %v10993_v37  ;;  %4794 = vmatpush.msrb.mxu3 %v10999_v39 }
 0x4a1   : > { %4709 = vmatmul.f32.vlgmr.msrb.gmra.mxu1 %v8926_v49  ;;  %4760 = vmatpush.msrb.mxu2 %v11000_v21  ;;  %v11004_v21 = vld [vmem:[#allocation197_spill] sm:$0xff] }
 0x4a2   : > { %4876 = vmatpush.msra.mxu1 %v10752_v31  ;;  %4596 = vmatpush.msrb.mxu0 %v10996_v20  ;;  %v11010_v31 = vld [vmem:[#allocation233_spill] sm:$0xff] }
 0x4a3   : > { %4796 = vmatpush.msrb.mxu3 %v11001_v48  ;;  %4763 = vmatmul.f32.vlgmr.msrb.gmra.mxu2 %v8932_v28  ;;  %v11006_v28 = vld [vmem:[#allocation202_spill] sm:$0xff] }
 0x4a4   : > { %4878 = vmatpush.msra.mxu1 %v10756_v11  ;;  %4913 = vmatpush.msra.mxu2 %v11002_v63  ;;  %v11007_v11 = vld [vmem:[#allocation229_spill] sm:$0xff] }
 0x4a5   : > { %4598 = vmatpush.msrb.mxu0 %v10999_v39  ;;  %4798 = vmatpush.msrb.mxu3 %v11003_v41 }
 0x4a6   : > { %4802 = vmatmul.f32.vlgmr.msrb.gmra.mxu3 %v8940_v24  ;;  %4880 = vmatpush.msra.mxu1 %v10760_v60  ;;  %v11008_v24 = vld [vmem:[#allocation203_spill] sm:$0xff]  ;;  %v11009_v60 = vld [vmem:[#allocation150_spill] sm:$0xff] }
 0x4a7   : > { %4915 = vmatpush.msra.mxu2 %v11004_v21  ;;  %4958 = vmatpush.msra.mxu3 %v11005_v45  ;;  %v11011_v45 = vld [vmem:[#allocation208_spill] sm:$0xff] }
 0x4a8   : > { %4600 = vmatpush.msrb.mxu0 %v11001_v48  ;;  %4882 = vmatpush.msra.mxu1 %v10763_v56  ;;  %v11012_v56 = vld [vmem:[#allocation153_spill] sm:$0xff] }
 0x4a9   : > { %4917 = vmatpush.msra.mxu2 %v11006_v28  ;;  %4964 = vmatpush.msra.mxu3 %v11007_v11  ;;  %v11014_v11 = vld [vmem:[#allocation215_spill] sm:$0xff] }
 0x4aa   : > { %4602 = vmatpush.msrb.mxu0 %v11003_v41  ;;  %4884 = vmatpush.msra.mxu1 %v10766_v61  ;;  %v11015_v61 = vld [vmem:[#allocation156_spill] sm:$0xff] }
 0x4ab   : > { %4608 = vmatmul.f32.vlgmr.msrb.gmra.mxu0 %v8955_v55  ;;  %4919 = vmatpush.msra.mxu2 %v11008_v24  ;;  %v11016_v55 = vld [vmem:[#allocation241_spill] sm:$0xff] }
 0x4ac   : > { %4809 = vmatpush.msra.mxu0 %v11009_v60  ;;  %4970 = vmatpush.msra.mxu3 %v11010_v31  ;;  %v11017_v60 = vld [vmem:[#allocation219_spill] sm:$0xff] }
 0x4ad   : > { %4886 = vmatpush.msra.mxu1 %v7744_v4  ;;  %4921 = vmatpush.msra.mxu2 %v11011_v45  ;;  %v11018_v31 = vld [vmem:[#allocation159_spill] sm:$0xff]  ;;  %v11019_v4 = vld [vmem:[#allocation245_spill] sm:$0xff] }
 0x4ae   : > { %4813 = vmatpush.msra.mxu0 %v11012_v56  ;;  %4976 = vmatpush.msra.mxu3 %v11013_v42  ;;  %v11020_v56 = vld [vmem:[#allocation223_spill] sm:$0xff] }
 0x4af   : > { %4888 = vmatpush.msra.mxu1 %v10978_v53  ;;  %4923 = vmatpush.msra.mxu2 %v11014_v11  ;;  %v11021_v42 = vld [vmem:[#allocation163_spill] sm:$0xff]  ;;  %v11022_v53 = vld [vmem:[#allocation249_spill] sm:$0xff] }
 0x4b0   : > { %4817 = vmatpush.msra.mxu0 %v11015_v61  ;;  %4982 = vmatpush.msra.mxu3 %v11016_v55  ;;  %v11023_v61 = vld [vmem:[#allocation228_spill] sm:$0xff]  ;;  %v11024_v55 = vld [vmem:[#allocation167_spill] sm:$0xff] }
 0x4b1   : > { %4890 = vmatpush.msra.mxu1 %v10981_v33  ;;  %4925 = vmatpush.msra.mxu2 %v11017_v60  ;;  %v11025_v33 = vld [vmem:[#allocation253_spill] sm:$0xff] }
 0x4b2   : > { %4821 = vmatpush.msra.mxu0 %v11018_v31  ;;  %4988 = vmatpush.msra.mxu3 %v11019_v4  ;;  %v11026_v31 = vld [vmem:[#allocation232_spill] sm:$0xff] }
 0x4b3   : > { %4892 = vmatpush.msra.mxu1 %v10984_v10  ;;  %4927 = vmatpush.msra.mxu2 %v11020_v56  ;;  %v11027_v4 = vld [vmem:[#allocation172_spill] sm:$0xff] }
 0x4b4   : > { %4825 = vmatpush.msra.mxu0 %v11021_v42  ;;  %4994 = vmatpush.msra.mxu3 %v11022_v53  ;;  %v11028_v10 = vld [vmem:[#allocation256_spill] sm:$0xff] }
 0x4b5   : > { %4894 = vmatpush.msra.mxu1 %v10987_v36  ;;  %4929 = vmatpush.msra.mxu2 %v11023_v61  ;;  %v11029_v42 = vld [vmem:[#allocation236_spill] sm:$0xff] }
 0x4b6   : > { %4829 = vmatpush.msra.mxu0 %v11024_v55  ;;  %5000 = vmatpush.msra.mxu3 %v11025_v33  ;;  %v11030_v53 = vld [vmem:[#allocation176_spill] sm:$0xff]  ;;  %v11033_v33 = vld [vmem:[#allocation177_spill] sm:$0xff] }
 0x4b7   : > { %4896 = vmatpush.msra.mxu1 %v10990_v7  ;;  %4931 = vmatpush.msra.mxu2 %v11026_v31  ;;  %v11031_v36 = vld [vmem:[#allocation260_spill] sm:$0xff]  ;;  %v11034_v7 = vld [vmem:[#allocation262_spill] sm:$0xff] }
 0x4b8   : > { %4833 = vmatpush.msra.mxu0 %v11027_v4  ;;  %5006 = vmatpush.msra.mxu3 %v11028_v10  ;;  %v11032_v55 = vld [vmem:[#allocation240_spill] sm:$0xff]  ;;  %v11036_v10 = vld [vmem:[#allocation181_spill] sm:$0xff] }
 0x4b9   : > { %4898 = vmatpush.msra.mxu1 %v10993_v37  ;;  %4933 = vmatpush.msra.mxu2 %v11029_v42  ;;  %v11035_v4 = vld [vmem:[#allocation244_spill] sm:$0xff]  ;;  %v11037_v37 = vld [vmem:[#allocation265_spill] sm:$0xff] }
 0x4ba   : > { %4837 = vmatpush.msra.mxu0 %v11030_v53  ;;  %5012 = vmatpush.msra.mxu3 %v11031_v36  ;;  %v11038_v53 = vld [vmem:[#allocation248_spill] sm:$0xff]  ;;  %v11039_v36 = vld [vmem:[#allocation187_spill] sm:$0xff] }
 0x4bb   : > { %4900 = vmatpush.msra.mxu1 %v10996_v20  ;;  %4935 = vmatpush.msra.mxu2 %v11032_v55  ;;  %v11040_v20 = vld [vmem:[#allocation266_spill] sm:$0xff] }
 0x4bc   : > { %4841 = vmatpush.msra.mxu0 %v11033_v33  ;;  %5018 = vmatpush.msra.mxu3 %v11034_v7  ;;  %v11041_v33 = vld [vmem:[#allocation252_spill] sm:$0xff] }
 0x4bd   : > { %4902 = vmatpush.msra.mxu1 %v10999_v39  ;;  %4937 = vmatpush.msra.mxu2 %v11035_v4  ;;  %v11042_v7 = vld [vmem:[#allocation192_spill] sm:$0xff] }
 0x4be   : > { %4845 = vmatpush.msra.mxu0 %v11036_v10  ;;  %5024 = vmatpush.msra.mxu3 %v11037_v37  ;;  %v11043_v39 = vld [vmem:[#allocation268_spill] sm:$0xff]  ;;  %v11044_v10 = vld [vmem:[#allocation258_spill] sm:$0xff]  ;;  %v11045_v37 = vld [vmem:[#allocation195_spill] sm:$0xff] }
 0x4bf   : > { %4904 = vmatpush.msra.mxu1 %v11001_v48  ;;  %4939 = vmatpush.msra.mxu2 %v11038_v53  ;;  %v11046_v48 = vld [vmem:[#allocation269_spill] sm:$0xff] }
 0x4c0   : > { %4849 = vmatpush.msra.mxu0 %v11039_v36  ;;  %5030 = vmatpush.msra.mxu3 %v11040_v20  ;;  %v11047_v20 = vld [vmem:[#allocation207_spill] sm:$0xff]  ;;  %v11048_v36 = vld [vmem:[#allocation200_spill] sm:$0xff] }
 0x4c1   : > { %4906 = vmatpush.msra.mxu1 %v11003_v41  ;;  %4941 = vmatpush.msra.mxu2 %v11041_v33 }
 0x4c2   : > { %4853 = vmatpush.msra.mxu0 %v11042_v7  ;;  %5036 = vmatpush.msra.mxu3 %v11043_v39  ;;  %v11049_v7 = vld [vmem:[#allocation270_spill] sm:$0xff] }
 0x4c3   : > { %4908 = vmatmul.f32.vlgmr.msra.gmra.mxu1 %v8926_v49  ;;  %4943 = vmatpush.msra.mxu2 %v11044_v10  ;;  %v11050_v39 = vld [vmem:[#allocation214_spill] sm:$0xff] }
 0x4c4   : > { %5109 = vmatpush.msrb.mxu1 %v11002_v63  ;;  %4857 = vmatpush.msra.mxu0 %v11045_v37  ;;  %v11051_v37 = vld [vmem:[#allocation205_spill] sm:$0xff] }
 0x4c5   : > { %5042 = vmatpush.msra.mxu3 %v11046_v48  ;;  %4949 = vmatmul.f32.vlgmr.msra.gmra.mxu2 %v8963_v57  ;;  %v11052_v57 = vld [vmem:[#allocation218_spill] sm:$0xff]  ;;  %v11104_v48 = vld [vmem:[#allocation17_spill] sm:$0xff] }
 0x4c6   : > { %5111 = vmatpush.msrb.mxu1 %v11004_v21  ;;  %5150 = vmatpush.msrb.mxu2 %v11047_v20  ;;  %v11053_v20 = vld [vmem:[#allocation210_spill] sm:$0xff] }
 0x4c7   : > { %4861 = vmatpush.msra.mxu0 %v11048_v36  ;;  %5048 = vmatpush.msra.mxu3 %v11049_v7  ;;  %v11054_v7 = vld [vmem:[#allocation220_spill] sm:$0xff]  ;;  %v11055_v36 = vld [vmem:[#allocation199_spill] sm:$0xff] }
 0x4c8   : > { %5050 = vmatmul.f32.vlgmr.msra.gmra.mxu3 %v8928_v46  ;;  %5113 = vmatpush.msrb.mxu1 %v11006_v28 }
 0x4c9   : > { %5154 = vmatpush.msrb.mxu2 %v11050_v39  ;;  %5217 = vmatpush.msrb.mxu3 %v11002_v63  ;;  %v11057_v39 = vld [vmem:[#allocation206_spill] sm:$0xff] }
 0x4ca   : > { %4865 = vmatpush.msra.mxu0 %v11051_v37  ;;  %5115 = vmatpush.msrb.mxu1 %v11008_v24  ;;  %v11056_v37 = vld [vmem:[#allocation225_spill] sm:$0xff] }
 0x4cb   : > { %5158 = vmatpush.msrb.mxu2 %v11052_v57  ;;  %5219 = vmatpush.msrb.mxu3 %v11004_v21  ;;  %v11059_v57 = vld [vmem:[#allocation211_spill] sm:$0xff] }
 0x4cc   : > { %4869 = vmatpush.msra.mxu0 %v11053_v20  ;;  %5117 = vmatpush.msrb.mxu1 %v11011_v45  ;;  %v11058_v20 = vld [vmem:[#allocation230_spill] sm:$0xff] }
 0x4cd   : > { %4871 = vmatmul.f32.vlgmr.msra.gmra.mxu0 %v8926_v49  ;;  %5162 = vmatpush.msrb.mxu2 %v11054_v7  ;;  %v11060_v49 = vld [vmem:[#allocation234_spill] sm:$0xff]  ;;  %v11101_v7 = vld [vmem:[#allocation13_spill] sm:$0xff] }
 0x4ce   : > { %5056 = vmatpush.msrb.mxu0 %v11055_v36  ;;  %5221 = vmatpush.msrb.mxu3 %v11006_v28  ;;  %v11061_v36 = vld [vmem:[#allocation212_spill] sm:$0xff] }
 0x4cf   : > { %5119 = vmatpush.msrb.mxu1 %v11014_v11  ;;  %5166 = vmatpush.msrb.mxu2 %v11056_v37  ;;  %v11063_v37 = vld [vmem:[#allocation216_spill] sm:$0xff] }
 0x4d0   : > { %5059 = vmatpush.msrb.mxu0 %v11057_v39  ;;  %5223 = vmatpush.msrb.mxu3 %v11008_v24  ;;  %v11062_v39 = vld [vmem:[#allocation238_spill] sm:$0xff] }
 0x4d1   : > { %5121 = vmatpush.msrb.mxu1 %v11017_v60  ;;  %5170 = vmatpush.msrb.mxu2 %v11058_v20  ;;  %v11065_v20 = vld [vmem:[#allocation222_spill] sm:$0xff] }
 0x4d2   : > { %5062 = vmatpush.msrb.mxu0 %v11059_v57  ;;  %5225 = vmatpush.msrb.mxu3 %v11011_v45  ;;  %v11064_v57 = vld [vmem:[#allocation242_spill] sm:$0xff] }
 0x4d3   : > { %5123 = vmatpush.msrb.mxu1 %v11020_v56  ;;  %5174 = vmatpush.msrb.mxu2 %v11060_v49  ;;  %v11067_v49 = vld [vmem:[#allocation227_spill] sm:$0xff] }
 0x4d4   : > { %5065 = vmatpush.msrb.mxu0 %v11061_v36  ;;  %5227 = vmatpush.msrb.mxu3 %v11014_v11  ;;  %v11066_v36 = vld [vmem:[#allocation246_spill] sm:$0xff] }
 0x4d5   : > { %5125 = vmatpush.msrb.mxu1 %v11023_v61  ;;  %5178 = vmatpush.msrb.mxu2 %v11062_v39  ;;  %v11069_v39 = vld [vmem:[#allocation231_spill] sm:$0xff] }
 0x4d6   : > { %5068 = vmatpush.msrb.mxu0 %v11063_v37  ;;  %5229 = vmatpush.msrb.mxu3 %v11017_v60  ;;  %v11068_v37 = vld [vmem:[#allocation250_spill] sm:$0xff] }
 0x4d7   : > { %5127 = vmatpush.msrb.mxu1 %v11026_v31  ;;  %5182 = vmatpush.msrb.mxu2 %v11064_v57  ;;  %v11071_v57 = vld [vmem:[#allocation235_spill] sm:$0xff] }
 0x4d8   : > { %5071 = vmatpush.msrb.mxu0 %v11065_v20  ;;  %5231 = vmatpush.msrb.mxu3 %v11020_v56  ;;  %v11070_v20 = vld [vmem:[#allocation254_spill] sm:$0xff] }
 0x4d9   : > { %5129 = vmatpush.msrb.mxu1 %v11029_v42  ;;  %5186 = vmatpush.msrb.mxu2 %v11066_v36  ;;  %v11073_v36 = vld [vmem:[#allocation239_spill] sm:$0xff] }
 0x4da   : > { %5074 = vmatpush.msrb.mxu0 %v11067_v49  ;;  %5233 = vmatpush.msrb.mxu3 %v11023_v61  ;;  %v11072_v49 = vld [vmem:[#allocation257_spill] sm:$0xff] }
 0x4db   : > { %5131 = vmatpush.msrb.mxu1 %v11032_v55  ;;  %5190 = vmatpush.msrb.mxu2 %v11068_v37  ;;  %v11075_v37 = vld [vmem:[#allocation243_spill] sm:$0xff] }
 0x4dc   : > { %5077 = vmatpush.msrb.mxu0 %v11069_v39  ;;  %5235 = vmatpush.msrb.mxu3 %v11026_v31  ;;  %v11074_v39 = vld [vmem:[#allocation261_spill] sm:$0xff]  ;;  %v11125_v31 = vld [vmem:[#allocation48_spill] sm:$0xff] }
 0x4dd   : > { %5133 = vmatpush.msrb.mxu1 %v11035_v4  ;;  %5194 = vmatpush.msrb.mxu2 %v11070_v20  ;;  %v11077_v20 = vld [vmem:[#allocation247_spill] sm:$0xff] }
 0x4de   : > { %5080 = vmatpush.msrb.mxu0 %v11071_v57  ;;  %5237 = vmatpush.msrb.mxu3 %v11029_v42  ;;  %v11076_v57 = vld [vmem:[#allocation264_spill] sm:$0xff]  ;;  %v11122_v42 = vld [vmem:[#allocation45_spill] sm:$0xff] }
 0x4df   : > { %5135 = vmatpush.msrb.mxu1 %v11038_v53  ;;  %5198 = vmatpush.msrb.mxu2 %v11072_v49  ;;  %v11079_v49 = vld [vmem:[#allocation251_spill] sm:$0xff] }
 0x4e0   : > { %5083 = vmatpush.msrb.mxu0 %v11073_v36  ;;  %5239 = vmatpush.msrb.mxu3 %v11032_v55  ;;  %v11078_v36 = vld [vmem:[#allocation267_spill] sm:$0xff] }
 0x4e1   : > { %5137 = vmatpush.msrb.mxu1 %v11041_v33  ;;  %5202 = vmatpush.msrb.mxu2 %v11074_v39  ;;  %v11086_v39 = vld [vmem:[#allocation15_spill] sm:$0xff] }
 0x4e2   : > { %5086 = vmatpush.msrb.mxu0 %v11075_v37  ;;  %5241 = vmatpush.msrb.mxu3 %v11035_v4  ;;  %v11080_v37 = vld [vmem:[#allocation255_spill] sm:$0xff]  ;;  %v11116_v4 = vld [vmem:[#allocation34_spill] sm:$0xff] }
 0x4e3   : > { %5139 = vmatpush.msrb.mxu1 %v11044_v10  ;;  %5206 = vmatpush.msrb.mxu2 %v11076_v57  ;;  %v11085_v57 = vld [vmem:[#allocation263_spill] sm:$0xff] }
 0x4e4   : > { %5089 = vmatpush.msrb.mxu0 %v11077_v20  ;;  %5243 = vmatpush.msrb.mxu3 %v11038_v53  ;;  %v11081_v20 = vld [vmem:[#allocation259_spill] sm:$0xff]  ;;  %v11113_v53 = vld [vmem:[#allocation29_spill] sm:$0xff] }
 0x4e5   : > { %5143 = vmatmul.f32.vlgmr.msrb.gmra.mxu1 %v8943_v32  ;;  %5210 = vmatpush.msrb.mxu2 %v11078_v36  ;;  %v11082_v32 = vld [vmem:[#allocation14_spill] sm:$0xff]  ;;  %v11083_v36 = vld [vmem:[#allocation35_spill] sm:$0xff] }
 0x4e6   : > { %5092 = vmatpush.msrb.mxu0 %v11079_v49  ;;  %5245 = vmatpush.msrb.mxu3 %v11041_v33  ;;  %v11084_v49 = vld [vmem:[#allocation8_spill] sm:$0xff]  ;;  %v11110_v33 = vld [vmem:[#allocation26_spill] sm:$0xff]  ;;  %v11119_v55 = vld [vmem:[#allocation39_spill] sm:$0xff] }
 0x4e7   : > { %5212 = vmatmul.f32.vlgmr.msrb.gmra.mxu2 %v8928_v46  ;;  %5312 = vmatpush.msra.mxu1 %v10863_v47  ;;  %v11087_v47 = vld [vmem:[#allocation38_spill] sm:$0xff] }
 0x4e8   : > { %5095 = vmatpush.msrb.mxu0 %v11080_v37  ;;  %5247 = vmatpush.msrb.mxu3 %v11044_v10  ;;  %v11088_v37 = vld [vmem:[#allocation16_spill] sm:$0xff] }
 0x4e9   : > { %5249 = vmatmul.f32.vlgmr.msrb.gmra.mxu3 %v8928_v46  ;;  %5318 = vmatpush.msra.mxu1 %v10866_v23  ;;  %v11089_v46 = vld [vmem:[#allocation9_spill] sm:$0xff]  ;;  %v11090_v23 = vld [vmem:[#allocation44_spill] sm:$0xff] }
 0x4ea   : > { %5098 = vmatpush.msrb.mxu0 %v11081_v20  ;;  %5410 = vmatpush.msra.mxu2 %v11082_v32  ;;  %v11091_v32 = vld [vmem:[#allocation18_spill] sm:$0xff]  ;;  %v11098_v20 = vld [vmem:[#allocation12_spill] sm:$0xff] }
 0x4eb   : > { %5324 = vmatpush.msra.mxu1 %v11083_v36  ;;  %5463 = vmatpush.msra.mxu3 %v11084_v49  ;;  %v11092_v36 = vld [vmem:[#allocation10_spill] sm:$0xff]  ;;  %v11107_v10 = vld [vmem:[#allocation24_spill] sm:$0xff] }
 0x4ec   : > { %5101 = vmatpush.msrb.mxu0 %v11085_v57  ;;  %5413 = vmatpush.msra.mxu2 %v11086_v39  ;;  %v11093_v57 = vld [vmem:[#allocation47_spill] sm:$0xff] }
 0x4ed   : > { %5104 = vmatmul.f32.vlgmr.msrb.gmra.mxu0 %v8935_v6  ;;  %5330 = vmatpush.msra.mxu1 %v11087_v47  ;;  %v11094_v39 = vld [vmem:[#allocation19_spill] sm:$0xff]  ;;  %v11097_v47 = vld [vmem:[#allocation20_spill] sm:$0xff] }
 0x4ee   : > { %5416 = vmatpush.msra.mxu2 %v11088_v37  ;;  %5465 = vmatpush.msra.mxu3 %v11089_v46  ;;  %v11095_v6 = vld [vmem:[#allocation11_spill] sm:$0xff]  ;;  %v11096_v37 = vld [vmem:[#allocation53_spill] sm:$0xff] }
 0x4ef   : > { %5267 = vmatpush.msra.mxu0 %v11084_v49  ;;  %5336 = vmatpush.msra.mxu1 %v11090_v23  ;;  %v11099_v23 = vld [vmem:[#allocation58_spill] sm:$0xff] }
 0x4f0   : > { %5419 = vmatpush.msra.mxu2 %v11091_v32  ;;  %5467 = vmatpush.msra.mxu3 %v11092_v36  ;;  %v11100_v32 = vld [vmem:[#allocation27_spill] sm:$0xff] }
 0x4f1   : > { %5269 = vmatpush.msra.mxu0 %v11089_v46  ;;  %5342 = vmatpush.msra.mxu1 %v11093_v57  ;;  %v11102_v57 = vld [vmem:[#allocation62_spill] sm:$0xff] }
 0x4f2   : > { %5422 = vmatpush.msra.mxu2 %v11094_v39  ;;  %5469 = vmatpush.msra.mxu3 %v11095_v6  ;;  %v11103_v39 = vld [vmem:[#allocation33_spill] sm:$0xff] }
 0x4f3   : > { %5271 = vmatpush.msra.mxu0 %v11092_v36  ;;  %5348 = vmatpush.msra.mxu1 %v11096_v37  ;;  %v11105_v37 = vld [vmem:[#allocation68_spill] sm:$0xff] }
 0x4f4   : > { %5425 = vmatpush.msra.mxu2 %v11097_v47  ;;  %5471 = vmatpush.msra.mxu3 %v11098_v20  ;;  %v11106_v47 = vld [vmem:[#allocation37_spill] sm:$0xff] }
 0x4f5   : > { %5273 = vmatpush.msra.mxu0 %v11095_v6  ;;  %5354 = vmatpush.msra.mxu1 %v11099_v23  ;;  %v11108_v23 = vld [vmem:[#allocation71_spill] sm:$0xff] }
 0x4f6   : > { %5428 = vmatpush.msra.mxu2 %v11100_v32  ;;  %5473 = vmatpush.msra.mxu3 %v11101_v7  ;;  %v11109_v32 = vld [vmem:[#allocation41_spill] sm:$0xff] }
 0x4f7   : > { %5275 = vmatpush.msra.mxu0 %v11098_v20  ;;  %5360 = vmatpush.msra.mxu1 %v11102_v57  ;;  %v11111_v57 = vld [vmem:[#allocation78_spill] sm:$0xff] }
 0x4f8   : > { %5431 = vmatpush.msra.mxu2 %v11103_v39  ;;  %5475 = vmatpush.msra.mxu3 %v11104_v48  ;;  %v11112_v39 = vld [vmem:[#allocation42_spill] sm:$0xff] }
 0x4f9   : > { %5277 = vmatpush.msra.mxu0 %v11101_v7  ;;  %5366 = vmatpush.msra.mxu1 %v11105_v37  ;;  %v11114_v37 = vld [vmem:[#allocation82_spill] sm:$0xff] }
 0x4fa   : > { %5434 = vmatpush.msra.mxu2 %v11106_v47  ;;  %5477 = vmatpush.msra.mxu3 %v11107_v10  ;;  %v11115_v47 = vld [vmem:[#allocation50_spill] sm:$0xff] }
 0x4fb   : > { %5279 = vmatpush.msra.mxu0 %v11104_v48  ;;  %5372 = vmatpush.msra.mxu1 %v11108_v23  ;;  %v11117_v23 = vld [vmem:[#allocation86_spill] sm:$0xff] }
 0x4fc   : > { %5437 = vmatpush.msra.mxu2 %v11109_v32  ;;  %5479 = vmatpush.msra.mxu3 %v11110_v33  ;;  %v11118_v32 = vld [vmem:[#allocation55_spill] sm:$0xff] }
 0x4fd   : > { %5281 = vmatpush.msra.mxu0 %v11107_v10  ;;  %5378 = vmatpush.msra.mxu1 %v11111_v57  ;;  %v11120_v57 = vld [vmem:[#allocation91_spill] sm:$0xff] }
 0x4fe   : > { %5440 = vmatpush.msra.mxu2 %v11112_v39  ;;  %5481 = vmatpush.msra.mxu3 %v11113_v53  ;;  %v11121_v39 = vld [vmem:[#allocation60_spill] sm:$0xff] }
 0x4ff   : > { %5283 = vmatpush.msra.mxu0 %v11110_v33  ;;  %5384 = vmatpush.msra.mxu1 %v11114_v37  ;;  %v11123_v37 = vld [vmem:[#allocation96_spill] sm:$0xff] }
 0x500   : > { %5443 = vmatpush.msra.mxu2 %v11115_v47  ;;  %5483 = vmatpush.msra.mxu3 %v11116_v4  ;;  %v11124_v47 = vld [vmem:[#allocation64_spill] sm:$0xff] }
 0x501   : > { %5285 = vmatpush.msra.mxu0 %v11113_v53  ;;  %5390 = vmatpush.msra.mxu1 %v11117_v23  ;;  %v11126_v23 = vld [vmem:[#allocation66_spill] sm:$0xff] }
 0x502   : > { %5446 = vmatpush.msra.mxu2 %v11118_v32  ;;  %5485 = vmatpush.msra.mxu3 %v11119_v55  ;;  %v11127_v32 = vld [vmem:[#allocation54_spill] sm:$0xff] }
 0x503   : > { %5287 = vmatpush.msra.mxu0 %v11116_v4  ;;  %5396 = vmatpush.msra.mxu1 %v11120_v57  ;;  %v11128_v57 = vld [vmem:[#allocation56_spill] sm:$0xff] }
 0x504   : > { %5449 = vmatpush.msra.mxu2 %v11121_v39  ;;  %5487 = vmatpush.msra.mxu3 %v11122_v42  ;;  %v11129_v39 = vld [vmem:[#allocation89_spill] sm:$0xff] }
 0x505   : > { %5289 = vmatpush.msra.mxu0 %v11119_v55  ;;  %5402 = vmatpush.msra.mxu1 %v11123_v37  ;;  %v11133_v37 = vld [vmem:[#allocation22_spill] sm:$0xff] }
 0x506   : > { %5452 = vmatpush.msra.mxu2 %v11124_v47  ;;  %5489 = vmatpush.msra.mxu3 %v11125_v31  ;;  %v11135_v47 = vld [vmem:[#allocation23_spill] sm:$0xff] }
 0x507   : > { %5571 = vmatpush.msrb.mxu1 %v11084_v49  ;;  %5291 = vmatpush.msra.mxu0 %v11122_v42  ;;  %v11130_v49 = vld [vmem:[#allocation94_spill] sm:$0xff] }
 0x508   : > { %5455 = vmatpush.msra.mxu2 %v11126_v23  ;;  %5491 = vmatpush.msra.mxu3 %v11127_v32  ;;  %v11136_v23 = vld [vmem:[#allocation107_spill] sm:$0xff] }
 0x509   : > { %5573 = vmatpush.msrb.mxu1 %v11089_v46  ;;  %5293 = vmatpush.msra.mxu0 %v11125_v31  ;;  %v11131_v46 = vld [vmem:[#allocation21_spill] sm:$0xff] }
 0x50a   : > { %5608 = vmatpush.msrb.mxu2 %v10666_v52  ;;  %5493 = vmatpush.msra.mxu3 %v11128_v57 }
 0x50b   : > { %5575 = vmatpush.msrb.mxu1 %v11092_v36  ;;  %5295 = vmatpush.msra.mxu0 %v11127_v32  ;;  %v11132_v36 = vld [vmem:[#allocation100_spill] sm:$0xff] }
 0x50c   : > { %5610 = vmatpush.msrb.mxu2 %v10669_v13  ;;  %5653 = vmatpush.msrb.mxu3 %v11129_v39  ;;  %v11138_v39 = vld [vmem:[#allocation111_spill] sm:$0xff] }
 0x50d   : > { %5577 = vmatpush.msrb.mxu1 %v11095_v6  ;;  %5297 = vmatpush.msra.mxu0 %v11128_v57  ;;  %v11134_v6 = vld [vmem:[#allocation104_spill] sm:$0xff] }
 0x50e   : > { %5612 = vmatpush.msrb.mxu2 %v10672_v9  ;;  %5659 = vmatpush.msrb.mxu3 %v11130_v49  ;;  %v11140_v49 = vld [vmem:[#allocation115_spill] sm:$0xff] }
 0x50f   : > { %5504 = vmatpush.msrb.mxu0 %v11131_v46  ;;  %5579 = vmatpush.msrb.mxu1 %v11098_v20  ;;  %v11137_v20 = vld [vmem:[#allocation25_spill] sm:$0xff]  ;;  %v11142_v46 = vld [vmem:[#allocation119_spill] sm:$0xff] }
 0x510   : > { %5614 = vmatpush.msrb.mxu2 %v10675_v51  ;;  %5665 = vmatpush.msrb.mxu3 %v11132_v36  ;;  %v11144_v36 = vld [vmem:[#allocation122_spill] sm:$0xff] }
 0x511   : > { %5508 = vmatpush.msrb.mxu0 %v11133_v37  ;;  %5581 = vmatpush.msrb.mxu1 %v11101_v7  ;;  %v11139_v7 = vld [vmem:[#allocation28_spill] sm:$0xff]  ;;  %v11146_v37 = vld [vmem:[#allocation126_spill] sm:$0xff] }
 0x512   : > { %5616 = vmatpush.msrb.mxu2 %v10678_v5  ;;  %5671 = vmatpush.msrb.mxu3 %v11134_v6  ;;  %v11148_v6 = vld [vmem:[#allocation129_spill] sm:$0xff] }
 0x513   : > { %5512 = vmatpush.msrb.mxu0 %v11135_v47  ;;  %5583 = vmatpush.msrb.mxu1 %v11104_v48  ;;  %v11141_v48 = vld [vmem:[#allocation30_spill] sm:$0xff]  ;;  %v11150_v47 = vld [vmem:[#allocation132_spill] sm:$0xff] }
 0x514   : > { %5618 = vmatpush.msrb.mxu2 %v10681_v27  ;;  %5677 = vmatpush.msrb.mxu3 %v11136_v23  ;;  %v11152_v23 = vld [vmem:[#allocation135_spill] sm:$0xff] }
 0x515   : > { %5516 = vmatpush.msrb.mxu0 %v11137_v20  ;;  %5585 = vmatpush.msrb.mxu1 %v11107_v10  ;;  %v11143_v10 = vld [vmem:[#allocation36_spill] sm:$0xff]  ;;  %v11154_v20 = vld [vmem:[#allocation138_spill] sm:$0xff] }
 0x516   : > { %5620 = vmatpush.msrb.mxu2 %v10684_v25  ;;  %5683 = vmatpush.msrb.mxu3 %v11138_v39  ;;  %v11156_v39 = vld [vmem:[#allocation139_spill] sm:$0xff] }
 0x517   : > { %5520 = vmatpush.msrb.mxu0 %v11139_v7  ;;  %5587 = vmatpush.msrb.mxu1 %v11110_v33  ;;  %v11145_v33 = vld [vmem:[#allocation40_spill] sm:$0xff]  ;;  %v11157_v7 = vld [vmem:[#allocation69_spill] sm:$0xff] }
 0x518   : > { %5622 = vmatpush.msrb.mxu2 %v10687_v26  ;;  %5689 = vmatpush.msrb.mxu3 %v11140_v49  ;;  %v11159_v49 = vld [vmem:[#allocation73_spill] sm:$0xff] }
 0x519   : > { %5524 = vmatpush.msrb.mxu0 %v11141_v48  ;;  %5589 = vmatpush.msrb.mxu1 %v11113_v53  ;;  %v11147_v53 = vld [vmem:[#allocation46_spill] sm:$0xff]  ;;  %v11160_v48 = vld [vmem:[#allocation76_spill] sm:$0xff] }
 0x51a   : > { %5624 = vmatpush.msrb.mxu2 %v10690_v29  ;;  %5695 = vmatpush.msrb.mxu3 %v11142_v46  ;;  %v3927_v46 = vpop.f32.mrf.mxu0 }
 0x51b   : > { %5528 = vmatpush.msrb.mxu0 %v11143_v10  ;;  %5591 = vmatpush.msrb.mxu1 %v11116_v4  ;;  %v11149_v4 = vld [vmem:[#allocation49_spill] sm:$0xff]  ;;  %v4082_v10 = vpop.f32.mrf.mxu2 }
 0x51c   : > { %5626 = vmatpush.msrb.mxu2 %v10693_v8  ;;  %5701 = vmatpush.msrb.mxu3 %v11144_v36  ;;  %v4121_v36 = vpop.f32.mrf.mxu3 }
 0x51d   : > { %5532 = vmatpush.msrb.mxu0 %v11145_v33  ;;  %5593 = vmatpush.msrb.mxu1 %v11119_v55  ;;  %v11151_v55 = vld [vmem:[#allocation51_spill] sm:$0xff] }
 0x51e   : > { %5628 = vmatpush.msrb.mxu2 %v10696_v43  ;;  %5707 = vmatpush.msrb.mxu3 %v11146_v37 }
 0x51f   : > { %5536 = vmatpush.msrb.mxu0 %v11147_v53  ;;  %5595 = vmatpush.msrb.mxu1 %v11122_v42  ;;  %v11153_v42 = vld [vmem:[#allocation59_spill] sm:$0xff] }
 0x520   : > { %5630 = vmatpush.msrb.mxu2 %v10699_v62  ;;  %5713 = vmatpush.msrb.mxu3 %v11148_v6 }
 0x521   : > { %5540 = vmatpush.msrb.mxu0 %v11149_v4  ;;  %5597 = vmatpush.msrb.mxu1 %v11125_v31  ;;  %v11155_v31 = vld [vmem:[#allocation63_spill] sm:$0xff] }
 0x522   : > { %5632 = vmatpush.msrb.mxu2 %v10702_v40  ;;  %5719 = vmatpush.msrb.mxu3 %v11150_v47  ;;  %v4190_v33 = vpop.f32.mrf.mxu0 }
 0x523   : > { %5544 = vmatpush.msrb.mxu0 %v11151_v55  ;;  %5599 = vmatpush.msrb.mxu1 %v11127_v32  ;;  %v11158_v32 = vld [vmem:[#allocation141_spill] sm:$0xff]  ;;  %v4268_v53 = vpop.f32.mrf.mxu2 }
 0x524   : > { %5634 = vmatpush.msrb.mxu2 %v10705_v44  ;;  %5725 = vmatpush.msrb.mxu3 %v11152_v23  ;;  %v4369_v4 = vpop.f32.mrf.mxu3 }
 0x525   : > { %5548 = vmatpush.msrb.mxu0 %v11153_v42  ;;  %5601 = vmatpush.msrb.mxu1 %v11128_v57  ;;  %v4028_v57 = vpop.f32.mrf.mxu1 }
 0x526   : > { %5636 = vmatpush.msrb.mxu2 %v10708_v59  ;;  %5731 = vmatpush.msrb.mxu3 %v11154_v20  ;;  %v4029_v23 = vadd.f32 %v4028_v57, %v3927_v46 }
 0x527   : > { %5552 = vmatpush.msrb.mxu0 %v11155_v31 }
 0x528   : > { %5638 = vmatpush.msrb.mxu2 %v10711_v58  ;;  %5737 = vmatpush.msrb.mxu3 %v11156_v39  ;;  %v4083_v39 = vadd.f32 %v4082_v10, %v4029_v23 }
 0x529   : > { %5556 = vmatpush.msrb.mxu0 %v11157_v7 }
 0x52a   : > { %5743 = vmatpush.msrb.mxu3 %v11158_v32  ;;  %v4423_v6 = vpop.f32.mrf.mxu0 }
 0x52b   : > { %5560 = vmatpush.msrb.mxu0 %v11159_v49  ;;  %v4531_v55 = vpop.f32.mrf.mxu2  ;;  %v4122_v49 = vadd.f32 %v4121_v36, %v4083_v39 }
 0x52c   : > { %v4568_v20 = vpop.f32.mrf.mxu3 }
 0x52d   : > { %5564 = vmatpush.msrb.mxu0 %v11160_v48  ;;  %v4227_v37 = vpop.f32.mrf.mxu1  ;;  %v4191_v61 = vadd.f32 %v4190_v33, %v4122_v49  ;;  %v11194_v49 = vld [vmem:[#allocation185_spill] sm:$0xff] }
 0x52f   : > { %v4228_v45 = vadd.f32 %v4227_v37, %v4191_v61 }
 0x531   : > { %v4269_v21 = vadd.f32 %v4268_v53, %v4228_v45 }
 0x532   : > { %v4609_v42 = vpop.f32.mrf.mxu0 }
 0x533   : > { %v4764_v32 = vpop.f32.mrf.mxu2  ;;  %v4370_v58 = vadd.f32 %v4369_v4, %v4269_v21 }
 0x534   : > { %v4803_v56 = vpop.f32.mrf.mxu3 }
 0x535   : > { %v4462_v47 = vpop.f32.mrf.mxu1  ;;  %v4424_v57 = vadd.f32 %v4423_v6, %v4370_v58 }
 0x537   : > { %v4463_v23 = vadd.f32 %v4462_v47, %v4424_v57  ;;  %v11190_v47 = vld [vmem:[#allocation145_spill] sm:$0xff]  ;;  %v11197_v57 = vld [vmem:[#allocation190_spill] sm:$0xff] }
 0x539   : > { %v4532_v39 = vadd.f32 %v4531_v55, %v4463_v23  ;;  %v11191_v55 = vld [vmem:[#allocation182_spill] sm:$0xff]  ;;  %v11199_v23 = vld [vmem:[#allocation152_spill] sm:$0xff] }
 0x53d   : > { %v4710_v31 = vpop.f32.mrf.mxu1 }
 0x53e   : > { %v4711_v7 = vadd.f32 %v4710_v31, %v4609_v42 }
 0x540   : > { %v4765_v48 = vadd.f32 %v4764_v32, %v4711_v7  ;;  %v11193_v32 = vld [vmem:[#allocation147_spill] sm:$0xff] }
 0x542   : > { %v4804_v11 = vadd.f32 %v4803_v56, %v4765_v48  ;;  %v11195_v48 = vld [vmem:[#allocation160_spill] sm:$0xff] }
 0x545   : > { %v4909_v28 = vpop.f32.mrf.mxu1 }
 0x548   : > { %v4950_v63 = vpop.f32.mrf.mxu2 }
 0x54a   : > { %v4872_v60 = vpop.f32.mrf.mxu0 }
 0x54b   : > { %v4873_v24 = vadd.f32 %v4872_v60, %v4804_v11  ;;  %v5051_v59 = vpop.f32.mrf.mxu3  ;;  %v4569_v11 = vadd.f32 %v4568_v20, %v4532_v39  ;;  %v11192_v20 = vld [vmem:[#allocation157_spill] sm:$0xff] }
 0x54c   : > { %v11204_v39 = vld [vmem:[#allocation169_spill] sm:$0xff] }
 0x54d   : > { %v4910_v41 = vadd.f32 %v4909_v28, %v4873_v24 }
 0x54f   : > { %v4951_v46 = vadd.f32 %v4950_v63, %v4910_v41 }
 0x551   : > { %v5052_v44 = vadd.f32 %v5051_v59, %v4951_v46  ;;  %v11196_v46 = vld [vmem:[#allocation149_spill] sm:$0xff] }
 0x562   : > { %v5144_v36 = vpop.f32.mrf.mxu1 }
 0x56a   : > { %v5105_v10 = vpop.f32.mrf.mxu0  ;;  %v5213_v33 = vpop.f32.mrf.mxu2 }
 0x56b   : > { %v5106_v42 = vadd.f32 %v5105_v10, %v5052_v44  ;;  %v11198_v10 = vld [vmem:[#allocation164_spill] sm:$0xff] }
 0x56c   : > { %v5250_v56 = vpop.f32.mrf.mxu3 }
 0x56d   : > { %v5145_v31 = vadd.f32 %v5144_v36, %v5106_v42  ;;  %v11200_v42 = vld [vmem:[#allocation194_spill] sm:$0xff]  ;;  %v11201_v36 = vld [vmem:[#allocation168_spill] sm:$0xff] }
 0x56f   : > { %v5214_v7 = vadd.f32 %v5213_v33, %v5145_v31  ;;  %v11202_v31 = vld [vmem:[#allocation155_spill] sm:$0xff]  ;;  %v11203_v33 = vld [vmem:[#allocation198_spill] sm:$0xff] }
 0x571   : > { %v5251_v61 = vadd.f32 %v5250_v56, %v5214_v7  ;;  %v11205_v7 = vld [vmem:[#allocation158_spill] sm:$0xff]  ;;  %v11206_v56 = vld [vmem:[#allocation204_spill] sm:$0xff] }
 0x573   : > { %v5255_v60 = vrot.slane %v5251_v61, 4  ;;  %v11207_v61 = vld [vmem:[#allocation173_spill] sm:$0xff] }
 0x575   : > { %v5256_v45 = vsel %vm1844_vm0, %v4569_v11, %v5255_v60  ;;  %v11208_v11 = vld [vmem:[#allocation161_spill] sm:$0xff] }
 0x576   : > { %v9360_v21 = vsub.f32 %v8923_v30, %v5256_v45  ;;  %v11209_v60 = vld [vmem:[#allocation209_spill] sm:$0xff]  ;;  %v11210_v45 = vld [vmem:[#allocation180_spill] sm:$0xff] }
 0x578   : > { %v5259_v59 = vmul.f32 %v9360_v21, %v9360_v21 }
 0x57a   : > { %5261 = vst [vmem:[#allocation1] ss:$2 sm:$0xff] %v5259_v59  ;;  %v11211_v59 = vld [vmem:[#allocation165_spill] sm:$0xff] }
 0x581   : > { %v5262_v58 = vld.sshfl [vmem:[#allocation1] sm:$0xff pattern:$0x75316420]  ;;  %v5263_v44 = vld.sshfl [vmem:[#allocation1 + $0x8] sm:$0xff pattern:$0x75316420] }
 0x582   : > { %v9364_v41 = vand.u32 4294901760, %v5262_v58  ;;  %v9366_v63 = vand.u32 4294901760, %v5263_v44 }
 0x584   : > { %5404 = vmatmul.f32.vlgmr.msra.gmra.mxu1 %v9364_v41  ;;  %v9370_v28 = vsub.f32 %v5262_v58, %v9364_v41  ;;  %v9373_v24 = vsub.f32 %v5263_v44, %v9366_v63  ;;  %v11212_v58 = vld [vmem:[#allocation213_spill] sm:$0xff]  ;;  %v11213_v44 = vld [vmem:[#allocation184_spill] sm:$0xff] }
 0x585   : > { %5804 = vmatpush.msra.mxu1 %v10666_v52 }
 0x586   : > { %5458 = vmatmul.f32.vlgmr.msra.gmra.mxu2 %v9370_v28  ;;  %v9378_v30 = vand.u32 4294901760, %v9370_v28  ;;  %v9381_v37 = vand.u32 4294901760, %v9373_v24 }
 0x587   : > { %5806 = vmatpush.msra.mxu1 %v10669_v13  ;;  %5845 = vmatpush.msra.mxu2 %v10717_v15 }
 0x588   : > { %5497 = vmatmul.f32.vlgmr.msra.gmra.mxu3 %v9378_v30  ;;  %v5301_v53 = vsub.f32 %v9370_v28, %v9378_v30  ;;  %v5642_v6 = vsub.f32 %v9373_v24, %v9381_v37 }
 0x589   : > { %5808 = vmatpush.msra.mxu1 %v10672_v9  ;;  %5849 = vmatpush.msra.mxu2 %v10718_v38  ;;  %v11171_v38 = vld [vmem:[#allocation113_spill] sm:$0xff] }
 0x58a   : > { %5912 = vmatpush.msra.mxu3 %v10666_v52  ;;  %v9393_v4 = vand.u32 4294901760, %v5301_v53  ;;  %v9401_v15 = vand.u32 4294901760, %v5642_v6  ;;  %v11169_v52 = vld [vmem:[#allocation121_spill] sm:$0xff]  ;;  %v11214_v53 = vld [vmem:[#allocation171_spill] sm:$0xff] }
 0x58b   : > { %5810 = vmatpush.msra.mxu1 %v10675_v51  ;;  %5853 = vmatpush.msra.mxu2 %v10719_v1  ;;  %v11172_v1 = vld [vmem:[#allocation125_spill] sm:$0xff] }
 0x58c   : > { %5914 = vmatpush.msra.mxu3 %v10669_v13  ;;  %5303 = vmatmul.f32.vlgmr.msra.gmra.mxu0 %v9393_v4  ;;  %v11164_v13 = vld [vmem:[#allocation120_spill] sm:$0xff]  ;;  %v11215_v6 = vld [vmem:[#allocation217_spill] sm:$0xff] }
 0x58d   : > { %5603 = vmatmul.f32.vlgmr.msrb.gmra.mxu1 %v9364_v41  ;;  %5751 = vmatpush.msra.mxu0 %v10720_v54  ;;  %v11174_v54 = vld [vmem:[#allocation118_spill] sm:$0xff] }
 0x58e   : > { %5812 = vmatpush.msra.mxu1 %v10678_v5  ;;  %5857 = vmatpush.msra.mxu2 %v10721_v12  ;;  %v11176_v12 = vld [vmem:[#allocation136_spill] sm:$0xff] }
 0x58f   : > { %5916 = vmatpush.msra.mxu3 %v10672_v9  ;;  %5644 = vmatmul.f32.vlgmr.msrb.gmra.mxu2 %v9401_v15  ;;  %v11161_v9 = vld [vmem:[#allocation95_spill] sm:$0xff] }
 0x590   : > { %5754 = vmatpush.msra.mxu0 %v10722_v14  ;;  %5814 = vmatpush.msra.mxu1 %v10681_v27  ;;  %v11178_v14 = vld [vmem:[#allocation146_spill] sm:$0xff] }
 0x591   : > { %5861 = vmatpush.msra.mxu2 %v10723_v0  ;;  %5918 = vmatpush.msra.mxu3 %v10675_v51  ;;  %v11165_v51 = vld [vmem:[#allocation105_spill] sm:$0xff]  ;;  %v11179_v0 = vld [vmem:[#allocation124_spill] sm:$0xff] }
 0x592   : > { %5745 = vmatmul.f32.vlgmr.msrb.gmra.mxu3 %v9366_v63  ;;  %5757 = vmatpush.msra.mxu0 %v10724_v18  ;;  %v11180_v18 = vld [vmem:[#allocation170_spill] sm:$0xff] }
 0x593   : > { %5816 = vmatpush.msra.mxu1 %v10684_v25  ;;  %5865 = vmatpush.msra.mxu2 %v10725_v22  ;;  %v11181_v22 = vld [vmem:[#allocation148_spill] sm:$0xff] }
 0x594   : > { %5920 = vmatpush.msra.mxu3 %v10678_v5  ;;  %5760 = vmatpush.msra.mxu0 %v10726_v19  ;;  %v11166_v5 = vld [vmem:[#allocation117_spill] sm:$0xff]  ;;  %v11182_v19 = vld [vmem:[#allocation143_spill] sm:$0xff] }
 0x595   : > { %5818 = vmatpush.msra.mxu1 %v10687_v26  ;;  %5869 = vmatpush.msra.mxu2 %v10727_v35  ;;  %v11183_v35 = vld [vmem:[#allocation128_spill] sm:$0xff] }
 0x596   : > { %5922 = vmatpush.msra.mxu3 %v10681_v27  ;;  %5566 = vmatmul.f32.vlgmr.msrb.gmra.mxu0 %v9364_v41  ;;  %v11163_v27 = vld [vmem:[#allocation101_spill] sm:$0xff] }
 0x597   : > { %5763 = vmatpush.msra.mxu0 %v10728_v34  ;;  %5820 = vmatpush.msra.mxu1 %v10690_v29  ;;  %v11184_v34 = vld [vmem:[#allocation174_spill] sm:$0xff] }
 0x598   : > { %5873 = vmatpush.msra.mxu2 %v10729_v17  ;;  %5924 = vmatpush.msra.mxu3 %v10684_v25  ;;  %v11162_v25 = vld [vmem:[#allocation116_spill] sm:$0xff]  ;;  %v11185_v17 = vld [vmem:[#allocation151_spill] sm:$0xff] }
 0x599   : > { %5766 = vmatpush.msra.mxu0 %v10942_v2  ;;  %5822 = vmatpush.msra.mxu1 %v10693_v8  ;;  %v11186_v2 = vld [vmem:[#allocation144_spill] sm:$0xff] }
 0x59a   : > { %5877 = vmatpush.msra.mxu2 %v10943_v3  ;;  %5926 = vmatpush.msra.mxu3 %v10687_v26  ;;  %v11168_v26 = vld [vmem:[#allocation109_spill] sm:$0xff]  ;;  %v11187_v3 = vld [vmem:[#allocation131_spill] sm:$0xff] }
 0x59b   : > { %5769 = vmatpush.msra.mxu0 %v10944_v16  ;;  %5824 = vmatpush.msra.mxu1 %v10696_v43  ;;  %v11188_v16 = vld [vmem:[#allocation178_spill] sm:$0xff] }
 0x59c   : > { %5881 = vmatpush.msra.mxu2 %v10945_v50  ;;  %5928 = vmatpush.msra.mxu3 %v10690_v29  ;;  %v11167_v29 = vld [vmem:[#allocation123_spill] sm:$0xff]  ;;  %v11189_v50 = vld [vmem:[#allocation154_spill] sm:$0xff] }
 0x59d   : > { %5772 = vmatpush.msra.mxu0 %v11161_v9  ;;  %5826 = vmatpush.msra.mxu1 %v10699_v62  ;;  %v11216_v9 = vld [vmem:[#allocation188_spill] sm:$0xff] }
 0x59e   : > { %5885 = vmatpush.msra.mxu2 %v11162_v25  ;;  %5930 = vmatpush.msra.mxu3 %v10693_v8  ;;  %v11170_v8 = vld [vmem:[#allocation130_spill] sm:$0xff]  ;;  %v11217_v25 = vld [vmem:[#allocation175_spill] sm:$0xff] }
 0x59f   : > { %5775 = vmatpush.msra.mxu0 %v11163_v27  ;;  %5828 = vmatpush.msra.mxu1 %v10702_v40  ;;  %v11218_v27 = vld [vmem:[#allocation221_spill] sm:$0xff] }
 0x5a0   : > { %5889 = vmatpush.msra.mxu2 %v11164_v13  ;;  %5932 = vmatpush.msra.mxu3 %v10696_v43  ;;  %v11173_v43 = vld [vmem:[#allocation133_spill] sm:$0xff] }
 0x5a1   : > { %5778 = vmatpush.msra.mxu0 %v11165_v51  ;;  %5830 = vmatpush.msra.mxu1 %v11166_v5  ;;  %v11219_v13 = vld [vmem:[#allocation193_spill] sm:$0xff]  ;;  %v11220_v51 = vld [vmem:[#allocation179_spill] sm:$0xff] }
 0x5a2   : > { %5893 = vmatpush.msra.mxu2 %v11167_v29  ;;  %5934 = vmatpush.msra.mxu3 %v10699_v62  ;;  %v11175_v62 = vld [vmem:[#allocation162_spill] sm:$0xff]  ;;  %v11222_v29 = vld [vmem:[#allocation196_spill] sm:$0xff] }
 0x5a3   : > { %5781 = vmatpush.msra.mxu0 %v11168_v26  ;;  %5832 = vmatpush.msra.mxu1 %v11169_v52  ;;  %v11223_v26 = vld [vmem:[#allocation183_spill] sm:$0xff] }
 0x5a4   : > { %5897 = vmatpush.msra.mxu2 %v11170_v8  ;;  %5936 = vmatpush.msra.mxu3 %v10702_v40  ;;  %v11177_v40 = vld [vmem:[#allocation166_spill] sm:$0xff] }
 0x5a5   : > { %5784 = vmatpush.msra.mxu0 %v11171_v38  ;;  %5834 = vmatpush.msra.mxu1 %v11172_v1  ;;  %v11225_v8 = vld [vmem:[#allocation186_spill] sm:$0xff]  ;;  %v11226_v38 = vld [vmem:[#allocation189_spill] sm:$0xff] }
 0x5a6   : > { %5901 = vmatpush.msra.mxu2 %v11173_v43  ;;  %5938 = vmatpush.msra.mxu3 %v11166_v5  ;;  %v11221_v5 = vld [vmem:[#allocation226_spill] sm:$0xff]  ;;  %v11228_v43 = vld [vmem:[#allocation197_spill] sm:$0xff] }
 0x5a7   : > { %5838 = vmatmul.f32.vlgmr.msra.gmra.mxu1 %v9381_v37  ;;  %5787 = vmatpush.msra.mxu0 %v11174_v54  ;;  %v11229_v54 = vld [vmem:[#allocation224_spill] sm:$0xff] }
 0x5a8   : > { %5994 = vmatpush.msrb.mxu1 %v11175_v62  ;;  %5905 = vmatpush.msra.mxu2 %v11176_v12  ;;  %v11231_v62 = vld [vmem:[#allocation229_spill] sm:$0xff]  ;;  %v11233_v12 = vld [vmem:[#allocation150_spill] sm:$0xff] }
 0x5a9   : > { %5940 = vmatpush.msra.mxu3 %v11169_v52  ;;  %5907 = vmatmul.f32.vlgmr.msra.gmra.mxu2 %v9366_v63  ;;  %v11224_v52 = vld [vmem:[#allocation201_spill] sm:$0xff] }
 0x5aa   : > { %6000 = vmatpush.msrb.mxu1 %v11177_v40  ;;  %6092 = vmatpush.msrb.mxu2 %v11178_v14  ;;  %v11234_v40 = vld [vmem:[#allocation233_spill] sm:$0xff]  ;;  %v11235_v14 = vld [vmem:[#allocation208_spill] sm:$0xff] }
 0x5ab   : > { %5790 = vmatpush.msra.mxu0 %v11179_v0  ;;  %5942 = vmatpush.msra.mxu3 %v11172_v1  ;;  %v11227_v1 = vld [vmem:[#allocation191_spill] sm:$0xff]  ;;  %v11236_v0 = vld [vmem:[#allocation153_spill] sm:$0xff] }
 0x5ac   : > { %5944 = vmatmul.f32.vlgmr.msra.gmra.mxu3 %v9366_v63  ;;  %6006 = vmatpush.msrb.mxu1 %v11180_v18  ;;  %v11237_v18 = vld [vmem:[#allocation237_spill] sm:$0xff] }
 0x5ad   : > { %6095 = vmatpush.msrb.mxu2 %v11181_v22  ;;  %6145 = vmatpush.msrb.mxu3 %v11182_v19  ;;  %v11238_v22 = vld [vmem:[#allocation215_spill] sm:$0xff] }
 0x5ae   : > { %5793 = vmatpush.msra.mxu0 %v11183_v35  ;;  %6012 = vmatpush.msrb.mxu1 %v11184_v34  ;;  %v11241_v35 = vld [vmem:[#allocation219_spill] sm:$0xff] }
 0x5af   : > { %6098 = vmatpush.msrb.mxu2 %v11185_v17  ;;  %6147 = vmatpush.msrb.mxu3 %v11186_v2  ;;  %v11242_v34 = vld [vmem:[#allocation159_spill] sm:$0xff]  ;;  %v11243_v17 = vld [vmem:[#allocation245_spill] sm:$0xff] }
 0x5b0   : > { %5796 = vmatpush.msra.mxu0 %v11187_v3  ;;  %6018 = vmatpush.msrb.mxu1 %v11188_v16  ;;  %v11245_v3 = vld [vmem:[#allocation163_spill] sm:$0xff]  ;;  %v11246_v16 = vld [vmem:[#allocation249_spill] sm:$0xff] }
 0x5b1   : > { %5799 = vmatmul.f32.vlgmr.msra.gmra.mxu0 %v9373_v24  ;;  %6101 = vmatpush.msrb.mxu2 %v11189_v50  ;;  %v11247_v50 = vld [vmem:[#allocation228_spill] sm:$0xff] }
 0x5b2   : > { %5949 = vmatpush.msrb.mxu0 %v11182_v19  ;;  %6149 = vmatpush.msrb.mxu3 %v11190_v47 }
 0x5b3   : > { %6024 = vmatpush.msrb.mxu1 %v11191_v55  ;;  %6104 = vmatpush.msrb.mxu2 %v11192_v20  ;;  %v11249_v55 = vld [vmem:[#allocation253_spill] sm:$0xff]  ;;  %v11250_v20 = vld [vmem:[#allocation232_spill] sm:$0xff] }
 0x5b4   : > { %5951 = vmatpush.msrb.mxu0 %v11186_v2  ;;  %6151 = vmatpush.msrb.mxu3 %v11193_v32 }
 0x5b5   : > { %6030 = vmatpush.msrb.mxu1 %v11194_v49  ;;  %6107 = vmatpush.msrb.mxu2 %v11195_v48  ;;  %v11252_v49 = vld [vmem:[#allocation256_spill] sm:$0xff] }
 0x5b6   : > { %5953 = vmatpush.msrb.mxu0 %v11190_v47  ;;  %6153 = vmatpush.msrb.mxu3 %v11196_v46  ;;  %v11253_v48 = vld [vmem:[#allocation236_spill] sm:$0xff] }
 0x5b7   : > { %6036 = vmatpush.msrb.mxu1 %v11197_v57  ;;  %6110 = vmatpush.msrb.mxu2 %v11198_v10  ;;  %v11255_v57 = vld [vmem:[#allocation260_spill] sm:$0xff] }
 0x5b8   : > { %5955 = vmatpush.msrb.mxu0 %v11193_v32  ;;  %6155 = vmatpush.msrb.mxu3 %v11199_v23  ;;  %v11256_v10 = vld [vmem:[#allocation240_spill] sm:$0xff] }
 0x5b9   : > { %6042 = vmatpush.msrb.mxu1 %v11200_v42  ;;  %6113 = vmatpush.msrb.mxu2 %v11201_v36  ;;  %v11258_v42 = vld [vmem:[#allocation262_spill] sm:$0xff]  ;;  %v11259_v36 = vld [vmem:[#allocation244_spill] sm:$0xff] }
 0x5ba   : > { %5957 = vmatpush.msrb.mxu0 %v11196_v46  ;;  %6157 = vmatpush.msrb.mxu3 %v11202_v31 }
 0x5bb   : > { %6048 = vmatpush.msrb.mxu1 %v11203_v33  ;;  %6116 = vmatpush.msrb.mxu2 %v11204_v39  ;;  %v11261_v33 = vld [vmem:[#allocation265_spill] sm:$0xff]  ;;  %v11262_v39 = vld [vmem:[#allocation248_spill] sm:$0xff] }
 0x5bc   : > { %5959 = vmatpush.msrb.mxu0 %v11199_v23  ;;  %6159 = vmatpush.msrb.mxu3 %v11205_v7 }
 0x5bd   : > { %6054 = vmatpush.msrb.mxu1 %v11206_v56  ;;  %6119 = vmatpush.msrb.mxu2 %v11207_v61  ;;  %v11264_v56 = vld [vmem:[#allocation266_spill] sm:$0xff]  ;;  %v11265_v61 = vld [vmem:[#allocation252_spill] sm:$0xff] }
 0x5be   : > { %5961 = vmatpush.msrb.mxu0 %v11202_v31  ;;  %6161 = vmatpush.msrb.mxu3 %v11208_v11 }
 0x5bf   : > { %6060 = vmatpush.msrb.mxu1 %v11209_v60  ;;  %6122 = vmatpush.msrb.mxu2 %v11210_v45  ;;  %v11267_v60 = vld [vmem:[#allocation268_spill] sm:$0xff]  ;;  %v11268_v45 = vld [vmem:[#allocation258_spill] sm:$0xff] }
 0x5c0   : > { %5963 = vmatpush.msrb.mxu0 %v11205_v7  ;;  %6163 = vmatpush.msrb.mxu3 %v11211_v59 }
 0x5c1   : > { %6066 = vmatpush.msrb.mxu1 %v11212_v58  ;;  %6125 = vmatpush.msrb.mxu2 %v11213_v44  ;;  %v11270_v58 = vld [vmem:[#allocation269_spill] sm:$0xff]  ;;  %v11271_v44 = vld [vmem:[#allocation207_spill] sm:$0xff] }
 0x5c2   : > { %5965 = vmatpush.msrb.mxu0 %v11208_v11  ;;  %6165 = vmatpush.msrb.mxu3 %v11214_v53 }
 0x5c3   : > { %6072 = vmatpush.msrb.mxu1 %v11215_v6  ;;  %6128 = vmatpush.msrb.mxu2 %v11216_v9  ;;  %v11273_v6 = vld [vmem:[#allocation270_spill] sm:$0xff] }
 0x5c4   : > { %5967 = vmatpush.msrb.mxu0 %v11211_v59  ;;  %6167 = vmatpush.msrb.mxu3 %v11217_v25  ;;  %v11274_v9 = vld [vmem:[#allocation214_spill] sm:$0xff] }
 0x5c5   : > { %6078 = vmatpush.msrb.mxu1 %v11218_v27  ;;  %6131 = vmatpush.msrb.mxu2 %v11219_v13  ;;  %v11277_v27 = vld [vmem:[#allocation210_spill] sm:$0xff]  ;;  %v11278_v13 = vld [vmem:[#allocation220_spill] sm:$0xff] }
 0x5c6   : > { %5969 = vmatpush.msrb.mxu0 %v11214_v53  ;;  %6169 = vmatpush.msrb.mxu3 %v11220_v51 }
 0x5c7   : > { %6084 = vmatpush.msrb.mxu1 %v11221_v5  ;;  %6134 = vmatpush.msrb.mxu2 %v11222_v29  ;;  %v11280_v5 = vld [vmem:[#allocation225_spill] sm:$0xff]  ;;  %v11281_v29 = vld [vmem:[#allocation206_spill] sm:$0xff] }
 0x5c8   : > { %5971 = vmatpush.msrb.mxu0 %v11217_v25  ;;  %6171 = vmatpush.msrb.mxu3 %v11223_v26 }
 0x5c9   : > { %6086 = vmatmul.f32.vlgmr.msrb.gmra.mxu1 %v9364_v41  ;;  %6137 = vmatpush.msrb.mxu2 %v11224_v52  ;;  %v11283_v52 = vld [vmem:[#allocation211_spill] sm:$0xff] }
 0x5ca   : > { %6253 = vmatpush.msra.mxu1 %v11182_v19  ;;  %5973 = vmatpush.msrb.mxu0 %v11220_v51  ;;  %v11239_v19 = vld [vmem:[#allocation156_spill] sm:$0xff] }
 0x5cb   : > { %6173 = vmatpush.msrb.mxu3 %v11225_v8  ;;  %6140 = vmatmul.f32.vlgmr.msrb.gmra.mxu2 %v9370_v28  ;;  %v11230_v28 = vld [vmem:[#allocation202_spill] sm:$0xff] }
 0x5cc   : > { %6255 = vmatpush.msra.mxu1 %v11186_v2  ;;  %6290 = vmatpush.msra.mxu2 %v11226_v38  ;;  %v11244_v2 = vld [vmem:[#allocation223_spill] sm:$0xff] }
 0x5cd   : > { %5975 = vmatpush.msrb.mxu0 %v11223_v26  ;;  %6175 = vmatpush.msrb.mxu3 %v11227_v1 }
 0x5ce   : > { %6179 = vmatmul.f32.vlgmr.msrb.gmra.mxu3 %v9378_v30  ;;  %6257 = vmatpush.msra.mxu1 %v11190_v47  ;;  %v11232_v30 = vld [vmem:[#allocation203_spill] sm:$0xff] }
 0x5cf   : > { %6292 = vmatpush.msra.mxu2 %v11228_v43  ;;  %6335 = vmatpush.msra.mxu3 %v11229_v54  ;;  %v11248_v47 = vld [vmem:[#allocation167_spill] sm:$0xff]  ;;  %v11289_v54 = vld [vmem:[#allocation222_spill] sm:$0xff] }
 0x5d0   : > { %5977 = vmatpush.msrb.mxu0 %v11225_v8  ;;  %6259 = vmatpush.msra.mxu1 %v11193_v32  ;;  %v11251_v32 = vld [vmem:[#allocation172_spill] sm:$0xff] }
 0x5d1   : > { %6294 = vmatpush.msra.mxu2 %v11230_v28  ;;  %6341 = vmatpush.msra.mxu3 %v11231_v62  ;;  %v11291_v62 = vld [vmem:[#allocation227_spill] sm:$0xff] }
 0x5d2   : > { %5979 = vmatpush.msrb.mxu0 %v11227_v1  ;;  %6261 = vmatpush.msra.mxu1 %v11196_v46  ;;  %v11254_v46 = vld [vmem:[#allocation176_spill] sm:$0xff] }
 0x5d3   : > { %5985 = vmatmul.f32.vlgmr.msrb.gmra.mxu0 %v9393_v4  ;;  %6296 = vmatpush.msra.mxu2 %v11232_v30  ;;  %v11240_v4 = vld [vmem:[#allocation241_spill] sm:$0xff] }
 0x5d4   : > { %6186 = vmatpush.msra.mxu0 %v11233_v12  ;;  %6347 = vmatpush.msra.mxu3 %v11234_v40  ;;  %v11293_v12 = vld [vmem:[#allocation231_spill] sm:$0xff]  ;;  %v11294_v40 = vld [vmem:[#allocation254_spill] sm:$0xff] }
 0x5d5   : > { %6263 = vmatpush.msra.mxu1 %v11199_v23  ;;  %6298 = vmatpush.msra.mxu2 %v11235_v14  ;;  %v11257_v23 = vld [vmem:[#allocation177_spill] sm:$0xff] }
 0x5d6   : > { %6190 = vmatpush.msra.mxu0 %v11236_v0  ;;  %6353 = vmatpush.msra.mxu3 %v11237_v18  ;;  %v11296_v0 = vld [vmem:[#allocation257_spill] sm:$0xff]  ;;  %v11297_v18 = vld [vmem:[#allocation239_spill] sm:$0xff] }
 0x5d7   : > { %6265 = vmatpush.msra.mxu1 %v11202_v31  ;;  %6300 = vmatpush.msra.mxu2 %v11238_v22  ;;  %v11260_v31 = vld [vmem:[#allocation181_spill] sm:$0xff] }
 0x5d8   : > { %6194 = vmatpush.msra.mxu0 %v11239_v19  ;;  %6359 = vmatpush.msra.mxu3 %v11240_v4  ;;  %v11299_v19 = vld [vmem:[#allocation243_spill] sm:$0xff]  ;;  %v11300_v4 = vld [vmem:[#allocation264_spill] sm:$0xff] }
 0x5d9   : > { %6267 = vmatpush.msra.mxu1 %v11205_v7  ;;  %6302 = vmatpush.msra.mxu2 %v11241_v35  ;;  %v11263_v7 = vld [vmem:[#allocation187_spill] sm:$0xff] }
 0x5da   : > { %6198 = vmatpush.msra.mxu0 %v11242_v34  ;;  %6365 = vmatpush.msra.mxu3 %v11243_v17  ;;  %v11302_v34 = vld [vmem:[#allocation267_spill] sm:$0xff] }
 0x5db   : > { %6269 = vmatpush.msra.mxu1 %v11208_v11  ;;  %6304 = vmatpush.msra.mxu2 %v11244_v2  ;;  %v11266_v11 = vld [vmem:[#allocation192_spill] sm:$0xff]  ;;  %v11303_v17 = vld [vmem:[#allocation251_spill] sm:$0xff] }
 0x5dc   : > { %6202 = vmatpush.msra.mxu0 %v11245_v3  ;;  %6371 = vmatpush.msra.mxu3 %v11246_v16  ;;  %v11305_v3 = vld [vmem:[#allocation259_spill] sm:$0xff] }
 0x5dd   : > { %6271 = vmatpush.msra.mxu1 %v11211_v59  ;;  %6306 = vmatpush.msra.mxu2 %v11247_v50  ;;  %v11269_v59 = vld [vmem:[#allocation195_spill] sm:$0xff] }
 0x5de   : > { %6206 = vmatpush.msra.mxu0 %v11248_v47  ;;  %6377 = vmatpush.msra.mxu3 %v11249_v55  ;;  %v11306_v16 = vld [vmem:[#allocation263_spill] sm:$0xff] }
 0x5df   : > { %6273 = vmatpush.msra.mxu1 %v11214_v53  ;;  %6308 = vmatpush.msra.mxu2 %v11250_v20  ;;  %v11272_v53 = vld [vmem:[#allocation200_spill] sm:$0xff] }
 0x5e0   : > { %6210 = vmatpush.msra.mxu0 %v11251_v32  ;;  %6383 = vmatpush.msra.mxu3 %v11252_v49 }
 0x5e1   : > { %6275 = vmatpush.msra.mxu1 %v11217_v25  ;;  %6310 = vmatpush.msra.mxu2 %v11253_v48  ;;  %v11275_v25 = vld [vmem:[#allocation205_spill] sm:$0xff] }
 0x5e2   : > { %6214 = vmatpush.msra.mxu0 %v11254_v46  ;;  %6389 = vmatpush.msra.mxu3 %v11255_v57 }
 0x5e3   : > { %6277 = vmatpush.msra.mxu1 %v11220_v51  ;;  %6312 = vmatpush.msra.mxu2 %v11256_v10  ;;  %v11279_v51 = vld [vmem:[#allocation199_spill] sm:$0xff] }
 0x5e4   : > { %6218 = vmatpush.msra.mxu0 %v11257_v23  ;;  %6395 = vmatpush.msra.mxu3 %v11258_v42 }
 0x5e5   : > { %6279 = vmatpush.msra.mxu1 %v11223_v26  ;;  %6314 = vmatpush.msra.mxu2 %v11259_v36  ;;  %v11282_v26 = vld [vmem:[#allocation230_spill] sm:$0xff] }
 0x5e6   : > { %6222 = vmatpush.msra.mxu0 %v11260_v31  ;;  %6401 = vmatpush.msra.mxu3 %v11261_v33 }
 0x5e7   : > { %6281 = vmatpush.msra.mxu1 %v11225_v8  ;;  %6316 = vmatpush.msra.mxu2 %v11262_v39  ;;  %v11285_v8 = vld [vmem:[#allocation212_spill] sm:$0xff] }
 0x5e8   : > { %6226 = vmatpush.msra.mxu0 %v11263_v7  ;;  %6407 = vmatpush.msra.mxu3 %v11264_v56 }
 0x5e9   : > { %6283 = vmatpush.msra.mxu1 %v11227_v1  ;;  %6318 = vmatpush.msra.mxu2 %v11265_v61  ;;  %v11287_v1 = vld [vmem:[#allocation216_spill] sm:$0xff] }
 0x5ea   : > { %6230 = vmatpush.msra.mxu0 %v11266_v11  ;;  %6413 = vmatpush.msra.mxu3 %v11267_v60 }
 0x5eb   : > { %6285 = vmatmul.f32.vlgmr.msra.gmra.mxu1 %v9364_v41  ;;  %6320 = vmatpush.msra.mxu2 %v11268_v45 }
 0x5ec   : > { %6486 = vmatpush.msrb.mxu1 %v11226_v38  ;;  %6234 = vmatpush.msra.mxu0 %v11269_v59 }
 0x5ed   : > { %6419 = vmatpush.msra.mxu3 %v11270_v58  ;;  %6326 = vmatmul.f32.vlgmr.msra.gmra.mxu2 %v9401_v15  ;;  %v11276_v15 = vld [vmem:[#allocation218_spill] sm:$0xff] }
 0x5ee   : > { %6488 = vmatpush.msrb.mxu1 %v11228_v43  ;;  %6527 = vmatpush.msrb.mxu2 %v11271_v44 }
 0x5ef   : > { %6238 = vmatpush.msra.mxu0 %v11272_v53  ;;  %6425 = vmatpush.msra.mxu3 %v11273_v6 }
 0x5f0   : > { %6427 = vmatmul.f32.vlgmr.msra.gmra.mxu3 %v9366_v63  ;;  %6490 = vmatpush.msrb.mxu1 %v11230_v28 }
 0x5f1   : > { %6531 = vmatpush.msrb.mxu2 %v11274_v9  ;;  %6594 = vmatpush.msrb.mxu3 %v11226_v38  ;;  %v11286_v38 = vld [vmem:[#allocation238_spill] sm:$0xff] }
 0x5f2   : > { %6242 = vmatpush.msra.mxu0 %v11275_v25  ;;  %6492 = vmatpush.msrb.mxu1 %v11232_v30 }
 0x5f3   : > { %6535 = vmatpush.msrb.mxu2 %v11276_v15  ;;  %6596 = vmatpush.msrb.mxu3 %v11228_v43  ;;  %v11288_v43 = vld [vmem:[#allocation242_spill] sm:$0xff] }
 0x5f4   : > { %6246 = vmatpush.msra.mxu0 %v11277_v27  ;;  %6494 = vmatpush.msrb.mxu1 %v11235_v14 }
 0x5f5   : > { %6248 = vmatmul.f32.vlgmr.msra.gmra.mxu0 %v9364_v41  ;;  %6539 = vmatpush.msrb.mxu2 %v11278_v13  ;;  %v11284_v41 = vld [vmem:[#allocation234_spill] sm:$0xff] }
 0x5f6   : > { %6433 = vmatpush.msrb.mxu0 %v11279_v51  ;;  %6598 = vmatpush.msrb.mxu3 %v11230_v28  ;;  %v11290_v28 = vld [vmem:[#allocation246_spill] sm:$0xff] }
 0x5f7   : > { %6496 = vmatpush.msrb.mxu1 %v11238_v22  ;;  %6543 = vmatpush.msrb.mxu2 %v11280_v5 }
 0x5f8   : > { %6436 = vmatpush.msrb.mxu0 %v11281_v29  ;;  %6600 = vmatpush.msrb.mxu3 %v11232_v30  ;;  %v11292_v30 = vld [vmem:[#allocation250_spill] sm:$0xff] }
 0x5f9   : > { %6498 = vmatpush.msrb.mxu1 %v11241_v35  ;;  %6547 = vmatpush.msrb.mxu2 %v11282_v26 }
 0x5fa   : > { %6439 = vmatpush.msrb.mxu0 %v11283_v52  ;;  %6602 = vmatpush.msrb.mxu3 %v11235_v14  ;;  %v11295_v14 = vld [vmem:[#allocation235_spill] sm:$0xff] }
 0x5fb   : > { %6500 = vmatpush.msrb.mxu1 %v11244_v2  ;;  %6551 = vmatpush.msrb.mxu2 %v11284_v41 }
 0x5fc   : > { %6442 = vmatpush.msrb.mxu0 %v11285_v8  ;;  %6604 = vmatpush.msrb.mxu3 %v11238_v22  ;;  %v11298_v22 = vld [vmem:[#allocation261_spill] sm:$0xff] }
 0x5fd   : > { %6502 = vmatpush.msrb.mxu1 %v11247_v50  ;;  %6555 = vmatpush.msrb.mxu2 %v11286_v38 }
 0x5fe   : > { %6445 = vmatpush.msrb.mxu0 %v11287_v1  ;;  %6606 = vmatpush.msrb.mxu3 %v11241_v35  ;;  %v11301_v35 = vld [vmem:[#allocation247_spill] sm:$0xff] }
 0x5ff   : > { %6504 = vmatpush.msrb.mxu1 %v11250_v20  ;;  %6559 = vmatpush.msrb.mxu2 %v11288_v43 }
 0x600   : > { %6448 = vmatpush.msrb.mxu0 %v11289_v54  ;;  %6608 = vmatpush.msrb.mxu3 %v11244_v2  ;;  %v11304_v2 = vld [vmem:[#allocation255_spill] sm:$0xff] }
 0x601   : > { %6506 = vmatpush.msrb.mxu1 %v11253_v48  ;;  %6563 = vmatpush.msrb.mxu2 %v11290_v28 }
 0x602   : > { %6451 = vmatpush.msrb.mxu0 %v11291_v62  ;;  %6610 = vmatpush.msrb.mxu3 %v11247_v50  ;;  %v5405_v50 = vpop.f32.mrf.mxu1 }
 0x603   : > { %6508 = vmatpush.msrb.mxu1 %v11256_v10  ;;  %6567 = vmatpush.msrb.mxu2 %v11292_v30 }
 0x604   : > { %6454 = vmatpush.msrb.mxu0 %v11293_v12  ;;  %6612 = vmatpush.msrb.mxu3 %v11250_v20 }
 0x605   : > { %6510 = vmatpush.msrb.mxu1 %v11259_v36  ;;  %6571 = vmatpush.msrb.mxu2 %v11294_v40 }
 0x606   : > { %6457 = vmatpush.msrb.mxu0 %v11295_v14  ;;  %6614 = vmatpush.msrb.mxu3 %v11253_v48 }
 0x607   : > { %6512 = vmatpush.msrb.mxu1 %v11262_v39  ;;  %6575 = vmatpush.msrb.mxu2 %v11296_v0 }
 0x608   : > { %6460 = vmatpush.msrb.mxu0 %v11297_v18  ;;  %6616 = vmatpush.msrb.mxu3 %v11256_v10 }
 0x609   : > { %6514 = vmatpush.msrb.mxu1 %v11265_v61  ;;  %6579 = vmatpush.msrb.mxu2 %v11298_v22  ;;  %v5459_v55 = vpop.f32.mrf.mxu2 }
 0x60a   : > { %6463 = vmatpush.msrb.mxu0 %v11299_v19  ;;  %6618 = vmatpush.msrb.mxu3 %v11259_v36  ;;  %v5604_v48 = vpop.f32.mrf.mxu1  ;;  %v6656_v19 = vld [vmem:[%s9727_s8] sm:$0x3] }
 0x60b   : > { %6516 = vmatpush.msrb.mxu1 %v11268_v45  ;;  %6583 = vmatpush.msrb.mxu2 %v11300_v4  ;;  %v5498_v49 = vpop.f32.mrf.mxu3 }
 0x60c   : > { %6466 = vmatpush.msrb.mxu0 %v11301_v35  ;;  %6620 = vmatpush.msrb.mxu3 %v11262_v39 }
 0x60d   : > { %6520 = vmatmul.f32.vlgmr.msrb.gmra.mxu1 %v9381_v37  ;;  %6587 = vmatpush.msrb.mxu2 %v11302_v34  ;;  %v5304_v37 = vpop.f32.mrf.mxu0  ;;  %v6664_v34 = vld [vmem:[%s9728_s9] sm:$0x3] }
 0x60e   : > { %6469 = vmatpush.msrb.mxu0 %v11303_v17  ;;  %6622 = vmatpush.msrb.mxu3 %v11265_v61  ;;  %v5305_v47 = vadd.f32 1e-05, %v5304_v37  ;;  %v6659_v17 = vperm.slane %v6656_v19, 1 }
 0x60f   : > { %6589 = vmatmul.f32.vlgmr.msrb.gmra.mxu2 %v9366_v63 }
 0x610   : > { %6472 = vmatpush.msrb.mxu0 %v11304_v2  ;;  %6624 = vmatpush.msrb.mxu3 %v11268_v45  ;;  %v5406_v32 = vadd.f32 %v5405_v50, %v5305_v47  ;;  %v6658_v50 = vperm.slane %v6656_v19, 0  ;;  %v6660_v47 = vrot.slane %v6659_v17, 4 }
 0x611   : > { %6626 = vmatmul.f32.vlgmr.msrb.gmra.mxu3 %v9366_v63 }
 0x612   : > { %6475 = vmatpush.msrb.mxu0 %v11305_v3  ;;  %v5460_v46 = vadd.f32 %v5459_v55, %v5406_v32  ;;  %v5645_v10 = vpop.f32.mrf.mxu2  ;;  %v6667_v3 = vperm.slane %v6664_v34, 1  ;;  %v6666_v32 = vperm.slane %v6664_v34, 0 }
 0x614   : > { %6478 = vmatpush.msrb.mxu0 %v11306_v16  ;;  %v5499_v23 = vadd.f32 %v5498_v49, %v5460_v46  ;;  %v6668_v49 = vrot.slane %v6667_v3, 4 }
 0x615   : > { %6481 = vmatmul.f32.vlgmr.msrb.gmra.mxu0 %v9373_v24  ;;  %v5567_v20 = vpop.f32.mrf.mxu0  ;;  %v5746_v42 = vpop.f32.mrf.mxu3 }
 0x616   : > { %v5568_v36 = vadd.f32 %v5567_v20, %v5499_v23  ;;  %v6669_v23 = vsel %vm1844_vm0, %v6666_v32, %v6668_v49 }
 0x618   : > { %v5605_v39 = vadd.f32 %v5604_v48, %v5568_v36 }
 0x61a   : > { %v5646_v61 = vadd.f32 %v5645_v10, %v5605_v39 }
 0x61c   : > { %v5747_v45 = vadd.f32 %v5746_v42, %v5646_v61 }
 0x624   : > { %v5839_v63 = vpop.f32.mrf.mxu1 }
 0x62c   : > { %v5908_v33 = vpop.f32.mrf.mxu2 }
 0x62e   : > { %v5800_v57 = vpop.f32.mrf.mxu0 }
 0x62f   : > { %v5945_v24 = vpop.f32.mrf.mxu3  ;;  %v5801_v58 = vadd.f32 %v5800_v57, %v5747_v45  ;;  %v6661_v57 = vsel %vm1844_vm0, %v6658_v50, %v6660_v47 }
 0x631   : > { %v5840_v9 = vadd.f32 %v5839_v63, %v5801_v58 }
 0x633   : > { %v5909_v27 = vadd.f32 %v5908_v33, %v5840_v9 }
 0x635   : > { %v5946_v5 = vadd.f32 %v5945_v24, %v5909_v27 }
 0x637   : > { %6871 = vrsqrt.f32 %v5946_v5  ;;  %vm6636_vm13 = vweird.f32 %v5946_v5 }
 0x63d   : > { %v6872_v54 = vpop.eup %6871 }
 0x63e   : > { %v6631_v12 = vmul.f32 %v6872_v54, %v5946_v5  ;;  %vm6637_vm10 = vweird.f32 %v6872_v54 }
 0x63f   : > { %vm6638_vm14 = vmor %vm6636_vm13, %vm6637_vm10 }
 0x640   : > { %v6632_v40 = vmul.f32 %v6872_v54, %v6631_v12 }
 0x642   : > { %v6633_v0 = vmul.f32 0.5, %v6632_v40 }
 0x644   : > { %v6634_v4 = vsub.f32 1.5, %v6633_v0 }
 0x646   : > { %v6087_v56 = vpop.f32.mrf.mxu1  ;;  %v6635_v16 = vmul.f32 %v6872_v54, %v6634_v4 }
 0x648   : > { %v6639_v48 = vsel %vm6638_vm14, %v6872_v54, %v6635_v16 }
 0x64e   : > { %v6141_v60 = vpop.f32.mrf.mxu2 }
 0x650   : > { %v5986_v31 = vpop.f32.mrf.mxu0 }
 0x651   : > { %v5987_v7 = vadd.f32 1e-05, %v5986_v31  ;;  %v6180_v44 = vpop.f32.mrf.mxu3 }
 0x653   : > { %v6088_v11 = vadd.f32 %v6087_v56, %v5987_v7 }
 0x655   : > { %v6142_v59 = vadd.f32 %v6141_v60, %v6088_v11 }
 0x657   : > { %v6181_v6 = vadd.f32 %v6180_v44, %v6142_v59 }
 0x668   : > { %v6286_v15 = vpop.f32.mrf.mxu1 }
 0x670   : > { %v6327_v51 = vpop.f32.mrf.mxu2 }
 0x672   : > { %v6249_v53 = vpop.f32.mrf.mxu0 }
 0x673   : > { %v6250_v25 = vadd.f32 %v6249_v53, %v6181_v6  ;;  %v6428_v26 = vpop.f32.mrf.mxu3 }
 0x675   : > { %v6287_v13 = vadd.f32 %v6286_v15, %v6250_v25 }
 0x677   : > { %v6328_v29 = vadd.f32 %v6327_v51, %v6287_v13 }
 0x679   : > { %v6429_v52 = vadd.f32 %v6428_v26, %v6328_v29 }
 0x68a   : > { %v6521_v38 = vpop.f32.mrf.mxu1 }
 0x692   : > { %v6482_v41 = vpop.f32.mrf.mxu0  ;;  %v6590_v43 = vpop.f32.mrf.mxu2 }
 0x693   : > { %v6483_v8 = vadd.f32 %v6482_v41, %v6429_v52 }
 0x694   : > { %v6627_v62 = vpop.f32.mrf.mxu3 }
 0x695   : > { %v6522_v1 = vadd.f32 %v6521_v38, %v6483_v8 }
 0x697   : > { %v6591_v28 = vadd.f32 %v6590_v43, %v6522_v1 }
 0x699   : > { %v6628_v30 = vadd.f32 %v6627_v62, %v6591_v28 }
 0x69b   : > { %6873 = vrsqrt.f32 %v6628_v30  ;;  %vm6646_vm11 = vweird.f32 %v6628_v30 }
 0x6a1   : > { %v6874_v14 = vpop.eup %6873 }
 0x6a2   : > { %v6641_v18 = vmul.f32 %v6874_v14, %v6628_v30  ;;  %vm6647_vm9 = vweird.f32 %v6874_v14 }
 0x6a3   : > { %vm6648_vm12 = vmor %vm6646_vm11, %vm6647_vm9 }
 0x6a4   : > { %v6642_v22 = vmul.f32 %v6874_v14, %v6641_v18 }
 0x6a6   : > { %v6643_v35 = vmul.f32 0.5, %v6642_v22 }
 0x6a8   : > { %v6644_v2 = vsub.f32 1.5, %v6643_v35 }
 0x6aa   : > { %v6645_v37 = vmul.f32 %v6874_v14, %v6644_v2 }
 0x6ac   : > { %v6649_v55 = vsel %vm6648_vm12, %v6874_v14, %v6645_v37 }
 0x6ad   : > { %v6652_v20 = vrot.slane %v6649_v55, 4 }
 0x6af   : > { %v6653_v46 = vsel %vm1844_vm0, %v6639_v48, %v6652_v20 }
 0x6b0   : > { %v6655_v10 = vmul.f32 %v6653_v46, %v9360_v21 }
 0x6b2   : > { %v6663_v42 = vmul.f32 %v6661_v57, %v6655_v10 }
 0x6b4   : > { %v6671_v63 = vadd.f32 %v6669_v23, %v6663_v42 }
 0x6b6   : > { %6672 = vst [vmem:[%s394_s16] sm:$0xff] %v6671_v63 }
 0x6b7   : > { %6932 = shalt.err (!%p6929_p9)
}
 0x6b8   : > { %6801 = dma.vmem_to_hbm [thread:$0]  (%p7088_p4), %s6690_s11, 128, %s6692_s12, %s6674_s20  }
 0x6b9 PF: > { %p6813_p10 = scmp.ge.s32.totalorder %s6987_s18, 2  ;;  %s6703_s22 = sand.u32 1, %s6967_s13  }
 0x6ba   : > { %s6704_s16 = scalar_lea.sflag [#allocation4], %s6703_s22 }
 0x6bb   : > { %p6808_p11 = pnand %p6813_p10, %p7095_p8 }
 0x6bd   : > { %p6809_p12 = pneg %p6808_p11 }
 0x6bf   : > { %6962 = dma.done.wait (%p6809_p12), %s6704_s16, 128  }
 0x6c0   : > { %6964 = vsyncadd (%p6809_p12), %s6704_s16, 4294967168  ;;  %s24_s18 = sadd.s32 1, %s6987_s18   ;;  %s11307_s13 = smov %s6971_s14 }
 0x6c1   : > { %p21_p13 = scmp.ge.s32.totalorder %s24_s18, 4   ;;  %s11308_s14 = smov %s6975_s15 }
 0x6c2   : > { %s11309_s15 = smov %s7101_s26  ;;  %s11310_s16 = smov %s6983_s17 }
 0x6c3   : > { %s11311_s17 = smov %s11313_s21  ;;  %23 = sbr.rel (!%p21_p13) target bundleno = 7 (0x7), region = 100 }
 0x6c8   :  { %6710 = vsyncpa [#allocation3], 1 }
 0x6c9   :  { %6712 = vsyncpa [#allocation3 + $0x1], 1 }
 0x6ca   :  { %6713 = vsyncpa [#allocation4], 1 }
 0x6cb   :  { %6715 = vsyncpa [#allocation4 + $0x1], 1 }

</bundles_post_ra>
